<compile_context>
chip_gen: v5e
topology: v5e:2x2
jax: 0.10.0
libtpu: 0.0.40
codegen_flags: <defaults>
</compile_context>

<pallas_src>
import functools
import math

import jax
import jax.numpy as jnp
from jax.experimental import pallas as pl

# ----------------------------- model config (small) -----------------------------
B = 2            # batch
IMG_C = 3        # input image channels
IMG = 32         # input spatial size (chosen so T=16 image tokens: sublane-aligned)
VAE_C = 16       # VAE hidden channels
LAT_C = 4        # latent channels (VAE conv_out emits 2*LAT_C = mean|logvar)
PATCH = 2        # transformer patch size
D = 64           # transformer inner dim
HEADS = 4        # attention heads
HEAD_DIM = D // HEADS
S_CTX = 8        # encoder_hidden_states (class embedding) sequence length
JOINT_DIM = 32   # joint_attention_dim of the context tokens
POOLED_DIM = 48  # pooled_projection dim
TIME_SIN = 32    # sinusoidal timestep embedding dim
N_BLOCKS = 2     # joint transformer blocks
FF_MULT = 4
LN_EPS = 1e-6
T_IMG = (IMG // 4 // PATCH) ** 2          # image tokens after VAE (/4) and patching
P_OUT = PATCH * PATCH * LAT_C             # proj_out features per token


# ============================ the single fused kernel ============================
def _sd3_fused_kernel(
    # activations
    patches_ref, pos_ref, ctx_ref, tsin_ref, pooled_ref,
    # embedders
    patch_w_ref, patch_b_ref, ctx_w_ref, ctx_b_ref,
    tw1_ref, tb1_ref, tw2_ref, tb2_ref,
    pw1_ref, pb1_ref, pw2_ref, pb2_ref,
    # per-block weights, stacked along a leading (n_blocks) axis
    ada_w_ref, ada_b_ref, qkvh_w_ref, qkvh_b_ref, qkvc_w_ref, qkvc_b_ref,
    oh_w_ref, oh_b_ref, oc_w_ref, oc_b_ref,
    ffh_w1_ref, ffh_b1_ref, ffh_w2_ref, ffh_b2_ref,
    ffc_w1_ref, ffc_b1_ref, ffc_w2_ref, ffc_b2_ref,
    # final layer
    nout_w_ref, nout_b_ref, pout_w_ref, pout_b_ref,
    # output
    out_ref,
    *, n_blocks, heads, eps, Bn, T, S,
):
    f32 = jnp.float32
    bf16 = jnp.bfloat16
    Dm = pos_ref.shape[-1]
    hd = Dm // heads
    TS = T + S
    inv_sqrt = 1.0 / math.sqrt(hd)

    def mm(x2d, w, b):
        """x2d @ w + b; bf16 MXU operands (w pre-cast to bf16), f32 accumulation."""
        return jnp.dot(x2d.astype(bf16), w, preferred_element_type=f32) + b

    def mm3(x3d, w, b):
        """(B, M, K) @ (K, N) via a single 2-D matmul (leading dims merged: free reshape)."""
        Bx, Mx, Kx = x3d.shape
        return mm(x3d.reshape(Bx * Mx, Kx), w, b).reshape(Bx, Mx, -1)

    def ln_mod(x, scale, shift):
        """LayerNorm (no affine, f32 stats) then * (1 + scale) + shift; scale/shift (B,1,D)."""
        mu = jnp.mean(x, axis=-1, keepdims=True)
        var = jnp.mean(jnp.square(x - mu), axis=-1, keepdims=True)
        xn = (x - mu) * jax.lax.rsqrt(var + eps)
        return xn * (1.0 + scale) + shift

    def joint_attention(hn, cn, wqkv_h, bqkv_h, wqkv_c, bqkv_c):
        """Head-batched joint attention over [image; context] tokens for the whole batch."""
        qkv = jnp.concatenate([mm3(hn, wqkv_h, bqkv_h),
                               mm3(cn, wqkv_c, bqkv_c)], axis=1)        # (B, TS, 3D)
        q = qkv[..., :Dm]
        k = qkv[..., Dm:2 * Dm]
        v = qkv[..., 2 * Dm:]

        def split_heads(x):       # (B, TS, D) -> (H*B, TS, hd), head-major batch
            return jnp.concatenate([x[..., i * hd:(i + 1) * hd] for i in range(heads)],
                                   axis=0)

        qh, kh, vh = split_heads(q), split_heads(k), split_heads(v)
        # One batched dot_general over all B*H heads (review: no per-head Python-loop dots).
        # TODO(synk): at real SD3 sizes replace with a KV-tiled flash-attention loop.
        s = jnp.einsum("bqd,bkd->bqk", qh.astype(bf16), kh.astype(bf16),
                       preferred_element_type=f32) * inv_sqrt            # (H*B, TS, TS)
        s = s - jnp.max(s, axis=-1, keepdims=True)
        p = jnp.exp(s)
        p = p * pl.reciprocal(jnp.sum(p, axis=-1, keepdims=True), approx=True)
        o = jnp.einsum("bqk,bkd->bqd", p.astype(bf16), vh.astype(bf16),
                       preferred_element_type=f32)                       # (H*B, TS, hd)
        o_hb = o.reshape(heads, Bn, TS, hd)                              # free split
        return jnp.concatenate([o_hb[i] for i in range(heads)], axis=-1)  # (B, TS, D)

    # --- combined timestep + pooled-text embedding -> silu(temb): (B, D), computed once ---
    t = jax.nn.silu(mm(tsin_ref[...], tw1_ref[...], tb1_ref[...]))
    t = mm(t, tw2_ref[...], tb2_ref[...])
    pe = jax.nn.silu(mm(pooled_ref[...], pw1_ref[...], pb1_ref[...]))
    pe = mm(pe, pw2_ref[...], pb2_ref[...])
    ts = jax.nn.silu(t + pe)                                             # (B, D) f32

    # --- fused (VAE 1x1 conv_out -> .mode() -> patchify -> patch_embed) + pos_embed ---
    h = mm(patches_ref[...], patch_w_ref[...], patch_b_ref[...]).reshape(Bn, T, Dm)
    h = h + pos_ref[...][None]                                           # (B, T, D)

    # --- context embedder ---
    c = mm(ctx_ref[...], ctx_w_ref[...], ctx_b_ref[...]).reshape(Bn, S, Dm)

    # --- N MMDiT joint blocks, unrolled, all weights resident in VMEM ---
    for blk in range(n_blocks):
        # AdaLN for both streams in one lane-dense matmul: (B, 12D).
        # (64-lane chunk slices are sub-vreg only because D=64; at D=1536 they are aligned.)
        mod = mm(ts, ada_w_ref[blk], ada_b_ref[blk])
        m = [mod[:, i * Dm:(i + 1) * Dm][:, None, :] for i in range(12)]  # each (B, 1, D)
        sh_msa, sc_msa, g_msa, sh_mlp, sc_mlp, g_mlp = m[:6]
        csh_msa, csc_msa, cg_msa, csh_mlp, csc_mlp, cg_mlp = m[6:]

        # joint attention: LN+mod prologue, fused QKV, out-proj + gate + residual epilogue
        hn = ln_mod(h, sc_msa, sh_msa)
        cn = ln_mod(c, csc_msa, csh_msa)
        attn = joint_attention(hn, cn, qkvh_w_ref[blk], qkvh_b_ref[blk],
                               qkvc_w_ref[blk], qkvc_b_ref[blk])
        h = h + g_msa * mm3(attn[:, :T], oh_w_ref[blk], oh_b_ref[blk])
        c = c + cg_msa * mm3(attn[:, T:], oc_w_ref[blk], oc_b_ref[blk])

        # feed-forward (LN+mod prologue, gate+residual epilogue), both streams
        hn2 = ln_mod(h, sc_mlp, sh_mlp)
        ffh = mm3(jax.nn.gelu(mm3(hn2, ffh_w1_ref[blk], ffh_b1_ref[blk]), approximate=True),
                  ffh_w2_ref[blk], ffh_b2_ref[blk])
        h = h + g_mlp * ffh

        cn2 = ln_mod(c, csc_mlp, csh_mlp)
        ffc = mm3(jax.nn.gelu(mm3(cn2, ffc_w1_ref[blk], ffc_b1_ref[blk]), approximate=True),
                  ffc_w2_ref[blk], ffc_b2_ref[blk])
        c = c + cg_mlp * ffc

    # --- final AdaLayerNormContinuous (scale/shift from silu(temb)) + proj_out ---
    emb = mm(ts, nout_w_ref[...], nout_b_ref[...])                       # (B, 2D)
    scale = emb[:, :Dm][:, None, :]
    shift = emb[:, Dm:][:, None, :]
    hn = ln_mod(h, scale, shift)
    out = mm3(hn, pout_w_ref[...], pout_b_ref[...])                      # (B, T, P_OUT)
    out_ref[...] = out.astype(out_ref.dtype)                             # single ~2 KB store


# ================================ glue (plain JAX) ===============================
def _conv_silu(x, w_oihw, b, stride, padding):
    """Tiny 3x3 conv left to XLA (per perf review); NHWC activations, OIHW weights."""
    w = jnp.transpose(w_oihw, (2, 3, 1, 0))                 # OIHW -> HWIO
    y = jax.lax.conv_general_dilated(
        x, w, window_strides=(stride, stride),
        padding=[(padding, padding), (padding, padding)],
        dimension_numbers=("NHWC", "HWIO", "NHWC"))
    return jax.nn.silu(y + b)


def vae_encode_features(x_nchw, p):
    """Synthetic small VAE encoder backbone (NHWC).  The 1x1 conv_out / .mode() is fused into
    the Pallas patch-embed matmul downstream (conv_1x1_as_mm)."""
    # TODO(synk): real SD3 VAE is a pretrained GroupNorm ResNet/attention stack.
    x = jnp.transpose(x_nchw, (0, 2, 3, 1))
    h = _conv_silu(x, p["vae_conv_in_w"], p["vae_conv_in_b"], 1, 1)
    h = _conv_silu(h, p["vae_down1_w"], p["vae_down1_b"], 2, 1)
    h = _conv_silu(h, p["vae_down2_w"], p["vae_down2_b"], 2, 1)
    return h                                                # (B, IMG//4, IMG//4, VAE_C)


def timestep_embedding(t, dim):
    half = dim // 2
    freqs = jnp.exp(-jnp.log(10000.0) * jnp.arange(half, dtype=jnp.float32) / half)
    args = t.astype(jnp.float32)[:, None] * freqs[None, :]
    return jnp.concatenate([jnp.cos(args), jnp.sin(args)], axis=-1)     # flip_sin_to_cos


# ================================ forward pieces =================================
def sd3_transformer(vae_feats, ctx, t, pooled, prep):
    Bn = vae_feats.shape[0]
    hp = wp = (IMG // 4) // PATCH
    T = hp * wp

    # patchify (tiny XLA transpose/reshape; the patch-embed matmul itself is in the kernel)
    patches = vae_feats.reshape(Bn, hp, PATCH, wp, PATCH, VAE_C)
    patches = patches.transpose(0, 1, 3, 5, 2, 4).reshape(Bn * T, VAE_C * PATCH * PATCH)

    t_sin = timestep_embedding(t, TIME_SIN)
    ctx2d = ctx.reshape(Bn * S_CTX, JOINT_DIM)

    kernel = functools.partial(_sd3_fused_kernel, n_blocks=N_BLOCKS, heads=HEADS,
                               eps=LN_EPS, Bn=Bn, T=T, S=S_CTX)
    # One fused pallas_call for the whole transformer: no grid, everything whole-in-VMEM.
    out = pl.pallas_call(
        kernel,
        out_shape=jax.ShapeDtypeStruct((Bn, T, P_OUT), jnp.float32),
    )(patches, prep["pos"], ctx2d, t_sin, pooled, *prep["flat"])

    # unpatchify (tiny XLA reshapes on a 2 KB tensor)
    out = out.reshape(Bn, hp, wp, PATCH, PATCH, LAT_C)
    out = jnp.transpose(out, (0, 5, 1, 3, 2, 4))            # nhwpqc -> nchpwq
    sample = out.reshape(Bn, LAT_C, hp * PATCH, wp * PATCH)
    return (sample,)                                        # return_dict=False


def sdv3_encoder_forward(x, class_embedding, pooled_projection, prep):
    feats = vae_encode_features(x, prep)                    # VAE .mode() fused downstream
    t = jnp.ones((x.shape[0],), dtype=jnp.int32)            # torch.ones(B).long()
    return sd3_transformer(feats, class_embedding, t, pooled_projection, prep)


# ================================ parameter init =================================
def init_params(key):
    keys = iter(jax.random.split(key, 128))

    def nrm(shape, s=0.02):
        return s * jax.random.normal(next(keys), shape, dtype=jnp.float32)

    def zeros(shape):
        return jnp.zeros(shape, dtype=jnp.float32)

    p = {
        "vae_conv_in_w": nrm((VAE_C, IMG_C, 3, 3)), "vae_conv_in_b": zeros((VAE_C,)),
        "vae_down1_w": nrm((VAE_C, VAE_C, 3, 3)), "vae_down1_b": zeros((VAE_C,)),
        "vae_down2_w": nrm((VAE_C, VAE_C, 3, 3)), "vae_down2_b": zeros((VAE_C,)),
        "vae_conv_out_w": nrm((2 * LAT_C, VAE_C, 1, 1)), "vae_conv_out_b": zeros((2 * LAT_C,)),
        "patch_w": nrm((LAT_C * PATCH * PATCH, D)), "patch_b": zeros((1, D)),
        "pos_embed": nrm((T_IMG, D)),
        "time_w1": nrm((TIME_SIN, D)), "time_b1": zeros((1, D)),
        "time_w2": nrm((D, D)), "time_b2": zeros((1, D)),
        "pool_w1": nrm((POOLED_DIM, D)), "pool_b1": zeros((1, D)),
        "pool_w2": nrm((D, D)), "pool_b2": zeros((1, D)),
        "ctx_w": nrm((JOINT_DIM, D)), "ctx_b": zeros((1, D)),
        "norm_out_w": nrm((D, 2 * D)), "norm_out_b": zeros((1, 2 * D)),
        "proj_out_w": nrm((D, P_OUT)), "proj_out_b": zeros((1, P_OUT)),
    }
    blocks = []
    for _ in range(N_BLOCKS):
        blocks.append({
            # adaln for both streams fused: first 6D chunks -> image stream, last 6D -> context
            "ada_w": nrm((D, 12 * D)), "ada_b": zeros((1, 12 * D)),
            # q|k|v fused per stream (lane-dense 3D outputs)
            "qkv_h_w": nrm((D, 3 * D)), "qkv_h_b": zeros((1, 3 * D)),
            "qkv_c_w": nrm((D, 3 * D)), "qkv_c_b": zeros((1, 3 * D)),
            "o_h_w": nrm((D, D)), "o_h_b": zeros((1, D)),
            "o_c_w": nrm((D, D)), "o_c_b": zeros((1, D)),
            "ff_h_w1": nrm((D, FF_MULT * D)), "ff_h_b1": zeros((1, FF_MULT * D)),
            "ff_h_w2": nrm((FF_MULT * D, D)), "ff_h_b2": zeros((1, D)),
            "ff_c_w1": nrm((D, FF_MULT * D)), "ff_c_b1": zeros((1, FF_MULT * D)),
            "ff_c_w2": nrm((FF_MULT * D, D)), "ff_c_b2": zeros((1, D)),
        })
    p["blocks"] = blocks
    return p


def prepare_params(p):
    """One-time weight preparation (outside the jitted forward):
       * compose VAE 1x1 conv_out (mean half only, .mode()) with the patch embedding,
       * stack the per-block weights along a leading axis,
       * pre-cast all weight matrices to bf16 (biases stay f32)."""
    bf16 = jnp.bfloat16
    f32 = jnp.float32

    w_out = p["vae_conv_out_w"][:LAT_C, :, 0, 0]             # (LAT_C, VAE_C), mean half only
    b_out = p["vae_conv_out_b"][:LAT_C]
    wp_r = p["patch_w"].reshape(LAT_C, PATCH, PATCH, D)      # [c, dy, dx, d]
    w_comp = jnp.einsum("ck,cijd->kijd", w_out, wp_r).reshape(VAE_C * PATCH * PATCH, D)
    b_comp = p["patch_b"] + jnp.einsum("c,cijd->d", b_out, wp_r)[None, :]

    def stack(name, dt):
        return jnp.stack([blk[name] for blk in p["blocks"]]).astype(dt)

    flat = (
        w_comp.astype(bf16), b_comp.astype(f32),
        p["ctx_w"].astype(bf16), p["ctx_b"],
        p["time_w1"].astype(bf16), p["time_b1"], p["time_w2"].astype(bf16), p["time_b2"],
        p["pool_w1"].astype(bf16), p["pool_b1"], p["pool_w2"].astype(bf16), p["pool_b2"],
        stack("ada_w", bf16), stack("ada_b", f32),
        stack("qkv_h_w", bf16), stack("qkv_h_b", f32),
        stack("qkv_c_w", bf16), stack("qkv_c_b", f32),
        stack("o_h_w", bf16), stack("o_h_b", f32),
        stack("o_c_w", bf16), stack("o_c_b", f32),
        stack("ff_h_w1", bf16), stack("ff_h_b1", f32),
        stack("ff_h_w2", bf16), stack("ff_h_b2", f32),
        stack("ff_c_w1", bf16), stack("ff_c_b1", f32),
        stack("ff_c_w2", bf16), stack("ff_c_b2", f32),
        p["norm_out_w"].astype(bf16), p["norm_out_b"],
        p["proj_out_w"].astype(bf16), p["proj_out_b"],
    )
    return {
        "vae_conv_in_w": p["vae_conv_in_w"], "vae_conv_in_b": p["vae_conv_in_b"],
        "vae_down1_w": p["vae_down1_w"], "vae_down1_b": p["vae_down1_b"],
        "vae_down2_w": p["vae_down2_w"], "vae_down2_b": p["vae_down2_b"],
        "pos": p["pos_embed"],
        "flat": flat,
    }


# ==================================== main =======================================
if __name__ == "__main__":
    key = jax.random.PRNGKey(0)
    k_param, k_x, k_ctx, k_pool = jax.random.split(key, 4)

    params = init_params(k_param)
    prep = prepare_params(params)     # bf16 pre-cast / composition / stacking, done once

    x = jax.random.normal(k_x, (B, IMG_C, IMG, IMG), dtype=jnp.float32)
    class_embedding = 0.02 * jax.random.normal(k_ctx, (B, S_CTX, JOINT_DIM), dtype=jnp.float32)
    pooled_projection = 0.02 * jax.random.normal(k_pool, (B, POOLED_DIM), dtype=jnp.float32)

    fwd = jax.jit(sdv3_encoder_forward)
    feats = fwd(x, class_embedding, pooled_projection, prep)
    jax.block_until_ready(feats)
    assert feats[0].shape == (B, LAT_C, IMG // 4, IMG // 4)
    print("KERNEL_OK")
</pallas_src>

<mosaic_0001>
module attributes {stable_mosaic.version = 11 : i64} {
  func.func @_sd3_fused_kernel(%arg0: memref<32x64xf32, #tpu.memory_space<vmem>>, %arg1: memref<16x64xf32, #tpu.memory_space<vmem>>, %arg2: memref<16x32xf32, #tpu.memory_space<vmem>>, %arg3: memref<2x32xf32, #tpu.memory_space<vmem>>, %arg4: memref<2x48xf32, #tpu.memory_space<vmem>>, %arg5: memref<64x64xbf16, #tpu.memory_space<vmem>>, %arg6: memref<1x64xf32, #tpu.memory_space<vmem>>, %arg7: memref<32x64xbf16, #tpu.memory_space<vmem>>, %arg8: memref<1x64xf32, #tpu.memory_space<vmem>>, %arg9: memref<32x64xbf16, #tpu.memory_space<vmem>>, %arg10: memref<1x64xf32, #tpu.memory_space<vmem>>, %arg11: memref<64x64xbf16, #tpu.memory_space<vmem>>, %arg12: memref<1x64xf32, #tpu.memory_space<vmem>>, %arg13: memref<48x64xbf16, #tpu.memory_space<vmem>>, %arg14: memref<1x64xf32, #tpu.memory_space<vmem>>, %arg15: memref<64x64xbf16, #tpu.memory_space<vmem>>, %arg16: memref<1x64xf32, #tpu.memory_space<vmem>>, %arg17: memref<2x64x768xbf16, #tpu.memory_space<vmem>>, %arg18: memref<2x1x768xf32, #tpu.memory_space<vmem>>, %arg19: memref<2x64x192xbf16, #tpu.memory_space<vmem>>, %arg20: memref<2x1x192xf32, #tpu.memory_space<vmem>>, %arg21: memref<2x64x192xbf16, #tpu.memory_space<vmem>>, %arg22: memref<2x1x192xf32, #tpu.memory_space<vmem>>, %arg23: memref<2x64x64xbf16, #tpu.memory_space<vmem>>, %arg24: memref<2x1x64xf32, #tpu.memory_space<vmem>>, %arg25: memref<2x64x64xbf16, #tpu.memory_space<vmem>>, %arg26: memref<2x1x64xf32, #tpu.memory_space<vmem>>, %arg27: memref<2x64x256xbf16, #tpu.memory_space<vmem>>, %arg28: memref<2x1x256xf32, #tpu.memory_space<vmem>>, %arg29: memref<2x256x64xbf16, #tpu.memory_space<vmem>>, %arg30: memref<2x1x64xf32, #tpu.memory_space<vmem>>, %arg31: memref<2x64x256xbf16, #tpu.memory_space<vmem>>, %arg32: memref<2x1x256xf32, #tpu.memory_space<vmem>>, %arg33: memref<2x256x64xbf16, #tpu.memory_space<vmem>>, %arg34: memref<2x1x64xf32, #tpu.memory_space<vmem>>, %arg35: memref<64x128xbf16, #tpu.memory_space<vmem>>, %arg36: memref<1x128xf32, #tpu.memory_space<vmem>>, %arg37: memref<64x16xbf16, #tpu.memory_space<vmem>>, %arg38: memref<1x16xf32, #tpu.memory_space<vmem>>, %arg39: memref<2x16x16xf32, #tpu.memory_space<vmem>>) attributes {dimension_semantics = [], scalar_prefetch = 0 : i64, scratch_operands = 0 : i64, tpu.core_type = #tpu.core_type<tc>} {
    %c0 = arith.constant 0 : index
    %c0_0 = arith.constant 0 : index
    %0 = vector.load %arg3[%c0, %c0_0] : memref<2x32xf32, #tpu.memory_space<vmem>>, vector<2x32xf32>
    %c0_1 = arith.constant 0 : index
    %c0_2 = arith.constant 0 : index
    %1 = vector.load %arg9[%c0_1, %c0_2] : memref<32x64xbf16, #tpu.memory_space<vmem>>, vector<32x64xbf16>
    %c0_3 = arith.constant 0 : index
    %c0_4 = arith.constant 0 : index
    %2 = vector.load %arg10[%c0_3, %c0_4] : memref<1x64xf32, #tpu.memory_space<vmem>>, vector<1x64xf32>
    %3 = arith.truncf %0 : vector<2x32xf32> to vector<2x32xbf16>
    %cst = arith.constant dense<0.000000e+00> : vector<2x64xf32>
    %4 = tpu.matmul %3, %1, %cst {dimension_numbers = #tpu.dot_dimension_numbers<[1], [0], [0], [1], [0, 0, 1, 1], [], []>} : vector<2x32xbf16>, vector<32x64xbf16>, vector<2x64xf32> -> vector<2x64xf32>
    %5 = vector.broadcast %2 : vector<1x64xf32> to vector<2x64xf32>
    %6 = arith.addf %4, %5 : vector<2x64xf32>
    %7 = arith.negf %6 : vector<2x64xf32>
    %8 = math.exp %7 : vector<2x64xf32>
    %cst_5 = arith.constant 1.000000e+00 : f32
    %9 = vector.broadcast %cst_5 : f32 to vector<2x64xf32>
    %10 = arith.addf %9, %8 : vector<2x64xf32>
    %11 = arith.divf %9, %10 : vector<2x64xf32>
    %12 = arith.mulf %6, %11 : vector<2x64xf32>
    %c0_6 = arith.constant 0 : index
    %c0_7 = arith.constant 0 : index
    %13 = vector.load %arg11[%c0_6, %c0_7] : memref<64x64xbf16, #tpu.memory_space<vmem>>, vector<64x64xbf16>
    %c0_8 = arith.constant 0 : index
    %c0_9 = arith.constant 0 : index
    %14 = vector.load %arg12[%c0_8, %c0_9] : memref<1x64xf32, #tpu.memory_space<vmem>>, vector<1x64xf32>
    %15 = arith.truncf %12 : vector<2x64xf32> to vector<2x64xbf16>
    %cst_10 = arith.constant dense<0.000000e+00> : vector<2x64xf32>
    %16 = tpu.matmul %15, %13, %cst_10 {dimension_numbers = #tpu.dot_dimension_numbers<[1], [0], [0], [1], [0, 0, 1, 1], [], []>} : vector<2x64xbf16>, vector<64x64xbf16>, vector<2x64xf32> -> vector<2x64xf32>
    %17 = vector.broadcast %14 : vector<1x64xf32> to vector<2x64xf32>
    %18 = arith.addf %16, %17 : vector<2x64xf32>
    %c0_11 = arith.constant 0 : index
    %c0_12 = arith.constant 0 : index
    %19 = vector.load %arg4[%c0_11, %c0_12] : memref<2x48xf32, #tpu.memory_space<vmem>>, vector<2x48xf32>
    %c0_13 = arith.constant 0 : index
    %c0_14 = arith.constant 0 : index
    %20 = vector.load %arg13[%c0_13, %c0_14] : memref<48x64xbf16, #tpu.memory_space<vmem>>, vector<48x64xbf16>
    %c0_15 = arith.constant 0 : index
    %c0_16 = arith.constant 0 : index
    %21 = vector.load %arg14[%c0_15, %c0_16] : memref<1x64xf32, #tpu.memory_space<vmem>>, vector<1x64xf32>
    %22 = arith.truncf %19 : vector<2x48xf32> to vector<2x48xbf16>
    %cst_17 = arith.constant dense<0.000000e+00> : vector<2x64xf32>
    %23 = tpu.matmul %22, %20, %cst_17 {dimension_numbers = #tpu.dot_dimension_numbers<[1], [0], [0], [1], [0, 0, 1, 1], [], []>} : vector<2x48xbf16>, vector<48x64xbf16>, vector<2x64xf32> -> vector<2x64xf32>
    %24 = vector.broadcast %21 : vector<1x64xf32> to vector<2x64xf32>
    %25 = arith.addf %23, %24 : vector<2x64xf32>
    %26 = arith.negf %25 : vector<2x64xf32>
    %27 = math.exp %26 : vector<2x64xf32>
    %cst_18 = arith.constant 1.000000e+00 : f32
    %28 = vector.broadcast %cst_18 : f32 to vector<2x64xf32>
    %29 = arith.addf %28, %27 : vector<2x64xf32>
    %30 = arith.divf %28, %29 : vector<2x64xf32>
    %31 = arith.mulf %25, %30 : vector<2x64xf32>
    %c0_19 = arith.constant 0 : index
    %c0_20 = arith.constant 0 : index
    %32 = vector.load %arg15[%c0_19, %c0_20] : memref<64x64xbf16, #tpu.memory_space<vmem>>, vector<64x64xbf16>
    %c0_21 = arith.constant 0 : index
    %c0_22 = arith.constant 0 : index
    %33 = vector.load %arg16[%c0_21, %c0_22] : memref<1x64xf32, #tpu.memory_space<vmem>>, vector<1x64xf32>
    %34 = arith.truncf %31 : vector<2x64xf32> to vector<2x64xbf16>
    %cst_23 = arith.constant dense<0.000000e+00> : vector<2x64xf32>
    %35 = tpu.matmul %34, %32, %cst_23 {dimension_numbers = #tpu.dot_dimension_numbers<[1], [0], [0], [1], [0, 0, 1, 1], [], []>} : vector<2x64xbf16>, vector<64x64xbf16>, vector<2x64xf32> -> vector<2x64xf32>
    %36 = vector.broadcast %33 : vector<1x64xf32> to vector<2x64xf32>
    %37 = arith.addf %35, %36 : vector<2x64xf32>
    %38 = arith.addf %18, %37 : vector<2x64xf32>
    %39 = arith.negf %38 : vector<2x64xf32>
    %40 = math.exp %39 : vector<2x64xf32>
    %cst_24 = arith.constant 1.000000e+00 : f32
    %41 = vector.broadcast %cst_24 : f32 to vector<2x64xf32>
    %42 = arith.addf %41, %40 : vector<2x64xf32>
    %43 = arith.divf %41, %42 : vector<2x64xf32>
    %44 = arith.mulf %38, %43 : vector<2x64xf32>
    %c0_25 = arith.constant 0 : index
    %c0_26 = arith.constant 0 : index
    %45 = vector.load %arg0[%c0_25, %c0_26] : memref<32x64xf32, #tpu.memory_space<vmem>>, vector<32x64xf32>
    %c0_27 = arith.constant 0 : index
    %c0_28 = arith.constant 0 : index
    %46 = vector.load %arg5[%c0_27, %c0_28] : memref<64x64xbf16, #tpu.memory_space<vmem>>, vector<64x64xbf16>
    %c0_29 = arith.constant 0 : index
    %c0_30 = arith.constant 0 : index
    %47 = vector.load %arg6[%c0_29, %c0_30] : memref<1x64xf32, #tpu.memory_space<vmem>>, vector<1x64xf32>
    %48 = arith.truncf %45 : vector<32x64xf32> to vector<32x64xbf16>
    %cst_31 = arith.constant dense<0.000000e+00> : vector<32x64xf32>
    %49 = tpu.matmul %48, %46, %cst_31 {dimension_numbers = #tpu.dot_dimension_numbers<[1], [0], [0], [1], [0, 0, 1, 1], [], []>} : vector<32x64xbf16>, vector<64x64xbf16>, vector<32x64xf32> -> vector<32x64xf32>
    %50 = vector.broadcast %47 : vector<1x64xf32> to vector<32x64xf32>
    %51 = arith.addf %49, %50 : vector<32x64xf32>
    %52 = vector.shape_cast %51 : vector<32x64xf32> to vector<2x16x64xf32>
    %c0_32 = arith.constant 0 : index
    %c0_33 = arith.constant 0 : index
    %53 = vector.load %arg1[%c0_32, %c0_33] : memref<16x64xf32, #tpu.memory_space<vmem>>, vector<16x64xf32>
    %54 = vector.shape_cast %53 : vector<16x64xf32> to vector<1x16x64xf32>
    %55 = vector.broadcast %54 : vector<1x16x64xf32> to vector<2x16x64xf32>
    %56 = arith.addf %52, %55 : vector<2x16x64xf32>
    %c0_34 = arith.constant 0 : index
    %c0_35 = arith.constant 0 : index
    %57 = vector.load %arg2[%c0_34, %c0_35] : memref<16x32xf32, #tpu.memory_space<vmem>>, vector<16x32xf32>
    %c0_36 = arith.constant 0 : index
    %c0_37 = arith.constant 0 : index
    %58 = vector.load %arg7[%c0_36, %c0_37] : memref<32x64xbf16, #tpu.memory_space<vmem>>, vector<32x64xbf16>
    %c0_38 = arith.constant 0 : index
    %c0_39 = arith.constant 0 : index
    %59 = vector.load %arg8[%c0_38, %c0_39] : memref<1x64xf32, #tpu.memory_space<vmem>>, vector<1x64xf32>
    %60 = arith.truncf %57 : vector<16x32xf32> to vector<16x32xbf16>
    %cst_40 = arith.constant dense<0.000000e+00> : vector<16x64xf32>
    %61 = tpu.matmul %60, %58, %cst_40 {dimension_numbers = #tpu.dot_dimension_numbers<[1], [0], [0], [1], [0, 0, 1, 1], [], []>} : vector<16x32xbf16>, vector<32x64xbf16>, vector<16x64xf32> -> vector<16x64xf32>
    %62 = vector.broadcast %59 : vector<1x64xf32> to vector<16x64xf32>
    %63 = arith.addf %61, %62 : vector<16x64xf32>
    %64 = vector.shape_cast %63 : vector<16x64xf32> to vector<2x8x64xf32>
    %c0_41 = arith.constant 0 : index
    %c0_42 = arith.constant 0 : index
    %c0_43 = arith.constant 0 : index
    %65 = vector.load %arg17[%c0_41, %c0_42, %c0_43] : memref<2x64x768xbf16, #tpu.memory_space<vmem>>, vector<1x64x768xbf16>
    %66 = vector.shape_cast %65 : vector<1x64x768xbf16> to vector<64x768xbf16>
    %c0_44 = arith.constant 0 : index
    %c0_45 = arith.constant 0 : index
    %c0_46 = arith.constant 0 : index
    %67 = vector.load %arg18[%c0_44, %c0_45, %c0_46] : memref<2x1x768xf32, #tpu.memory_space<vmem>>, vector<1x1x768xf32>
    %68 = vector.shape_cast %67 : vector<1x1x768xf32> to vector<1x768xf32>
    %69 = arith.truncf %44 : vector<2x64xf32> to vector<2x64xbf16>
    %cst_47 = arith.constant dense<0.000000e+00> : vector<2x768xf32>
    %70 = tpu.matmul %69, %66, %cst_47 {dimension_numbers = #tpu.dot_dimension_numbers<[1], [0], [0], [1], [0, 0, 1, 1], [], []>} : vector<2x64xbf16>, vector<64x768xbf16>, vector<2x768xf32> -> vector<2x768xf32>
    %71 = vector.broadcast %68 : vector<1x768xf32> to vector<2x768xf32>
    %72 = arith.addf %70, %71 : vector<2x768xf32>
    %73 = vector.extract_strided_slice %72 {offsets = [0, 0], sizes = [2, 64], strides = [1, 1]} : vector<2x768xf32> to vector<2x64xf32>
    %74 = vector.shape_cast %73 : vector<2x64xf32> to vector<2x1x64xf32>
    %75 = vector.extract_strided_slice %72 {offsets = [0, 64], sizes = [2, 64], strides = [1, 1]} : vector<2x768xf32> to vector<2x64xf32>
    %76 = vector.shape_cast %75 : vector<2x64xf32> to vector<2x1x64xf32>
    %77 = vector.extract_strided_slice %72 {offsets = [0, 128], sizes = [2, 64], strides = [1, 1]} : vector<2x768xf32> to vector<2x64xf32>
    %78 = vector.shape_cast %77 : vector<2x64xf32> to vector<2x1x64xf32>
    %79 = vector.extract_strided_slice %72 {offsets = [0, 192], sizes = [2, 64], strides = [1, 1]} : vector<2x768xf32> to vector<2x64xf32>
    %80 = vector.shape_cast %79 : vector<2x64xf32> to vector<2x1x64xf32>
    %81 = vector.extract_strided_slice %72 {offsets = [0, 256], sizes = [2, 64], strides = [1, 1]} : vector<2x768xf32> to vector<2x64xf32>
    %82 = vector.shape_cast %81 : vector<2x64xf32> to vector<2x1x64xf32>
    %83 = vector.extract_strided_slice %72 {offsets = [0, 320], sizes = [2, 64], strides = [1, 1]} : vector<2x768xf32> to vector<2x64xf32>
    %84 = vector.shape_cast %83 : vector<2x64xf32> to vector<2x1x64xf32>
    %85 = vector.extract_strided_slice %72 {offsets = [0, 384], sizes = [2, 64], strides = [1, 1]} : vector<2x768xf32> to vector<2x64xf32>
    %86 = vector.shape_cast %85 : vector<2x64xf32> to vector<2x1x64xf32>
    %87 = vector.extract_strided_slice %72 {offsets = [0, 448], sizes = [2, 64], strides = [1, 1]} : vector<2x768xf32> to vector<2x64xf32>
    %88 = vector.shape_cast %87 : vector<2x64xf32> to vector<2x1x64xf32>
    %89 = vector.extract_strided_slice %72 {offsets = [0, 512], sizes = [2, 64], strides = [1, 1]} : vector<2x768xf32> to vector<2x64xf32>
    %90 = vector.shape_cast %89 : vector<2x64xf32> to vector<2x1x64xf32>
    %91 = vector.extract_strided_slice %72 {offsets = [0, 576], sizes = [2, 64], strides = [1, 1]} : vector<2x768xf32> to vector<2x64xf32>
    %92 = vector.shape_cast %91 : vector<2x64xf32> to vector<2x1x64xf32>
    %93 = vector.extract_strided_slice %72 {offsets = [0, 640], sizes = [2, 64], strides = [1, 1]} : vector<2x768xf32> to vector<2x64xf32>
    %94 = vector.shape_cast %93 : vector<2x64xf32> to vector<2x1x64xf32>
    %95 = vector.extract_strided_slice %72 {offsets = [0, 704], sizes = [2, 64], strides = [1, 1]} : vector<2x768xf32> to vector<2x64xf32>
    %96 = vector.shape_cast %95 : vector<2x64xf32> to vector<2x1x64xf32>
    %cst_48 = arith.constant dense<0.000000e+00> : vector<2x16xf32>
    %97 = vector.multi_reduction <add>, %56, %cst_48 [2] : vector<2x16x64xf32> to vector<2x16xf32>
    %98 = vector.shape_cast %97 : vector<2x16xf32> to vector<2x16x1xf32>
    %cst_49 = arith.constant 6.400000e+01 : f32
    %99 = vector.broadcast %cst_49 : f32 to vector<2x16x1xf32>
    %100 = arith.divf %98, %99 : vector<2x16x1xf32>
    %101 = vector.broadcast %100 : vector<2x16x1xf32> to vector<2x16x64xf32>
    %102 = arith.subf %56, %101 : vector<2x16x64xf32>
    %103 = arith.mulf %102, %102 : vector<2x16x64xf32>
    %cst_50 = arith.constant dense<0.000000e+00> : vector<2x16xf32>
    %104 = vector.multi_reduction <add>, %103, %cst_50 [2] : vector<2x16x64xf32> to vector<2x16xf32>
    %105 = vector.shape_cast %104 : vector<2x16xf32> to vector<2x16x1xf32>
    %cst_51 = arith.constant 6.400000e+01 : f32
    %106 = vector.broadcast %cst_51 : f32 to vector<2x16x1xf32>
    %107 = arith.divf %105, %106 : vector<2x16x1xf32>
    %108 = vector.broadcast %100 : vector<2x16x1xf32> to vector<2x16x64xf32>
    %109 = arith.subf %56, %108 : vector<2x16x64xf32>
    %cst_52 = arith.constant 9.99999997E-7 : f32
    %110 = vector.broadcast %cst_52 : f32 to vector<2x16x1xf32>
    %111 = arith.addf %107, %110 : vector<2x16x1xf32>
    %112 = math.rsqrt %111 : vector<2x16x1xf32>
    %113 = vector.broadcast %112 : vector<2x16x1xf32> to vector<2x16x64xf32>
    %114 = arith.mulf %109, %113 : vector<2x16x64xf32>
    %cst_53 = arith.constant 1.000000e+00 : f32
    %115 = vector.broadcast %cst_53 : f32 to vector<2x1x64xf32>
    %116 = arith.addf %115, %76 : vector<2x1x64xf32>
    %117 = vector.broadcast %116 : vector<2x1x64xf32> to vector<2x16x64xf32>
    %118 = arith.mulf %114, %117 : vector<2x16x64xf32>
    %119 = vector.broadcast %74 : vector<2x1x64xf32> to vector<2x16x64xf32>
    %120 = arith.addf %118, %119 : vector<2x16x64xf32>
    %cst_54 = arith.constant dense<0.000000e+00> : vector<2x8xf32>
    %121 = vector.multi_reduction <add>, %64, %cst_54 [2] : vector<2x8x64xf32> to vector<2x8xf32>
    %122 = vector.shape_cast %121 : vector<2x8xf32> to vector<2x8x1xf32>
    %cst_55 = arith.constant 6.400000e+01 : f32
    %123 = vector.broadcast %cst_55 : f32 to vector<2x8x1xf32>
    %124 = arith.divf %122, %123 : vector<2x8x1xf32>
    %125 = vector.broadcast %124 : vector<2x8x1xf32> to vector<2x8x64xf32>
    %126 = arith.subf %64, %125 : vector<2x8x64xf32>
    %127 = arith.mulf %126, %126 : vector<2x8x64xf32>
    %cst_56 = arith.constant dense<0.000000e+00> : vector<2x8xf32>
    %128 = vector.multi_reduction <add>, %127, %cst_56 [2] : vector<2x8x64xf32> to vector<2x8xf32>
    %129 = vector.shape_cast %128 : vector<2x8xf32> to vector<2x8x1xf32>
    %cst_57 = arith.constant 6.400000e+01 : f32
    %130 = vector.broadcast %cst_57 : f32 to vector<2x8x1xf32>
    %131 = arith.divf %129, %130 : vector<2x8x1xf32>
    %132 = vector.broadcast %124 : vector<2x8x1xf32> to vector<2x8x64xf32>
    %133 = arith.subf %64, %132 : vector<2x8x64xf32>
    %cst_58 = arith.constant 9.99999997E-7 : f32
    %134 = vector.broadcast %cst_58 : f32 to vector<2x8x1xf32>
    %135 = arith.addf %131, %134 : vector<2x8x1xf32>
    %136 = math.rsqrt %135 : vector<2x8x1xf32>
    %137 = vector.broadcast %136 : vector<2x8x1xf32> to vector<2x8x64xf32>
    %138 = arith.mulf %133, %137 : vector<2x8x64xf32>
    %cst_59 = arith.constant 1.000000e+00 : f32
    %139 = vector.broadcast %cst_59 : f32 to vector<2x1x64xf32>
    %140 = arith.addf %139, %88 : vector<2x1x64xf32>
    %141 = vector.broadcast %140 : vector<2x1x64xf32> to vector<2x8x64xf32>
    %142 = arith.mulf %138, %141 : vector<2x8x64xf32>
    %143 = vector.broadcast %86 : vector<2x1x64xf32> to vector<2x8x64xf32>
    %144 = arith.addf %142, %143 : vector<2x8x64xf32>
    %c0_60 = arith.constant 0 : index
    %c0_61 = arith.constant 0 : index
    %c0_62 = arith.constant 0 : index
    %145 = vector.load %arg19[%c0_60, %c0_61, %c0_62] : memref<2x64x192xbf16, #tpu.memory_space<vmem>>, vector<1x64x192xbf16>
    %146 = vector.shape_cast %145 : vector<1x64x192xbf16> to vector<64x192xbf16>
    %c0_63 = arith.constant 0 : index
    %c0_64 = arith.constant 0 : index
    %c0_65 = arith.constant 0 : index
    %147 = vector.load %arg20[%c0_63, %c0_64, %c0_65] : memref<2x1x192xf32, #tpu.memory_space<vmem>>, vector<1x1x192xf32>
    %148 = vector.shape_cast %147 : vector<1x1x192xf32> to vector<1x192xf32>
    %c0_66 = arith.constant 0 : index
    %c0_67 = arith.constant 0 : index
    %c0_68 = arith.constant 0 : index
    %149 = vector.load %arg21[%c0_66, %c0_67, %c0_68] : memref<2x64x192xbf16, #tpu.memory_space<vmem>>, vector<1x64x192xbf16>
    %150 = vector.shape_cast %149 : vector<1x64x192xbf16> to vector<64x192xbf16>
    %c0_69 = arith.constant 0 : index
    %c0_70 = arith.constant 0 : index
    %c0_71 = arith.constant 0 : index
    %151 = vector.load %arg22[%c0_69, %c0_70, %c0_71] : memref<2x1x192xf32, #tpu.memory_space<vmem>>, vector<1x1x192xf32>
    %152 = vector.shape_cast %151 : vector<1x1x192xf32> to vector<1x192xf32>
    %153 = vector.shape_cast %120 : vector<2x16x64xf32> to vector<32x64xf32>
    %154 = arith.truncf %153 : vector<32x64xf32> to vector<32x64xbf16>
    %cst_72 = arith.constant dense<0.000000e+00> : vector<32x192xf32>
    %155 = tpu.matmul %154, %146, %cst_72 {dimension_numbers = #tpu.dot_dimension_numbers<[1], [0], [0], [1], [0, 0, 1, 1], [], []>} : vector<32x64xbf16>, vector<64x192xbf16>, vector<32x192xf32> -> vector<32x192xf32>
    %156 = vector.broadcast %148 : vector<1x192xf32> to vector<32x192xf32>
    %157 = arith.addf %155, %156 : vector<32x192xf32>
    %158 = vector.shape_cast %157 : vector<32x192xf32> to vector<2x16x192xf32>
    %159 = vector.shape_cast %144 : vector<2x8x64xf32> to vector<16x64xf32>
    %160 = arith.truncf %159 : vector<16x64xf32> to vector<16x64xbf16>
    %cst_73 = arith.constant dense<0.000000e+00> : vector<16x192xf32>
    %161 = tpu.matmul %160, %150, %cst_73 {dimension_numbers = #tpu.dot_dimension_numbers<[1], [0], [0], [1], [0, 0, 1, 1], [], []>} : vector<16x64xbf16>, vector<64x192xbf16>, vector<16x192xf32> -> vector<16x192xf32>
    %162 = vector.broadcast %152 : vector<1x192xf32> to vector<16x192xf32>
    %163 = arith.addf %161, %162 : vector<16x192xf32>
    %164 = vector.shape_cast %163 : vector<16x192xf32> to vector<2x8x192xf32>
    %165 = tpu.concatenate %158, %164 in 1 : vector<2x16x192xf32>, vector<2x8x192xf32> -> vector<2x24x192xf32>
    %166 = vector.extract_strided_slice %165 {offsets = [0, 0, 0], sizes = [2, 24, 64], strides = [1, 1, 1]} : vector<2x24x192xf32> to vector<2x24x64xf32>
    %167 = vector.extract_strided_slice %165 {offsets = [0, 0, 64], sizes = [2, 24, 64], strides = [1, 1, 1]} : vector<2x24x192xf32> to vector<2x24x64xf32>
    %168 = vector.extract_strided_slice %165 {offsets = [0, 0, 128], sizes = [2, 24, 64], strides = [1, 1, 1]} : vector<2x24x192xf32> to vector<2x24x64xf32>
    %169 = vector.extract_strided_slice %166 {offsets = [0, 0, 0], sizes = [2, 24, 16], strides = [1, 1, 1]} : vector<2x24x64xf32> to vector<2x24x16xf32>
    %170 = vector.extract_strided_slice %166 {offsets = [0, 0, 16], sizes = [2, 24, 16], strides = [1, 1, 1]} : vector<2x24x64xf32> to vector<2x24x16xf32>
    %171 = vector.extract_strided_slice %166 {offsets = [0, 0, 32], sizes = [2, 24, 16], strides = [1, 1, 1]} : vector<2x24x64xf32> to vector<2x24x16xf32>
    %172 = vector.extract_strided_slice %166 {offsets = [0, 0, 48], sizes = [2, 24, 16], strides = [1, 1, 1]} : vector<2x24x64xf32> to vector<2x24x16xf32>
    %173 = tpu.concatenate %169, %170, %171, %172 in 0 : vector<2x24x16xf32>, vector<2x24x16xf32>, vector<2x24x16xf32>, vector<2x24x16xf32> -> vector<8x24x16xf32>
    %174 = vector.extract_strided_slice %167 {offsets = [0, 0, 0], sizes = [2, 24, 16], strides = [1, 1, 1]} : vector<2x24x64xf32> to vector<2x24x16xf32>
    %175 = vector.extract_strided_slice %167 {offsets = [0, 0, 16], sizes = [2, 24, 16], strides = [1, 1, 1]} : vector<2x24x64xf32> to vector<2x24x16xf32>
    %176 = vector.extract_strided_slice %167 {offsets = [0, 0, 32], sizes = [2, 24, 16], strides = [1, 1, 1]} : vector<2x24x64xf32> to vector<2x24x16xf32>
    %177 = vector.extract_strided_slice %167 {offsets = [0, 0, 48], sizes = [2, 24, 16], strides = [1, 1, 1]} : vector<2x24x64xf32> to vector<2x24x16xf32>
    %178 = tpu.concatenate %174, %175, %176, %177 in 0 : vector<2x24x16xf32>, vector<2x24x16xf32>, vector<2x24x16xf32>, vector<2x24x16xf32> -> vector<8x24x16xf32>
    %179 = vector.extract_strided_slice %168 {offsets = [0, 0, 0], sizes = [2, 24, 16], strides = [1, 1, 1]} : vector<2x24x64xf32> to vector<2x24x16xf32>
    %180 = vector.extract_strided_slice %168 {offsets = [0, 0, 16], sizes = [2, 24, 16], strides = [1, 1, 1]} : vector<2x24x64xf32> to vector<2x24x16xf32>
    %181 = vector.extract_strided_slice %168 {offsets = [0, 0, 32], sizes = [2, 24, 16], strides = [1, 1, 1]} : vector<2x24x64xf32> to vector<2x24x16xf32>
    %182 = vector.extract_strided_slice %168 {offsets = [0, 0, 48], sizes = [2, 24, 16], strides = [1, 1, 1]} : vector<2x24x64xf32> to vector<2x24x16xf32>
    %183 = tpu.concatenate %179, %180, %181, %182 in 0 : vector<2x24x16xf32>, vector<2x24x16xf32>, vector<2x24x16xf32>, vector<2x24x16xf32> -> vector<8x24x16xf32>
    %184 = arith.truncf %173 : vector<8x24x16xf32> to vector<8x24x16xbf16>
    %185 = arith.truncf %178 : vector<8x24x16xf32> to vector<8x24x16xbf16>
    "tpu.trace_start"() <{level = 10 : i32, message = "bqd,bkd->bqk"}> : () -> ()
    %cst_74 = arith.constant dense<0.000000e+00> : vector<8x24x24xf32>
    %186 = tpu.matmul %184, %185, %cst_74 {dimension_numbers = #tpu.dot_dimension_numbers<[2], [2], [1], [1], [0, 0, 0, 1, 1, 1], [0], [0]>} : vector<8x24x16xbf16>, vector<8x24x16xbf16>, vector<8x24x24xf32> -> vector<8x24x24xf32>
    "tpu.trace_stop"() : () -> ()
    %cst_75 = arith.constant 2.500000e-01 : f32
    %187 = vector.broadcast %cst_75 : f32 to vector<8x24x24xf32>
    %188 = arith.mulf %186, %187 : vector<8x24x24xf32>
    %cst_76 = arith.constant dense<0xFF800000> : vector<8x24xf32>
    %189 = vector.multi_reduction <maximumf>, %188, %cst_76 [2] : vector<8x24x24xf32> to vector<8x24xf32>
    %190 = vector.shape_cast %189 : vector<8x24xf32> to vector<8x24x1xf32>
    %191 = vector.broadcast %190 : vector<8x24x1xf32> to vector<8x24x24xf32>
    %192 = arith.subf %188, %191 : vector<8x24x24xf32>
    %193 = math.exp %192 : vector<8x24x24xf32>
    %cst_77 = arith.constant dense<0.000000e+00> : vector<8x24xf32>
    %194 = vector.multi_reduction <add>, %193, %cst_77 [2] : vector<8x24x24xf32> to vector<8x24xf32>
    %195 = vector.shape_cast %194 : vector<8x24xf32> to vector<8x24x1xf32>
    %196 = tpu.reciprocal %195 {approx = true} : vector<8x24x1xf32> -> vector<8x24x1xf32>
    %197 = vector.broadcast %196 : vector<8x24x1xf32> to vector<8x24x24xf32>
    %198 = arith.mulf %193, %197 : vector<8x24x24xf32>
    %199 = arith.truncf %198 : vector<8x24x24xf32> to vector<8x24x24xbf16>
    %200 = arith.truncf %183 : vector<8x24x16xf32> to vector<8x24x16xbf16>
    "tpu.trace_start"() <{level = 10 : i32, message = "bqk,bkd->bqd"}> : () -> ()
    %cst_78 = arith.constant dense<0.000000e+00> : vector<8x24x16xf32>
    %201 = tpu.matmul %199, %200, %cst_78 {dimension_numbers = #tpu.dot_dimension_numbers<[2], [1], [1], [2], [0, 0, 0, 1, 1, 2], [0], [0]>} : vector<8x24x24xbf16>, vector<8x24x16xbf16>, vector<8x24x16xf32> -> vector<8x24x16xf32>
    "tpu.trace_stop"() : () -> ()
    %202 = vector.shape_cast %201 : vector<8x24x16xf32> to vector<4x2x24x16xf32>
    %203 = vector.extract_strided_slice %202 {offsets = [0, 0, 0, 0], sizes = [1, 2, 24, 16], strides = [1, 1, 1, 1]} : vector<4x2x24x16xf32> to vector<1x2x24x16xf32>
    %204 = vector.shape_cast %203 : vector<1x2x24x16xf32> to vector<2x24x16xf32>
    %205 = vector.extract_strided_slice %202 {offsets = [1, 0, 0, 0], sizes = [1, 2, 24, 16], strides = [1, 1, 1, 1]} : vector<4x2x24x16xf32> to vector<1x2x24x16xf32>
    %206 = vector.shape_cast %205 : vector<1x2x24x16xf32> to vector<2x24x16xf32>
    %207 = vector.extract_strided_slice %202 {offsets = [2, 0, 0, 0], sizes = [1, 2, 24, 16], strides = [1, 1, 1, 1]} : vector<4x2x24x16xf32> to vector<1x2x24x16xf32>
    %208 = vector.shape_cast %207 : vector<1x2x24x16xf32> to vector<2x24x16xf32>
    %209 = vector.extract_strided_slice %202 {offsets = [3, 0, 0, 0], sizes = [1, 2, 24, 16], strides = [1, 1, 1, 1]} : vector<4x2x24x16xf32> to vector<1x2x24x16xf32>
    %210 = vector.shape_cast %209 : vector<1x2x24x16xf32> to vector<2x24x16xf32>
    %211 = tpu.concatenate %204, %206, %208, %210 in 2 : vector<2x24x16xf32>, vector<2x24x16xf32>, vector<2x24x16xf32>, vector<2x24x16xf32> -> vector<2x24x64xf32>
    %212 = vector.extract_strided_slice %211 {offsets = [0, 0, 0], sizes = [2, 16, 64], strides = [1, 1, 1]} : vector<2x24x64xf32> to vector<2x16x64xf32>
    %c0_79 = arith.constant 0 : index
    %c0_80 = arith.constant 0 : index
    %c0_81 = arith.constant 0 : index
    %213 = vector.load %arg23[%c0_79, %c0_80, %c0_81] : memref<2x64x64xbf16, #tpu.memory_space<vmem>>, vector<1x64x64xbf16>
    %214 = vector.shape_cast %213 : vector<1x64x64xbf16> to vector<64x64xbf16>
    %c0_82 = arith.constant 0 : index
    %c0_83 = arith.constant 0 : index
    %c0_84 = arith.constant 0 : index
    %215 = vector.load %arg24[%c0_82, %c0_83, %c0_84] : memref<2x1x64xf32, #tpu.memory_space<vmem>>, vector<1x1x64xf32>
    %216 = vector.shape_cast %215 : vector<1x1x64xf32> to vector<1x64xf32>
    %217 = vector.shape_cast %212 : vector<2x16x64xf32> to vector<32x64xf32>
    %218 = arith.truncf %217 : vector<32x64xf32> to vector<32x64xbf16>
    %cst_85 = arith.constant dense<0.000000e+00> : vector<32x64xf32>
    %219 = tpu.matmul %218, %214, %cst_85 {dimension_numbers = #tpu.dot_dimension_numbers<[1], [0], [0], [1], [0, 0, 1, 1], [], []>} : vector<32x64xbf16>, vector<64x64xbf16>, vector<32x64xf32> -> vector<32x64xf32>
    %220 = vector.broadcast %216 : vector<1x64xf32> to vector<32x64xf32>
    %221 = arith.addf %219, %220 : vector<32x64xf32>
    %222 = vector.shape_cast %221 : vector<32x64xf32> to vector<2x16x64xf32>
    %223 = vector.broadcast %78 : vector<2x1x64xf32> to vector<2x16x64xf32>
    %224 = arith.mulf %223, %222 : vector<2x16x64xf32>
    %225 = arith.addf %56, %224 : vector<2x16x64xf32>
    %226 = vector.extract_strided_slice %211 {offsets = [0, 16, 0], sizes = [2, 8, 64], strides = [1, 1, 1]} : vector<2x24x64xf32> to vector<2x8x64xf32>
    %c0_86 = arith.constant 0 : index
    %c0_87 = arith.constant 0 : index
    %c0_88 = arith.constant 0 : index
    %227 = vector.load %arg25[%c0_86, %c0_87, %c0_88] : memref<2x64x64xbf16, #tpu.memory_space<vmem>>, vector<1x64x64xbf16>
    %228 = vector.shape_cast %227 : vector<1x64x64xbf16> to vector<64x64xbf16>
    %c0_89 = arith.constant 0 : index
    %c0_90 = arith.constant 0 : index
    %c0_91 = arith.constant 0 : index
    %229 = vector.load %arg26[%c0_89, %c0_90, %c0_91] : memref<2x1x64xf32, #tpu.memory_space<vmem>>, vector<1x1x64xf32>
    %230 = vector.shape_cast %229 : vector<1x1x64xf32> to vector<1x64xf32>
    %231 = vector.shape_cast %226 : vector<2x8x64xf32> to vector<16x64xf32>
    %232 = arith.truncf %231 : vector<16x64xf32> to vector<16x64xbf16>
    %cst_92 = arith.constant dense<0.000000e+00> : vector<16x64xf32>
    %233 = tpu.matmul %232, %228, %cst_92 {dimension_numbers = #tpu.dot_dimension_numbers<[1], [0], [0], [1], [0, 0, 1, 1], [], []>} : vector<16x64xbf16>, vector<64x64xbf16>, vector<16x64xf32> -> vector<16x64xf32>
    %234 = vector.broadcast %230 : vector<1x64xf32> to vector<16x64xf32>
    %235 = arith.addf %233, %234 : vector<16x64xf32>
    %236 = vector.shape_cast %235 : vector<16x64xf32> to vector<2x8x64xf32>
    %237 = vector.broadcast %90 : vector<2x1x64xf32> to vector<2x8x64xf32>
    %238 = arith.mulf %237, %236 : vector<2x8x64xf32>
    %239 = arith.addf %64, %238 : vector<2x8x64xf32>
    %cst_93 = arith.constant dense<0.000000e+00> : vector<2x16xf32>
    %240 = vector.multi_reduction <add>, %225, %cst_93 [2] : vector<2x16x64xf32> to vector<2x16xf32>
    %241 = vector.shape_cast %240 : vector<2x16xf32> to vector<2x16x1xf32>
    %cst_94 = arith.constant 6.400000e+01 : f32
    %242 = vector.broadcast %cst_94 : f32 to vector<2x16x1xf32>
    %243 = arith.divf %241, %242 : vector<2x16x1xf32>
    %244 = vector.broadcast %243 : vector<2x16x1xf32> to vector<2x16x64xf32>
    %245 = arith.subf %225, %244 : vector<2x16x64xf32>
    %246 = arith.mulf %245, %245 : vector<2x16x64xf32>
    %cst_95 = arith.constant dense<0.000000e+00> : vector<2x16xf32>
    %247 = vector.multi_reduction <add>, %246, %cst_95 [2] : vector<2x16x64xf32> to vector<2x16xf32>
    %248 = vector.shape_cast %247 : vector<2x16xf32> to vector<2x16x1xf32>
    %cst_96 = arith.constant 6.400000e+01 : f32
    %249 = vector.broadcast %cst_96 : f32 to vector<2x16x1xf32>
    %250 = arith.divf %248, %249 : vector<2x16x1xf32>
    %251 = vector.broadcast %243 : vector<2x16x1xf32> to vector<2x16x64xf32>
    %252 = arith.subf %225, %251 : vector<2x16x64xf32>
    %cst_97 = arith.constant 9.99999997E-7 : f32
    %253 = vector.broadcast %cst_97 : f32 to vector<2x16x1xf32>
    %254 = arith.addf %250, %253 : vector<2x16x1xf32>
    %255 = math.rsqrt %254 : vector<2x16x1xf32>
    %256 = vector.broadcast %255 : vector<2x16x1xf32> to vector<2x16x64xf32>
    %257 = arith.mulf %252, %256 : vector<2x16x64xf32>
    %cst_98 = arith.constant 1.000000e+00 : f32
    %258 = vector.broadcast %cst_98 : f32 to vector<2x1x64xf32>
    %259 = arith.addf %258, %82 : vector<2x1x64xf32>
    %260 = vector.broadcast %259 : vector<2x1x64xf32> to vector<2x16x64xf32>
    %261 = arith.mulf %257, %260 : vector<2x16x64xf32>
    %262 = vector.broadcast %80 : vector<2x1x64xf32> to vector<2x16x64xf32>
    %263 = arith.addf %261, %262 : vector<2x16x64xf32>
    %c0_99 = arith.constant 0 : index
    %c0_100 = arith.constant 0 : index
    %c0_101 = arith.constant 0 : index
    %264 = vector.load %arg27[%c0_99, %c0_100, %c0_101] : memref<2x64x256xbf16, #tpu.memory_space<vmem>>, vector<1x64x256xbf16>
    %265 = vector.shape_cast %264 : vector<1x64x256xbf16> to vector<64x256xbf16>
    %c0_102 = arith.constant 0 : index
    %c0_103 = arith.constant 0 : index
    %c0_104 = arith.constant 0 : index
    %266 = vector.load %arg28[%c0_102, %c0_103, %c0_104] : memref<2x1x256xf32, #tpu.memory_space<vmem>>, vector<1x1x256xf32>
    %267 = vector.shape_cast %266 : vector<1x1x256xf32> to vector<1x256xf32>
    %268 = vector.shape_cast %263 : vector<2x16x64xf32> to vector<32x64xf32>
    %269 = arith.truncf %268 : vector<32x64xf32> to vector<32x64xbf16>
    %cst_105 = arith.constant dense<0.000000e+00> : vector<32x256xf32>
    %270 = tpu.matmul %269, %265, %cst_105 {dimension_numbers = #tpu.dot_dimension_numbers<[1], [0], [0], [1], [0, 0, 1, 1], [], []>} : vector<32x64xbf16>, vector<64x256xbf16>, vector<32x256xf32> -> vector<32x256xf32>
    %271 = vector.broadcast %267 : vector<1x256xf32> to vector<32x256xf32>
    %272 = arith.addf %270, %271 : vector<32x256xf32>
    %273 = vector.shape_cast %272 : vector<32x256xf32> to vector<2x16x256xf32>
    %274 = arith.mulf %273, %273 : vector<2x16x256xf32>
    %275 = arith.mulf %273, %274 : vector<2x16x256xf32>
    %cst_106 = arith.constant 4.471500e-02 : f32
    %276 = vector.broadcast %cst_106 : f32 to vector<2x16x256xf32>
    %277 = arith.mulf %276, %275 : vector<2x16x256xf32>
    %278 = arith.addf %273, %277 : vector<2x16x256xf32>
    %cst_107 = arith.constant 0.797884583 : f32
    %279 = vector.broadcast %cst_107 : f32 to vector<2x16x256xf32>
    %280 = arith.mulf %279, %278 : vector<2x16x256xf32>
    %281 = math.tanh %280 : vector<2x16x256xf32>
    %cst_108 = arith.constant 1.000000e+00 : f32
    %282 = vector.broadcast %cst_108 : f32 to vector<2x16x256xf32>
    %283 = arith.addf %282, %281 : vector<2x16x256xf32>
    %cst_109 = arith.constant 5.000000e-01 : f32
    %284 = vector.broadcast %cst_109 : f32 to vector<2x16x256xf32>
    %285 = arith.mulf %284, %283 : vector<2x16x256xf32>
    %286 = arith.mulf %273, %285 : vector<2x16x256xf32>
    %c0_110 = arith.constant 0 : index
    %c0_111 = arith.constant 0 : index
    %c0_112 = arith.constant 0 : index
    %287 = vector.load %arg29[%c0_110, %c0_111, %c0_112] : memref<2x256x64xbf16, #tpu.memory_space<vmem>>, vector<1x256x64xbf16>
    %288 = vector.shape_cast %287 : vector<1x256x64xbf16> to vector<256x64xbf16>
    %c0_113 = arith.constant 0 : index
    %c0_114 = arith.constant 0 : index
    %c0_115 = arith.constant 0 : index
    %289 = vector.load %arg30[%c0_113, %c0_114, %c0_115] : memref<2x1x64xf32, #tpu.memory_space<vmem>>, vector<1x1x64xf32>
    %290 = vector.shape_cast %289 : vector<1x1x64xf32> to vector<1x64xf32>
    %291 = vector.shape_cast %286 : vector<2x16x256xf32> to vector<32x256xf32>
    %292 = arith.truncf %291 : vector<32x256xf32> to vector<32x256xbf16>
    %cst_116 = arith.constant dense<0.000000e+00> : vector<32x64xf32>
    %293 = tpu.matmul %292, %288, %cst_116 {dimension_numbers = #tpu.dot_dimension_numbers<[1], [0], [0], [1], [0, 0, 1, 1], [], []>} : vector<32x256xbf16>, vector<256x64xbf16>, vector<32x64xf32> -> vector<32x64xf32>
    %294 = vector.broadcast %290 : vector<1x64xf32> to vector<32x64xf32>
    %295 = arith.addf %293, %294 : vector<32x64xf32>
    %296 = vector.shape_cast %295 : vector<32x64xf32> to vector<2x16x64xf32>
    %297 = vector.broadcast %84 : vector<2x1x64xf32> to vector<2x16x64xf32>
    %298 = arith.mulf %297, %296 : vector<2x16x64xf32>
    %299 = arith.addf %225, %298 : vector<2x16x64xf32>
    %cst_117 = arith.constant dense<0.000000e+00> : vector<2x8xf32>
    %300 = vector.multi_reduction <add>, %239, %cst_117 [2] : vector<2x8x64xf32> to vector<2x8xf32>
    %301 = vector.shape_cast %300 : vector<2x8xf32> to vector<2x8x1xf32>
    %cst_118 = arith.constant 6.400000e+01 : f32
    %302 = vector.broadcast %cst_118 : f32 to vector<2x8x1xf32>
    %303 = arith.divf %301, %302 : vector<2x8x1xf32>
    %304 = vector.broadcast %303 : vector<2x8x1xf32> to vector<2x8x64xf32>
    %305 = arith.subf %239, %304 : vector<2x8x64xf32>
    %306 = arith.mulf %305, %305 : vector<2x8x64xf32>
    %cst_119 = arith.constant dense<0.000000e+00> : vector<2x8xf32>
    %307 = vector.multi_reduction <add>, %306, %cst_119 [2] : vector<2x8x64xf32> to vector<2x8xf32>
    %308 = vector.shape_cast %307 : vector<2x8xf32> to vector<2x8x1xf32>
    %cst_120 = arith.constant 6.400000e+01 : f32
    %309 = vector.broadcast %cst_120 : f32 to vector<2x8x1xf32>
    %310 = arith.divf %308, %309 : vector<2x8x1xf32>
    %311 = vector.broadcast %303 : vector<2x8x1xf32> to vector<2x8x64xf32>
    %312 = arith.subf %239, %311 : vector<2x8x64xf32>
    %cst_121 = arith.constant 9.99999997E-7 : f32
    %313 = vector.broadcast %cst_121 : f32 to vector<2x8x1xf32>
    %314 = arith.addf %310, %313 : vector<2x8x1xf32>
    %315 = math.rsqrt %314 : vector<2x8x1xf32>
    %316 = vector.broadcast %315 : vector<2x8x1xf32> to vector<2x8x64xf32>
    %317 = arith.mulf %312, %316 : vector<2x8x64xf32>
    %cst_122 = arith.constant 1.000000e+00 : f32
    %318 = vector.broadcast %cst_122 : f32 to vector<2x1x64xf32>
    %319 = arith.addf %318, %94 : vector<2x1x64xf32>
    %320 = vector.broadcast %319 : vector<2x1x64xf32> to vector<2x8x64xf32>
    %321 = arith.mulf %317, %320 : vector<2x8x64xf32>
    %322 = vector.broadcast %92 : vector<2x1x64xf32> to vector<2x8x64xf32>
    %323 = arith.addf %321, %322 : vector<2x8x64xf32>
    %c0_123 = arith.constant 0 : index
    %c0_124 = arith.constant 0 : index
    %c0_125 = arith.constant 0 : index
    %324 = vector.load %arg31[%c0_123, %c0_124, %c0_125] : memref<2x64x256xbf16, #tpu.memory_space<vmem>>, vector<1x64x256xbf16>
    %325 = vector.shape_cast %324 : vector<1x64x256xbf16> to vector<64x256xbf16>
    %c0_126 = arith.constant 0 : index
    %c0_127 = arith.constant 0 : index
    %c0_128 = arith.constant 0 : index
    %326 = vector.load %arg32[%c0_126, %c0_127, %c0_128] : memref<2x1x256xf32, #tpu.memory_space<vmem>>, vector<1x1x256xf32>
    %327 = vector.shape_cast %326 : vector<1x1x256xf32> to vector<1x256xf32>
    %328 = vector.shape_cast %323 : vector<2x8x64xf32> to vector<16x64xf32>
    %329 = arith.truncf %328 : vector<16x64xf32> to vector<16x64xbf16>
    %cst_129 = arith.constant dense<0.000000e+00> : vector<16x256xf32>
    %330 = tpu.matmul %329, %325, %cst_129 {dimension_numbers = #tpu.dot_dimension_numbers<[1], [0], [0], [1], [0, 0, 1, 1], [], []>} : vector<16x64xbf16>, vector<64x256xbf16>, vector<16x256xf32> -> vector<16x256xf32>
    %331 = vector.broadcast %327 : vector<1x256xf32> to vector<16x256xf32>
    %332 = arith.addf %330, %331 : vector<16x256xf32>
    %333 = vector.shape_cast %332 : vector<16x256xf32> to vector<2x8x256xf32>
    %334 = arith.mulf %333, %333 : vector<2x8x256xf32>
    %335 = arith.mulf %333, %334 : vector<2x8x256xf32>
    %cst_130 = arith.constant 4.471500e-02 : f32
    %336 = vector.broadcast %cst_130 : f32 to vector<2x8x256xf32>
    %337 = arith.mulf %336, %335 : vector<2x8x256xf32>
    %338 = arith.addf %333, %337 : vector<2x8x256xf32>
    %cst_131 = arith.constant 0.797884583 : f32
    %339 = vector.broadcast %cst_131 : f32 to vector<2x8x256xf32>
    %340 = arith.mulf %339, %338 : vector<2x8x256xf32>
    %341 = math.tanh %340 : vector<2x8x256xf32>
    %cst_132 = arith.constant 1.000000e+00 : f32
    %342 = vector.broadcast %cst_132 : f32 to vector<2x8x256xf32>
    %343 = arith.addf %342, %341 : vector<2x8x256xf32>
    %cst_133 = arith.constant 5.000000e-01 : f32
    %344 = vector.broadcast %cst_133 : f32 to vector<2x8x256xf32>
    %345 = arith.mulf %344, %343 : vector<2x8x256xf32>
    %346 = arith.mulf %333, %345 : vector<2x8x256xf32>
    %c0_134 = arith.constant 0 : index
    %c0_135 = arith.constant 0 : index
    %c0_136 = arith.constant 0 : index
    %347 = vector.load %arg33[%c0_134, %c0_135, %c0_136] : memref<2x256x64xbf16, #tpu.memory_space<vmem>>, vector<1x256x64xbf16>
    %348 = vector.shape_cast %347 : vector<1x256x64xbf16> to vector<256x64xbf16>
    %c0_137 = arith.constant 0 : index
    %c0_138 = arith.constant 0 : index
    %c0_139 = arith.constant 0 : index
    %349 = vector.load %arg34[%c0_137, %c0_138, %c0_139] : memref<2x1x64xf32, #tpu.memory_space<vmem>>, vector<1x1x64xf32>
    %350 = vector.shape_cast %349 : vector<1x1x64xf32> to vector<1x64xf32>
    %351 = vector.shape_cast %346 : vector<2x8x256xf32> to vector<16x256xf32>
    %352 = arith.truncf %351 : vector<16x256xf32> to vector<16x256xbf16>
    %cst_140 = arith.constant dense<0.000000e+00> : vector<16x64xf32>
    %353 = tpu.matmul %352, %348, %cst_140 {dimension_numbers = #tpu.dot_dimension_numbers<[1], [0], [0], [1], [0, 0, 1, 1], [], []>} : vector<16x256xbf16>, vector<256x64xbf16>, vector<16x64xf32> -> vector<16x64xf32>
    %354 = vector.broadcast %350 : vector<1x64xf32> to vector<16x64xf32>
    %355 = arith.addf %353, %354 : vector<16x64xf32>
    %356 = vector.shape_cast %355 : vector<16x64xf32> to vector<2x8x64xf32>
    %357 = vector.broadcast %96 : vector<2x1x64xf32> to vector<2x8x64xf32>
    %358 = arith.mulf %357, %356 : vector<2x8x64xf32>
    %359 = arith.addf %239, %358 : vector<2x8x64xf32>
    %c1 = arith.constant 1 : index
    %c0_141 = arith.constant 0 : index
    %c0_142 = arith.constant 0 : index
    %360 = vector.load %arg17[%c1, %c0_141, %c0_142] : memref<2x64x768xbf16, #tpu.memory_space<vmem>>, vector<1x64x768xbf16>
    %361 = vector.shape_cast %360 : vector<1x64x768xbf16> to vector<64x768xbf16>
    %c1_143 = arith.constant 1 : index
    %c0_144 = arith.constant 0 : index
    %c0_145 = arith.constant 0 : index
    %362 = vector.load %arg18[%c1_143, %c0_144, %c0_145] : memref<2x1x768xf32, #tpu.memory_space<vmem>>, vector<1x1x768xf32>
    %363 = vector.shape_cast %362 : vector<1x1x768xf32> to vector<1x768xf32>
    %364 = arith.truncf %44 : vector<2x64xf32> to vector<2x64xbf16>
    %cst_146 = arith.constant dense<0.000000e+00> : vector<2x768xf32>
    %365 = tpu.matmul %364, %361, %cst_146 {dimension_numbers = #tpu.dot_dimension_numbers<[1], [0], [0], [1], [0, 0, 1, 1], [], []>} : vector<2x64xbf16>, vector<64x768xbf16>, vector<2x768xf32> -> vector<2x768xf32>
    %366 = vector.broadcast %363 : vector<1x768xf32> to vector<2x768xf32>
    %367 = arith.addf %365, %366 : vector<2x768xf32>
    %368 = vector.extract_strided_slice %367 {offsets = [0, 0], sizes = [2, 64], strides = [1, 1]} : vector<2x768xf32> to vector<2x64xf32>
    %369 = vector.shape_cast %368 : vector<2x64xf32> to vector<2x1x64xf32>
    %370 = vector.extract_strided_slice %367 {offsets = [0, 64], sizes = [2, 64], strides = [1, 1]} : vector<2x768xf32> to vector<2x64xf32>
    %371 = vector.shape_cast %370 : vector<2x64xf32> to vector<2x1x64xf32>
    %372 = vector.extract_strided_slice %367 {offsets = [0, 128], sizes = [2, 64], strides = [1, 1]} : vector<2x768xf32> to vector<2x64xf32>
    %373 = vector.shape_cast %372 : vector<2x64xf32> to vector<2x1x64xf32>
    %374 = vector.extract_strided_slice %367 {offsets = [0, 192], sizes = [2, 64], strides = [1, 1]} : vector<2x768xf32> to vector<2x64xf32>
    %375 = vector.shape_cast %374 : vector<2x64xf32> to vector<2x1x64xf32>
    %376 = vector.extract_strided_slice %367 {offsets = [0, 256], sizes = [2, 64], strides = [1, 1]} : vector<2x768xf32> to vector<2x64xf32>
    %377 = vector.shape_cast %376 : vector<2x64xf32> to vector<2x1x64xf32>
    %378 = vector.extract_strided_slice %367 {offsets = [0, 320], sizes = [2, 64], strides = [1, 1]} : vector<2x768xf32> to vector<2x64xf32>
    %379 = vector.shape_cast %378 : vector<2x64xf32> to vector<2x1x64xf32>
    %380 = vector.extract_strided_slice %367 {offsets = [0, 384], sizes = [2, 64], strides = [1, 1]} : vector<2x768xf32> to vector<2x64xf32>
    %381 = vector.shape_cast %380 : vector<2x64xf32> to vector<2x1x64xf32>
    %382 = vector.extract_strided_slice %367 {offsets = [0, 448], sizes = [2, 64], strides = [1, 1]} : vector<2x768xf32> to vector<2x64xf32>
    %383 = vector.shape_cast %382 : vector<2x64xf32> to vector<2x1x64xf32>
    %cst_147 = arith.constant dense<0.000000e+00> : vector<2x16xf32>
    %384 = vector.multi_reduction <add>, %299, %cst_147 [2] : vector<2x16x64xf32> to vector<2x16xf32>
    %385 = vector.shape_cast %384 : vector<2x16xf32> to vector<2x16x1xf32>
    %cst_148 = arith.constant 6.400000e+01 : f32
    %386 = vector.broadcast %cst_148 : f32 to vector<2x16x1xf32>
    %387 = arith.divf %385, %386 : vector<2x16x1xf32>
    %388 = vector.broadcast %387 : vector<2x16x1xf32> to vector<2x16x64xf32>
    %389 = arith.subf %299, %388 : vector<2x16x64xf32>
    %390 = arith.mulf %389, %389 : vector<2x16x64xf32>
    %cst_149 = arith.constant dense<0.000000e+00> : vector<2x16xf32>
    %391 = vector.multi_reduction <add>, %390, %cst_149 [2] : vector<2x16x64xf32> to vector<2x16xf32>
    %392 = vector.shape_cast %391 : vector<2x16xf32> to vector<2x16x1xf32>
    %cst_150 = arith.constant 6.400000e+01 : f32
    %393 = vector.broadcast %cst_150 : f32 to vector<2x16x1xf32>
    %394 = arith.divf %392, %393 : vector<2x16x1xf32>
    %395 = vector.broadcast %387 : vector<2x16x1xf32> to vector<2x16x64xf32>
    %396 = arith.subf %299, %395 : vector<2x16x64xf32>
    %cst_151 = arith.constant 9.99999997E-7 : f32
    %397 = vector.broadcast %cst_151 : f32 to vector<2x16x1xf32>
    %398 = arith.addf %394, %397 : vector<2x16x1xf32>
    %399 = math.rsqrt %398 : vector<2x16x1xf32>
    %400 = vector.broadcast %399 : vector<2x16x1xf32> to vector<2x16x64xf32>
    %401 = arith.mulf %396, %400 : vector<2x16x64xf32>
    %cst_152 = arith.constant 1.000000e+00 : f32
    %402 = vector.broadcast %cst_152 : f32 to vector<2x1x64xf32>
    %403 = arith.addf %402, %371 : vector<2x1x64xf32>
    %404 = vector.broadcast %403 : vector<2x1x64xf32> to vector<2x16x64xf32>
    %405 = arith.mulf %401, %404 : vector<2x16x64xf32>
    %406 = vector.broadcast %369 : vector<2x1x64xf32> to vector<2x16x64xf32>
    %407 = arith.addf %405, %406 : vector<2x16x64xf32>
    %cst_153 = arith.constant dense<0.000000e+00> : vector<2x8xf32>
    %408 = vector.multi_reduction <add>, %359, %cst_153 [2] : vector<2x8x64xf32> to vector<2x8xf32>
    %409 = vector.shape_cast %408 : vector<2x8xf32> to vector<2x8x1xf32>
    %cst_154 = arith.constant 6.400000e+01 : f32
    %410 = vector.broadcast %cst_154 : f32 to vector<2x8x1xf32>
    %411 = arith.divf %409, %410 : vector<2x8x1xf32>
    %412 = vector.broadcast %411 : vector<2x8x1xf32> to vector<2x8x64xf32>
    %413 = arith.subf %359, %412 : vector<2x8x64xf32>
    %414 = arith.mulf %413, %413 : vector<2x8x64xf32>
    %cst_155 = arith.constant dense<0.000000e+00> : vector<2x8xf32>
    %415 = vector.multi_reduction <add>, %414, %cst_155 [2] : vector<2x8x64xf32> to vector<2x8xf32>
    %416 = vector.shape_cast %415 : vector<2x8xf32> to vector<2x8x1xf32>
    %cst_156 = arith.constant 6.400000e+01 : f32
    %417 = vector.broadcast %cst_156 : f32 to vector<2x8x1xf32>
    %418 = arith.divf %416, %417 : vector<2x8x1xf32>
    %419 = vector.broadcast %411 : vector<2x8x1xf32> to vector<2x8x64xf32>
    %420 = arith.subf %359, %419 : vector<2x8x64xf32>
    %cst_157 = arith.constant 9.99999997E-7 : f32
    %421 = vector.broadcast %cst_157 : f32 to vector<2x8x1xf32>
    %422 = arith.addf %418, %421 : vector<2x8x1xf32>
    %423 = math.rsqrt %422 : vector<2x8x1xf32>
    %424 = vector.broadcast %423 : vector<2x8x1xf32> to vector<2x8x64xf32>
    %425 = arith.mulf %420, %424 : vector<2x8x64xf32>
    %cst_158 = arith.constant 1.000000e+00 : f32
    %426 = vector.broadcast %cst_158 : f32 to vector<2x1x64xf32>
    %427 = arith.addf %426, %383 : vector<2x1x64xf32>
    %428 = vector.broadcast %427 : vector<2x1x64xf32> to vector<2x8x64xf32>
    %429 = arith.mulf %425, %428 : vector<2x8x64xf32>
    %430 = vector.broadcast %381 : vector<2x1x64xf32> to vector<2x8x64xf32>
    %431 = arith.addf %429, %430 : vector<2x8x64xf32>
    %c1_159 = arith.constant 1 : index
    %c0_160 = arith.constant 0 : index
    %c0_161 = arith.constant 0 : index
    %432 = vector.load %arg19[%c1_159, %c0_160, %c0_161] : memref<2x64x192xbf16, #tpu.memory_space<vmem>>, vector<1x64x192xbf16>
    %433 = vector.shape_cast %432 : vector<1x64x192xbf16> to vector<64x192xbf16>
    %c1_162 = arith.constant 1 : index
    %c0_163 = arith.constant 0 : index
    %c0_164 = arith.constant 0 : index
    %434 = vector.load %arg20[%c1_162, %c0_163, %c0_164] : memref<2x1x192xf32, #tpu.memory_space<vmem>>, vector<1x1x192xf32>
    %435 = vector.shape_cast %434 : vector<1x1x192xf32> to vector<1x192xf32>
    %c1_165 = arith.constant 1 : index
    %c0_166 = arith.constant 0 : index
    %c0_167 = arith.constant 0 : index
    %436 = vector.load %arg21[%c1_165, %c0_166, %c0_167] : memref<2x64x192xbf16, #tpu.memory_space<vmem>>, vector<1x64x192xbf16>
    %437 = vector.shape_cast %436 : vector<1x64x192xbf16> to vector<64x192xbf16>
    %c1_168 = arith.constant 1 : index
    %c0_169 = arith.constant 0 : index
    %c0_170 = arith.constant 0 : index
    %438 = vector.load %arg22[%c1_168, %c0_169, %c0_170] : memref<2x1x192xf32, #tpu.memory_space<vmem>>, vector<1x1x192xf32>
    %439 = vector.shape_cast %438 : vector<1x1x192xf32> to vector<1x192xf32>
    %440 = vector.shape_cast %407 : vector<2x16x64xf32> to vector<32x64xf32>
    %441 = arith.truncf %440 : vector<32x64xf32> to vector<32x64xbf16>
    %cst_171 = arith.constant dense<0.000000e+00> : vector<32x192xf32>
    %442 = tpu.matmul %441, %433, %cst_171 {dimension_numbers = #tpu.dot_dimension_numbers<[1], [0], [0], [1], [0, 0, 1, 1], [], []>} : vector<32x64xbf16>, vector<64x192xbf16>, vector<32x192xf32> -> vector<32x192xf32>
    %443 = vector.broadcast %435 : vector<1x192xf32> to vector<32x192xf32>
    %444 = arith.addf %442, %443 : vector<32x192xf32>
    %445 = vector.shape_cast %444 : vector<32x192xf32> to vector<2x16x192xf32>
    %446 = vector.shape_cast %431 : vector<2x8x64xf32> to vector<16x64xf32>
    %447 = arith.truncf %446 : vector<16x64xf32> to vector<16x64xbf16>
    %cst_172 = arith.constant dense<0.000000e+00> : vector<16x192xf32>
    %448 = tpu.matmul %447, %437, %cst_172 {dimension_numbers = #tpu.dot_dimension_numbers<[1], [0], [0], [1], [0, 0, 1, 1], [], []>} : vector<16x64xbf16>, vector<64x192xbf16>, vector<16x192xf32> -> vector<16x192xf32>
    %449 = vector.broadcast %439 : vector<1x192xf32> to vector<16x192xf32>
    %450 = arith.addf %448, %449 : vector<16x192xf32>
    %451 = vector.shape_cast %450 : vector<16x192xf32> to vector<2x8x192xf32>
    %452 = tpu.concatenate %445, %451 in 1 : vector<2x16x192xf32>, vector<2x8x192xf32> -> vector<2x24x192xf32>
    %453 = vector.extract_strided_slice %452 {offsets = [0, 0, 0], sizes = [2, 24, 64], strides = [1, 1, 1]} : vector<2x24x192xf32> to vector<2x24x64xf32>
    %454 = vector.extract_strided_slice %452 {offsets = [0, 0, 64], sizes = [2, 24, 64], strides = [1, 1, 1]} : vector<2x24x192xf32> to vector<2x24x64xf32>
    %455 = vector.extract_strided_slice %452 {offsets = [0, 0, 128], sizes = [2, 24, 64], strides = [1, 1, 1]} : vector<2x24x192xf32> to vector<2x24x64xf32>
    %456 = vector.extract_strided_slice %453 {offsets = [0, 0, 0], sizes = [2, 24, 16], strides = [1, 1, 1]} : vector<2x24x64xf32> to vector<2x24x16xf32>
    %457 = vector.extract_strided_slice %453 {offsets = [0, 0, 16], sizes = [2, 24, 16], strides = [1, 1, 1]} : vector<2x24x64xf32> to vector<2x24x16xf32>
    %458 = vector.extract_strided_slice %453 {offsets = [0, 0, 32], sizes = [2, 24, 16], strides = [1, 1, 1]} : vector<2x24x64xf32> to vector<2x24x16xf32>
    %459 = vector.extract_strided_slice %453 {offsets = [0, 0, 48], sizes = [2, 24, 16], strides = [1, 1, 1]} : vector<2x24x64xf32> to vector<2x24x16xf32>
    %460 = tpu.concatenate %456, %457, %458, %459 in 0 : vector<2x24x16xf32>, vector<2x24x16xf32>, vector<2x24x16xf32>, vector<2x24x16xf32> -> vector<8x24x16xf32>
    %461 = vector.extract_strided_slice %454 {offsets = [0, 0, 0], sizes = [2, 24, 16], strides = [1, 1, 1]} : vector<2x24x64xf32> to vector<2x24x16xf32>
    %462 = vector.extract_strided_slice %454 {offsets = [0, 0, 16], sizes = [2, 24, 16], strides = [1, 1, 1]} : vector<2x24x64xf32> to vector<2x24x16xf32>
    %463 = vector.extract_strided_slice %454 {offsets = [0, 0, 32], sizes = [2, 24, 16], strides = [1, 1, 1]} : vector<2x24x64xf32> to vector<2x24x16xf32>
    %464 = vector.extract_strided_slice %454 {offsets = [0, 0, 48], sizes = [2, 24, 16], strides = [1, 1, 1]} : vector<2x24x64xf32> to vector<2x24x16xf32>
    %465 = tpu.concatenate %461, %462, %463, %464 in 0 : vector<2x24x16xf32>, vector<2x24x16xf32>, vector<2x24x16xf32>, vector<2x24x16xf32> -> vector<8x24x16xf32>
    %466 = vector.extract_strided_slice %455 {offsets = [0, 0, 0], sizes = [2, 24, 16], strides = [1, 1, 1]} : vector<2x24x64xf32> to vector<2x24x16xf32>
    %467 = vector.extract_strided_slice %455 {offsets = [0, 0, 16], sizes = [2, 24, 16], strides = [1, 1, 1]} : vector<2x24x64xf32> to vector<2x24x16xf32>
    %468 = vector.extract_strided_slice %455 {offsets = [0, 0, 32], sizes = [2, 24, 16], strides = [1, 1, 1]} : vector<2x24x64xf32> to vector<2x24x16xf32>
    %469 = vector.extract_strided_slice %455 {offsets = [0, 0, 48], sizes = [2, 24, 16], strides = [1, 1, 1]} : vector<2x24x64xf32> to vector<2x24x16xf32>
    %470 = tpu.concatenate %466, %467, %468, %469 in 0 : vector<2x24x16xf32>, vector<2x24x16xf32>, vector<2x24x16xf32>, vector<2x24x16xf32> -> vector<8x24x16xf32>
    %471 = arith.truncf %460 : vector<8x24x16xf32> to vector<8x24x16xbf16>
    %472 = arith.truncf %465 : vector<8x24x16xf32> to vector<8x24x16xbf16>
    "tpu.trace_start"() <{level = 10 : i32, message = "bqd,bkd->bqk"}> : () -> ()
    %cst_173 = arith.constant dense<0.000000e+00> : vector<8x24x24xf32>
    %473 = tpu.matmul %471, %472, %cst_173 {dimension_numbers = #tpu.dot_dimension_numbers<[2], [2], [1], [1], [0, 0, 0, 1, 1, 1], [0], [0]>} : vector<8x24x16xbf16>, vector<8x24x16xbf16>, vector<8x24x24xf32> -> vector<8x24x24xf32>
    "tpu.trace_stop"() : () -> ()
    %cst_174 = arith.constant 2.500000e-01 : f32
    %474 = vector.broadcast %cst_174 : f32 to vector<8x24x24xf32>
    %475 = arith.mulf %473, %474 : vector<8x24x24xf32>
    %cst_175 = arith.constant dense<0xFF800000> : vector<8x24xf32>
    %476 = vector.multi_reduction <maximumf>, %475, %cst_175 [2] : vector<8x24x24xf32> to vector<8x24xf32>
    %477 = vector.shape_cast %476 : vector<8x24xf32> to vector<8x24x1xf32>
    %478 = vector.broadcast %477 : vector<8x24x1xf32> to vector<8x24x24xf32>
    %479 = arith.subf %475, %478 : vector<8x24x24xf32>
    %480 = math.exp %479 : vector<8x24x24xf32>
    %cst_176 = arith.constant dense<0.000000e+00> : vector<8x24xf32>
    %481 = vector.multi_reduction <add>, %480, %cst_176 [2] : vector<8x24x24xf32> to vector<8x24xf32>
    %482 = vector.shape_cast %481 : vector<8x24xf32> to vector<8x24x1xf32>
    %483 = tpu.reciprocal %482 {approx = true} : vector<8x24x1xf32> -> vector<8x24x1xf32>
    %484 = vector.broadcast %483 : vector<8x24x1xf32> to vector<8x24x24xf32>
    %485 = arith.mulf %480, %484 : vector<8x24x24xf32>
    %486 = arith.truncf %485 : vector<8x24x24xf32> to vector<8x24x24xbf16>
    %487 = arith.truncf %470 : vector<8x24x16xf32> to vector<8x24x16xbf16>
    "tpu.trace_start"() <{level = 10 : i32, message = "bqk,bkd->bqd"}> : () -> ()
    %cst_177 = arith.constant dense<0.000000e+00> : vector<8x24x16xf32>
    %488 = tpu.matmul %486, %487, %cst_177 {dimension_numbers = #tpu.dot_dimension_numbers<[2], [1], [1], [2], [0, 0, 0, 1, 1, 2], [0], [0]>} : vector<8x24x24xbf16>, vector<8x24x16xbf16>, vector<8x24x16xf32> -> vector<8x24x16xf32>
    "tpu.trace_stop"() : () -> ()
    %489 = vector.shape_cast %488 : vector<8x24x16xf32> to vector<4x2x24x16xf32>
    %490 = vector.extract_strided_slice %489 {offsets = [0, 0, 0, 0], sizes = [1, 2, 24, 16], strides = [1, 1, 1, 1]} : vector<4x2x24x16xf32> to vector<1x2x24x16xf32>
    %491 = vector.shape_cast %490 : vector<1x2x24x16xf32> to vector<2x24x16xf32>
    %492 = vector.extract_strided_slice %489 {offsets = [1, 0, 0, 0], sizes = [1, 2, 24, 16], strides = [1, 1, 1, 1]} : vector<4x2x24x16xf32> to vector<1x2x24x16xf32>
    %493 = vector.shape_cast %492 : vector<1x2x24x16xf32> to vector<2x24x16xf32>
    %494 = vector.extract_strided_slice %489 {offsets = [2, 0, 0, 0], sizes = [1, 2, 24, 16], strides = [1, 1, 1, 1]} : vector<4x2x24x16xf32> to vector<1x2x24x16xf32>
    %495 = vector.shape_cast %494 : vector<1x2x24x16xf32> to vector<2x24x16xf32>
    %496 = vector.extract_strided_slice %489 {offsets = [3, 0, 0, 0], sizes = [1, 2, 24, 16], strides = [1, 1, 1, 1]} : vector<4x2x24x16xf32> to vector<1x2x24x16xf32>
    %497 = vector.shape_cast %496 : vector<1x2x24x16xf32> to vector<2x24x16xf32>
    %498 = tpu.concatenate %491, %493, %495, %497 in 2 : vector<2x24x16xf32>, vector<2x24x16xf32>, vector<2x24x16xf32>, vector<2x24x16xf32> -> vector<2x24x64xf32>
    %499 = vector.extract_strided_slice %498 {offsets = [0, 0, 0], sizes = [2, 16, 64], strides = [1, 1, 1]} : vector<2x24x64xf32> to vector<2x16x64xf32>
    %c1_178 = arith.constant 1 : index
    %c0_179 = arith.constant 0 : index
    %c0_180 = arith.constant 0 : index
    %500 = vector.load %arg23[%c1_178, %c0_179, %c0_180] : memref<2x64x64xbf16, #tpu.memory_space<vmem>>, vector<1x64x64xbf16>
    %501 = vector.shape_cast %500 : vector<1x64x64xbf16> to vector<64x64xbf16>
    %c1_181 = arith.constant 1 : index
    %c0_182 = arith.constant 0 : index
    %c0_183 = arith.constant 0 : index
    %502 = vector.load %arg24[%c1_181, %c0_182, %c0_183] : memref<2x1x64xf32, #tpu.memory_space<vmem>>, vector<1x1x64xf32>
    %503 = vector.shape_cast %502 : vector<1x1x64xf32> to vector<1x64xf32>
    %504 = vector.shape_cast %499 : vector<2x16x64xf32> to vector<32x64xf32>
    %505 = arith.truncf %504 : vector<32x64xf32> to vector<32x64xbf16>
    %cst_184 = arith.constant dense<0.000000e+00> : vector<32x64xf32>
    %506 = tpu.matmul %505, %501, %cst_184 {dimension_numbers = #tpu.dot_dimension_numbers<[1], [0], [0], [1], [0, 0, 1, 1], [], []>} : vector<32x64xbf16>, vector<64x64xbf16>, vector<32x64xf32> -> vector<32x64xf32>
    %507 = vector.broadcast %503 : vector<1x64xf32> to vector<32x64xf32>
    %508 = arith.addf %506, %507 : vector<32x64xf32>
    %509 = vector.shape_cast %508 : vector<32x64xf32> to vector<2x16x64xf32>
    %510 = vector.broadcast %373 : vector<2x1x64xf32> to vector<2x16x64xf32>
    %511 = arith.mulf %510, %509 : vector<2x16x64xf32>
    %512 = arith.addf %299, %511 : vector<2x16x64xf32>
    %cst_185 = arith.constant dense<0.000000e+00> : vector<2x16xf32>
    %513 = vector.multi_reduction <add>, %512, %cst_185 [2] : vector<2x16x64xf32> to vector<2x16xf32>
    %514 = vector.shape_cast %513 : vector<2x16xf32> to vector<2x16x1xf32>
    %cst_186 = arith.constant 6.400000e+01 : f32
    %515 = vector.broadcast %cst_186 : f32 to vector<2x16x1xf32>
    %516 = arith.divf %514, %515 : vector<2x16x1xf32>
    %517 = vector.broadcast %516 : vector<2x16x1xf32> to vector<2x16x64xf32>
    %518 = arith.subf %512, %517 : vector<2x16x64xf32>
    %519 = arith.mulf %518, %518 : vector<2x16x64xf32>
    %cst_187 = arith.constant dense<0.000000e+00> : vector<2x16xf32>
    %520 = vector.multi_reduction <add>, %519, %cst_187 [2] : vector<2x16x64xf32> to vector<2x16xf32>
    %521 = vector.shape_cast %520 : vector<2x16xf32> to vector<2x16x1xf32>
    %cst_188 = arith.constant 6.400000e+01 : f32
    %522 = vector.broadcast %cst_188 : f32 to vector<2x16x1xf32>
    %523 = arith.divf %521, %522 : vector<2x16x1xf32>
    %524 = vector.broadcast %516 : vector<2x16x1xf32> to vector<2x16x64xf32>
    %525 = arith.subf %512, %524 : vector<2x16x64xf32>
    %cst_189 = arith.constant 9.99999997E-7 : f32
    %526 = vector.broadcast %cst_189 : f32 to vector<2x16x1xf32>
    %527 = arith.addf %523, %526 : vector<2x16x1xf32>
    %528 = math.rsqrt %527 : vector<2x16x1xf32>
    %529 = vector.broadcast %528 : vector<2x16x1xf32> to vector<2x16x64xf32>
    %530 = arith.mulf %525, %529 : vector<2x16x64xf32>
    %cst_190 = arith.constant 1.000000e+00 : f32
    %531 = vector.broadcast %cst_190 : f32 to vector<2x1x64xf32>
    %532 = arith.addf %531, %377 : vector<2x1x64xf32>
    %533 = vector.broadcast %532 : vector<2x1x64xf32> to vector<2x16x64xf32>
    %534 = arith.mulf %530, %533 : vector<2x16x64xf32>
    %535 = vector.broadcast %375 : vector<2x1x64xf32> to vector<2x16x64xf32>
    %536 = arith.addf %534, %535 : vector<2x16x64xf32>
    %c1_191 = arith.constant 1 : index
    %c0_192 = arith.constant 0 : index
    %c0_193 = arith.constant 0 : index
    %537 = vector.load %arg27[%c1_191, %c0_192, %c0_193] : memref<2x64x256xbf16, #tpu.memory_space<vmem>>, vector<1x64x256xbf16>
    %538 = vector.shape_cast %537 : vector<1x64x256xbf16> to vector<64x256xbf16>
    %c1_194 = arith.constant 1 : index
    %c0_195 = arith.constant 0 : index
    %c0_196 = arith.constant 0 : index
    %539 = vector.load %arg28[%c1_194, %c0_195, %c0_196] : memref<2x1x256xf32, #tpu.memory_space<vmem>>, vector<1x1x256xf32>
    %540 = vector.shape_cast %539 : vector<1x1x256xf32> to vector<1x256xf32>
    %541 = vector.shape_cast %536 : vector<2x16x64xf32> to vector<32x64xf32>
    %542 = arith.truncf %541 : vector<32x64xf32> to vector<32x64xbf16>
    %cst_197 = arith.constant dense<0.000000e+00> : vector<32x256xf32>
    %543 = tpu.matmul %542, %538, %cst_197 {dimension_numbers = #tpu.dot_dimension_numbers<[1], [0], [0], [1], [0, 0, 1, 1], [], []>} : vector<32x64xbf16>, vector<64x256xbf16>, vector<32x256xf32> -> vector<32x256xf32>
    %544 = vector.broadcast %540 : vector<1x256xf32> to vector<32x256xf32>
    %545 = arith.addf %543, %544 : vector<32x256xf32>
    %546 = vector.shape_cast %545 : vector<32x256xf32> to vector<2x16x256xf32>
    %547 = arith.mulf %546, %546 : vector<2x16x256xf32>
    %548 = arith.mulf %546, %547 : vector<2x16x256xf32>
    %cst_198 = arith.constant 4.471500e-02 : f32
    %549 = vector.broadcast %cst_198 : f32 to vector<2x16x256xf32>
    %550 = arith.mulf %549, %548 : vector<2x16x256xf32>
    %551 = arith.addf %546, %550 : vector<2x16x256xf32>
    %cst_199 = arith.constant 0.797884583 : f32
    %552 = vector.broadcast %cst_199 : f32 to vector<2x16x256xf32>
    %553 = arith.mulf %552, %551 : vector<2x16x256xf32>
    %554 = math.tanh %553 : vector<2x16x256xf32>
    %cst_200 = arith.constant 1.000000e+00 : f32
    %555 = vector.broadcast %cst_200 : f32 to vector<2x16x256xf32>
    %556 = arith.addf %555, %554 : vector<2x16x256xf32>
    %cst_201 = arith.constant 5.000000e-01 : f32
    %557 = vector.broadcast %cst_201 : f32 to vector<2x16x256xf32>
    %558 = arith.mulf %557, %556 : vector<2x16x256xf32>
    %559 = arith.mulf %546, %558 : vector<2x16x256xf32>
    %c1_202 = arith.constant 1 : index
    %c0_203 = arith.constant 0 : index
    %c0_204 = arith.constant 0 : index
    %560 = vector.load %arg29[%c1_202, %c0_203, %c0_204] : memref<2x256x64xbf16, #tpu.memory_space<vmem>>, vector<1x256x64xbf16>
    %561 = vector.shape_cast %560 : vector<1x256x64xbf16> to vector<256x64xbf16>
    %c1_205 = arith.constant 1 : index
    %c0_206 = arith.constant 0 : index
    %c0_207 = arith.constant 0 : index
    %562 = vector.load %arg30[%c1_205, %c0_206, %c0_207] : memref<2x1x64xf32, #tpu.memory_space<vmem>>, vector<1x1x64xf32>
    %563 = vector.shape_cast %562 : vector<1x1x64xf32> to vector<1x64xf32>
    %564 = vector.shape_cast %559 : vector<2x16x256xf32> to vector<32x256xf32>
    %565 = arith.truncf %564 : vector<32x256xf32> to vector<32x256xbf16>
    %cst_208 = arith.constant dense<0.000000e+00> : vector<32x64xf32>
    %566 = tpu.matmul %565, %561, %cst_208 {dimension_numbers = #tpu.dot_dimension_numbers<[1], [0], [0], [1], [0, 0, 1, 1], [], []>} : vector<32x256xbf16>, vector<256x64xbf16>, vector<32x64xf32> -> vector<32x64xf32>
    %567 = vector.broadcast %563 : vector<1x64xf32> to vector<32x64xf32>
    %568 = arith.addf %566, %567 : vector<32x64xf32>
    %569 = vector.shape_cast %568 : vector<32x64xf32> to vector<2x16x64xf32>
    %570 = vector.broadcast %379 : vector<2x1x64xf32> to vector<2x16x64xf32>
    %571 = arith.mulf %570, %569 : vector<2x16x64xf32>
    %572 = arith.addf %512, %571 : vector<2x16x64xf32>
    %c0_209 = arith.constant 0 : index
    %c0_210 = arith.constant 0 : index
    %573 = vector.load %arg35[%c0_209, %c0_210] : memref<64x128xbf16, #tpu.memory_space<vmem>>, vector<64x128xbf16>
    %c0_211 = arith.constant 0 : index
    %c0_212 = arith.constant 0 : index
    %574 = vector.load %arg36[%c0_211, %c0_212] : memref<1x128xf32, #tpu.memory_space<vmem>>, vector<1x128xf32>
    %575 = arith.truncf %44 : vector<2x64xf32> to vector<2x64xbf16>
    %cst_213 = arith.constant dense<0.000000e+00> : vector<2x128xf32>
    %576 = tpu.matmul %575, %573, %cst_213 {dimension_numbers = #tpu.dot_dimension_numbers<[1], [0], [0], [1], [0, 0, 1, 1], [], []>} : vector<2x64xbf16>, vector<64x128xbf16>, vector<2x128xf32> -> vector<2x128xf32>
    %577 = vector.broadcast %574 : vector<1x128xf32> to vector<2x128xf32>
    %578 = arith.addf %576, %577 : vector<2x128xf32>
    %579 = vector.extract_strided_slice %578 {offsets = [0, 0], sizes = [2, 64], strides = [1, 1]} : vector<2x128xf32> to vector<2x64xf32>
    %580 = vector.shape_cast %579 : vector<2x64xf32> to vector<2x1x64xf32>
    %581 = vector.extract_strided_slice %578 {offsets = [0, 64], sizes = [2, 64], strides = [1, 1]} : vector<2x128xf32> to vector<2x64xf32>
    %582 = vector.shape_cast %581 : vector<2x64xf32> to vector<2x1x64xf32>
    %cst_214 = arith.constant dense<0.000000e+00> : vector<2x16xf32>
    %583 = vector.multi_reduction <add>, %572, %cst_214 [2] : vector<2x16x64xf32> to vector<2x16xf32>
    %584 = vector.shape_cast %583 : vector<2x16xf32> to vector<2x16x1xf32>
    %cst_215 = arith.constant 6.400000e+01 : f32
    %585 = vector.broadcast %cst_215 : f32 to vector<2x16x1xf32>
    %586 = arith.divf %584, %585 : vector<2x16x1xf32>
    %587 = vector.broadcast %586 : vector<2x16x1xf32> to vector<2x16x64xf32>
    %588 = arith.subf %572, %587 : vector<2x16x64xf32>
    %589 = arith.mulf %588, %588 : vector<2x16x64xf32>
    %cst_216 = arith.constant dense<0.000000e+00> : vector<2x16xf32>
    %590 = vector.multi_reduction <add>, %589, %cst_216 [2] : vector<2x16x64xf32> to vector<2x16xf32>
    %591 = vector.shape_cast %590 : vector<2x16xf32> to vector<2x16x1xf32>
    %cst_217 = arith.constant 6.400000e+01 : f32
    %592 = vector.broadcast %cst_217 : f32 to vector<2x16x1xf32>
    %593 = arith.divf %591, %592 : vector<2x16x1xf32>
    %594 = vector.broadcast %586 : vector<2x16x1xf32> to vector<2x16x64xf32>
    %595 = arith.subf %572, %594 : vector<2x16x64xf32>
    %cst_218 = arith.constant 9.99999997E-7 : f32
    %596 = vector.broadcast %cst_218 : f32 to vector<2x16x1xf32>
    %597 = arith.addf %593, %596 : vector<2x16x1xf32>
    %598 = math.rsqrt %597 : vector<2x16x1xf32>
    %599 = vector.broadcast %598 : vector<2x16x1xf32> to vector<2x16x64xf32>
    %600 = arith.mulf %595, %599 : vector<2x16x64xf32>
    %cst_219 = arith.constant 1.000000e+00 : f32
    %601 = vector.broadcast %cst_219 : f32 to vector<2x1x64xf32>
    %602 = arith.addf %601, %580 : vector<2x1x64xf32>
    %603 = vector.broadcast %602 : vector<2x1x64xf32> to vector<2x16x64xf32>
    %604 = arith.mulf %600, %603 : vector<2x16x64xf32>
    %605 = vector.broadcast %582 : vector<2x1x64xf32> to vector<2x16x64xf32>
    %606 = arith.addf %604, %605 : vector<2x16x64xf32>
    %c0_220 = arith.constant 0 : index
    %c0_221 = arith.constant 0 : index
    %607 = vector.load %arg37[%c0_220, %c0_221] : memref<64x16xbf16, #tpu.memory_space<vmem>>, vector<64x16xbf16>
    %c0_222 = arith.constant 0 : index
    %c0_223 = arith.constant 0 : index
    %608 = vector.load %arg38[%c0_222, %c0_223] : memref<1x16xf32, #tpu.memory_space<vmem>>, vector<1x16xf32>
    %609 = vector.shape_cast %606 : vector<2x16x64xf32> to vector<32x64xf32>
    %610 = arith.truncf %609 : vector<32x64xf32> to vector<32x64xbf16>
    %cst_224 = arith.constant dense<0.000000e+00> : vector<32x16xf32>
    %611 = tpu.matmul %610, %607, %cst_224 {dimension_numbers = #tpu.dot_dimension_numbers<[1], [0], [0], [1], [0, 0, 1, 1], [], []>} : vector<32x64xbf16>, vector<64x16xbf16>, vector<32x16xf32> -> vector<32x16xf32>
    %612 = vector.broadcast %608 : vector<1x16xf32> to vector<32x16xf32>
    %613 = arith.addf %611, %612 : vector<32x16xf32>
    %614 = vector.shape_cast %613 : vector<32x16xf32> to vector<2x16x16xf32>
    %c0_225 = arith.constant 0 : index
    %c0_226 = arith.constant 0 : index
    %c0_227 = arith.constant 0 : index
    %615 = vector.load %arg39[%c0_225, %c0_226, %c0_227] : memref<2x16x16xf32, #tpu.memory_space<vmem>>, vector<2x16x16xf32>
    tpu.vector_store %arg39[%c0_225, %c0_226, %c0_227], %614 {strides = array<i32>} : memref<2x16x16xf32, #tpu.memory_space<vmem>>, vector<2x16x16xf32>,
    return
  }
}

</mosaic_0001>

<bundles_post_ra>
// kernel: sdv3_encoder_forward.1
= control target key start
LH: loop header
LB: loop body
LE: loop exit
PB: predicated region body
PF: predicated region fallthrough
CT: control target
= control target key end

     0   :  { %s7742_s3 = smov 9   ;;  %s7743_s7 = smov 13   ;;  %vm185_vm0 = vcmask 261120   ;;  %vm306_vm1 = vcmask 392192   ;;  %vm259_vm4 = vcmask 523264   ;;  %s9974_s0 = inlined_call_operand.smem [shape: u32[40], index: -1, kind: input, shape index: {}] }
   0x1   :  { %s6004_s6 = sld [smem:[%s9974_s0 + %s7742_s3]]   ;;  %s7744_s11 = smov 3  }
   0x2   :  { %s6008_s10 = sld [smem:[%s9974_s0 + %s7743_s7]]   ;;  %s7745_s15 = smov 4  }
   0x3   :  { %s5998_s14 = sld [smem:[%s9974_s0 + %s7744_s11]]   ;;  %s7746_s19 = smov 7  }
   0x4   :  { %s5999_s18 = sld [smem:[%s9974_s0 + %s7745_s15]]   ;;  %s7747_s23 = smov 10  }
   0x5   :  { %s6002_s22 = sld [smem:[%s9974_s0 + %s7746_s19]]   ;;  %s7748_s27 = smov 14  }
   0x6   :  { %s7810_s26 = sld [smem:[%s9974_s0 + %s7747_s23]]   ;;  %s7749_s1 = smov 2  }
   0x7   :  { %v6968_v0 = vld [vmem:[%s6004_s6 + $0x8] sm:$0xff]  ;;  %v6967_v2 = vld [vmem:[%s6004_s6] sm:$0xff]  ;;  %s7816_s30 = sld [smem:[%s9974_s0 + %s7748_s27]]   ;;  %s7750_s5 = smov 8  }
   0x8   :  { %v6975_v1 = vld [vmem:[%s6008_s10 + $0x10] sm:$0xff]  ;;  %195 = vmatpush.bf16.msra.mxu0 %v6968_v0  ;;  %v6974_v4 = vld [vmem:[%s6008_s10 + $0x8] sm:$0xff]  ;;  %v6973_v6 = vld [vmem:[%s6008_s10] sm:$0xff]  ;;  %s5997_s4 = sld [smem:[%s9974_s0 + %s7749_s1]]   ;;  %s7751_s9 = smov 11  }
   0x9   :  { %v163_v3 = vld [vmem:[%s5998_s14] sm:$0x3]  ;;  %315 = vmatpush.bf16.msra.mxu2 %v6975_v1  ;;  %s7825_s8 = sld [smem:[%s9974_s0 + %s7750_s5]]   ;;  %s7752_s13 = smov 15  }
   0xa   :  { %v169_v5 = vpack.c.bf16 %v163_v3, %v163_v3  ;;  %v276_v7 = vld [vmem:[%s5999_s18] sm:$0x3]  ;;  %s6006_s12 = sld [smem:[%s9974_s0 + %s7751_s9]]   ;;  %s7753_s17 = smov 5  }
   0xb   :  { %v6985_v8 = vld [vmem:[%s6002_s22 + $0x8] sm:$0xff]  ;;  %v284_v9 = vpack.c.bf16 %v276_v7, %v276_v7  ;;  %v6984_v10 = vld [vmem:[%s6002_s22] sm:$0xff]  ;;  %s6010_s16 = sld [smem:[%s9974_s0 + %s7752_s13]]   ;;  %s7754_s21 = smov 12  }
   0xc   :  { %196 = vmatpush.bf16.msra.mxu0 %v6967_v2  ;;  %v7430_v17 = vld [vmem:[%s7810_s26] ss:$0 sm:$0xff]  ;;  %s6000_s20 = sld [smem:[%s9974_s0 + %s7753_s17]]   ;;  %s7755_s25 = smov 16  }
   0xd   :  { %316 = vmatpush.bf16.msra.mxu2 %v6974_v4  ;;  %v7431_v26 = vld [vmem:[%s7816_s30] ss:$0 sm:$0xff]  ;;  %s7846_s24 = sld [smem:[%s9974_s0 + %s7754_s21]]   ;;  %s7756_s2 = smov 6  }
   0xe   :  { %v490_v11 = vld [vmem:[%s5997_s4] sm:$0xff]  ;;  %v491_v12 = vld [vmem:[%s5997_s4 + $0x8] sm:$0xff]  ;;  %s7859_s28 = sld [smem:[%s9974_s0 + %s7755_s25]]   ;;  %s7758_s6 = smov 17  }
   0xf   :  { %6043 = vmatmul.msk.bf16.vlgmr.msra.gmra.mxu0 %vm185_vm0, %v169_v5  ;;  %v497_v13 = vpack.c.bf16 %v491_v12, %v490_v11  ;;  %v7432_v43 = vld [vmem:[%s7825_s8] ss:$0 sm:$0xff]  ;;  %s1_s1 = sld [smem:[%s9974_s0]]   ;;  %s7759_s10 = smov 1  }
  0x10   :  { %v6972_v14 = vld [vmem:[%s6006_s12 + $0x18] sm:$0xff]  ;;  %v6971_v15 = vld [vmem:[%s6006_s12 + $0x10] sm:$0xff]  ;;  %v6970_v16 = vld [vmem:[%s6006_s12 + $0x8] sm:$0xff]  ;;  %s7871_s5 = sld [smem:[%s9974_s0 + %s7756_s2]]   ;;  %s7760_s14 = smov 18  }
  0x11   :  { %317 = vmatpush.bf16.msra.mxu2 %v6973_v6  ;;  %267 = vmatpush.bf16.msra.mxu1 %v6972_v14  ;;  %v6979_v18 = vld [vmem:[%s6010_s16 + $0x18] sm:$0xff]  ;;  %v6969_v20 = vld [vmem:[%s6006_s12] sm:$0xff]  ;;  %v6978_v22 = vld [vmem:[%s6010_s16 + $0x10] sm:$0xff]  ;;  %s7886_s9 = sld [smem:[%s9974_s0 + %s7758_s6]]   ;;  %s7761_s18 = smov 64  }
  0x12   :  { %387 = vmatpush.bf16.msrb.mxu0 %v6979_v18  ;;  %v6977_v24 = vld [vmem:[%s6010_s16 + $0x8] sm:$0xff]  ;;  %v6976_v27 = vld [vmem:[%s6010_s16] sm:$0xff]  ;;  %v6983_v32 = vld [vmem:[%s6000_s20 + $0x18] sm:$0xff]  ;;  %s7933_s13 = sld [smem:[%s9974_s0 + %s7759_s10]]   ;;  %s7762_s19 = smov 19  }
  0x13   :  { %v6982_v34 = vld [vmem:[%s6000_s20 + $0x10] sm:$0xff]  ;;  %v6981_v37 = vld [vmem:[%s6000_s20 + $0x8] sm:$0xff]  ;;  %v6980_v44 = vld [vmem:[%s6000_s20] sm:$0xff]  ;;  %s8002_s17 = sld [smem:[%s9974_s0 + %s7760_s14]]   ;;  %s7763_s23 = smov 21  }
  0x14   :  { %6074 = vmatmul.msk.bf16.vlgmr.msra.gmra.mxu2 %vm306_vm1, %v284_v9  ;;  %s8049_s22 = sld [smem:[%s9974_s0 + %s7762_s19]]   ;;  %s7765_s2 = smov 22  }
  0x15   :  { %522 = vmatpush.bf16.msrb.mxu2 %v6985_v8  ;;  %268 = vmatpush.bf16.msra.mxu1 %v6971_v15  ;;  %v417_v7 = vld [vmem:[%s1_s1] sm:$0xff]  ;;  %v418_v8 = vld [vmem:[%s1_s1 + $0x8] sm:$0xff]  ;;  %v420_v11 = vld [vmem:[%s1_s1 + $0x18] sm:$0xff]  ;;  %s8058_s27 = sld [smem:[%s9974_s0 + %s7763_s23]]   ;;  %s7766_s6 = smov 112  }
  0x16   :  { %388 = vmatpush.bf16.msrb.mxu0 %v6978_v22  ;;  %v430_v9 = vpack.c.bf16 %v418_v8, %v417_v7  ;;  %s7767_s7 = smov 96   ;;  %s7768_s8 = smov 80  }
  0x17   :  { %v6125_v8 = vld [vmem:[%s7886_s9 + $0x18] sm:$0xf0]  ;;  %s7769_s10 = smov 32   ;;  %s7770_s11 = smov 48  }
  0x18   :  { %s7771_s12 = smov 23   ;;  %s7772_s16 = smov 24  }
  0x19   :  { %523 = vmatpush.bf16.msrb.mxu2 %v6984_v10  ;;  %269 = vmatpush.bf16.msra.mxu1 %v6970_v16  ;;  %v419_v10 = vld [vmem:[%s1_s1 + $0x10] sm:$0xff]  ;;  %s8641_s15 = sld [smem:[%s9974_s0 + %s7771_s12]]   ;;  %s7773_s23 = smov 25  }
  0x1a   :  { %389 = vmatpush.bf16.msrb.mxu0 %v6977_v24  ;;  %v431_v12 = vpack.c.bf16 %v420_v11, %v419_v10  ;;  %v6990_v10 = vld [vmem:[%s7886_s9 + $0x1c] sm:$0xf0]  ;;  %s8646_s21 = sld [smem:[%s9974_s0 + %s7772_s16]]   ;;  %s7774_s29 = smov 26  }
  0x1b   :  { %s8683_s3 = sld [smem:[%s9974_s0 + %s7774_s29]]   ;;  %s7775_s4 = smov 27  }
  0x1c   :  { %s8784_s14 = sld [smem:[%s9974_s0 + %s7775_s4]]   ;;  %s7776_s16 = smov 31  }
  0x1d   :  { %270 = vmatpush.bf16.msra.mxu1 %v6969_v20  ;;  %s7779_s4 = smov 33   ;;  %s7780_s19 = smov 30  }
  0x1e   :  { %390 = vmatpush.bf16.msrb.mxu0 %v6976_v27  ;;  %v7004_v27 = vld [vmem:[%s7886_s9 + $0x94] sm:$0xf] }
  0x22   :  { %469 = vmatpush.bf16.msra.mxu0 %v6983_v32  ;;  %v7008_v32 = vld [vmem:[%s7886_s9 + $0xac] sm:$0xf0] }
  0x24   :  { %6120 = vmatmul.msk.bf16.vlgmr.msrb.gmra.mxu2 %vm185_vm0, %v497_v13  ;;  %v7757_v13 = vmov 64.0  }
  0x26   :  { %470 = vmatpush.bf16.msra.mxu0 %v6982_v34 }
  0x2a   :  { %471 = vmatpush.bf16.msra.mxu0 %v6981_v37 }
  0x2e   :  { %472 = vmatpush.bf16.msra.mxu0 %v6980_v44  ;;  %v7002_v44 = vld [vmem:[%s7886_s9 + $0x7c] sm:$0xf0] }
  0x8c   :  { %v198_v19 = vpop.f32.mrf.mxu0 }
  0x8d   :  { %v199_v21 = vadd.f32 %v7430_v17, %v198_v19 }
  0x8f   :  { %v6044_v23 = vmul.f32 -1.442695, %v199_v21 }
  0x91   :  { %7444 = vpow2.f32 %v6044_v23 }
  0x94   :  { %v200_v25 = vpop.f32.mrf.mxu0 }
  0x95   :  { %v6195_v25 = vld [vmem:[%s7886_s9 + $0x90] sm:$0xf] }
  0x97   :  { %v7445_v28 = vpop.eup %7444  ;;  %v319_v29 = vpop.f32.mrf.mxu2 }
  0x98   :  { %v205_v30 = vadd.f32 1.0, %v7445_v28  ;;  %v7839_v31 = vadd.f32 %v7431_v26, %v319_v29  ;;  %v7007_v26 = vld [vmem:[%s7886_s9 + $0xa4] sm:$0xf0] }
  0x99   :  { %v6196_v29 = vor.u32 %v7007_v26, %v6195_v25  ;;  %v7009_v26 = vld [vmem:[%s7886_s9 + $0xb4] sm:$0xf0] }
  0x9a   :  { %7446 = vrcp.f32 %v205_v30  ;;  %v6075_v33 = vmul.f32 -1.442695, %v7839_v31  ;;  %v217_v41 = vand.u32 2147483648, %v205_v30  ;;  %vm211_vm2 = vweird.f32 %v205_v30 }
  0x9b   :  { %v215_v46 = vand.u32 2147483647, %v205_v30  ;;  %696 = vmatpush.bf16.msrb.mxu1 %v6196_v29  ;;  %v6999_v29 = vld [vmem:[%s7886_s9 + $0x6c] sm:$0xf] }
  0x9c   :  { %7448 = vpow2.f32 %v6075_v33  ;;  %v218_v49 = vor.u32 1.1754944e-38, %v217_v41 }
  0x9d   :  { %vm216_vm6 = vcmp.eq.f32.partialorder %v215_v46, 8.507059e+37 }
  0x9f   :  { %v321_v35 = vpop.f32.mrf.mxu2 }
  0xa0   :  { %v7447_v36 = vpop.eup %7446  ;;  %v7006_v35 = vld [vmem:[%s7886_s9 + $0xa4] sm:$0xf] }
  0xa1   :  { %v207_v38 = vmul.f32 %v7447_v36, %v205_v30  ;;  %vm212_vm3 = vweird.f32 %v7447_v36  ;;  %v6197_v30 = vld [vmem:[%s7886_s9 + $0xa8] sm:$0xf0] }
  0xa2   :  { %v7449_v39 = vpop.eup %7448  ;;  %vm213_vm5 = vmor %vm211_vm2, %vm212_vm3  ;;  %v6200_v33 = vor.u32 %v7004_v27, %v6197_v30  ;;  %v6181_v30 = vld [vmem:[%s7886_s9 + $0x80] sm:$0xf0] }
  0xa3   :  { %v208_v40 = vsub.f32 1.0, %v207_v38  ;;  %v326_v42 = vadd.f32 1.0, %v7449_v39  ;;  %v6171_v38 = vld [vmem:[%s7886_s9 + $0x60] sm:$0xf]  ;;  %v7001_v39 = vld [vmem:[%s7886_s9 + $0x74] sm:$0xf0] }
  0xa4   :  { %709 = vmatpush.bf16.msra.mxu3 %v6200_v33  ;;  %v6172_v41 = vor.u32 %v7001_v39, %v6171_v38  ;;  %v7003_v33 = vld [vmem:[%s7886_s9 + $0x84] sm:$0xf0]  ;;  %v6997_v39 = vld [vmem:[%s7886_s9 + $0x54] sm:$0xf0] }
  0xa5   :  { %v209_v45 = vmul.f32 %v7447_v36, %v208_v40  ;;  %7450 = vrcp.f32 %v326_v42  ;;  %v338_v60 = vand.u32 2147483648, %v326_v42  ;;  %v336_v63 = vand.u32 2147483647, %v326_v42  ;;  %v6998_v40 = vld [vmem:[%s7886_s9 + $0x64] sm:$0xf] }
  0xa6   :  { %vm332_vm8 = vweird.f32 %v326_v42  ;;  %7452 = vrcp.f32 %v7757_v13  ;;  %697 = vmatpush.bf16.msrb.mxu1 %v6172_v41  ;;  %v7435_v41 = vld [vmem:[%s7871_s5] ss:$0 sm:$0xff]  ;;  %s8130_s5 = sld [smem:[%s9974_s0 + %s7765_s2]]  }
  0xa7   :  { %v210_v47 = vadd.f32 %v7447_v36, %v209_v45  ;;  %v525_v48 = vpop.f32.mrf.mxu2  ;;  %v339_v2 = vor.u32 1.1754944e-38, %v338_v60  ;;  %vm337_vm10 = vcmp.eq.f32.partialorder %v336_v63, 8.507059e+37  ;;  %v7434_v60 = vld [vmem:[%s7859_s28] ss:$0 sm:$0xff]  ;;  %s7764_s28 = smov 20  }
  0xa8   :  { %v7848_v50 = vadd.f32 %v7432_v43, %v525_v48  ;;  %v6189_v48 = vld [vmem:[%s7886_s9 + $0x88] sm:$0xf0]  ;;  %s8125_s1 = sld [smem:[%s9974_s0 + %s7764_s28]]  }
  0xa9   :  { %v214_v51 = vsel %vm213_vm5, %v7447_v36, %v210_v47  ;;  %v6213_v36 = vld [vmem:[%s7886_s9 + $0xb8] sm:$0xf0]  ;;  %v7000_v47 = vld [vmem:[%s7886_s9 + $0x74] sm:$0xf]  ;;  %s8656_s28 = sld [smem:[%s9974_s0 + %s7773_s23]]  }
  0xaa   :  { %v219_v52 = vsel %vm216_vm6, %v218_v49, %v214_v51  ;;  %v905_v53 = vsel %vm259_vm4, %v7848_v50, 0.0  ;;  %v6216_v37 = vor.u32 %v7006_v35, %v6213_v36  ;;  %v6192_v49 = vor.u32 %v7000_v47, %v6189_v48  ;;  %v7433_v51 = vld [vmem:[%s7846_s24] ss:$0 sm:$0xff]  ;;  %v6993_v35 = vld [vmem:[%s7886_s9 + $0x3c] sm:$0xf]  ;;  %s8816_s23 = sld [smem:[%s9974_s0 + %s7776_s16]]   ;;  %s7777_s24 = smov 29  }
  0xab   :  { %v221_v54 = vmul.f32 %v219_v52, %v199_v21  ;;  %906 = vadd.xlane.f32.xlu1 %v905_v53  ;;  %v7451_v55 = vpop.eup %7450  ;;  %v6147_v52 = vld [vmem:[%s7886_s9 + $0x30] sm:$0xf]  ;;  %v6995_v53 = vld [vmem:[%s7886_s9 + $0x44] sm:$0xf0]  ;;  %v6157_v36 = vld [vmem:[%s7886_s9 + $0x50] sm:$0xf0]  ;;  %s8933_s29 = sld [smem:[%s9974_s0 + %s7777_s24]]  }
  0xac   :  { %v328_v57 = vmul.f32 %v7451_v55, %v326_v42  ;;  %vm333_vm7 = vweird.f32 %v7451_v55  ;;  %v7453_v14 = vpop.eup %7452  ;;  %v6173_v42 = vld [vmem:[%s7886_s9 + $0x78] sm:$0xf0]  ;;  %v6160_v38 = vor.u32 %v6993_v35, %v6157_v36  ;;  %v484_v48 = vld [vmem:[%s7933_s13] sm:$0xff]  ;;  %s8976_s16 = sld [smem:[%s9974_s0 + %s7779_s4]]  }
  0xad   :  { %v231_v56 = vpack.c.bf16 %v221_v54, %v221_v54  ;;  %vm334_vm9 = vmor %vm332_vm8, %vm333_vm7  ;;  %v799_v15 = vmul.f32 64.0, %v7453_v14  ;;  %vm803_vm11 = vweird.f32 %v7453_v14  ;;  %v6176_v45 = vor.u32 %v6998_v40, %v6173_v42  ;;  %v6992_v54 = vld [vmem:[%s7886_s9 + $0x34] sm:$0xf]  ;;  %v554_v35 = vld [vmem:[%s8002_s17] sm:$0x3f]  ;;  %s8981_s24 = sld [smem:[%s9974_s0 + %s7780_s19]]  }
  0xae   :  { %v329_v58 = vsub.f32 1.0, %v328_v57  ;;  %v6149_v57 = vld [vmem:[%s7886_s9 + $0x48] sm:$0xf0]  ;;  %v562_v36 = vperm.slane %v554_v35, 5 }
  0xaf   :  { %v527_v59 = vpop.f32.mrf.mxu2  ;;  %6061 = vmatmul.msk.bf16.vlgmr.msra.gmra.mxu1 %vm259_vm4, %v231_v56  ;;  %v800_v16 = vsub.f32 1.0, %v799_v15  ;;  %710 = vmatpush.bf16.msra.mxu3 %v6176_v45  ;;  %v6148_v56 = vor.u32 %v6995_v53, %v6147_v52  ;;  %v6988_v15 = vld [vmem:[%s7886_s9 + $0x14] sm:$0xf]  ;;  %v6133_v45 = vld [vmem:[%s7886_s9 + $0x20] sm:$0xf0] }
  0xb0   :  { %v7853_v61 = vadd.f32 %v7432_v43, %v527_v59  ;;  %v330_v62 = vmul.f32 %v7451_v55, %v329_v58  ;;  %v6179_v43 = vld [vmem:[%s7886_s9 + $0x68] sm:$0xf]  ;;  %v6155_v58 = vld [vmem:[%s7886_s9 + $0x38] sm:$0xf]  ;;  %v6996_v59 = vld [vmem:[%s7886_s9 + $0x4c] sm:$0xf0] }
  0xb1   :  { %v801_v17 = vmul.f32 %v7453_v14, %v800_v16  ;;  %v6180_v46 = vor.u32 %v7002_v44, %v6179_v43  ;;  %v6156_v63 = vor.u32 %v6996_v59, %v6155_v58  ;;  %698 = vmatpush.bf16.msrb.mxu1 %v6148_v56  ;;  %v6141_v16 = vld [vmem:[%s7886_s9 + $0x28] sm:$0xf0] }
  0xb2   :  { %v908_v0 = vsel %vm259_vm4, %v7853_v61, 0.0  ;;  %v331_v1 = vadd.f32 %v7451_v55, %v330_v62  ;;  %v6152_v62 = vor.u32 %v6992_v54, %v6149_v57  ;;  %v6987_v44 = vld [vmem:[%s7886_s9 + $0xc] sm:$0xf] }
  0xb3   :  { %909 = vadd.xlane.f32.xlu1 %v908_v0  ;;  %v802_v18 = vadd.f32 %v7453_v14, %v801_v17  ;;  %v6994_v0 = vld [vmem:[%s7886_s9 + $0x44] sm:$0xf]  ;;  %v6144_v17 = vor.u32 %v6988_v15, %v6141_v16  ;;  %v6136_v52 = vor.u32 %v6987_v44, %v6133_v45 }
  0xb4   :  { %v335_v3 = vsel %vm334_vm9, %v7451_v55, %v331_v1  ;;  %v6165_v1 = vld [vmem:[%s7886_s9 + $0x58] sm:$0xf0]  ;;  %711 = vmatpush.bf16.msra.mxu3 %v6152_v62 }
  0xb5   :  { %v340_v4 = vsel %vm337_vm10, %v339_v2, %v335_v3  ;;  %v7875_v19 = vsel %vm803_vm11, %v7453_v14, %v802_v18  ;;  %v6168_v2 = vor.u32 %v6994_v0, %v6165_v1  ;;  %v6123_v3 = vld [vmem:[%s7886_s9] sm:$0xf] }
  0xb6   :  { %v342_v5 = vmul.f32 %v340_v4, %v7839_v31  ;;  %v6203_v31 = vld [vmem:[%s7886_s9 + $0x98] sm:$0xf] }
  0xb7   :  { %v6204_v34 = vor.u32 %v7008_v32, %v6203_v31  ;;  %v6989_v4 = vld [vmem:[%s7886_s9 + $0x14] sm:$0xf0]  ;;  %v6187_v31 = vld [vmem:[%s7886_s9 + $0x70] sm:$0xf]  ;;  %v6184_v32 = vor.u32 %v6999_v29, %v6181_v30 }
  0xb8   :  { %v352_v6 = vpack.c.bf16 %v342_v5, %v342_v5  ;;  %v6986_v5 = vld [vmem:[%s7886_s9 + $0x4] sm:$0xf]  ;;  %v6124_v7 = vor.u32 %v6989_v4, %v6123_v3 }
  0xb9   :  { %722 = vmatpush.bf16.msra.mxu2 %v6204_v34  ;;  %v6128_v13 = vor.u32 %v6986_v5, %v6125_v8  ;;  %v6188_v34 = vor.u32 %v7003_v33, %v6187_v31 }
  0xba   :  { %6092 = vmatmul.msk.bf16.vlgmr.msrb.gmra.mxu0 %vm259_vm4, %v352_v6  ;;  %699 = vmatpush.bf16.msrb.mxu1 %v6124_v7 }
  0xbb   :  { %761 = vmatpush.bf16.msrb.mxu0 %v6216_v37  ;;  %712 = vmatpush.bf16.msra.mxu3 %v6128_v13  ;;  %v6163_v37 = vld [vmem:[%s7886_s9 + $0x40] sm:$0xf] }
  0xbc   :  { %v6164_v42 = vor.u32 %v6997_v39, %v6163_v37  ;;  %v557_v39 = vperm.slane %v554_v35, 0 }
  0xbd   :  { %723 = vmatpush.bf16.msra.mxu2 %v6180_v46  ;;  %v6139_v46 = vld [vmem:[%s7886_s9 + $0x10] sm:$0xf] }
  0xbf   :  { %762 = vmatpush.bf16.msrb.mxu0 %v6192_v49  ;;  %v6991_v49 = vld [vmem:[%s7886_s9 + $0x24] sm:$0xf0] }
  0xc0   :  { %v6140_v53 = vor.u32 %v6991_v49, %v6139_v46 }
  0xc1   :  { %724 = vmatpush.bf16.msra.mxu2 %v6156_v63 }
  0xc3   :  { %763 = vmatpush.bf16.msrb.mxu0 %v6168_v2 }
  0xc7   :  { %764 = vmatpush.bf16.msrb.mxu0 %v6144_v17 }
  0xca   :  { %6110 = vmatmul.msk.bf16.vlgmr.msra.gmra.mxu0 %vm259_vm4, %v430_v9  ;;  %v6131_v9 = vld [vmem:[%s7886_s9 + $0x8] sm:$0xf] }
  0xcb   :  { %v6132_v14 = vor.u32 %v6990_v10, %v6131_v9 }
  0xcd   :  { %725 = vmatpush.bf16.msra.mxu2 %v6132_v14 }
  0xda   :  { %6111 = vmatmul.msk.bf16.gmra.mxu0 %vm259_vm4, %v431_v12 }
 0x11e   :  { %v907_v20 = vpop.xlane.xlu1 %906 }
 0x11f   :  { %v911_v21 = vmul.f32 %v907_v20, %v7875_v19  ;;  %v7005_v20 = vld [vmem:[%s7886_s9 + $0x9c] sm:$0xf] }
 0x121   :  { %v7879_v22 = vsub.f32 %v7848_v50, %v911_v21  ;;  %v6205_v21 = vld [vmem:[%s7886_s9 + $0xb0] sm:$0xf0] }
 0x122   :  { %v6208_v25 = vor.u32 %v7005_v20, %v6205_v21 }
 0x123   :  { %v915_v23 = vmul.f32 %v7879_v22, %v7879_v22 }
 0x124   :  { %735 = vmatpush.bf16.msra.mxu1 %v6208_v25 }
 0x125   :  { %v917_v24 = vsel %vm259_vm4, %v915_v23, 0.0  ;;  %v6211_v23 = vld [vmem:[%s7886_s9 + $0xa0] sm:$0xf] }
 0x126   :  { %918 = vadd.xlane.f32.xlu2 %v917_v24  ;;  %v6212_v27 = vor.u32 %v7009_v26, %v6211_v23  ;;  %v910_v57 = vpop.xlane.xlu1 %909 }
 0x127   :  { %v912_v0 = vmul.f32 %v910_v57, %v7875_v19 }
 0x128   :  { %748 = vmatpush.bf16.msrb.mxu3 %v6212_v27  ;;  %736 = vmatpush.bf16.msra.mxu1 %v6184_v32 }
 0x129   :  { %v7960_v7 = vsub.f32 %v7853_v61, %v912_v0 }
 0x12b   :  { %v916_v14 = vmul.f32 %v7960_v7, %v7960_v7 }
 0x12c   :  { %v272_v28 = vpop.f32.mrf.mxu1  ;;  %749 = vmatpush.bf16.msrb.mxu3 %v6188_v34  ;;  %737 = vmatpush.bf16.msra.mxu1 %v6160_v38 }
 0x12d   :  { %v273_v11 = vadd.f32 %v7433_v51, %v272_v28 }
 0x130   :  { %750 = vmatpush.bf16.msrb.mxu3 %v6164_v42  ;;  %738 = vmatpush.bf16.msra.mxu1 %v6136_v52  ;;  %v559_v42 = vperm.slane %v554_v35, 2  ;;  %v560_v52 = vperm.slane %v554_v35, 3 }
 0x134   :  { %v274_v55 = vpop.f32.mrf.mxu1  ;;  %751 = vmatpush.bf16.msrb.mxu3 %v6140_v53 }
 0x137   :  { %v392_v6 = vpop.f32.mrf.mxu0 }
 0x138   :  { %v393_v12 = vadd.f32 %v7434_v60, %v392_v6  ;;  %v485_v60 = vld [vmem:[%s7933_s13 + $0x8] sm:$0xff] }
 0x13a   :  { %v7923_v18 = vadd.f32 %v393_v12, %v273_v11 }
 0x13c   :  { %v6093_v24 = vmul.f32 -1.442695, %v7923_v18 }
 0x13e   :  { %7454 = vpow2.f32 %v6093_v24 }
 0x13f   :  { %v394_v28 = vpop.f32.mrf.mxu0 }
 0x144   :  { %v7455_v40 = vpop.eup %7454 }
 0x145   :  { %v400_v43 = vadd.f32 1.0, %v7455_v40 }
 0x147   :  { %7456 = vrcp.f32 %v400_v43  ;;  %v474_v47 = vpop.f32.mrf.mxu0  ;;  %v412_v1 = vand.u32 2147483648, %v400_v43  ;;  %v410_v3 = vand.u32 2147483647, %v400_v43  ;;  %vm406_vm13 = vweird.f32 %v400_v43 }
 0x148   :  { %v475_v51 = vadd.f32 %v7435_v41, %v474_v47 }
 0x149   :  { %v413_v8 = vor.u32 1.1754944e-38, %v412_v1  ;;  %vm411_vm15 = vcmp.eq.f32.partialorder %v410_v3, 8.507059e+37 }
 0x14a   :  { %v7949_v54 = vadd.f32 %v484_v48, %v475_v51 }
 0x14c   :  { %v786_v55 = vsel %vm259_vm4, %v7949_v54, 0.0 }
 0x14d   :  { %v7457_v56 = vpop.eup %7456  ;;  %787 = vadd.xlane.f32.xlu0 %v786_v55 }
 0x14e   :  { %v402_v58 = vmul.f32 %v7457_v56, %v400_v43  ;;  %vm407_vm12 = vweird.f32 %v7457_v56 }
 0x14f   :  { %v476_v59 = vpop.f32.mrf.mxu0  ;;  %vm408_vm14 = vmor %vm406_vm13, %vm407_vm12 }
 0x150   :  { %v403_v62 = vsub.f32 1.0, %v402_v58  ;;  %v477_v63 = vadd.f32 %v7435_v41, %v476_v59 }
 0x152   :  { %v404_v2 = vmul.f32 %v7457_v56, %v403_v62  ;;  %v7955_v4 = vadd.f32 %v485_v60, %v477_v63 }
 0x154   :  { %v405_v5 = vadd.f32 %v7457_v56, %v404_v2  ;;  %v789_v6 = vsel %vm259_vm4, %v7955_v4, 0.0 }
 0x155   :  { %790 = vadd.xlane.f32.xlu0 %v789_v6 }
 0x156   :  { %v409_v9 = vsel %vm408_vm14, %v7457_v56, %v405_v5 }
 0x157   :  { %v414_v10 = vsel %vm411_vm15, %v413_v8, %v409_v9  ;;  %v479_v11 = vpop.f32.mrf.mxu0 }
 0x158   :  { %v416_v12 = vmul.f32 %v414_v10, %v7923_v18  ;;  %v480_v13 = vadd.f32 %v7435_v41, %v479_v11  ;;  %v920_v18 = vsel %vm259_vm4, %v916_v14, 0.0 }
 0x15a   :  { %v7965_v15 = vpack.c.bf16 %v416_v12, %v416_v12  ;;  %v7967_v16 = vadd.f32 %v484_v48, %v480_v13 }
 0x15c   :  { %6217 = vmatmul.msk.bf16.vlgmr.msrb.gmra.mxu1 %vm259_vm4, %v7965_v15  ;;  %6218 = vmatmul.msk.bf16.vlgmr.msra.gmra.mxu3 %vm259_vm4, %v7965_v15  ;;  %v792_v17 = vsel %vm259_vm4, %v7967_v16, 0.0 }
 0x15d   :  { %6219 = vmatmul.msk.bf16.vlgmr.msra.gmra.mxu2 %vm259_vm4, %v7965_v15  ;;  %6222 = vmatmul.msk.bf16.vlgmr.msrb.gmra.mxu0 %vm259_vm4, %v7965_v15 }
 0x15e   :  { %793 = vadd.xlane.f32.xlu2 %v792_v17  ;;  %921 = vadd.xlane.f32.xlu0 %v920_v18 }
 0x15f   :  { %v481_v20 = vpop.f32.mrf.mxu0 }
 0x160   :  { %v482_v21 = vadd.f32 %v7435_v41, %v481_v20  ;;  %v558_v41 = vperm.slane %v554_v35, 1 }
 0x162   :  { %v7980_v23 = vadd.f32 %v485_v60, %v482_v21  ;;  %v561_v60 = vperm.slane %v554_v35, 4 }
 0x164   :  { %v795_v24 = vsel %vm259_vm4, %v7980_v23, 0.0 }
 0x166   :  { %796 = vadd.xlane.f32.xlu2 %v795_v24 }
 0x16c   :  { %6220 = vmatmul.msk.bf16.vlgmr.msra.gmra.mxu1 %vm259_vm4, %v7965_v15  ;;  %6221 = vmatmul.msk.bf16.vlgmr.msrb.gmra.mxu3 %vm259_vm4, %v7965_v15 }
 0x199   :  { %v919_v6 = vpop.xlane.xlu2 %918 }
 0x1c0   :  { %v788_v25 = vpop.xlane.xlu0 %787 }
 0x1c1   :  { %v805_v26 = vmul.f32 %v7875_v19, %v788_v25 }
 0x1c3   :  { %v7990_v27 = vsub.f32 %v7949_v54, %v805_v26 }
 0x1c5   :  { %v813_v28 = vmul.f32 %v7990_v27, %v7990_v27 }
 0x1c7   :  { %v817_v29 = vsel %vm259_vm4, %v813_v28, 0.0  ;;  %v6249_v28 = vld [vmem:[%s8049_s22 + $0x30] sm:$0xf] }
 0x1c8   :  { %818 = vadd.xlane.f32.xlu0 %v817_v29  ;;  %v791_v30 = vpop.xlane.xlu0 %790  ;;  %v7017_v29 = vld [vmem:[%s8049_s22 + $0x34] sm:$0xf0] }
 0x1c9   :  { %v806_v31 = vmul.f32 %v7875_v19, %v791_v30  ;;  %v7016_v30 = vld [vmem:[%s8049_s22 + $0x34] sm:$0xf] }
 0x1cb   :  { %v7997_v32 = vsub.f32 %v7955_v4, %v806_v31  ;;  %v6250_v31 = vor.u32 %v7017_v29, %v6249_v28 }
 0x1cd   :  { %v814_v33 = vmul.f32 %v7997_v32, %v7997_v32  ;;  %1044 = vmatpush.bf16.msrb.mxu2 %v6250_v31  ;;  %v7021_v31 = vld [vmem:[%s8058_s27 + $0x14] sm:$0xf0] }
 0x1cf   :  { %v820_v34 = vsel %vm259_vm4, %v814_v33, 0.0  ;;  %v6251_v33 = vld [vmem:[%s8049_s22 + $0x38] sm:$0xf0] }
 0x1d0   :  { %821 = vadd.xlane.f32.xlu1 %v820_v34  ;;  %v6254_v35 = vor.u32 %v7016_v30, %v6251_v33  ;;  %v6269_v30 = vld [vmem:[%s8058_s27 + $0x10] sm:$0xf]  ;;  %v7020_v33 = vld [vmem:[%s8058_s27 + $0x14] sm:$0xf] }
 0x1d1   :  { %v794_v12 = vpop.xlane.xlu2 %793  ;;  %v922_v34 = vpop.xlane.xlu0 %921 }
 0x1d2   :  { %v807_v18 = vmul.f32 %v7875_v19, %v794_v12  ;;  %1063 = vmatpush.bf16.msrb.mxu1 %v6254_v35  ;;  %v6270_v35 = vor.u32 %v7021_v31, %v6269_v30 }
 0x1d4   :  { %v8040_v21 = vsub.f32 %v7967_v16, %v807_v18  ;;  %v6277_v18 = vld [vmem:[%s8058_s27 + $0x20] sm:$0xf] }
 0x1d6   :  { %v815_v25 = vmul.f32 %v8040_v21, %v8040_v21 }
 0x1d8   :  { %v823_v26 = vsel %vm259_vm4, %v815_v25, 0.0  ;;  %v7022_v25 = vld [vmem:[%s8058_s27 + $0x24] sm:$0xf] }
 0x1d9   :  { %v701_v37 = vpop.f32.mrf.mxu1  ;;  %v797_v13 = vpop.xlane.xlu2 %796 }
 0x1da   :  { %v766_v38 = vpop.f32.mrf.mxu0  ;;  %v8010_v43 = vadd.f32 %v701_v37, %v557_v39  ;;  %v808_v14 = vmul.f32 %v7875_v19, %v797_v13  ;;  %v7015_v37 = vld [vmem:[%s8049_s22 + $0x24] sm:$0xf0] }
 0x1db   :  { %v8008_v40 = vadd.f32 %v766_v38, %v562_v36  ;;  %v6241_v36 = vld [vmem:[%s8049_s22 + $0x20] sm:$0xf]  ;;  %v7014_v38 = vld [vmem:[%s8049_s22 + $0x24] sm:$0xf] }
 0x1dc   :  { %v881_v51 = vadd.f32 1.0, %v8010_v43  ;;  %v771_v2 = vrot.slane %v8010_v43, 1  ;;  %v8034_v17 = vsub.f32 %v7980_v23, %v808_v14  ;;  %v6242_v39 = vor.u32 %v7015_v37, %v6241_v36  ;;  %v6227_v14 = vld [vmem:[%s8049_s22 + $0x8] sm:$0xf0]  ;;  %v6271_v36 = vld [vmem:[%s8058_s27 + $0x18] sm:$0xf0] }
 0x1de   :  { %v885_v55 = vperm.slane %v881_v51, 0  ;;  %v882_v9 = vadd.f32 1.0, %v771_v2  ;;  %v816_v20 = vmul.f32 %v8034_v17, %v8034_v17  ;;  %v923_v51 = vmul.f32 %v919_v6, %v7875_v19  ;;  %1045 = vmatpush.bf16.msrb.mxu2 %v6242_v39 }
 0x1df   :  { %v714_v44 = vpop.f32.mrf.mxu3 }
 0x1e0   :  { %v8012_v45 = vadd.f32 %v714_v44, %v558_v41  ;;  %v727_v46 = vpop.f32.mrf.mxu2  ;;  %v886_v11 = vperm.slane %v882_v9, 0  ;;  %v826_v24 = vsel %vm259_vm4, %v816_v20, 0.0  ;;  %v6243_v41 = vld [vmem:[%s8049_s22 + $0x28] sm:$0xf0]  ;;  %v7013_v44 = vld [vmem:[%s8049_s22 + $0x14] sm:$0xf0] }
 0x1e1   :  { %v8014_v47 = vadd.f32 %v727_v46, %v559_v42  ;;  %v703_v48 = vpop.f32.mrf.mxu1  ;;  %v6233_v42 = vld [vmem:[%s8049_s22 + $0x10] sm:$0xf]  ;;  %v6246_v46 = vor.u32 %v7014_v38, %v6243_v41  ;;  %v6225_v9 = vld [vmem:[%s8049_s22] sm:$0xf]  ;;  %v6274_v38 = vor.u32 %v7020_v33, %v6271_v36 }
 0x1e2   :  { %v768_v49 = vpop.f32.mrf.mxu0  ;;  %v7012_v48 = vld [vmem:[%s8049_s22 + $0x14] sm:$0xf] }
 0x1e3   :  { %v6235_v49 = vld [vmem:[%s8049_s22 + $0x18] sm:$0xf0]  ;;  %1064 = vmatpush.bf16.msrb.mxu1 %v6246_v46 }
 0x1e7   :  { %v716_v53 = vpop.f32.mrf.mxu3 }
 0x1e8   :  { %v729_v56 = vpop.f32.mrf.mxu2  ;;  %v6234_v53 = vor.u32 %v7013_v44, %v6233_v42  ;;  %v6261_v42 = vld [vmem:[%s8058_s27] sm:$0xf]  ;;  %v7019_v44 = vld [vmem:[%s8058_s27 + $0x4] sm:$0xf0] }
 0x1e9   :  { %v740_v57 = vpop.f32.mrf.mxu1  ;;  %887 = vrot.lane.b32.xlu1 %v885_v55, %s7761_s18  ;;  %v6238_v55 = vor.u32 %v7012_v48, %v6235_v49  ;;  %v6285_v56 = vld [vmem:[%s8058_s27 + $0x30] sm:$0xf]  ;;  %v6262_v49 = vor.u32 %v7019_v44, %v6261_v42 }
 0x1ea   :  { %v8018_v58 = vadd.f32 %v740_v57, %v560_v52  ;;  %v924_v52 = vmul.f32 %v922_v34, %v7875_v19  ;;  %v7025_v57 = vld [vmem:[%s8058_s27 + $0x34] sm:$0xf0]  ;;  %1046 = vmatpush.bf16.msrb.mxu2 %v6234_v53 }
 0x1eb   :  { %1065 = vmatpush.bf16.msrb.mxu1 %v6238_v55 }
 0x1ec   :  { %v779_v59 = vrot.slane %v8018_v58, 1  ;;  %v949_v62 = vadd.f32 1.0, %v8018_v58 }
 0x1ee   :  { %v953_v63 = vperm.slane %v949_v62, 0  ;;  %v950_v0 = vadd.f32 1.0, %v779_v59 }
 0x1ef   :  { %v753_v1 = vpop.f32.mrf.mxu3 }
 0x1f0   :  { %v8025_v3 = vadd.f32 %v753_v1, %v561_v60  ;;  %955 = vrot.lane.b32.xlu2 %v953_v63, %s7761_s18  ;;  %v954_v5 = vperm.slane %v950_v0, 0  ;;  %v7024_v60 = vld [vmem:[%s8058_s27 + $0x34] sm:$0xf]  ;;  %v6286_v63 = vor.u32 %v7025_v57, %v6285_v56  ;;  %v6287_v0 = vld [vmem:[%s8058_s27 + $0x38] sm:$0xf0] }
 0x1f1   :  { %v742_v8 = vpop.f32.mrf.mxu1  ;;  %v8074_v1 = vadd.f32 1e-06, %v923_v51  ;;  %v7018_v51 = vld [vmem:[%s8058_s27 + $0x4] sm:$0xf] }
 0x1f2   :  { %957 = vrot.lane.b32.xlu0 %v954_v5, %s7761_s18  ;;  %v8076_v5 = vadd.f32 1e-06, %v924_v52  ;;  %v6290_v8 = vor.u32 %v7024_v60, %v6287_v0  ;;  %1131 = vmatpush.bf16.msra.mxu3 %v6286_v63  ;;  %v6263_v52 = vld [vmem:[%s8058_s27 + $0x8] sm:$0xf0] }
 0x1f3   :  { %v6266_v53 = vor.u32 %v7018_v51, %v6263_v52  ;;  %vm933_vm10 = vweird.f32 %v8074_v1  ;;  %v963_v51 = vperm.slane %v8018_v58, 0 }
 0x1f4   :  { %1145 = vmatpush.bf16.msra.mxu0 %v6290_v8  ;;  %vm943_vm13 = vweird.f32 %v8076_v5 }
 0x1f7   :  { %v755_v10 = vpop.f32.mrf.mxu3 }
 0x1f8   :  { %v7011_v10 = vld [vmem:[%s8049_s22 + $0x4] sm:$0xf0] }
 0x1f9   :  { %v6226_v13 = vor.u32 %v7011_v10, %v6225_v9 }
 0x1fa   :  { %889 = vrot.lane.b32.xlu0 %v886_v11, %s7761_s18  ;;  %v7010_v11 = vld [vmem:[%s8049_s22 + $0x4] sm:$0xf] }
 0x1fb   :  { %v6230_v20 = vor.u32 %v7010_v11, %v6227_v14  ;;  %1047 = vmatpush.bf16.msrb.mxu2 %v6226_v13 }
 0x1fd   :  { %1066 = vmatpush.bf16.msrb.mxu1 %v6230_v20 }
 0x213   :  { %827 = vadd.xlane.f32.xlu1 %v826_v24  ;;  %v7023_v24 = vld [vmem:[%s8058_s27 + $0x24] sm:$0xf0] }
 0x214   :  { %v6278_v28 = vor.u32 %v7023_v24, %v6277_v18 }
 0x216   :  { %1132 = vmatpush.bf16.msra.mxu3 %v6278_v28 }
 0x219   :  { %824 = vadd.xlane.f32.xlu2 %v823_v26  ;;  %v6279_v26 = vld [vmem:[%s8058_s27 + $0x28] sm:$0xf0] }
 0x21a   :  { %v6282_v29 = vor.u32 %v7022_v25, %v6279_v26  ;;  %1133 = vmatpush.bf16.msra.mxu3 %v6270_v35 }
 0x21c   :  { %1146 = vmatpush.bf16.msra.mxu0 %v6282_v29 }
 0x21e   :  { %1134 = vmatpush.bf16.msra.mxu3 %v6262_v49 }
 0x220   :  { %1147 = vmatpush.bf16.msra.mxu0 %v6274_v38 }
 0x224   :  { %1148 = vmatpush.bf16.msra.mxu0 %v6266_v53 }
 0x23b   :  { %v819_v62 = vpop.xlane.xlu0 %818 }
 0x23c   :  { %v829_v6 = vmul.f32 %v819_v62, %v7875_v19 }
 0x23e   :  { %v833_v12 = vadd.f32 1e-06, %v829_v6 }
 0x240   :  { %7458 = vrsqrt.f32 %v833_v12  ;;  %vm843_vm3 = vweird.f32 %v833_v12 }
 0x241   :  { %7460 = vrsqrt.f32 %v8074_v1 }
 0x242   :  { %7462 = vrsqrt.f32 %v8076_v5 }
 0x243   :  { %v822_v34 = vpop.xlane.xlu1 %821 }
 0x244   :  { %v830_v37 = vmul.f32 %v822_v34, %v7875_v19 }
 0x246   :  { %v7459_v39 = vpop.eup %7458  ;;  %v834_v41 = vadd.f32 1e-06, %v830_v37 }
 0x247   :  { %v7461_v46 = vpop.eup %7460  ;;  %v838_v48 = vmul.f32 %v7459_v39, %v833_v12  ;;  %vm844_vm2 = vweird.f32 %v7459_v39  ;;  %v897_v12 = vperm.slane %v8010_v43, 0  ;;  %v977_v43 = vld [vmem:[%s8125_s1] sm:$0x3] }
 0x248   :  { %7464 = vrsqrt.f32 %v834_v41  ;;  %v7463_v55 = vpop.eup %7462  ;;  %v928_v57 = vmul.f32 %v7461_v46, %v8074_v1  ;;  %vm845_vm6 = vmor %vm843_vm3, %vm844_vm2  ;;  %vm853_vm7 = vweird.f32 %v834_v41  ;;  %vm934_vm9 = vweird.f32 %v7461_v46 }
 0x249   :  { %v839_v56 = vmul.f32 %v7459_v39, %v838_v48  ;;  %v938_v62 = vmul.f32 %v7463_v55, %v8076_v5  ;;  %vm944_vm11 = vweird.f32 %v7463_v55  ;;  %vm935_vm12 = vmor %vm933_vm10, %vm934_vm9  ;;  %v964_v5 = vperm.slane %v779_v59, 0 }
 0x24a   :  { %v929_v0 = vmul.f32 %v7461_v46, %v928_v57  ;;  %vm945_vm14 = vmor %vm943_vm13, %vm944_vm11  ;;  %v956_v42 = vpop.permute.xlu2 %955  ;;  %vm1996_vm9 = vcmask 1043456   ;;  %vm1660_vm10 = vcmask 195584  }
 0x24b   :  { %v840_v60 = vmul.f32 0.5, %v839_v56  ;;  %v939_v9 = vmul.f32 %v7463_v55, %v938_v62 }
 0x24c   :  { %v930_v11 = vmul.f32 0.5, %v929_v0 }
 0x24d   :  { %v841_v6 = vsub.f32 1.5, %v840_v60  ;;  %v940_v18 = vmul.f32 0.5, %v939_v9 }
 0x24e   :  { %v7465_v63 = vpop.eup %7464  ;;  %v931_v24 = vsub.f32 1.5, %v930_v11 }
 0x24f   :  { %v848_v8 = vmul.f32 %v7465_v63, %v834_v41  ;;  %v842_v14 = vmul.f32 %v7459_v39, %v841_v6  ;;  %vm854_vm5 = vweird.f32 %v7465_v63  ;;  %v941_v28 = vsub.f32 1.5, %v940_v18 }
 0x250   :  { %vm855_vm8 = vmor %vm853_vm7, %vm854_vm5  ;;  %v932_v30 = vmul.f32 %v7461_v46, %v931_v24 }
 0x251   :  { %v849_v10 = vmul.f32 %v7465_v63, %v848_v8  ;;  %v846_v26 = vsel %vm845_vm6, %v7459_v39, %v842_v14  ;;  %v942_v37 = vmul.f32 %v7463_v55, %v941_v28 }
 0x252   :  { %v877_v33 = vmul.f32 %v846_v26, %v7990_v27  ;;  %v936_v38 = vsel %vm935_vm12, %v7461_v46, %v932_v30  ;;  %v898_v30 = vperm.slane %v771_v2, 0  ;;  %v986_v2 = vld [vmem:[%s8130_s5] sm:$0x3] }
 0x253   :  { %v850_v13 = vmul.f32 0.5, %v849_v10  ;;  %v946_v44 = vsel %vm945_vm14, %v7463_v55, %v942_v37  ;;  %v947_v27 = vmul.f32 %v936_v38, %v7879_v22  ;;  %v990_v37 = vperm.slane %v977_v43, 0 }
 0x254   :  { %v948_v48 = vmul.f32 %v946_v44, %v7960_v7 }
 0x255   :  { %v851_v20 = vsub.f32 1.5, %v850_v13  ;;  %v961_v1 = vmul.f32 %v956_v42, %v947_v27 }
 0x257   :  { %v852_v25 = vmul.f32 %v7465_v63, %v851_v20  ;;  %v967_v52 = vadd.f32 %v963_v51, %v961_v1 }
 0x259   :  { %v856_v29 = vsel %vm855_vm8, %v7465_v63, %v852_v25  ;;  %vm1311_vm8 = vcmask 130048  }
 0x25a   :  { %v878_v31 = vmul.f32 %v856_v29, %v7997_v32 }
 0x25b   :  { %v888_v34 = vpop.permute.xlu1 %887 }
 0x25c   :  { %v893_v35 = vmul.f32 %v888_v34, %v877_v33  ;;  %v894_v36 = vmul.f32 %v888_v34, %v878_v31 }
 0x25e   :  { %v901_v39 = vadd.f32 %v897_v12, %v893_v35  ;;  %v902_v41 = vadd.f32 %v897_v12, %v894_v36  ;;  %v1081_v35 = vperm.slane %v986_v2, 1 }
 0x260   :  { %v987_v32 = vpack.c.bf16 %v902_v41, %v901_v39 }
 0x262   :  { %6255 = vmatmul.msk.bf16.vlgmr.msrb.gmra.mxu2 %vm259_vm4, %v987_v32  ;;  %6257 = vmatmul.msk.bf16.vlgmr.msrb.gmra.mxu1 %vm259_vm4, %v987_v32  ;;  %v1080_v32 = vperm.slane %v986_v2, 0 }
 0x264   :  { %v958_v49 = vpop.permute.xlu0 %957 }
 0x265   :  { %v962_v46 = vmul.f32 %v958_v49, %v948_v48 }
 0x267   :  { %v968_v53 = vadd.f32 %v964_v5, %v962_v46 }
 0x269   :  { %v1078_v56 = vpack.c.bf16 %v968_v53, %v967_v52 }
 0x26b   :  { %6291 = vmatmul.msk.bf16.vlgmr.msra.gmra.mxu3 %vm259_vm4, %v1078_v56  ;;  %6292 = vmatmul.msk.bf16.vlgmr.msra.gmra.mxu0 %vm259_vm4, %v1078_v56 }
 0x26c   :  { %v890_v25 = vpop.permute.xlu0 %889 }
 0x286   :  { %v828_v22 = vpop.xlane.xlu1 %827 }
 0x287   :  { %v832_v55 = vmul.f32 %v828_v22, %v7875_v19 }
 0x289   :  { %v836_v57 = vadd.f32 1e-06, %v832_v55 }
 0x28b   :  { %7466 = vrsqrt.f32 %v836_v57  ;;  %vm873_vm2 = vweird.f32 %v836_v57 }
 0x28c   :  { %v825_v7 = vpop.xlane.xlu2 %824 }
 0x28d   :  { %v831_v60 = vmul.f32 %v825_v7, %v7875_v19 }
 0x28f   :  { %v835_v62 = vadd.f32 1e-06, %v831_v60 }
 0x291   :  { %v7467_v63 = vpop.eup %7466  ;;  %7468 = vrsqrt.f32 %v835_v62  ;;  %vm863_vm6 = vweird.f32 %v835_v62 }
 0x292   :  { %v868_v58 = vmul.f32 %v7467_v63, %v836_v57  ;;  %vm874_vm15 = vweird.f32 %v7467_v63 }
 0x293   :  { %vm875_vm3 = vmor %vm873_vm2, %vm874_vm15 }
 0x294   :  { %v869_v59 = vmul.f32 %v7467_v63, %v868_v58 }
 0x296   :  { %v870_v0 = vmul.f32 0.5, %v869_v59 }
 0x297   :  { %v7469_v6 = vpop.eup %7468 }
 0x298   :  { %v871_v8 = vsub.f32 1.5, %v870_v0  ;;  %v858_v9 = vmul.f32 %v7469_v6, %v835_v62  ;;  %vm864_vm5 = vweird.f32 %v7469_v6 }
 0x299   :  { %vm865_vm7 = vmor %vm863_vm6, %vm864_vm5 }
 0x29a   :  { %v872_v10 = vmul.f32 %v7467_v63, %v871_v8  ;;  %v859_v11 = vmul.f32 %v7469_v6, %v858_v9 }
 0x29c   :  { %v876_v13 = vsel %vm875_vm3, %v7467_v63, %v872_v10  ;;  %v860_v14 = vmul.f32 0.5, %v859_v11 }
 0x29d   :  { %v880_v20 = vmul.f32 %v876_v13, %v8034_v17  ;;  %v8134_v17 = vperm.slane %v977_v43, 1 }
 0x29e   :  { %v861_v18 = vsub.f32 1.5, %v860_v14 }
 0x29f   :  { %v896_v29 = vmul.f32 %v890_v25, %v880_v20 }
 0x2a0   :  { %v862_v24 = vmul.f32 %v7469_v6, %v861_v18 }
 0x2a1   :  { %v904_v12 = vadd.f32 %v898_v30, %v896_v29 }
 0x2a2   :  { %v866_v26 = vsel %vm865_vm7, %v7469_v6, %v862_v24 }
 0x2a3   :  { %v879_v28 = vmul.f32 %v866_v26, %v8040_v21 }
 0x2a5   :  { %v895_v31 = vmul.f32 %v890_v25, %v879_v28 }
 0x2a7   :  { %v903_v33 = vadd.f32 %v898_v30, %v895_v31 }
 0x2a9   :  { %v988_v34 = vpack.c.bf16 %v904_v12, %v903_v33 }
 0x2ab   :  { %6256 = vmatmul.msk.bf16.gmra.mxu2 %vm259_vm4, %v988_v34  ;;  %6258 = vmatmul.msk.bf16.gmra.mxu1 %vm259_vm4, %v988_v34 }
 0x2df   :  { %v1068_v36 = vpop.f32.mrf.mxu1 }
 0x2e0   :  { %v8137_v39 = vadd.f32 %v1068_v36, %v8134_v17 }
 0x2e5   :  { %v1049_v21 = vpop.f32.mrf.mxu2 }
 0x2e6   :  { %v1050_v42 = vadd.f32 %v1049_v21, %v990_v37 }
 0x2e7   :  { %v8157_v63 = vpop.f32.mrf.mxu1 }
 0x2e8   :  { %v1150_v38 = vpop.f32.mrf.mxu0  ;;  %v1275_v49 = vpack.c.bf16 %v1050_v42, %v1050_v42 }
 0x2e9   :  { %v8139_v41 = vadd.f32 %v1150_v38, %v1081_v35 }
 0x2ea   :  { %v1302_v52 = vunpack.c.l.b16 %v1275_v49 }
 0x2eb   :  { %v8143_v44 = vpack.i.bf16 %v8137_v39, %v8139_v41 }
 0x2ed   :  { %v1051_v27 = vpop.f32.mrf.mxu2 }
 0x2ee   :  { %v1052_v1 = vadd.f32 %v1051_v27, %v990_v37  ;;  %v1136_v48 = vpop.f32.mrf.mxu3 }
 0x2ef   :  { %v1137_v51 = vadd.f32 %v1136_v48, %v1080_v32 }
 0x2f0   :  { %v1276_v5 = vpack.c.bf16 %v1052_v1, %v1052_v1  ;;  %v1152_v58 = vpop.f32.mrf.mxu0 }
 0x2f1   :  { %v7195_v46 = vpack.i.bf16 %v1050_v42, %v1137_v51  ;;  %v1277_v7 = vpack.c.bf16 %v1137_v51, %v1137_v51  ;;  %v8159_v0 = vadd.f32 %v1152_v58, %v1081_v35 }
 0x2f2   :  { %v1303_v53 = vunpack.c.l.b16 %v1276_v5 }
 0x2f3   :  { %7196 = vrot.lane.b32.xlu0 %v7195_v46, %s7766_s6  ;;  %v1304_v60 = vunpack.c.l.b16 %v1277_v7 }
 0x2f4   :  { %v8146_v56 = vpack.c.b16 %v1303_v53, %v1302_v52 }
 0x2f5   :  { %v8153_v62 = vpack.c.b16 %v1304_v60, %v1304_v60 }
 0x2f6   :  { %v1138_v22 = vpop.f32.mrf.mxu3 }
 0x2f7   :  { %v1139_v55 = vadd.f32 %v1138_v22, %v1080_v32 }
 0x2f9   :  { %v7220_v57 = vpack.i.bf16 %v1139_v55, %v1052_v1  ;;  %v1280_v48 = vpack.c.bf16 %v1139_v55, %v1139_v55 }
 0x2fb   :  { %7221 = vrot.lane.b32.xlu1 %v7220_v57, %s7767_s7  ;;  %7201 = vrot.lane.b32.xlu0 %v7220_v57, %s7766_s6  ;;  %v1347_v5 = vunpack.c.l.b16 %v1280_v48 }
 0x2fd   :  { %v8189_v22 = vpack.c.b16 %v1347_v5, %v1347_v5 }
 0x303   :  { %7206 = vrot.lane.b32.xlu0 %v7195_v46, %s7767_s7 }
 0x30b   :  { %7211 = vrot.lane.b32.xlu0 %v7195_v46, %s7768_s8 }
 0x313   :  { %7226 = vrot.lane.b32.xlu0 %v7220_v57, %s7768_s8 }
 0x31b   :  { %1309 = vrot.lane.b32.xlu0 %v8153_v62, %s7761_s18 }
 0x328   :  { %v1073_v59 = vpop.f32.mrf.mxu1 }
 0x329   :  { %v8162_v6 = vadd.f32 %v1073_v59, %v8134_v17 }
 0x32b   :  { %v8166_v8 = vpack.i.bf16 %v8162_v6, %v8159_v0 }
 0x32e   :  { %v1054_v9 = vpop.f32.mrf.mxu2 }
 0x32f   :  { %v1055_v10 = vadd.f32 %v1054_v9, %v990_v37 }
 0x331   :  { %v1278_v14 = vpack.c.bf16 %v1055_v10, %v1055_v10 }
 0x333   :  { %v1345_v24 = vunpack.c.l.b16 %v1278_v14 }
 0x336   :  { %v1056_v11 = vpop.f32.mrf.mxu2 }
 0x337   :  { %v1057_v13 = vadd.f32 %v1056_v11, %v990_v37 }
 0x339   :  { %v7230_v18 = vpack.i.bf16 %v1057_v13, %v1055_v10  ;;  %v1279_v20 = vpack.c.bf16 %v1057_v13, %v1057_v13 }
 0x33b   :  { %7231 = vrot.lane.b32.xlu1 %v7230_v18, %s7767_s7  ;;  %7216 = vrot.lane.b32.xlu2 %v7230_v18, %s7766_s6  ;;  %v1346_v25 = vunpack.c.l.b16 %v1279_v20 }
 0x33d   :  { %v8170_v26 = vpack.c.b16 %v1346_v25, %v1345_v24 }
 0x343   :  { %1307 = vrot.lane.b32.xlu2 %v8146_v56, %s7761_s18 }
 0x34b   :  { %7236 = vrot.lane.b32.xlu2 %v7230_v18, %s7768_s8 }
 0x365   :  { %v7197_v28 = vpop.permute.xlu0 %7196 }
 0x366   :  { %v7198_v29 = vunpack.i.l.bf16 %v7197_v28  ;;  %v7199_v31 = vunpack.i.h.bf16 %v7197_v28 }
 0x368   :  { %v1283_v30 = vpack.c.bf16 %v7198_v29, %v7198_v29  ;;  %v1281_v43 = vpack.c.bf16 %v7199_v31, %v7199_v31 }
 0x36a   :  { %v1389_v33 = vunpack.c.l.b16 %v1283_v30  ;;  %v1387_v37 = vunpack.c.l.b16 %v1281_v43 }
 0x36c   :  { %v8175_v12 = vpack.c.b16 %v1389_v33, %v1389_v33 }
 0x36d   :  { %v7202_v34 = vpop.permute.xlu0 %7201  ;;  %v7222_v55 = vpop.permute.xlu1 %7221 }
 0x36e   :  { %v7204_v2 = vunpack.i.h.bf16 %v7202_v34  ;;  %v7203_v21 = vunpack.i.l.bf16 %v7202_v34  ;;  %1394 = vrot.lane.b32.xlu0 %v8175_v12, %s7761_s18  ;;  %v7223_v9 = vunpack.i.l.bf16 %v7222_v55  ;;  %v7224_v48 = vunpack.i.h.bf16 %v7222_v55 }
 0x370   :  { %v1286_v35 = vpack.c.bf16 %v7204_v2, %v7204_v2  ;;  %v1282_v36 = vpack.c.bf16 %v7203_v21, %v7203_v21  ;;  %v1288_v20 = vpack.c.bf16 %v7223_v9, %v7223_v9 }
 0x372   :  { %v1388_v38 = vunpack.c.l.b16 %v1282_v36  ;;  %v1431_v42 = vunpack.c.l.b16 %v1286_v35  ;;  %v1472_v31 = vunpack.c.l.b16 %v1288_v20 }
 0x374   :  { %v8179_v32 = vpack.c.b16 %v1431_v42, %v1431_v42  ;;  %v8181_v27 = vpack.c.b16 %v1388_v38, %v1387_v37  ;;  %v1075_v38 = vpop.f32.mrf.mxu1 }
 0x375   :  { %v7207_v1 = vpop.permute.xlu0 %7206  ;;  %v8215_v5 = vadd.f32 %v1075_v38, %v8134_v17 }
 0x376   :  { %v7208_v49 = vunpack.i.l.bf16 %v7207_v1  ;;  %1436 = vrot.lane.b32.xlu1 %v8179_v32, %s7761_s18  ;;  %1392 = vrot.lane.b32.xlu0 %v8181_v27, %s7761_s18  ;;  %v7209_v60 = vunpack.i.h.bf16 %v7207_v1 }
 0x378   :  { %v1289_v51 = vpack.c.bf16 %v7208_v49, %v7208_v49  ;;  %v1287_v11 = vpack.c.bf16 %v7209_v60, %v7209_v60 }
 0x37a   :  { %v1473_v46 = vunpack.c.l.b16 %v1289_v51  ;;  %v1471_v25 = vunpack.c.l.b16 %v1287_v11  ;;  %v8229_v11 = vadd.f32 %v8157_v63, %v8134_v17 }
 0x37c   :  { %v8187_v52 = vpack.c.b16 %v1473_v46, %v1473_v46  ;;  %v8203_v2 = vpack.c.b16 %v1472_v31, %v1471_v25 }
 0x37d   :  { %v7212_v53 = vpop.permute.xlu0 %7211 }
 0x37e   :  { %v7213_v57 = vunpack.i.l.bf16 %v7212_v53  ;;  %1478 = vrot.lane.b32.xlu2 %v8187_v52, %s7761_s18  ;;  %1350 = vrot.lane.b32.xlu1 %v8170_v26, %s7761_s18  ;;  %v7214_v58 = vunpack.i.h.bf16 %v7212_v53 }
 0x37f   :  { %1352 = vrot.lane.b32.xlu0 %v8189_v22, %s7761_s18 }
 0x380   :  { %v1295_v7 = vpack.c.bf16 %v7213_v57, %v7213_v57  ;;  %v1293_v14 = vpack.c.bf16 %v7214_v58, %v7214_v58  ;;  %v1292_v57 = vpack.c.bf16 %v7224_v48, %v7224_v48  ;;  %v7250_v58 = vpack.i.bf16 %v8215_v5, %v8162_v6 }
 0x382   :  { %v1557_v59 = vunpack.c.l.b16 %v1295_v7  ;;  %v1555_v29 = vunpack.c.l.b16 %v1293_v14  ;;  %v1515_v55 = vunpack.c.l.b16 %v1292_v57  ;;  %v1951_v57 = vpack.c.bf16 %v8139_v41, %v8139_v41 }
 0x383   :  { %v1949_v41 = vpack.c.bf16 %v8137_v39, %v8137_v39 }
 0x384   :  { %v8197_v10 = vpack.c.b16 %v1557_v59, %v1557_v59  ;;  %v8225_v9 = vpack.c.b16 %v1515_v55, %v1515_v55 }
 0x385   :  { %v7227_v13 = vpop.permute.xlu0 %7226 }
 0x386   :  { %v7228_v18 = vunpack.i.l.bf16 %v7227_v13  ;;  %v7229_v28 = vunpack.i.h.bf16 %v7227_v13 }
 0x387   :  { %1562 = vrot.lane.b32.xlu0 %v8197_v10, %s7761_s18 }
 0x388   :  { %v1294_v24 = vpack.c.bf16 %v7228_v18, %v7228_v18  ;;  %v1298_v34 = vpack.c.bf16 %v7229_v28, %v7229_v28 }
 0x38a   :  { %v1556_v30 = vunpack.c.l.b16 %v1294_v24  ;;  %v1599_v35 = vunpack.c.l.b16 %v1298_v34 }
 0x38c   :  { %v8201_v33 = vpack.c.b16 %v1556_v30, %v1555_v29  ;;  %v8210_v37 = vpack.c.b16 %v1599_v35, %v1599_v35 }
 0x38d   :  { %v1310_v43 = vpop.permute.xlu0 %1309 }
 0x38e   :  { %v1322_v21 = vsel %vm1311_vm8, %v1310_v43, 0  ;;  %1560 = vrot.lane.b32.xlu1 %v8201_v33, %s7761_s18 }
 0x38f   :  { %1476 = vrot.lane.b32.xlu0 %v8203_v2, %s7761_s18  ;;  %1330 = vmatpush.bf16.xpose.msrb.mxu3 %v1322_v21  ;;  %v7245_v21 = vpack.i.bf16 %v8159_v0, %v8229_v11 }
 0x395   :  { %v7217_v36 = vpop.permute.xlu2 %7216 }
 0x396   :  { %v7219_v42 = vunpack.i.h.bf16 %v7217_v36  ;;  %v7218_v1 = vunpack.i.l.bf16 %v7217_v36 }
 0x397   :  { %1604 = vrot.lane.b32.xlu0 %v8210_v37, %s7761_s18 }
 0x398   :  { %v1285_v49 = vpack.c.bf16 %v7219_v42, %v7219_v42  ;;  %v1284_v51 = vpack.c.bf16 %v7218_v1, %v7218_v1 }
 0x39a   :  { %v1430_v46 = vunpack.c.l.b16 %v1285_v49  ;;  %v1429_v53 = vunpack.c.l.b16 %v1284_v51 }
 0x39c   :  { %v8217_v7 = vpack.c.b16 %v1430_v46, %v1429_v53 }
 0x39d   :  { %v1308_v60 = vpop.permute.xlu2 %1307 }
 0x39e   :  { %1434 = vrot.lane.b32.xlu2 %v8217_v7, %s7761_s18  ;;  %v1319_v59 = vsel %vm1311_vm8, %v1308_v60, 0 }
 0x39f   :  { %7251 = vrot.lane.b32.xlu0 %v7250_v58, %s7766_s6  ;;  %1331 = vmatpush.bf16.xpose.msrb.mxu3 %v1319_v59 }
 0x3a5   :  { %v7237_v13 = vpop.permute.xlu2 %7236 }
 0x3a6   :  { %v7239_v14 = vunpack.i.h.bf16 %v7237_v13  ;;  %v7238_v18 = vunpack.i.l.bf16 %v7237_v13  ;;  %6293 = vmatmul.msk.bf16.vlgmr.msrb.gmra.mxu3 %vm1311_vm8, %v8146_v56  ;;  %1520 = vrot.lane.b32.xlu2 %v8225_v9, %s7761_s18 }
 0x3a7   :  { %1259 = vrot.lane.b32.xlu0 %v8229_v11, %s7768_s8 }
 0x3a8   :  { %v1297_v20 = vpack.c.bf16 %v7239_v14, %v7239_v14  ;;  %v1296_v24 = vpack.c.bf16 %v7238_v18, %v7238_v18  ;;  %v1986_v14 = vunpack.c.l.b16 %v1951_v57 }
 0x3aa   :  { %v1598_v25 = vunpack.c.l.b16 %v1297_v20  ;;  %v1597_v28 = vunpack.c.l.b16 %v1296_v24  ;;  %v1988_v18 = vpack.c.b16 %v1986_v14, %v1986_v14 }
 0x3ac   :  { %v8237_v29 = vpack.c.b16 %v1598_v25, %v1597_v28  ;;  %v1998_v39 = vsel %vm1996_vm9, %v1988_v18, 0 }
 0x3ad   :  { %v7232_v17 = vpop.permute.xlu1 %7231 }
 0x3ae   :  { %v7234_v63 = vunpack.i.h.bf16 %v7232_v17  ;;  %v7233_v30 = vunpack.i.l.bf16 %v7232_v17  ;;  %1602 = vrot.lane.b32.xlu2 %v8237_v29, %s7761_s18 }
 0x3b0   :  { %v1291_v31 = vpack.c.bf16 %v7234_v63, %v7234_v63  ;;  %v1290_v56 = vpack.c.bf16 %v7233_v30, %v7233_v30  ;;  %v1984_v30 = vunpack.c.l.b16 %v1949_v41 }
 0x3b2   :  { %v1514_v34 = vunpack.c.l.b16 %v1291_v31  ;;  %v1513_v43 = vunpack.c.l.b16 %v1290_v56 }
 0x3b4   :  { %v8243_v35 = vpack.c.b16 %v1514_v34, %v1513_v43 }
 0x3b6   :  { %6294 = vmatmul.msk.bf16.gmra.mxu3 %vm1311_vm8, %v8153_v62  ;;  %7246 = vrot.lane.b32.xlu2 %v7245_v21, %s7766_s6 }
 0x3b7   :  { %1518 = vrot.lane.b32.xlu1 %v8243_v35, %s7761_s18 }
 0x3be   :  { %7261 = vrot.lane.b32.xlu2 %v8143_v44, %s7768_s8 }
 0x3bf   :  { %7241 = vrot.lane.b32.xlu1 %v8143_v44, %s7766_s6 }
 0x3c6   :  { %1241 = vrot.lane.b32.xlu2 %v8229_v11, %s7767_s7 }
 0x3c7   :  { %7256 = vrot.lane.b32.xlu1 %v8143_v44, %s7767_s7 }
 0x3d8   :  { %v1479_v36 = vpop.permute.xlu2 %1478 }
 0x3d9   :  { %v1490_v62 = vsel %vm1311_vm8, %v1479_v36, 0 }
 0x3da   :  { %1498 = vmatpush.bf16.xpose.msra.mxu3 %v1490_v62 }
 0x3e0   :  { %v1395_v38 = vpop.permute.xlu0 %1394 }
 0x3e1   :  { %v1406_v42 = vsel %vm1311_vm8, %v1395_v38, 0 }
 0x3e2   :  { %1414 = vmatpush.bf16.xpose.msra.mxu2 %v1406_v42 }
 0x3e8   :  { %v1437_v1 = vpop.permute.xlu1 %1436  ;;  %v1393_v48 = vpop.permute.xlu0 %1392 }
 0x3e9   :  { %v1448_v49 = vsel %vm1311_vm8, %v1437_v1, 0  ;;  %v1403_v51 = vsel %vm1311_vm8, %v1393_v48, 0 }
 0x3ea   :  { %1415 = vmatpush.bf16.xpose.msra.mxu2 %v1403_v51  ;;  %1456 = vmatpush.bf16.xpose.msra.mxu1 %v1448_v49 }
 0x3f0   :  { %v1351_v53 = vpop.permute.xlu1 %1350 }
 0x3f1   :  { %v1353_v46 = vpop.permute.xlu0 %1352  ;;  %6297 = vmatmul.msk.bf16.vlgmr.msra.gmra.mxu2 %vm1311_vm8, %v8181_v27  ;;  %v1361_v13 = vsel %vm1311_vm8, %v1351_v53, 0  ;;  %v1950_v27 = vpack.c.bf16 %v8229_v11, %v8229_v11 }
 0x3f2   :  { %v1364_v44 = vsel %vm1311_vm8, %v1353_v46, 0 }
 0x3f3   :  { %1372 = vmatpush.bf16.xpose.msrb.mxu0 %v1364_v44  ;;  %v1985_v63 = vunpack.c.l.b16 %v1950_v27  ;;  %v1953_v44 = vpack.c.bf16 %v8215_v5, %v8215_v5 }
 0x3f5   :  { %v1987_v31 = vpack.c.b16 %v1985_v63, %v1984_v30 }
 0x3f8   :  { %v1435_v60 = vpop.permute.xlu2 %1434 }
 0x3f9   :  { %v1563_v58 = vpop.permute.xlu0 %1562  ;;  %v1445_v59 = vsel %vm1311_vm8, %v1435_v60, 0 }
 0x3fa   :  { %v1574_v55 = vsel %vm1311_vm8, %v1563_v58, 0  ;;  %1457 = vmatpush.bf16.xpose.msra.mxu1 %v1445_v59  ;;  %v2030_v59 = vunpack.c.l.b16 %v1953_v44 }
 0x3fb   :  { %1373 = vmatpush.bf16.xpose.msrb.mxu0 %v1361_v13  ;;  %1582 = vmatpush.bf16.xpose.msrb.mxu2 %v1574_v55 }
 0x400   :  { %v1521_v20 = vpop.permute.xlu2 %1520  ;;  %v1561_v24 = vpop.permute.xlu1 %1560 }
 0x401   :  { %v1532_v25 = vsel %vm1311_vm8, %v1521_v20, 0  ;;  %v1477_v28 = vpop.permute.xlu0 %1476  ;;  %6298 = vmatmul.msk.bf16.gmra.mxu2 %vm1311_vm8, %v8175_v12  ;;  %6299 = vmatmul.msk.bf16.vlgmr.msra.gmra.mxu1 %vm1311_vm8, %v8217_v7  ;;  %v1571_v17 = vsel %vm1311_vm8, %v1561_v24, 0 }
 0x402   :  { %6295 = vmatmul.msk.bf16.vlgmr.msrb.gmra.mxu0 %vm1311_vm8, %v8170_v26  ;;  %v1487_v11 = vsel %vm1311_vm8, %v1477_v28, 0 }
 0x403   :  { %1499 = vmatpush.bf16.xpose.msra.mxu3 %v1487_v11  ;;  %1540 = vmatpush.bf16.xpose.msra.mxu0 %v1532_v25 }
 0x404   :  { %1583 = vmatpush.bf16.xpose.msrb.mxu2 %v1571_v17 }
 0x408   :  { %v1603_v12 = vpop.permute.xlu2 %1602 }
 0x409   :  { %v1605_v56 = vpop.permute.xlu0 %1604  ;;  %v1613_v62 = vsel %vm1311_vm8, %v1603_v12, 0 }
 0x40a   :  { %v1616_v7 = vsel %vm1311_vm8, %v1605_v56, 0  ;;  %6301 = vmatmul.msk.bf16.vlgmr.msra.gmra.mxu3 %vm1311_vm8, %v8203_v2 }
 0x40b   :  { %2006 = vmatpush.bf16.msrb.mxu3 %v1998_v39  ;;  %1624 = vmatpush.bf16.xpose.msrb.mxu1 %v1616_v7 }
 0x40f   :  { %2007 = vmatpush.bf16.msrb.mxu3 %v1987_v31 }
 0x410   :  { %v7247_v26 = vpop.permute.xlu2 %7246 }
 0x411   :  { %v7249_v34 = vunpack.i.h.bf16 %v7247_v26  ;;  %v7252_v43 = vpop.permute.xlu0 %7251  ;;  %6300 = vmatmul.msk.bf16.gmra.mxu1 %vm1311_vm8, %v8179_v32  ;;  %6305 = vmatmul.msk.bf16.vlgmr.msrb.gmra.mxu2 %vm1311_vm8, %v8201_v33  ;;  %v7248_v25 = vunpack.i.l.bf16 %v7247_v26 }
 0x412   :  { %v7254_v21 = vunpack.i.h.bf16 %v7252_v43  ;;  %v7253_v36 = vunpack.i.l.bf16 %v7252_v43  ;;  %6296 = vmatmul.msk.bf16.gmra.mxu0 %vm1311_vm8, %v8189_v22  ;;  %v1954_v22 = vpack.c.bf16 %v8159_v0, %v8159_v0 }
 0x413   :  { %v1960_v38 = vpack.c.bf16 %v7249_v34, %v7249_v34  ;;  %1625 = vmatpush.bf16.xpose.msrb.mxu1 %v1613_v62  ;;  %v1956_v31 = vpack.c.bf16 %v7248_v25, %v7248_v25 }
 0x414   :  { %v1959_v2 = vpack.c.bf16 %v7254_v21, %v7254_v21  ;;  %v1958_v42 = vpack.c.bf16 %v7253_v36, %v7253_v36  ;;  %v2031_v46 = vunpack.c.l.b16 %v1954_v22 }
 0x415   :  { %v2119_v1 = vunpack.c.l.b16 %v1960_v38  ;;  %v2074_v62 = vunpack.c.l.b16 %v1956_v31 }
 0x416   :  { %v2118_v49 = vunpack.c.l.b16 %v1959_v2  ;;  %v2117_v51 = vunpack.c.l.b16 %v1958_v42  ;;  %v2033_v53 = vpack.c.b16 %v2031_v46, %v2031_v46 }
 0x417   :  { %v2121_v48 = vpack.c.b16 %v2119_v1, %v2119_v1 }
 0x418   :  { %v2120_v33 = vpack.c.b16 %v2118_v49, %v2117_v51 }
 0x419   :  { %v2130_v32 = vsel %vm1996_vm9, %v2121_v48, 0 }
 0x41a   :  { %6302 = vmatmul.msk.bf16.gmra.mxu3 %vm1311_vm8, %v8187_v52  ;;  %v1952_v52 = vpack.c.bf16 %v8162_v6, %v8162_v6 }
 0x41b   :  { %2138 = vmatpush.bf16.msra.mxu1 %v2130_v32 }
 0x41c   :  { %v2029_v13 = vunpack.c.l.b16 %v1952_v52 }
 0x41e   :  { %v2032_v14 = vpack.c.b16 %v2030_v59, %v2029_v13 }
 0x41f   :  { %2139 = vmatpush.bf16.msra.mxu1 %v2120_v33 }
 0x421   :  { %6306 = vmatmul.msk.bf16.gmra.mxu2 %vm1311_vm8, %v8197_v10  ;;  %6307 = vmatmul.msk.bf16.vlgmr.msrb.gmra.mxu1 %vm1311_vm8, %v8237_v29  ;;  %v2042_v10 = vsel %vm1996_vm9, %v2033_v53, 0  ;;  %v7262_v29 = vpop.permute.xlu2 %7261 }
 0x422   :  { %v7263_v6 = vunpack.i.l.bf16 %v7262_v29  ;;  %v7264_v39 = vunpack.i.h.bf16 %v7262_v29 }
 0x424   :  { %v1969_v28 = vpack.c.bf16 %v7263_v6, %v7263_v6  ;;  %v1967_v21 = vpack.c.bf16 %v7264_v39, %v7264_v39 }
 0x426   :  { %v2251_v12 = vunpack.c.l.b16 %v1969_v28  ;;  %v2249_v51 = vunpack.c.l.b16 %v1967_v21 }
 0x428   :  { %v2253_v38 = vpack.c.b16 %v2251_v12, %v2251_v12 }
 0x429   :  { %v1519_v57 = vpop.permute.xlu1 %1518  ;;  %v1333_v60 = vpop.f32.mrf.mxu3 }
 0x42a   :  { %v8307_v58 = vmul.f32 0.25, %v1333_v60  ;;  %v1529_v0 = vsel %vm1311_vm8, %v1519_v57, 0  ;;  %v1242_v42 = vpop.permute.xlu2 %1241  ;;  %v2262_v22 = vsel %vm1996_vm9, %v2253_v38, 0 }
 0x42b   :  { %1541 = vmatpush.bf16.xpose.msra.mxu0 %v1529_v0  ;;  %v1962_v33 = vpack.c.bf16 %v1242_v42, %v1242_v42 }
 0x42c   :  { %v1661_v55 = vsel %vm1660_vm10, %v8307_v58, -inf }
 0x42d   :  { %1662 = vmax.xlane.f32.xlu0 %v1661_v55  ;;  %v2162_v0 = vunpack.c.l.b16 %v1962_v33 }
 0x431   :  { %v7242_v27 = vpop.permute.xlu1 %7241  ;;  %v1335_v18 = vpop.f32.mrf.mxu3  ;;  %6308 = vmatmul.msk.bf16.gmra.mxu1 %vm1311_vm8, %v8210_v37 }
 0x432   :  { %v7244_v20 = vunpack.i.h.bf16 %v7242_v27  ;;  %v7243_v24 = vunpack.i.l.bf16 %v7242_v27  ;;  %v8315_v41 = vmul.f32 0.25, %v1335_v18  ;;  %6303 = vmatmul.msk.bf16.vlgmr.msra.gmra.mxu0 %vm1311_vm8, %v8243_v35  ;;  %v1260_v37 = vpop.permute.xlu0 %1259 }
 0x433   :  { %2050 = vmatpush.bf16.msrb.mxu0 %v2042_v10  ;;  %v1968_v2 = vpack.c.bf16 %v1260_v37, %v1260_v37 }
 0x434   :  { %v1957_v17 = vpack.c.bf16 %v7243_v24, %v7243_v24  ;;  %v1664_v11 = vsel %vm1660_vm10, %v8315_v41, -inf  ;;  %v1955_v63 = vpack.c.bf16 %v7244_v20, %v7244_v20 }
 0x435   :  { %1665 = vmax.xlane.f32.xlu1 %v1664_v11  ;;  %v2250_v46 = vunpack.c.l.b16 %v1968_v2 }
 0x436   :  { %v2075_v30 = vunpack.c.l.b16 %v1957_v17  ;;  %v2073_v7 = vunpack.c.l.b16 %v1955_v63 }
 0x437   :  { %2051 = vmatpush.bf16.msrb.mxu0 %v2032_v14  ;;  %v2252_v60 = vpack.c.b16 %v2250_v46, %v2249_v51 }
 0x438   :  { %v2077_v56 = vpack.c.b16 %v2075_v30, %v2075_v30  ;;  %v2076_v49 = vpack.c.b16 %v2074_v62, %v2073_v7 }
 0x439   :  { %v7257_v34 = vpop.permute.xlu1 %7256  ;;  %v1338_v43 = vpop.f32.mrf.mxu3 }
 0x43a   :  { %v7259_v36 = vunpack.i.h.bf16 %v7257_v34  ;;  %v7258_v35 = vunpack.i.l.bf16 %v7257_v34  ;;  %v2086_v26 = vsel %vm1996_vm9, %v2077_v56, 0  ;;  %v8340_v63 = vmul.f32 0.25, %v1338_v43 }
 0x43b   :  { %2094 = vmatpush.bf16.msra.mxu2 %v2086_v26 }
 0x43c   :  { %v1963_v1 = vpack.c.bf16 %v7258_v35, %v7258_v35  ;;  %v1961_v48 = vpack.c.bf16 %v7259_v36, %v7259_v36  ;;  %v1667_v56 = vsel %vm1660_vm10, %v8340_v63, -inf }
 0x43e   :  { %v2163_v32 = vunpack.c.l.b16 %v1963_v1  ;;  %v2161_v53 = vunpack.c.l.b16 %v1961_v48 }
 0x43f   :  { %2095 = vmatpush.bf16.msra.mxu2 %v2076_v49 }
 0x440   :  { %v2165_v44 = vpack.c.b16 %v2163_v32, %v2163_v32  ;;  %v2164_v59 = vpack.c.b16 %v2162_v0, %v2161_v53 }
 0x441   :  { %v1340_v52 = vpop.f32.mrf.mxu3 }
 0x442   :  { %6304 = vmatmul.msk.bf16.gmra.mxu0 %vm1311_vm8, %v8225_v9  ;;  %v2174_v57 = vsel %vm1996_vm9, %v2165_v44, 0 }
 0x443   :  { %2270 = vmatpush.bf16.msrb.mxu2 %v2262_v22  ;;  %2182 = vmatpush.bf16.msra.mxu3 %v2174_v57 }
 0x447   :  { %2271 = vmatpush.bf16.msrb.mxu2 %v2252_v60  ;;  %2183 = vmatpush.bf16.msra.mxu3 %v2164_v59 }
 0x474   :  { %v1417_v10 = vpop.f32.mrf.mxu2 }
 0x475   :  { %v8356_v35 = vmul.f32 0.25, %v1417_v10 }
 0x477   :  { %v1679_v38 = vsel %vm1660_vm10, %v8356_v35, -inf }
 0x47c   :  { %v1419_v29 = vpop.f32.mrf.mxu2 }
 0x47d   :  { %v8332_v9 = vmul.f32 0.25, %v1419_v29 }
 0x47e   :  { %v1459_v55 = vpop.f32.mrf.mxu1 }
 0x47f   :  { %v1375_v13 = vpop.f32.mrf.mxu0  ;;  %v1682_v25 = vsel %vm1660_vm10, %v8332_v9, -inf  ;;  %v8364_v48 = vmul.f32 0.25, %v1459_v55 }
 0x480   :  { %v8326_v14 = vmul.f32 0.25, %v1375_v13 }
 0x481   :  { %v1688_v33 = vsel %vm1660_vm10, %v8364_v48, -inf }
 0x482   :  { %v1670_v6 = vsel %vm1660_vm10, %v8326_v14, -inf }
 0x483   :  { %1671 = vmax.xlane.f32.xlu0 %v1670_v6 }
 0x484   :  { %v8330_v27 = vpop.f32.mrf.mxu2 }
 0x486   :  { %v1461_v18 = vpop.f32.mrf.mxu1 }
 0x487   :  { %v1377_v20 = vpop.f32.mrf.mxu0  ;;  %v8342_v39 = vmul.f32 0.25, %v1461_v18 }
 0x488   :  { %v8334_v24 = vmul.f32 0.25, %v1377_v20 }
 0x489   :  { %v1691_v37 = vsel %vm1660_vm10, %v8342_v39, -inf }
 0x48a   :  { %v1673_v28 = vsel %vm1660_vm10, %v8334_v24, -inf }
 0x48b   :  { %1683 = vmax.xlane.f32.xlu0 %v1682_v25  ;;  %1674 = vmax.xlane.f32.xlu1 %v1673_v28 }
 0x48c   :  { %v1424_v17 = vpop.f32.mrf.mxu2 }
 0x48d   :  { %v1501_v11 = vpop.f32.mrf.mxu3  ;;  %v8393_v17 = vmul.f32 0.25, %v8330_v27 }
 0x48e   :  { %v1464_v30 = vpop.f32.mrf.mxu1  ;;  %v8354_v21 = vmul.f32 0.25, %v1501_v11 }
 0x48f   :  { %v1380_v31 = vpop.f32.mrf.mxu0 }
 0x490   :  { %v8344_v12 = vmul.f32 0.25, %v1380_v31  ;;  %v1697_v62 = vsel %vm1660_vm10, %v8354_v21, -inf }
 0x492   :  { %v1676_v7 = vsel %vm1660_vm10, %v8344_v12, -inf }
 0x493   :  { %1692 = vmax.xlane.f32.xlu0 %v1691_v37  ;;  %1668 = vmax.xlane.f32.xlu1 %v1667_v56  ;;  %v1685_v37 = vsel %vm1660_vm10, %v8393_v17, -inf  ;;  %v8401_v56 = vmul.f32 0.25, %v1464_v30 }
 0x494   :  { %1677 = vmax.xlane.f32.xlu2 %v1676_v7  ;;  %v8352_v34 = vpop.f32.mrf.mxu2 }
 0x495   :  { %v1503_v43 = vpop.f32.mrf.mxu3 }
 0x496   :  { %v1466_v36 = vpop.f32.mrf.mxu1  ;;  %v8383_v10 = vmul.f32 0.25, %v1503_v43 }
 0x497   :  { %v1382_v26 = vpop.f32.mrf.mxu0  ;;  %v1694_v36 = vsel %vm1660_vm10, %v8401_v56, -inf }
 0x498   :  { %v1700_v25 = vsel %vm1660_vm10, %v8383_v10, -inf }
 0x49b   :  { %1698 = vmax.xlane.f32.xlu1 %v1697_v62 }
 0x49c   :  { %1680 = vmax.xlane.f32.xlu2 %v1679_v38  ;;  %v8362_v2 = vpop.f32.mrf.mxu2 }
 0x49d   :  { %v1506_v42 = vpop.f32.mrf.mxu3 }
 0x49e   :  { %v1627_v1 = vpop.f32.mrf.mxu1  ;;  %v8395_v11 = vmul.f32 0.25, %v1506_v42 }
 0x49f   :  { %v8409_v26 = vmul.f32 0.25, %v1627_v1 }
 0x4a0   :  { %v1663_v49 = vpop.xlane.xlu0 %1662 }
 0x4a1   :  { %v1733_v51 = vsub.f32 %v8307_v58, %v1663_v49  ;;  %v1724_v62 = vsel %vm1660_vm10, %v8409_v26, -inf }
 0x4a3   :  { %v1757_v32 = vmul.f32 1.442695, %v1733_v51 }
 0x4a4   :  { %1689 = vmax.xlane.f32.xlu2 %v1688_v33  ;;  %v8369_v22 = vpop.f32.mrf.mxu2 }
 0x4a5   :  { %7470 = vpow2.f32 %v1757_v32  ;;  %v1508_v46 = vpop.f32.mrf.mxu3 }
 0x4a6   :  { %v8371_v44 = vpop.f32.mrf.mxu1 }
 0x4a8   :  { %v1666_v29 = vpop.xlane.xlu1 %1665 }
 0x4a9   :  { %v1734_v18 = vsub.f32 %v8315_v41, %v1666_v29  ;;  %v1703_v41 = vsel %vm1660_vm10, %v8395_v11, -inf }
 0x4ab   :  { %v8373_v53 = vpop.eup %7470  ;;  %v1759_v28 = vmul.f32 1.442695, %v1734_v18 }
 0x4ac   :  { %v1592_v52 = vpop.f32.mrf.mxu2  ;;  %v1805_v57 = vsel %vm1660_vm10, %v8373_v53, 0.0 }
 0x4ad   :  { %1806 = vadd.xlane.f32.xlu1 %v1805_v57  ;;  %7472 = vpow2.f32 %v1759_v28  ;;  %v8438_v28 = vmul.f32 0.25, %v8352_v34  ;;  %v8450_v34 = vmul.f32 0.25, %v8371_v44 }
 0x4ae   :  { %v8377_v60 = vpop.f32.mrf.mxu1 }
 0x4af   :  { %v1543_v58 = vpop.f32.mrf.mxu0 }
 0x4b0   :  { %v8379_v0 = vmul.f32 0.25, %v1543_v58 }
 0x4b2   :  { %v1706_v59 = vsel %vm1660_vm10, %v8379_v0, -inf }
 0x4b3   :  { %1707 = vmax.xlane.f32.xlu2 %v1706_v59  ;;  %v8403_v7 = vpop.eup %7472 }
 0x4b4   :  { %v1808_v27 = vsel %vm1660_vm10, %v8403_v7, 0.0 }
 0x4b6   :  { %v1634_v55 = vpop.f32.mrf.mxu1 }
 0x4b7   :  { %v1545_v13 = vpop.f32.mrf.mxu0 }
 0x4b8   :  { %v8385_v6 = vmul.f32 0.25, %v1545_v13 }
 0x4ba   :  { %v1709_v20 = vsel %vm1660_vm10, %v8385_v6, -inf }
 0x4bb   :  { %1710 = vmax.xlane.f32.xlu0 %v1709_v20  ;;  %1701 = vmax.xlane.f32.xlu2 %v1700_v25 }
 0x4bf   :  { %v1548_v31 = vpop.f32.mrf.mxu0 }
 0x4c0   :  { %v8419_v1 = vmul.f32 0.25, %v1548_v31  ;;  %v8441_v31 = vmul.f32 0.25, %v8362_v2 }
 0x4c2   :  { %v1712_v13 = vsel %vm1660_vm10, %v8419_v1, -inf }
 0x4c3   :  { %1686 = vmax.xlane.f32.xlu2 %v1685_v37  ;;  %1704 = vmax.xlane.f32.xlu0 %v1703_v41 }
 0x4c7   :  { %v1550_v43 = vpop.f32.mrf.mxu0 }
 0x4cb   :  { %1809 = vadd.xlane.f32.xlu2 %v1808_v27  ;;  %1695 = vmax.xlane.f32.xlu0 %v1694_v36 }
 0x4d3   :  { %1725 = vmax.xlane.f32.xlu2 %v1724_v62  ;;  %v1715_v62 = vsel %vm1660_vm10, %v8438_v28, -inf }
 0x4f6   :  { %v1672_v38 = vpop.xlane.xlu0 %1671 }
 0x4f7   :  { %v1736_v30 = vsub.f32 %v8326_v14, %v1672_v38  ;;  %v1718_v38 = vsel %vm1660_vm10, %v8441_v31, -inf }
 0x4f9   :  { %v1763_v42 = vmul.f32 1.442695, %v1736_v30 }
 0x4fb   :  { %7474 = vpow2.f32 %v1763_v42  ;;  %v8453_v42 = vmul.f32 0.25, %v8377_v60 }
 0x4fd   :  { %v1730_v44 = vsel %vm1660_vm10, %v8453_v42, -inf }
 0x4fe   :  { %v1675_v49 = vpop.xlane.xlu1 %1674  ;;  %v1684_v30 = vpop.xlane.xlu0 %1683 }
 0x4ff   :  { %v1737_v51 = vsub.f32 %v8334_v24, %v1675_v49  ;;  %v1740_v49 = vsub.f32 %v8332_v9, %v1684_v30 }
 0x501   :  { %v8415_v32 = vpop.eup %7474  ;;  %v1765_v33 = vmul.f32 1.442695, %v1737_v51  ;;  %v1727_v51 = vsel %vm1660_vm10, %v8450_v34, -inf }
 0x502   :  { %v1814_v46 = vsel %vm1660_vm10, %v8415_v32, 0.0 }
 0x503   :  { %7476 = vpow2.f32 %v1765_v33  ;;  %1815 = vadd.xlane.f32.xlu1 %v1814_v46  ;;  %v1771_v46 = vmul.f32 1.442695, %v1740_v49 }
 0x506   :  { %v1669_v52 = vpop.xlane.xlu1 %1668 }
 0x507   :  { %v1735_v57 = vsub.f32 %v8340_v63, %v1669_v52  ;;  %v1678_v58 = vpop.xlane.xlu2 %1677  ;;  %v1693_v52 = vpop.xlane.xlu0 %1692 }
 0x508   :  { %v1738_v14 = vsub.f32 %v8344_v12, %v1678_v58 }
 0x509   :  { %v8423_v59 = vpop.eup %7476  ;;  %v1761_v29 = vmul.f32 1.442695, %v1735_v57 }
 0x50a   :  { %v1767_v24 = vmul.f32 1.442695, %v1738_v14  ;;  %v1817_v55 = vsel %vm1660_vm10, %v8423_v59, 0.0 }
 0x50b   :  { %7478 = vpow2.f32 %v1761_v29  ;;  %1818 = vadd.xlane.f32.xlu0 %v1817_v55  ;;  %1713 = vmax.xlane.f32.xlu1 %v1712_v13 }
 0x50c   :  { %7480 = vpow2.f32 %v1767_v24 }
 0x50e   :  { %v1699_v37 = vpop.xlane.xlu1 %1698 }
 0x50f   :  { %v1681_v18 = vpop.xlane.xlu2 %1680  ;;  %v1745_v27 = vsub.f32 %v8354_v21, %v1699_v37 }
 0x510   :  { %v1739_v21 = vsub.f32 %v8356_v35, %v1681_v18  ;;  %v8466_v35 = vmul.f32 0.25, %v8369_v22 }
 0x511   :  { %v8429_v20 = vpop.eup %7478  ;;  %v1781_v2 = vmul.f32 1.442695, %v1745_v27 }
 0x512   :  { %v8431_v63 = vpop.eup %7480  ;;  %v1811_v12 = vsel %vm1660_vm10, %v8429_v20, 0.0  ;;  %v1769_v60 = vmul.f32 1.442695, %v1739_v21  ;;  %v1721_v14 = vsel %vm1660_vm10, %v8466_v35, -inf }
 0x513   :  { %1812 = vadd.xlane.f32.xlu0 %v1811_v12  ;;  %v1820_v25 = vsel %vm1660_vm10, %v8431_v63, 0.0 }
 0x514   :  { %1821 = vadd.xlane.f32.xlu1 %v1820_v25 }
 0x517   :  { %v1690_v41 = vpop.xlane.xlu2 %1689 }
 0x518   :  { %v1742_v43 = vsub.f32 %v8364_v48, %v1690_v41 }
 0x51a   :  { %v1775_v36 = vmul.f32 1.442695, %v1742_v43 }
 0x51b   :  { %1716 = vmax.xlane.f32.xlu0 %v1715_v62 }
 0x51c   :  { %7482 = vpow2.f32 %v1775_v36  ;;  %1719 = vmax.xlane.f32.xlu1 %v1718_v38 }
 0x51d   :  { %7484 = vpow2.f32 %v1781_v2 }
 0x51e   :  { %7486 = vpow2.f32 %v1769_v60 }
 0x51f   :  { %7488 = vpow2.f32 %v1771_v46 }
 0x522   :  { %v8456_v48 = vpop.eup %7482 }
 0x523   :  { %v1832_v33 = vsel %vm1660_vm10, %v8456_v48, 0.0  ;;  %1728 = vmax.xlane.f32.xlu0 %v1727_v51  ;;  %v8468_v57 = vpop.eup %7484 }
 0x524   :  { %1833 = vadd.xlane.f32.xlu2 %v1832_v33  ;;  %1731 = vmax.xlane.f32.xlu1 %v1730_v44  ;;  %v1841_v29 = vsel %vm1660_vm10, %v8468_v57, 0.0  ;;  %v8475_v13 = vpop.eup %7486 }
 0x525   :  { %v8479_v25 = vpop.eup %7488  ;;  %v1823_v43 = vsel %vm1660_vm10, %v8475_v13, 0.0 }
 0x526   :  { %v1708_v9 = vpop.xlane.xlu2 %1707  ;;  %v1826_v27 = vsel %vm1660_vm10, %v8479_v25, 0.0 }
 0x527   :  { %v1748_v58 = vsub.f32 %v8379_v0, %v1708_v9  ;;  %v1743_v0 = vsub.f32 %v8342_v39, %v1693_v52 }
 0x529   :  { %v1787_v24 = vmul.f32 1.442695, %v1748_v58  ;;  %v1777_v36 = vmul.f32 1.442695, %v1743_v0 }
 0x52b   :  { %1722 = vmax.xlane.f32.xlu0 %v1721_v14  ;;  %7490 = vpow2.f32 %v1787_v24 }
 0x52c   :  { %1842 = vadd.xlane.f32.xlu1 %v1841_v29 }
 0x52e   :  { %v1702_v22 = vpop.xlane.xlu2 %1701  ;;  %v1711_v55 = vpop.xlane.xlu0 %1710 }
 0x52f   :  { %v1746_v18 = vsub.f32 %v8383_v10, %v1702_v22  ;;  %v1749_v12 = vsub.f32 %v8385_v6, %v1711_v55  ;;  %v1807_v10 = vpop.xlane.xlu1 %1806 }
 0x531   :  { %v1783_v37 = vmul.f32 1.442695, %v1746_v18  ;;  %v1789_v41 = vmul.f32 1.442695, %v1749_v12  ;;  %v8488_v38 = vpop.eup %7490 }
 0x532   :  { %v1850_v49 = vsel %vm1660_vm10, %v8488_v38, 0.0 }
 0x533   :  { %7492 = vpow2.f32 %v1783_v37  ;;  %1824 = vadd.xlane.f32.xlu0 %v1823_v43 }
 0x534   :  { %7494 = vpow2.f32 %v1789_v41  ;;  %1827 = vadd.xlane.f32.xlu1 %v1826_v27 }
 0x535   :  { %7496 = vpow2.f32 %v1777_v36 }
 0x536   :  { %v1687_v6 = vpop.xlane.xlu2 %1686  ;;  %v8486_v62 = vpop.xlane.xlu0 %1704  ;;  %7498 = vrcp.f32 %v1807_v10 }
 0x537   :  { %v1741_v30 = vsub.f32 %v8393_v17, %v1687_v6 }
 0x539   :  { %v8490_v39 = vpop.eup %7492  ;;  %v1773_v33 = vmul.f32 1.442695, %v1741_v30 }
 0x53a   :  { %v8493_v2 = vpop.eup %7494  ;;  %v1844_v21 = vsel %vm1660_vm10, %v8490_v39, 0.0 }
 0x53b   :  { %1845 = vadd.xlane.f32.xlu2 %v1844_v21  ;;  %1851 = vadd.xlane.f32.xlu0 %v1850_v49  ;;  %v1853_v51 = vsel %vm1660_vm10, %v8493_v2, 0.0  ;;  %v8501_v44 = vpop.eup %7496 }
 0x53c   :  { %1854 = vadd.xlane.f32.xlu1 %v1853_v51  ;;  %v7499_v17 = vpop.eup %7498  ;;  %v1835_v14 = vsel %vm1660_vm10, %v8501_v44, 0.0  ;;  %v1747_v51 = vsub.f32 %v8395_v11, %v8486_v62 }
 0x53d   :  { %v1901_v58 = vmul.f32 %v7499_v17, %v8373_v53 }
 0x53e   :  { %v1810_v60 = vpop.xlane.xlu2 %1809  ;;  %v1696_v46 = vpop.xlane.xlu0 %1695 }
 0x53f   :  { %7500 = vrcp.f32 %v1810_v60  ;;  %v1744_v52 = vsub.f32 %v8401_v56, %v1696_v46  ;;  %v1925_v24 = vpack.c.bf16 %v1901_v58, %v1901_v58 }
 0x540   :  { %7502 = vpow2.f32 %v1773_v33 }
 0x541   :  { %v1779_v9 = vmul.f32 1.442695, %v1744_v52  ;;  %v1976_v41 = vunpack.c.l.b16 %v1925_v24 }
 0x543   :  { %7504 = vpow2.f32 %v1779_v9  ;;  %1836 = vadd.xlane.f32.xlu0 %v1835_v14 }
 0x545   :  { %v7501_v29 = vpop.eup %7500 }
 0x546   :  { %v1902_v22 = vmul.f32 %v7501_v29, %v8403_v7  ;;  %v1726_v55 = vpop.xlane.xlu2 %1725  ;;  %v8508_v18 = vpop.eup %7502 }
 0x547   :  { %v1754_v12 = vsub.f32 %v8409_v26, %v1726_v55  ;;  %v1829_v43 = vsel %vm1660_vm10, %v8508_v18, 0.0 }
 0x548   :  { %v1926_v0 = vpack.c.bf16 %v1902_v22, %v1902_v22 }
 0x549   :  { %v8511_v56 = vpop.eup %7504  ;;  %v1799_v37 = vmul.f32 1.442695, %v1754_v12 }
 0x54a   :  { %v1977_v53 = vunpack.c.l.b16 %v1926_v0  ;;  %v1838_v27 = vsel %vm1660_vm10, %v8511_v56, 0.0 }
 0x54b   :  { %7506 = vpow2.f32 %v1799_v37  ;;  %1830 = vadd.xlane.f32.xlu0 %v1829_v43  ;;  %1839 = vadd.xlane.f32.xlu2 %v1838_v27 }
 0x54c   :  { %v1979_v7 = vpack.c.b16 %v1977_v53, %v1976_v41 }
 0x54e   :  { %6309 = vmatmul.msk.bf16.vlgmr.msrb.gmra.mxu3 %vm1660_vm10, %v1979_v7 }
 0x551   :  { %v8518_v36 = vpop.eup %7506 }
 0x552   :  { %v1868_v26 = vsel %vm1660_vm10, %v8518_v36, 0.0 }
 0x553   :  { %1869 = vadd.xlane.f32.xlu1 %v1868_v26 }
 0x563   :  { %7271 = vrot.lane.b32.xlu2 %v8166_v8, %s7768_s8 }
 0x56c   :  { %7266 = vrot.lane.b32.xlu1 %v8166_v8, %s7767_s7  ;;  %v1785_v8 = vmul.f32 1.442695, %v1747_v51 }
 0x576   :  { %v1816_v10 = vpop.xlane.xlu1 %1815 }
 0x577   :  { %7508 = vrcp.f32 %v1816_v10 }
 0x57d   :  { %v7509_v21 = vpop.eup %7508 }
 0x57e   :  { %v8526_v6 = vpop.xlane.xlu1 %1713  ;;  %v1819_v30 = vpop.xlane.xlu0 %1818  ;;  %v1904_v49 = vmul.f32 %v7509_v21, %v8415_v32 }
 0x57f   :  { %7510 = vrcp.f32 %v1819_v30 }
 0x580   :  { %v1928_v60 = vpack.c.bf16 %v1904_v49, %v1904_v49 }
 0x582   :  { %v2021_v58 = vunpack.c.l.b16 %v1928_v60 }
 0x585   :  { %v7511_v33 = vpop.eup %7510 }
 0x586   :  { %v1905_v46 = vmul.f32 %v7511_v33, %v8423_v59  ;;  %v1813_v17 = vpop.xlane.xlu0 %1812 }
 0x587   :  { %v1822_v52 = vpop.xlane.xlu1 %1821  ;;  %7512 = vrcp.f32 %v1813_v17 }
 0x588   :  { %v1929_v9 = vpack.c.bf16 %v1905_v46, %v1905_v46  ;;  %7514 = vrcp.f32 %v1822_v52 }
 0x589   :  { %7516 = vpow2.f32 %v1785_v8 }
 0x58a   :  { %v2022_v14 = vunpack.c.l.b16 %v1929_v9 }
 0x58c   :  { %v2024_v29 = vpack.c.b16 %v2022_v14, %v2021_v58 }
 0x58d   :  { %v7513_v24 = vpop.eup %7512 }
 0x58e   :  { %v7515_v22 = vpop.eup %7514  ;;  %6311 = vmatmul.msk.bf16.vlgmr.msrb.gmra.mxu0 %vm1660_vm10, %v2024_v29  ;;  %v1717_v32 = vpop.xlane.xlu0 %1716  ;;  %v1903_v11 = vmul.f32 %v7513_v24, %v8429_v20 }
 0x58f   :  { %v1720_v62 = vpop.xlane.xlu1 %1719  ;;  %v1751_v59 = vsub.f32 %v8438_v28, %v1717_v32  ;;  %v1906_v0 = vmul.f32 %v7515_v22, %v8431_v63  ;;  %v8537_v41 = vpop.eup %7516 }
 0x590   :  { %v1752_v55 = vsub.f32 %v8441_v31, %v1720_v62  ;;  %v1927_v12 = vpack.c.bf16 %v1903_v11, %v1903_v11  ;;  %v1847_v20 = vsel %vm1660_vm10, %v8537_v41, 0.0 }
 0x591   :  { %v1793_v37 = vmul.f32 1.442695, %v1751_v59  ;;  %v1930_v7 = vpack.c.bf16 %v1906_v0, %v1906_v0 }
 0x592   :  { %v1795_v53 = vmul.f32 1.442695, %v1752_v55  ;;  %v1978_v43 = vunpack.c.l.b16 %v1927_v12 }
 0x593   :  { %7518 = vpow2.f32 %v1793_v37  ;;  %v2023_v10 = vunpack.c.l.b16 %v1930_v7 }
 0x594   :  { %7520 = vpow2.f32 %v1795_v53  ;;  %v1980_v27 = vpack.c.b16 %v1978_v43, %v1978_v43 }
 0x596   :  { %1848 = vadd.xlane.f32.xlu1 %v1847_v20  ;;  %6310 = vmatmul.msk.bf16.gmra.mxu3 %vm1660_vm10, %v1980_v27  ;;  %v1729_v28 = vpop.xlane.xlu0 %1728 }
 0x597   :  { %v1732_v31 = vpop.xlane.xlu1 %1731  ;;  %v1755_v26 = vsub.f32 %v8450_v34, %v1729_v28  ;;  %v2025_v34 = vpack.c.b16 %v2023_v10, %v2023_v10  ;;  %v1834_v58 = vpop.xlane.xlu2 %1833 }
 0x598   :  { %v1756_v63 = vsub.f32 %v8453_v42, %v1732_v31 }
 0x599   :  { %v8544_v30 = vpop.eup %7518  ;;  %v1801_v21 = vmul.f32 1.442695, %v1755_v26 }
 0x59a   :  { %v8546_v49 = vpop.eup %7520  ;;  %v1803_v51 = vmul.f32 1.442695, %v1756_v63  ;;  %v1859_v33 = vsel %vm1660_vm10, %v8544_v30, 0.0 }
 0x59b   :  { %7522 = vpow2.f32 %v1801_v21  ;;  %v1862_v60 = vsel %vm1660_vm10, %v8546_v49, 0.0  ;;  %1860 = vadd.xlane.f32.xlu0 %v1859_v33 }
 0x59c   :  { %7524 = vpow2.f32 %v1803_v51  ;;  %1863 = vadd.xlane.f32.xlu2 %v1862_v60 }
 0x59e   :  { %6312 = vmatmul.msk.bf16.gmra.mxu0 %vm1660_vm10, %v2025_v34  ;;  %v8553_v42 = vpop.xlane.xlu0 %1722 }
 0x59f   :  { %v1843_v46 = vpop.xlane.xlu1 %1842 }
 0x5a1   :  { %v8555_v17 = vpop.eup %7522 }
 0x5a2   :  { %v8557_v52 = vpop.eup %7524  ;;  %v1871_v8 = vsel %vm1660_vm10, %v8555_v17, 0.0 }
 0x5a3   :  { %v1874_v9 = vsel %vm1660_vm10, %v8557_v52, 0.0 }
 0x5a4   :  { %1875 = vadd.xlane.f32.xlu1 %v1874_v9  ;;  %1872 = vadd.xlane.f32.xlu2 %v1871_v8 }
 0x5a6   :  { %v1825_v14 = vpop.xlane.xlu0 %1824 }
 0x5a7   :  { %v1828_v29 = vpop.xlane.xlu1 %1827  ;;  %7526 = vrcp.f32 %v1825_v14 }
 0x5a8   :  { %7528 = vrcp.f32 %v1828_v29 }
 0x5a9   :  { %7530 = vrcp.f32 %v1843_v46 }
 0x5ad   :  { %v7527_v24 = vpop.eup %7526 }
 0x5ae   :  { %v7529_v22 = vpop.eup %7528  ;;  %v1907_v32 = vmul.f32 %v7527_v24, %v8475_v13  ;;  %v1846_v11 = vpop.xlane.xlu2 %1845 }
 0x5af   :  { %v8564_v62 = vpop.xlane.xlu0 %1851  ;;  %v7531_v59 = vpop.eup %7530  ;;  %v1908_v55 = vmul.f32 %v7529_v22, %v8479_v25  ;;  %7532 = vrcp.f32 %v1846_v11  ;;  %1247 = vrot.lane.b32.xlu0 %v8215_v5, %s7767_s7 }
 0x5b0   :  { %v1931_v12 = vpack.c.bf16 %v1907_v32, %v1907_v32  ;;  %7534 = vrcp.f32 %v1834_v58  ;;  %v1913_v37 = vmul.f32 %v7531_v59, %v8468_v57 }
 0x5b1   :  { %v1932_v0 = vpack.c.bf16 %v1908_v55, %v1908_v55 }
 0x5b2   :  { %v2065_v53 = vunpack.c.l.b16 %v1931_v12  ;;  %v1937_v13 = vpack.c.bf16 %v1913_v37, %v1913_v37 }
 0x5b3   :  { %v2066_v43 = vunpack.c.l.b16 %v1932_v0 }
 0x5b4   :  { %v2153_v63 = vunpack.c.l.b16 %v1937_v13 }
 0x5b5   :  { %v7533_v27 = vpop.eup %7532  ;;  %v2068_v7 = vpack.c.b16 %v2066_v43, %v2065_v53  ;;  %v1855_v53 = vpop.xlane.xlu1 %1854 }
 0x5b6   :  { %v1914_v20 = vmul.f32 %v7533_v27, %v8490_v39  ;;  %v7535_v31 = vpop.eup %7534 }
 0x5b7   :  { %v1837_v28 = vpop.xlane.xlu0 %1836  ;;  %6313 = vmatmul.msk.bf16.vlgmr.msra.gmra.mxu2 %vm1660_vm10, %v2068_v7  ;;  %v1910_v26 = vmul.f32 %v7535_v31, %v8456_v48 }
 0x5b8   :  { %7536 = vrcp.f32 %v1837_v28  ;;  %v1938_v25 = vpack.c.bf16 %v1914_v20, %v1914_v20 }
 0x5b9   :  { %v1934_v51 = vpack.c.bf16 %v1910_v26, %v1910_v26 }
 0x5ba   :  { %v2154_v10 = vunpack.c.l.b16 %v1938_v25 }
 0x5bb   :  { %v2109_v46 = vunpack.c.l.b16 %v1934_v51 }
 0x5bc   :  { %v2156_v21 = vpack.c.b16 %v2154_v10, %v2153_v63  ;;  %1265 = vrot.lane.b32.xlu2 %v8215_v5, %s7768_s8  ;;  %v1750_v5 = vsub.f32 %v8419_v1, %v8526_v6 }
 0x5be   :  { %v7537_v57 = vpop.eup %7536  ;;  %v1840_v60 = vpop.xlane.xlu2 %1839  ;;  %6317 = vmatmul.msk.bf16.vlgmr.msra.gmra.mxu3 %vm1660_vm10, %v2156_v21  ;;  %v1791_v11 = vmul.f32 1.442695, %v1750_v5 }
 0x5bf   :  { %v1911_v33 = vmul.f32 %v7537_v57, %v8501_v44  ;;  %v1831_v39 = vpop.xlane.xlu0 %1830  ;;  %7538 = vrcp.f32 %v1840_v60 }
 0x5c0   :  { %7540 = vrcp.f32 %v1831_v39 }
 0x5c1   :  { %v1935_v34 = vpack.c.bf16 %v1911_v33, %v1911_v33  ;;  %7542 = vpow2.f32 %v1791_v11 }
 0x5c3   :  { %v2110_v8 = vunpack.c.l.b16 %v1935_v34 }
 0x5c5   :  { %v2112_v48 = vpack.c.b16 %v2110_v8, %v2109_v46  ;;  %v7539_v9 = vpop.eup %7538 }
 0x5c6   :  { %v7541_v58 = vpop.eup %7540  ;;  %v8577_v14 = vpop.permute.xlu2 %7271  ;;  %v1912_v24 = vmul.f32 %v7539_v9, %v8511_v56 }
 0x5c7   :  { %6315 = vmatmul.msk.bf16.vlgmr.msra.gmra.mxu1 %vm1660_vm10, %v2112_v48  ;;  %v7273_v44 = vunpack.i.l.bf16 %v8577_v14  ;;  %v1909_v29 = vmul.f32 %v7541_v58, %v8508_v18  ;;  %v1753_v18 = vsub.f32 %v8466_v35, %v8553_v42  ;;  %v8589_v43 = vpop.eup %7542  ;;  %v1870_v27 = vpop.xlane.xlu1 %1869 }
 0x5c8   :  { %v1936_v12 = vpack.c.bf16 %v1912_v24, %v1912_v24  ;;  %v1856_v13 = vsel %vm1660_vm10, %v8589_v43, 0.0 }
 0x5c9   :  { %v1972_v22 = vpack.c.bf16 %v7273_v44, %v7273_v44  ;;  %v1933_v32 = vpack.c.bf16 %v1909_v29, %v1909_v29  ;;  %v1797_v7 = vmul.f32 1.442695, %v1753_v18 }
 0x5ca   :  { %v2111_v6 = vunpack.c.l.b16 %v1936_v12 }
 0x5cb   :  { %v2295_v59 = vunpack.c.l.b16 %v1972_v22  ;;  %v2067_v55 = vunpack.c.l.b16 %v1933_v32  ;;  %7544 = vpow2.f32 %v1797_v7 }
 0x5cc   :  { %v2113_v56 = vpack.c.b16 %v2111_v6, %v2111_v6 }
 0x5cd   :  { %v2297_v0 = vpack.c.b16 %v2295_v59, %v2295_v59  ;;  %v2069_v37 = vpack.c.b16 %v2067_v55, %v2067_v55 }
 0x5cf   :  { %6314 = vmatmul.msk.bf16.gmra.mxu2 %vm1660_vm10, %v2069_v37  ;;  %v2306_v1 = vsel %vm1996_vm9, %v2297_v0, 0 }
 0x5d0   :  { %2314 = vmatpush.bf16.msrb.mxu1 %v2306_v1 }
 0x5d1   :  { %v8594_v31 = vpop.eup %7544  ;;  %v8599_v10 = vpop.f32.mrf.mxu3 }
 0x5d2   :  { %v1865_v35 = vsel %vm1660_vm10, %v8594_v31, 0.0 }
 0x5d7   :  { %6316 = vmatmul.msk.bf16.gmra.mxu1 %vm1660_vm10, %v2113_v56 }
 0x5d9   :  { %1857 = vadd.xlane.f32.xlu0 %v1856_v13  ;;  %v8603_v39 = vpop.f32.mrf.mxu3 }
 0x5de   :  { %v7267_v20 = vpop.permute.xlu1 %7266 }
 0x5df   :  { %v7268_v28 = vunpack.i.l.bf16 %v7267_v20 }
 0x5e1   :  { %v1966_v25 = vpack.c.bf16 %v7268_v28, %v7268_v28 }
 0x5e3   :  { %v2207_v26 = vunpack.c.l.b16 %v1966_v25 }
 0x5e5   :  { %v2209_v42 = vpack.c.b16 %v2207_v26, %v2207_v26  ;;  %1866 = vadd.xlane.f32.xlu2 %v1865_v35 }
 0x5e7   :  { %v2218_v63 = vsel %vm1996_vm9, %v2209_v42, 0 }
 0x5e8   :  { %2226 = vmatpush.bf16.msra.mxu0 %v2218_v63 }
 0x609   :  { %v1849_v21 = vpop.xlane.xlu1 %1848 }
 0x60a   :  { %7546 = vrcp.f32 %v1849_v21 }
 0x60b   :  { %v8601_v57 = vpop.f32.mrf.mxu0 }
 0x60e   :  { %v1861_v51 = vpop.xlane.xlu0 %1860 }
 0x60f   :  { %v1864_v33 = vpop.xlane.xlu2 %1863  ;;  %7548 = vrcp.f32 %v1861_v51 }
 0x610   :  { %v7547_v60 = vpop.eup %7546  ;;  %7550 = vrcp.f32 %v1864_v33 }
 0x611   :  { %v1915_v34 = vmul.f32 %v7547_v60, %v8537_v41  ;;  %7552 = vrcp.f32 %v1855_v53  ;;  %v7274_v41 = vunpack.i.h.bf16 %v8577_v14 }
 0x612   :  { %7554 = vrcp.f32 %v8564_v62 }
 0x613   :  { %v8607_v46 = vpop.f32.mrf.mxu0  ;;  %v1939_v8 = vpack.c.bf16 %v1915_v34, %v1915_v34  ;;  %7556 = vrcp.f32 %v1870_v27  ;;  %v1970_v6 = vpack.c.bf16 %v7274_v41, %v7274_v41 }
 0x615   :  { %v7549_v48 = vpop.eup %7548  ;;  %v2155_v9 = vunpack.c.l.b16 %v1939_v8 }
 0x616   :  { %v7551_v58 = vpop.eup %7550  ;;  %v1919_v5 = vmul.f32 %v7549_v48, %v8544_v30 }
 0x617   :  { %v1920_v44 = vmul.f32 %v7551_v58, %v8546_v49  ;;  %v1873_v29 = vpop.xlane.xlu2 %1872  ;;  %v2157_v24 = vpack.c.b16 %v2155_v9, %v2155_v9  ;;  %v7553_v22 = vpop.eup %7552  ;;  %v7269_v49 = vunpack.i.h.bf16 %v7267_v20 }
 0x618   :  { %v1943_v32 = vpack.c.bf16 %v1919_v5, %v1919_v5  ;;  %v7555_v11 = vpop.eup %7554  ;;  %7558 = vrcp.f32 %v1873_v29  ;;  %v1917_v30 = vmul.f32 %v7553_v22, %v8493_v2  ;;  %v1876_v56 = vpop.xlane.xlu1 %1875  ;;  %v2293_v2 = vunpack.c.l.b16 %v1970_v6 }
 0x619   :  { %v1944_v59 = vpack.c.bf16 %v1920_v44, %v1920_v44  ;;  %v8612_v62 = vpop.f32.mrf.mxu3  ;;  %6318 = vmatmul.msk.bf16.gmra.mxu3 %vm1660_vm10, %v2157_v24  ;;  %v7557_v55 = vpop.eup %7556  ;;  %v1916_v53 = vmul.f32 %v7555_v11, %v8488_v38  ;;  %v1964_v7 = vpack.c.bf16 %v7269_v49, %v7269_v49  ;;  %7560 = vrcp.f32 %v1876_v56 }
 0x61a   :  { %v2241_v12 = vunpack.c.l.b16 %v1943_v32  ;;  %v1922_v1 = vmul.f32 %v7557_v55, %v8518_v36  ;;  %v1941_v25 = vpack.c.bf16 %v1917_v30, %v1917_v30 }
 0x61b   :  { %v2242_v0 = vunpack.c.l.b16 %v1944_v59  ;;  %v8615_v37 = vpop.f32.mrf.mxu0  ;;  %v1940_v26 = vpack.c.bf16 %v1916_v53, %v1916_v53  ;;  %v2205_v51 = vunpack.c.l.b16 %v1964_v7 }
 0x61c   :  { %v1946_v35 = vpack.c.bf16 %v1922_v1, %v1922_v1  ;;  %v2198_v8 = vunpack.c.l.b16 %v1941_v25 }
 0x61d   :  { %v2244_v14 = vpack.c.b16 %v2242_v0, %v2241_v12  ;;  %v2197_v48 = vunpack.c.l.b16 %v1940_v26 }
 0x61e   :  { %v7559_v18 = vpop.eup %7558  ;;  %v2285_v9 = vunpack.c.l.b16 %v1946_v35 }
 0x61f   :  { %v1266_v27 = vpop.permute.xlu2 %1265  ;;  %6321 = vmatmul.msk.bf16.vlgmr.msrb.gmra.mxu2 %vm1660_vm10, %v2244_v14  ;;  %v1923_v13 = vmul.f32 %v7559_v18, %v8555_v17  ;;  %v7561_v5 = vpop.eup %7560  ;;  %v2200_v44 = vpack.c.b16 %v2198_v8, %v2197_v48 }
 0x620   :  { %v1971_v28 = vpack.c.bf16 %v1266_v27, %v1266_v27  ;;  %v1924_v29 = vmul.f32 %v7561_v5, %v8557_v52 }
 0x621   :  { %v2016_v20 = vpop.f32.mrf.mxu3  ;;  %v1248_v42 = vpop.permute.xlu0 %1247  ;;  %v1947_v38 = vpack.c.bf16 %v1923_v13, %v1923_v13 }
 0x622   :  { %v2294_v36 = vunpack.c.l.b16 %v1971_v28  ;;  %v1965_v63 = vpack.c.bf16 %v1248_v42, %v1248_v42  ;;  %v1948_v24 = vpack.c.bf16 %v1924_v29, %v1924_v29 }
 0x623   :  { %v2060_v21 = vpop.f32.mrf.mxu0  ;;  %v2286_v33 = vunpack.c.l.b16 %v1947_v38 }
 0x624   :  { %v2206_v60 = vunpack.c.l.b16 %v1965_v63  ;;  %v2296_v34 = vpack.c.b16 %v2294_v36, %v2293_v2  ;;  %v2287_v22 = vunpack.c.l.b16 %v1948_v24 }
 0x625   :  { %v2288_v58 = vpack.c.b16 %v2286_v33, %v2285_v9 }
 0x626   :  { %2315 = vmatpush.bf16.msrb.mxu1 %v2296_v34  ;;  %v2208_v17 = vpack.c.b16 %v2206_v60, %v2205_v51  ;;  %v2289_v32 = vpack.c.b16 %v2287_v22, %v2287_v22  ;;  %v7029_v22 = vld [vmem:[%s8641_s15 + $0x18] sm:$0xff] }
 0x627   :  { %2464 = vmatpush.bf16.msrb.mxu3 %v7029_v22 }
 0x628   :  { %2227 = vmatpush.bf16.msra.mxu0 %v2208_v17 }
 0x629   :  { %6323 = vmatmul.msk.bf16.vlgmr.msrb.gmra.mxu1 %vm1660_vm10, %v2288_v58 }
 0x62b   :  { %6319 = vmatmul.msk.bf16.vlgmr.msra.gmra.mxu0 %vm1660_vm10, %v2200_v44 }
 0x639   :  { %6324 = vmatmul.msk.bf16.gmra.mxu1 %vm1660_vm10, %v2289_v32  ;;  %v7028_v32 = vld [vmem:[%s8641_s15 + $0x10] sm:$0xff] }
 0x63a   :  { %v2097_v11 = vpop.f32.mrf.mxu2  ;;  %2465 = vmatpush.bf16.msrb.mxu3 %v7028_v32 }
 0x641   :  { %v2185_v41 = vpop.f32.mrf.mxu3 }
 0x642   :  { %v2099_v59 = vpop.f32.mrf.mxu2 }
 0x643   :  { %v7275_v55 = vpack.i.bf16 %v2099_v59, %v2097_v11  ;;  %v7026_v59 = vld [vmem:[%s8641_s15] sm:$0xff] }
 0x644   :  { %v2141_v12 = vpop.f32.mrf.mxu1 }
 0x645   :  { %7276 = vrot.lane.b32.xlu2 %v7275_v55, %s7755_s25 }
 0x649   :  { %v2187_v0 = vpop.f32.mrf.mxu3 }
 0x64a   :  { %v7280_v30 = vpack.i.bf16 %v2187_v0, %v2185_v41  ;;  %v7027_v41 = vld [vmem:[%s8641_s15 + $0x8] sm:$0xff] }
 0x64b   :  { %2466 = vmatpush.bf16.msrb.mxu3 %v7027_v41 }
 0x64c   :  { %v2143_v49 = vpop.f32.mrf.mxu1  ;;  %7281 = vrot.lane.b32.xlu1 %v7280_v30, %s7769_s10  ;;  %v1858_v52 = vpop.xlane.xlu0 %1857  ;;  %v7032_v30 = vld [vmem:[%s8656_s28 + $0x10] sm:$0xff] }
 0x64d   :  { %7562 = vrcp.f32 %v1858_v52 }
 0x64f   :  { %2467 = vmatpush.bf16.msrb.mxu3 %v7026_v59 }
 0x652   :  { %v2102_v53 = vpop.f32.mrf.mxu2 }
 0x653   :  { %v7563_v1 = vpop.eup %7562 }
 0x654   :  { %v2146_v6 = vpop.f32.mrf.mxu1  ;;  %v1918_v14 = vmul.f32 %v7563_v1, %v8589_v43 }
 0x655   :  { %v7305_v18 = vpack.i.bf16 %v2146_v6, %v2102_v53 }
 0x656   :  { %v1942_v56 = vpack.c.bf16 %v1918_v14, %v1918_v14  ;;  %v7031_v14 = vld [vmem:[%s8656_s28 + $0x8] sm:$0xff] }
 0x658   :  { %v1867_v27 = vpop.xlane.xlu2 %1866  ;;  %v2199_v7 = vunpack.c.l.b16 %v1942_v56 }
 0x659   :  { %7564 = vrcp.f32 %v1867_v27 }
 0x65a   :  { %v2104_v13 = vpop.f32.mrf.mxu2  ;;  %v2201_v28 = vpack.c.b16 %v2199_v7, %v2199_v7 }
 0x65c   :  { %v2148_v25 = vpop.f32.mrf.mxu1  ;;  %6320 = vmatmul.msk.bf16.gmra.mxu0 %vm1660_vm10, %v2201_v28 }
 0x65f   :  { %v7565_v26 = vpop.eup %7564 }
 0x660   :  { %v1921_v35 = vmul.f32 %v7565_v26, %v8594_v31  ;;  %v7290_v31 = vpack.i.bf16 %v2143_v49, %v2141_v12  ;;  %v7033_v12 = vld [vmem:[%s8656_s28 + $0x18] sm:$0xff] }
 0x661   :  { %2535 = vmatpush.bf16.msrb.mxu0 %v7033_v12 }
 0x662   :  { %v1945_v2 = vpack.c.bf16 %v1921_v35, %v1921_v35 }
 0x664   :  { %v2243_v20 = vunpack.c.l.b16 %v1945_v2 }
 0x665   :  { %2536 = vmatpush.bf16.msrb.mxu0 %v7032_v30 }
 0x666   :  { %v2245_v42 = vpack.c.b16 %v2243_v20, %v2243_v20 }
 0x668   :  { %6322 = vmatmul.msk.bf16.gmra.mxu2 %vm1660_vm10, %v2245_v42 }
 0x669   :  { %2537 = vmatpush.bf16.msrb.mxu0 %v7031_v14 }
 0x69c   :  { %v2190_v38 = vpop.f32.mrf.mxu3 }
 0x69f   :  { %v7277_v55 = vpop.permute.xlu2 %7276 }
 0x6a0   :  { %v7279_v49 = vunpack.i.h.bf16 %v7277_v55  ;;  %v7278_v52 = vunpack.i.l.bf16 %v7277_v55 }
 0x6a2   :  { %v2273_v43 = vpop.f32.mrf.mxu2  ;;  %v2398_v56 = vsel %vm1311_vm8, %v8599_v10, %v7278_v52 }
 0x6a4   :  { %v2192_v36 = vpop.f32.mrf.mxu3 }
 0x6a6   :  { %v2317_v63 = vpop.f32.mrf.mxu1 }
 0x6a8   :  { %v2229_v21 = vpop.f32.mrf.mxu0 }
 0x6aa   :  { %v2275_v51 = vpop.f32.mrf.mxu2 }
 0x6ab   :  { %v7285_v33 = vpack.i.bf16 %v2275_v51, %v2273_v43 }
 0x6ad   :  { %7286 = vrot.lane.b32.xlu0 %v7285_v33, %s7770_s11 }
 0x6ae   :  { %v2319_v60 = vpop.f32.mrf.mxu1 }
 0x6af   :  { %v7300_v34 = vpack.i.bf16 %v2319_v60, %v2317_v63 }
 0x6b0   :  { %v2231_v8 = vpop.f32.mrf.mxu0 }
 0x6b1   :  { %v7295_v48 = vpack.i.bf16 %v2231_v8, %v2229_v21  ;;  %7301 = vrot.lane.b32.xlu1 %v7300_v34, %s7770_s11 }
 0x6b3   :  { %7296 = vrot.lane.b32.xlu2 %v7295_v48, %s7769_s10 }
 0x6b5   :  { %7291 = vrot.lane.b32.xlu0 %v7290_v31, %s7755_s25 }
 0x6b6   :  { %v2322_v9 = vpop.f32.mrf.mxu1 }
 0x6bd   :  { %7306 = vrot.lane.b32.xlu0 %v7305_v18, %s7755_s25  ;;  %v2399_v18 = vsel %vm1311_vm8, %v8603_v39, %v7279_v49 }
 0x6be   :  { %v2324_v17 = vpop.f32.mrf.mxu1  ;;  %v7282_v0 = vpop.permute.xlu1 %7281 }
 0x6bf   :  { %v7284_v53 = vunpack.i.h.bf16 %v7282_v0  ;;  %v7283_v1 = vunpack.i.l.bf16 %v7282_v0  ;;  %v7436_v0 = vld [vmem:[%s8646_s21] ss:$0 sm:$0xff] }
 0x6c1   :  { %v2404_v13 = vsel %vm185_vm0, %v2398_v56, %v7283_v1  ;;  %v2405_v28 = vsel %vm185_vm0, %v2399_v18, %v7284_v53  ;;  %v774_v18 = vrot.slane %v8012_v45, 1 }
 0x6d9   :  { %v2234_v58 = vpop.f32.mrf.mxu0 }
 0x6da   :  { %v7310_v5 = vpack.i.bf16 %v2234_v58, %v2190_v38 }
 0x6dc   :  { %7311 = vrot.lane.b32.xlu2 %v7310_v5, %s7769_s10 }
 0x6e1   :  { %v2236_v44 = vpop.f32.mrf.mxu0 }
 0x6eb   :  { %v2278_v29 = vpop.f32.mrf.mxu2 }
 0x6ec   :  { %v7315_v24 = vpack.i.bf16 %v2322_v9, %v2278_v29 }
 0x6ee   :  { %7316 = vrot.lane.b32.xlu1 %v7315_v24, %s7770_s11 }
 0x6f3   :  { %v2280_v11 = vpop.f32.mrf.mxu2 }
 0x70d   :  { %v7297_v20 = vpop.permute.xlu2 %7296 }
 0x70e   :  { %v7299_v43 = vunpack.i.h.bf16 %v7297_v20  ;;  %v7298_v36 = vunpack.i.l.bf16 %v7297_v20 }
 0x71f   :  { %v7287_v6 = vpop.permute.xlu0 %7286 }
 0x720   :  { %v7289_v27 = vunpack.i.h.bf16 %v7287_v6  ;;  %v7288_v7 = vunpack.i.l.bf16 %v7287_v6 }
 0x722   :  { %v2411_v25 = vsel %vm306_vm1, %v2405_v28, %v7289_v27  ;;  %v2410_v26 = vsel %vm306_vm1, %v2404_v13, %v7288_v7 }
 0x723   :  { %v2425_v35 = vpack.c.bf16 %v2411_v25, %v2410_v26  ;;  %v7302_v63 = vpop.permute.xlu1 %7301 }
 0x724   :  { %v7304_v33 = vunpack.i.h.bf16 %v7302_v63  ;;  %v7303_v60 = vunpack.i.l.bf16 %v7302_v63 }
 0x725   :  { %6341 = vmatmul.msk.bf16.vlgmr.msrb.gmra.mxu3 %vm259_vm4, %v2425_v35 }
 0x727   :  { %v7292_v2 = vpop.permute.xlu0 %7291 }
 0x728   :  { %v7294_v39 = vunpack.i.h.bf16 %v7292_v2  ;;  %v7293_v42 = vunpack.i.l.bf16 %v7292_v2 }
 0x72a   :  { %v2402_v10 = vsel %vm1311_vm8, %v8607_v46, %v7294_v39  ;;  %v2401_v38 = vsel %vm1311_vm8, %v8601_v57, %v7293_v42  ;;  %v7030_v46 = vld [vmem:[%s8656_s28] sm:$0xff] }
 0x72b   :  { %v2408_v21 = vsel %vm185_vm0, %v2402_v10, %v7299_v43  ;;  %v2407_v51 = vsel %vm185_vm0, %v2401_v38, %v7298_v36  ;;  %2538 = vmatpush.bf16.msrb.mxu0 %v7030_v46  ;;  %v7437_v39 = vld [vmem:[%s8683_s3] ss:$0 sm:$0xff]  ;;  %v782_v43 = vrot.slane %v8025_v3, 1 }
 0x72c   :  { %v2413_v34 = vsel %vm306_vm1, %v2407_v51, %v7303_v60  ;;  %v2414_v8 = vsel %vm306_vm1, %v2408_v21, %v7304_v33 }
 0x72d   :  { %v2426_v48 = vpack.c.bf16 %v2414_v8, %v2413_v34  ;;  %v2546_v21 = vperm.slane %v782_v43, 0 }
 0x72f   :  { %v7307_v57 = vpop.permute.xlu0 %7306 }
 0x730   :  { %v7309_v9 = vunpack.i.h.bf16 %v7307_v57  ;;  %v7308_v17 = vunpack.i.l.bf16 %v7307_v57 }
 0x732   :  { %v2403_v29 = vsel %vm1311_vm8, %v8615_v37, %v7309_v9  ;;  %v2400_v24 = vsel %vm1311_vm8, %v8612_v62, %v7308_v17  ;;  %v2479_v37 = vperm.slane %v8012_v45, 0 }
 0x735   :  { %6342 = vmatmul.msk.bf16.gmra.mxu3 %vm259_vm4, %v2426_v48 }
 0x736   :  { %v7312_v31 = vpop.permute.xlu2 %7311 }
 0x737   :  { %v7314_v58 = vunpack.i.h.bf16 %v7312_v31  ;;  %v7313_v5 = vunpack.i.l.bf16 %v7312_v31 }
 0x739   :  { %v2406_v11 = vsel %vm185_vm0, %v2400_v24, %v7313_v5  ;;  %v2409_v41 = vsel %vm185_vm0, %v2403_v29, %v7314_v58 }
 0x760   :  { %v7317_v44 = vpop.permute.xlu1 %7316 }
 0x761   :  { %v7319_v22 = vunpack.i.h.bf16 %v7317_v44  ;;  %v7318_v32 = vunpack.i.l.bf16 %v7317_v44 }
 0x763   :  { %v2415_v59 = vsel %vm306_vm1, %v2409_v41, %v7319_v22  ;;  %v2412_v55 = vsel %vm306_vm1, %v2406_v11, %v7318_v32 }
 0x764   :  { %v2500_v12 = vpack.c.bf16 %v2415_v59, %v2412_v55 }
 0x766   :  { %6359 = vmatmul.msk.bf16.vlgmr.msrb.gmra.mxu0 %vm259_vm4, %v2500_v12 }
 0x7a8   :  { %v2469_v30 = vpop.f32.mrf.mxu3 }
 0x7a9   :  { %v2470_v49 = vadd.f32 %v7436_v0, %v2469_v30 }
 0x7ab   :  { %v2483_v52 = vmul.f32 %v2479_v37, %v2470_v49 }
 0x7ad   :  { %v8697_v62 = vadd.f32 %v2483_v52, %v7949_v54  ;;  %v8707_v54 = vperm.slane %v774_v18, 0  ;;  %v7041_v18 = vld [vmem:[%s8784_s14 + $0x34] sm:$0xf0] }
 0x7af   :  { %v2553_v53 = vsel %vm259_vm4, %v8697_v62, 0.0 }
 0x7b0   :  { %v2471_v1 = vpop.f32.mrf.mxu3  ;;  %2554 = vadd.xlane.f32.xlu0 %v2553_v53 }
 0x7b1   :  { %v2472_v6 = vadd.f32 %v7436_v0, %v2471_v1 }
 0x7b3   :  { %v2484_v14 = vmul.f32 %v2479_v37, %v2472_v6 }
 0x7b5   :  { %v8703_v56 = vadd.f32 %v2484_v14, %v7955_v4  ;;  %v6386_v14 = vld [vmem:[%s8784_s14 + $0x30] sm:$0xf] }
 0x7b7   :  { %v2556_v27 = vsel %vm259_vm4, %v8703_v56, 0.0 }
 0x7b8   :  { %2557 = vadd.xlane.f32.xlu2 %v2556_v27  ;;  %v2474_v7 = vpop.f32.mrf.mxu3  ;;  %v7040_v27 = vld [vmem:[%s8784_s14 + $0x34] sm:$0xf] }
 0x7b9   :  { %v2475_v13 = vadd.f32 %v7436_v0, %v2474_v7  ;;  %v6387_v7 = vor.u32 %v7041_v18, %v6386_v14 }
 0x7bb   :  { %v2485_v28 = vmul.f32 %v8707_v54, %v2475_v13  ;;  %2729 = vmatpush.bf16.msra.mxu2 %v6387_v7 }
 0x7bd   :  { %v8711_v25 = vadd.f32 %v2485_v28, %v7967_v16  ;;  %v2545_v16 = vperm.slane %v8025_v3, 0  ;;  %v6378_v28 = vld [vmem:[%s8784_s14 + $0x20] sm:$0xf] }
 0x7bf   :  { %v2559_v45 = vsel %vm259_vm4, %v8711_v25, 0.0 }
 0x7c0   :  { %v2476_v26 = vpop.f32.mrf.mxu3  ;;  %2560 = vadd.xlane.f32.xlu1 %v2559_v45  ;;  %v7039_v45 = vld [vmem:[%s8784_s14 + $0x24] sm:$0xf0] }
 0x7c1   :  { %v2477_v4 = vadd.f32 %v7436_v0, %v2476_v26  ;;  %v7038_v26 = vld [vmem:[%s8784_s14 + $0x24] sm:$0xf] }
 0x7c3   :  { %v2486_v35 = vmul.f32 %v8707_v54, %v2477_v4  ;;  %v6379_v4 = vor.u32 %v7039_v45, %v6378_v28 }
 0x7c5   :  { %v8717_v2 = vadd.f32 %v2486_v35, %v7980_v23  ;;  %v6380_v35 = vld [vmem:[%s8784_s14 + $0x28] sm:$0xf0]  ;;  %2730 = vmatpush.bf16.msra.mxu2 %v6379_v4 }
 0x7c7   :  { %v2562_v20 = vsel %vm259_vm4, %v8717_v2, 0.0 }
 0x7c8   :  { %2563 = vadd.xlane.f32.xlu0 %v2562_v20  ;;  %v6383_v20 = vor.u32 %v7038_v26, %v6380_v35  ;;  %v6486_v35 = vld [vmem:[%s8816_s23 + $0x30] sm:$0xf] }
 0x7e3   :  { %v2540_v42 = vpop.f32.mrf.mxu0 }
 0x7e4   :  { %v2541_v10 = vadd.f32 %v7437_v39, %v2540_v42  ;;  %v7037_v42 = vld [vmem:[%s8784_s14 + $0x14] sm:$0xf0] }
 0x7e6   :  { %v2549_v38 = vmul.f32 %v2545_v16, %v2541_v10 }
 0x7e8   :  { %v8725_v36 = vadd.f32 %v2549_v38, %v7848_v50  ;;  %v6372_v38 = vld [vmem:[%s8784_s14 + $0x18] sm:$0xf0] }
 0x7ea   :  { %v3053_v63 = vsel %vm259_vm4, %v8725_v36, 0.0 }
 0x7eb   :  { %v2542_v23 = vpop.f32.mrf.mxu0  ;;  %3054 = vadd.xlane.f32.xlu2 %v3053_v63 }
 0x7ec   :  { %v2543_v51 = vadd.f32 %v7437_v39, %v2542_v23  ;;  %v6370_v39 = vld [vmem:[%s8784_s14 + $0x10] sm:$0xf] }
 0x7ed   :  { %v6371_v10 = vor.u32 %v7037_v42, %v6370_v39  ;;  %v7064_v39 = vld [vmem:[%s8816_s23 + $0x34] sm:$0xf] }
 0x7ee   :  { %v2550_v33 = vmul.f32 %v2546_v21, %v2543_v51  ;;  %v7035_v51 = vld [vmem:[%s8784_s14 + $0x4] sm:$0xf0] }
 0x7ef   :  { %2731 = vmatpush.bf16.msra.mxu2 %v6371_v10 }
 0x7f0   :  { %v8730_v60 = vadd.f32 %v2550_v33, %v7853_v61  ;;  %v7034_v33 = vld [vmem:[%s8784_s14 + $0x4] sm:$0xf] }
 0x7f2   :  { %v3056_v34 = vsel %vm259_vm4, %v8730_v60, 0.0 }
 0x7f3   :  { %3057 = vadd.xlane.f32.xlu1 %v3056_v34 }
 0x823   :  { %v2555_v8 = vpop.xlane.xlu0 %2554 }
 0x824   :  { %v2565_v3 = vmul.f32 %v2555_v8, %v7875_v19 }
 0x826   :  { %v8736_v50 = vsub.f32 %v8697_v62, %v2565_v3  ;;  %v6364_v3 = vld [vmem:[%s8784_s14 + $0x8] sm:$0xf0] }
 0x828   :  { %v2573_v48 = vmul.f32 %v8736_v50, %v8736_v50 }
 0x82a   :  { %v2577_v46 = vsel %vm259_vm4, %v2573_v48, 0.0  ;;  %v6367_v48 = vor.u32 %v7034_v33, %v6364_v3  ;;  %v7062_v33 = vld [vmem:[%s8816_s23 + $0x24] sm:$0xf] }
 0x82b   :  { %v2558_v57 = vpop.xlane.xlu2 %2557  ;;  %2578 = vadd.xlane.f32.xlu0 %v2577_v46 }
 0x82c   :  { %v2566_v61 = vmul.f32 %v2558_v57, %v7875_v19 }
 0x82e   :  { %v8743_v31 = vsub.f32 %v8703_v56, %v2566_v61 }
 0x830   :  { %v2574_v9 = vmul.f32 %v8743_v31, %v8743_v31 }
 0x832   :  { %v2580_v17 = vsel %vm259_vm4, %v2574_v9, 0.0 }
 0x833   :  { %2581 = vadd.xlane.f32.xlu2 %v2580_v17  ;;  %v2561_v22 = vpop.xlane.xlu1 %2560 }
 0x834   :  { %v2567_v41 = vmul.f32 %v2561_v22, %v7875_v19 }
 0x836   :  { %v8765_v12 = vsub.f32 %v8711_v25, %v2567_v41 }
 0x838   :  { %v2575_v52 = vmul.f32 %v8765_v12, %v8765_v12 }
 0x83a   :  { %v2583_v6 = vsel %vm259_vm4, %v2575_v52, 0.0 }
 0x83b   :  { %v2564_v58 = vpop.xlane.xlu0 %2563 }
 0x83c   :  { %v2568_v5 = vmul.f32 %v2564_v58, %v7875_v19 }
 0x83e   :  { %v8750_v44 = vsub.f32 %v8717_v2, %v2568_v5 }
 0x840   :  { %v2576_v29 = vmul.f32 %v8750_v44, %v8750_v44 }
 0x842   :  { %v2586_v24 = vsel %vm259_vm4, %v2576_v29, 0.0 }
 0x843   :  { %2587 = vadd.xlane.f32.xlu0 %v2586_v24 }
 0x84b   :  { %2653 = vrot.lane.b32.xlu2 %v2479_v37, %s7761_s18 }
 0x853   :  { %3109 = vrot.lane.b32.xlu2 %v2546_v21, %s7761_s18  ;;  %v6362_v21 = vld [vmem:[%s8784_s14] sm:$0xf] }
 0x854   :  { %v6363_v8 = vor.u32 %v7035_v51, %v6362_v21  ;;  %v6478_v21 = vld [vmem:[%s8816_s23 + $0x20] sm:$0xf]  ;;  %v7063_v51 = vld [vmem:[%s8816_s23 + $0x24] sm:$0xf0] }
 0x855   :  { %v6479_v3 = vor.u32 %v7063_v51, %v6478_v21  ;;  %v6611_v21 = vld [vmem:[%s7886_s9 + $0x138] sm:$0xf0]  ;;  %v6635_v51 = vld [vmem:[%s7886_s9 + $0x170] sm:$0xf0] }
 0x856   :  { %2732 = vmatpush.bf16.msra.mxu2 %v6363_v8 }
 0x85e   :  { %v3055_v32 = vpop.xlane.xlu2 %3054 }
 0x85f   :  { %v3059_v11 = vmul.f32 %v3055_v32, %v7875_v19 }
 0x861   :  { %v8760_v59 = vsub.f32 %v8725_v36, %v3059_v11 }
 0x863   :  { %v3063_v55 = vmul.f32 %v8760_v59, %v8760_v59 }
 0x865   :  { %v3065_v0 = vsel %vm259_vm4, %v3063_v55, 0.0 }
 0x866   :  { %v3058_v30 = vpop.xlane.xlu1 %3057  ;;  %3066 = vadd.xlane.f32.xlu1 %v3065_v0  ;;  %v2641_v0 = vadd.f32 1.0, %v8014_v47 }
 0x867   :  { %v3060_v37 = vmul.f32 %v3058_v30, %v7875_v19 }
 0x869   :  { %v8770_v49 = vsub.f32 %v8730_v60, %v3060_v37 }
 0x86b   :  { %v3064_v53 = vmul.f32 %v8770_v49, %v8770_v49 }
 0x86d   :  { %v3068_v1 = vsel %vm259_vm4, %v3064_v53, 0.0  ;;  %v2645_v53 = vperm.slane %v2641_v0, 0  ;;  %v6464_v0 = vld [vmem:[%s8816_s23 + $0x8] sm:$0xf0] }
 0x86e   :  { %3069 = vadd.xlane.f32.xlu0 %v3068_v1  ;;  %2584 = vadd.xlane.f32.xlu1 %v2583_v6 }
 0x882   :  { %3107 = vrot.lane.b32.xlu0 %v2545_v16, %s7761_s18  ;;  %v7036_v16 = vld [vmem:[%s8784_s14 + $0x14] sm:$0xf] }
 0x883   :  { %v6375_v63 = vor.u32 %v7036_v16, %v6372_v38  ;;  %v6488_v38 = vld [vmem:[%s8816_s23 + $0x38] sm:$0xf0] }
 0x887   :  { %2655 = vrot.lane.b32.xlu1 %v8707_v54, %s7761_s18  ;;  %v6388_v54 = vld [vmem:[%s8784_s14 + $0x38] sm:$0xf0] }
 0x888   :  { %v6391_v13 = vor.u32 %v7040_v27, %v6388_v54 }
 0x88a   :  { %2748 = vmatpush.bf16.msra.mxu1 %v6391_v13 }
 0x88e   :  { %2749 = vmatpush.bf16.msra.mxu1 %v6383_v20  ;;  %v7065_v20 = vld [vmem:[%s8816_s23 + $0x34] sm:$0xf0] }
 0x88f   :  { %v6487_v10 = vor.u32 %v7065_v20, %v6486_v35  ;;  %v6627_v35 = vld [vmem:[%s7886_s9 + $0x168] sm:$0xf0]  ;;  %v776_v20 = vrot.slane %v8014_v47, 1 }
 0x891   :  { %3177 = vmatpush.bf16.msrb.mxu2 %v6487_v10  ;;  %v7092_v10 = vld [vmem:[%s7886_s9 + $0x134] sm:$0xf0] }
 0x892   :  { %2750 = vmatpush.bf16.msra.mxu1 %v6375_v63 }
 0x895   :  { %3178 = vmatpush.bf16.msrb.mxu2 %v6479_v3 }
 0x896   :  { %2751 = vmatpush.bf16.msra.mxu1 %v6367_v48  ;;  %v6480_v48 = vld [vmem:[%s8816_s23 + $0x28] sm:$0xf0] }
 0x89e   :  { %v2579_v43 = vpop.xlane.xlu0 %2578 }
 0x89f   :  { %v2589_v23 = vmul.f32 %v2579_v43, %v7875_v19 }
 0x8a1   :  { %v2593_v34 = vadd.f32 1e-06, %v2589_v23  ;;  %v6491_v23 = vor.u32 %v7064_v39, %v6488_v38 }
 0x8a3   :  { %7566 = vrsqrt.f32 %v2593_v34  ;;  %vm2603_vm12 = vweird.f32 %v2593_v34  ;;  %3191 = vmatpush.bf16.msrb.mxu1 %v6491_v23  ;;  %v7090_v23 = vld [vmem:[%s7886_s9 + $0x124] sm:$0xf] }
 0x8a6   :  { %v2582_v46 = vpop.xlane.xlu2 %2581 }
 0x8a7   :  { %v2590_v57 = vmul.f32 %v2582_v46, %v7875_v19  ;;  %v6483_v46 = vor.u32 %v7062_v33, %v6480_v48  ;;  %v6614_v33 = vor.u32 %v7090_v23, %v6611_v21  ;;  %v7097_v21 = vld [vmem:[%s7886_s9 + $0x16c] sm:$0xf0] }
 0x8a9   :  { %v7567_v61 = vpop.eup %7566  ;;  %v2594_v9 = vadd.f32 1e-06, %v2590_v57  ;;  %v6470_v57 = vld [vmem:[%s8816_s23 + $0x10] sm:$0xf]  ;;  %3192 = vmatpush.bf16.msrb.mxu1 %v6483_v46  ;;  %v7086_v46 = vld [vmem:[%s7886_s9 + $0xf4] sm:$0xf] }
 0x8aa   :  { %v2598_v17 = vmul.f32 %v7567_v61, %v2593_v34  ;;  %vm2604_vm11 = vweird.f32 %v7567_v61 }
 0x8ab   :  { %7568 = vrsqrt.f32 %v2594_v9  ;;  %vm2605_vm13 = vmor %vm2603_vm12, %vm2604_vm11  ;;  %vm2613_vm15 = vweird.f32 %v2594_v9 }
 0x8ac   :  { %v2599_v58 = vmul.f32 %v7567_v61, %v2598_v17 }
 0x8ae   :  { %v2600_v5 = vmul.f32 0.5, %v2599_v58  ;;  %v2654_v27 = vpop.permute.xlu2 %2653 }
 0x8b0   :  { %v2601_v29 = vsub.f32 1.5, %v2600_v5 }
 0x8b1   :  { %v7569_v24 = vpop.eup %7568 }
 0x8b2   :  { %v2602_v22 = vmul.f32 %v7567_v61, %v2601_v29  ;;  %v2608_v32 = vmul.f32 %v7569_v24, %v2594_v9  ;;  %vm2614_vm14 = vweird.f32 %v7569_v24  ;;  %v7060_v9 = vld [vmem:[%s8816_s23 + $0x14] sm:$0xf]  ;;  %v6472_v29 = vld [vmem:[%s8816_s23 + $0x18] sm:$0xf0] }
 0x8b3   :  { %vm2615_vm2 = vmor %vm2613_vm15, %vm2614_vm14 }
 0x8b4   :  { %v2609_v11 = vmul.f32 %v7569_v24, %v2608_v32  ;;  %v2606_v55 = vsel %vm2605_vm13, %v7567_v61, %v2602_v22  ;;  %v7061_v61 = vld [vmem:[%s8816_s23 + $0x14] sm:$0xf0]  ;;  %v6475_v22 = vor.u32 %v7060_v9, %v6472_v29  ;;  %v6462_v32 = vld [vmem:[%s8816_s23] sm:$0xf] }
 0x8b5   :  { %v2637_v37 = vmul.f32 %v2606_v55, %v8736_v50  ;;  %v7058_v55 = vld [vmem:[%s8816_s23 + $0x4] sm:$0xf] }
 0x8b6   :  { %v2610_v41 = vmul.f32 0.5, %v2609_v11  ;;  %v2588_v28 = vpop.xlane.xlu0 %2587  ;;  %v7059_v11 = vld [vmem:[%s8816_s23 + $0x4] sm:$0xf0]  ;;  %3193 = vmatpush.bf16.msrb.mxu1 %v6475_v22 }
 0x8b7   :  { %v2649_v14 = vmul.f32 %v2645_v53, %v2637_v37  ;;  %v2592_v50 = vmul.f32 %v2588_v28, %v7875_v19 }
 0x8b8   :  { %v2611_v30 = vsub.f32 1.5, %v2610_v41 }
 0x8b9   :  { %v2659_v7 = vadd.f32 %v2654_v27, %v2649_v14  ;;  %v8810_v45 = vadd.f32 1e-06, %v2592_v50 }
 0x8ba   :  { %v2612_v52 = vmul.f32 %v7569_v24, %v2611_v30  ;;  %v6463_v30 = vor.u32 %v7059_v11, %v6462_v32  ;;  %v6577_v32 = vld [vmem:[%s7886_s9 + $0xc0] sm:$0xf] }
 0x8bb   :  { %7570 = vrsqrt.f32 %v8810_v45  ;;  %vm2633_vm5 = vweird.f32 %v8810_v45 }
 0x8bc   :  { %v2616_v1 = vsel %vm2615_vm2, %v7569_v24, %v2612_v52  ;;  %v6471_v24 = vor.u32 %v7061_v61, %v6470_v57  ;;  %v6467_v52 = vor.u32 %v7058_v55, %v6464_v0  ;;  %v6595_v57 = vld [vmem:[%s7886_s9 + $0x108] sm:$0xf0]  ;;  %v2642_v61 = vadd.f32 1.0, %v776_v20  ;;  %v7082_v55 = vld [vmem:[%s7886_s9 + $0xc4] sm:$0xf] }
 0x8bd   :  { %v2638_v6 = vmul.f32 %v2616_v1, %v8743_v31  ;;  %v6598_v22 = vor.u32 %v7086_v46, %v6595_v57  ;;  %v6579_v0 = vld [vmem:[%s7886_s9 + $0xd8] sm:$0xf0] }
 0x8be   :  { %3179 = vmatpush.bf16.msrb.mxu2 %v6471_v24  ;;  %3194 = vmatpush.bf16.msrb.mxu1 %v6467_v52  ;;  %v2646_v52 = vperm.slane %v2642_v61, 0  ;;  %v6601_v61 = vld [vmem:[%s7886_s9 + $0xf8] sm:$0xf] }
 0x8bf   :  { %v2650_v18 = vmul.f32 %v2645_v53, %v2638_v6 }
 0x8c1   :  { %v2660_v54 = vadd.f32 %v2654_v27, %v2650_v18  ;;  %v8819_v4 = vpop.eup %7570 }
 0x8c2   :  { %v2628_v42 = vmul.f32 %v8819_v4, %v8810_v45  ;;  %3180 = vmatpush.bf16.msrb.mxu2 %v6463_v30  ;;  %vm2634_vm3 = vweird.f32 %v8819_v4 }
 0x8c3   :  { %v2672_v13 = vpack.c.bf16 %v2660_v54, %v2659_v7  ;;  %v6625_v7 = vld [vmem:[%s7886_s9 + $0x150] sm:$0xf]  ;;  %v7096_v54 = vld [vmem:[%s7886_s9 + $0x164] sm:$0xf0]  ;;  %vm8876_vm6 = vmor %vm2633_vm5, %vm2634_vm3 }
 0x8c4   :  { %v2629_v17 = vmul.f32 %v8819_v4, %v2628_v42  ;;  %v6609_v42 = vld [vmem:[%s7886_s9 + $0x120] sm:$0xf] }
 0x8c5   :  { %6392 = vmatmul.msk.bf16.vlgmr.msra.gmra.mxu2 %vm259_vm4, %v2672_v13  ;;  %6394 = vmatmul.msk.bf16.vlgmr.msra.gmra.mxu1 %vm259_vm4, %v2672_v13 }
 0x8c6   :  { %v2630_v41 = vmul.f32 0.5, %v2629_v17 }
 0x8c8   :  { %v2631_v1 = vsub.f32 1.5, %v2630_v41 }
 0x8ca   :  { %v2632_v50 = vmul.f32 %v8819_v4, %v2631_v1 }
 0x8cc   :  { %v2636_v48 = vsel %vm8876_vm6, %v8819_v4, %v2632_v50  ;;  %v7084_v4 = vld [vmem:[%s7886_s9 + $0xd4] sm:$0xf0] }
 0x8cd   :  { %v2640_v24 = vmul.f32 %v2636_v48, %v8750_v44  ;;  %v6619_v48 = vld [vmem:[%s7886_s9 + $0x140] sm:$0xf0] }
 0x8d9   :  { %v3067_v31 = vpop.xlane.xlu1 %3066 }
 0x8da   :  { %v3071_v26 = vmul.f32 %v3067_v31, %v7875_v19  ;;  %v6626_v31 = vor.u32 %v7096_v54, %v6625_v7  ;;  %v6582_v7 = vor.u32 %v7082_v55, %v6579_v0  ;;  %v784_v54 = vrot.slane %v8008_v40, 1 }
 0x8dc   :  { %v8826_v16 = vadd.f32 1e-06, %v3071_v26  ;;  %v7094_v26 = vld [vmem:[%s7886_s9 + $0x154] sm:$0xf]  ;;  %3535 = vmatpush.bf16.msra.mxu2 %v6626_v31  ;;  %v3098_v31 = vadd.f32 1.0, %v784_v54 }
 0x8dd   :  { %v6630_v39 = vor.u32 %v7094_v26, %v6627_v35  ;;  %v3097_v26 = vadd.f32 1.0, %v8008_v40 }
 0x8de   :  { %7572 = vrsqrt.f32 %v8826_v16  ;;  %vm3081_vm3 = vweird.f32 %v8826_v16  ;;  %v3102_v35 = vperm.slane %v3098_v31, 0  ;;  %v7044_v31 = vld [vmem:[%s8933_s29 + $0x10] sm:$0xff] }
 0x8df   :  { %3548 = vmatpush.bf16.msra.mxu1 %v6630_v39  ;;  %v3101_v39 = vperm.slane %v3097_v26, 0  ;;  %v7050_v26 = vld [vmem:[%s8933_s29 + $0x40] sm:$0xff] }
 0x8e1   :  { %v3070_v43 = vpop.xlane.xlu0 %3069  ;;  %v2585_v63 = vpop.xlane.xlu1 %2584 }
 0x8e2   :  { %v3072_v34 = vmul.f32 %v3070_v43, %v7875_v19  ;;  %v2591_v8 = vmul.f32 %v2585_v63, %v7875_v19  ;;  %v6610_v63 = vor.u32 %v7092_v10, %v6609_v42 }
 0x8e3   :  { %3549 = vmatpush.bf16.msra.mxu1 %v6614_v33 }
 0x8e4   :  { %v8839_v58 = vadd.f32 1e-06, %v3072_v34  ;;  %v8841_v5 = vadd.f32 1e-06, %v2591_v8  ;;  %v8851_v37 = vpop.eup %7572  ;;  %v6593_v34 = vld [vmem:[%s7886_s9 + $0xf0] sm:$0xf]  ;;  %3536 = vmatpush.bf16.msra.mxu2 %v6610_v63 }
 0x8e5   :  { %v3076_v18 = vmul.f32 %v8851_v37, %v8826_v16  ;;  %v7088_v8 = vld [vmem:[%s7886_s9 + $0x104] sm:$0xf0]  ;;  %vm3082_vm14 = vweird.f32 %v8851_v37  ;;  %v6633_v63 = vld [vmem:[%s7886_s9 + $0x158] sm:$0xf] }
 0x8e6   :  { %7574 = vrsqrt.f32 %v8839_v58  ;;  %vm2623_vm11 = vweird.f32 %v8841_v5  ;;  %v6594_v29 = vor.u32 %v7088_v8, %v6593_v34  ;;  %vm3091_vm15 = vweird.f32 %v8839_v58  ;;  %vm3083_vm5 = vmor %vm3081_vm3, %vm3082_vm14  ;;  %v6617_v34 = vld [vmem:[%s7886_s9 + $0x128] sm:$0xf] }
 0x8e7   :  { %7576 = vrsqrt.f32 %v8841_v5  ;;  %v3077_v38 = vmul.f32 %v8851_v37, %v3076_v18  ;;  %3550 = vmatpush.bf16.msra.mxu1 %v6598_v22  ;;  %v6634_v33 = vor.u32 %v7097_v21, %v6633_v63 }
 0x8e8   :  { %3537 = vmatpush.bf16.msra.mxu2 %v6594_v29  ;;  %v6603_v29 = vld [vmem:[%s7886_s9 + $0x110] sm:$0xf0] }
 0x8e9   :  { %v3078_v9 = vmul.f32 0.5, %v3077_v38  ;;  %v3110_v38 = vpop.permute.xlu2 %3109 }
 0x8eb   :  { %v3079_v1 = vsub.f32 1.5, %v3078_v9  ;;  %3551 = vmatpush.bf16.msra.mxu1 %v6582_v7  ;;  %v7089_v9 = vld [vmem:[%s7886_s9 + $0x10c] sm:$0xf0]  ;;  %v7053_v7 = vld [vmem:[%s8933_s29 + $0x58] sm:$0xff] }
 0x8ec   :  { %v8853_v53 = vpop.eup %7574 }
 0x8ed   :  { %v7577_v6 = vpop.eup %7576  ;;  %v3086_v14 = vmul.f32 %v8853_v53, %v8839_v58  ;;  %vm3092_vm13 = vweird.f32 %v8853_v53 }
 0x8ee   :  { %v2618_v27 = vmul.f32 %v7577_v6, %v8841_v5  ;;  %vm2624_vm7 = vweird.f32 %v7577_v6  ;;  %v6578_v5 = vor.u32 %v7084_v4, %v6577_v32  ;;  %vm3093_vm2 = vmor %vm3091_vm15, %vm3092_vm13  ;;  %v6585_v32 = vld [vmem:[%s7886_s9 + $0xc8] sm:$0xf]  ;;  %v7085_v4 = vld [vmem:[%s7886_s9 + $0xdc] sm:$0xf0] }
 0x8ef   :  { %v3087_v13 = vmul.f32 %v8853_v53, %v3086_v14  ;;  %vm2625_vm12 = vmor %vm2623_vm11, %vm2624_vm7  ;;  %v6586_v55 = vor.u32 %v7085_v4, %v6585_v32 }
 0x8f0   :  { %v2619_v28 = vmul.f32 %v7577_v6, %v2618_v27  ;;  %v2652_v27 = vmul.f32 %v2646_v52, %v2640_v24  ;;  %3538 = vmatpush.bf16.msra.mxu2 %v6578_v5  ;;  %v6602_v24 = vor.u32 %v7089_v9, %v6601_v61  ;;  %v7048_v5 = vld [vmem:[%s8933_s29 + $0x30] sm:$0xff] }
 0x8f1   :  { %v3088_v45 = vmul.f32 0.5, %v3087_v13 }
 0x8f2   :  { %v2620_v43 = vmul.f32 0.5, %v2619_v28 }
 0x8f3   :  { %v3089_v11 = vsub.f32 1.5, %v3088_v45  ;;  %v7093_v45 = vld [vmem:[%s7886_s9 + $0x13c] sm:$0xf0] }
 0x8f4   :  { %v2621_v3 = vsub.f32 1.5, %v2620_v43  ;;  %v3108_v43 = vpop.permute.xlu0 %3107  ;;  %v6618_v46 = vor.u32 %v7093_v45, %v6617_v34 }
 0x8f5   :  { %v3090_v44 = vmul.f32 %v8853_v53, %v3089_v11  ;;  %v7083_v11 = vld [vmem:[%s7886_s9 + $0xcc] sm:$0xf] }
 0x8f6   :  { %v2622_v17 = vmul.f32 %v7577_v6, %v2621_v3  ;;  %v7091_v3 = vld [vmem:[%s7886_s9 + $0x12c] sm:$0xf] }
 0x8f7   :  { %v3094_v50 = vsel %vm3093_vm2, %v8853_v53, %v3090_v44  ;;  %v6622_v57 = vor.u32 %v7091_v3, %v6619_v48  ;;  %v7046_v44 = vld [vmem:[%s8933_s29 + $0x20] sm:$0xff] }
 0x8f8   :  { %v2626_v41 = vsel %vm2625_vm12, %v7577_v6, %v2622_v17  ;;  %v3096_v16 = vmul.f32 %v3094_v50, %v8770_v49  ;;  %v7087_v17 = vld [vmem:[%s7886_s9 + $0xfc] sm:$0xf] }
 0x8f9   :  { %v2639_v30 = vmul.f32 %v2626_v41, %v8765_v12  ;;  %v2656_v14 = vpop.permute.xlu1 %2655  ;;  %v3080_v12 = vmul.f32 %v8851_v37, %v3079_v1  ;;  %v6606_v22 = vor.u32 %v7087_v17, %v6603_v29  ;;  %v6587_v41 = vld [vmem:[%s7886_s9 + $0xe0] sm:$0xf0]  ;;  %v7049_v1 = vld [vmem:[%s8933_s29 + $0x38] sm:$0xff] }
 0x8fa   :  { %v2662_v13 = vadd.f32 %v2656_v14, %v2652_v27  ;;  %v3106_v42 = vmul.f32 %v3102_v35, %v3096_v16  ;;  %v6590_v0 = vor.u32 %v7083_v11, %v6587_v41  ;;  %2971 = vmatpush.bf16.msra.mxu3 %v7049_v1  ;;  %v7047_v27 = vld [vmem:[%s8933_s29 + $0x28] sm:$0xff] }
 0x8fb   :  { %v2651_v18 = vmul.f32 %v2646_v52, %v2639_v30  ;;  %v3084_v58 = vsel %vm3083_vm5, %v8851_v37, %v3080_v12  ;;  %v7095_v37 = vld [vmem:[%s7886_s9 + $0x15c] sm:$0xf]  ;;  %v7056_v52 = vld [vmem:[%s8933_s29 + $0x70] sm:$0xff]  ;;  %s7778_s9 = smov 28   ;;  %v7043_v35 = vld [vmem:[%s8933_s29 + $0x8] sm:$0xff] }
 0x8fc   :  { %v3095_v53 = vmul.f32 %v3084_v58, %v8760_v59  ;;  %v3114_v23 = vadd.f32 %v3110_v38, %v3106_v42  ;;  %v6638_v59 = vor.u32 %v7095_v37, %v6635_v51  ;;  %v7057_v30 = vld [vmem:[%s8933_s29 + $0x78] sm:$0xff]  ;;  %s8952_s3 = sld [smem:[%s9974_s0 + %s7778_s9]]   ;;  %v7042_v38 = vld [vmem:[%s8933_s29] sm:$0xff] }
 0x8fd   :  { %v2661_v6 = vadd.f32 %v2656_v14, %v2651_v18  ;;  %2990 = vmatpush.bf16.msra.mxu0 %v7057_v30  ;;  %v7055_v14 = vld [vmem:[%s8933_s29 + $0x68] sm:$0xff]  ;;  %v7054_v18 = vld [vmem:[%s8933_s29 + $0x60] sm:$0xff]  ;;  %v7045_v12 = vld [vmem:[%s8933_s29 + $0x18] sm:$0xff]  ;;  %s6027_s9 = sld [smem:[%s9974_s0 + %s7769_s10]]  }
 0x8fe   :  { %v3105_v10 = vmul.f32 %v3101_v39, %v3095_v53  ;;  %2972 = vmatpush.bf16.msra.mxu3 %v7048_v5 }
 0x8ff   :  { %v2673_v28 = vpack.c.bf16 %v2662_v13, %v2661_v6  ;;  %v7052_v6 = vld [vmem:[%s8933_s29 + $0x50] sm:$0xff] }
 0x900   :  { %v3113_v49 = vadd.f32 %v3108_v43, %v3105_v10 }
 0x901   :  { %6393 = vmatmul.msk.bf16.gmra.mxu2 %vm259_vm4, %v2673_v28  ;;  %6395 = vmatmul.msk.bf16.gmra.mxu1 %vm259_vm4, %v2673_v28  ;;  %v7051_v28 = vld [vmem:[%s8933_s29 + $0x48] sm:$0xff] }
 0x902   :  { %v3124_v8 = vpack.c.bf16 %v3114_v23, %v3113_v49  ;;  %2991 = vmatpush.bf16.msra.mxu0 %v7056_v52  ;;  %2973 = vmatpush.bf16.msra.mxu3 %v7047_v27  ;;  %v2671_v13 = vld [vmem:[%s8952_s3] sm:$0x3] }
 0x903   :  { %v8961_v50 = vperm.slane %v2671_v13, 1  ;;  %v8967_v39 = vperm.slane %v2671_v13, 0 }
 0x906   :  { %2992 = vmatpush.bf16.msra.mxu0 %v7055_v14  ;;  %2974 = vmatpush.bf16.msra.mxu3 %v7046_v44 }
 0x90a   :  { %2993 = vmatpush.bf16.msra.mxu0 %v7054_v18  ;;  %2975 = vmatpush.bf16.msra.mxu3 %v7045_v12 }
 0x90e   :  { %2994 = vmatpush.bf16.msra.mxu0 %v7053_v7  ;;  %2976 = vmatpush.bf16.msra.mxu3 %v7044_v31  ;;  %v7081_v31 = vld [vmem:[%s8976_s16 + $0x78] sm:$0xff] }
 0x911   :  { %6492 = vmatmul.msk.bf16.vlgmr.msrb.gmra.mxu2 %vm259_vm4, %v3124_v8  ;;  %6493 = vmatmul.msk.bf16.vlgmr.msrb.gmra.mxu1 %vm259_vm4, %v3124_v8 }
 0x912   :  { %3561 = vmatpush.bf16.msrb.mxu2 %v6634_v33  ;;  %3574 = vmatpush.bf16.msrb.mxu1 %v6638_v59 }
 0x913   :  { %2995 = vmatpush.bf16.msra.mxu0 %v7052_v6  ;;  %2977 = vmatpush.bf16.msra.mxu3 %v7043_v35  ;;  %v7072_v35 = vld [vmem:[%s8976_s16 + $0x30] sm:$0xff] }
 0x916   :  { %3562 = vmatpush.bf16.msrb.mxu2 %v6618_v46  ;;  %3575 = vmatpush.bf16.msrb.mxu1 %v6622_v57 }
 0x917   :  { %2996 = vmatpush.bf16.msra.mxu0 %v7051_v28  ;;  %2978 = vmatpush.bf16.msra.mxu3 %v7042_v38  ;;  %v7071_v38 = vld [vmem:[%s8976_s16 + $0x28] sm:$0xff] }
 0x91a   :  { %3563 = vmatpush.bf16.msrb.mxu2 %v6602_v24  ;;  %3576 = vmatpush.bf16.msrb.mxu1 %v6606_v22 }
 0x91b   :  { %2997 = vmatpush.bf16.msra.mxu0 %v7050_v26  ;;  %v7073_v26 = vld [vmem:[%s8976_s16 + $0x38] sm:$0xff] }
 0x91c   :  { %3371 = vmatpush.bf16.msrb.mxu3 %v7073_v26 }
 0x91e   :  { %3564 = vmatpush.bf16.msrb.mxu2 %v6586_v55  ;;  %3577 = vmatpush.bf16.msrb.mxu1 %v6590_v0 }
 0x91f   :  { %3385 = vmatpush.bf16.msrb.mxu0 %v7081_v31 }
 0x920   :  { %3372 = vmatpush.bf16.msrb.mxu3 %v7072_v35 }
 0x921   :  { %6639 = vmatmul.msk.bf16.vlgmr.msra.gmra.mxu2 %vm259_vm4, %v7965_v15  ;;  %6640 = vmatmul.msk.bf16.vlgmr.msra.gmra.mxu1 %vm259_vm4, %v7965_v15 }
 0x924   :  { %3373 = vmatpush.bf16.msrb.mxu3 %v7071_v38 }
 0x931   :  { %6641 = vmatmul.msk.bf16.vlgmr.msrb.gmra.mxu2 %vm259_vm4, %v7965_v15  ;;  %6642 = vmatmul.msk.bf16.vlgmr.msrb.gmra.mxu1 %vm259_vm4, %v7965_v15 }
 0x942   :  { %v2753_v58 = vpop.f32.mrf.mxu1 }
 0x943   :  { %v2754_v16 = vadd.f32 %v2753_v58, %v8961_v50  ;;  %v7080_v58 = vld [vmem:[%s8976_s16 + $0x70] sm:$0xff] }
 0x944   :  { %3386 = vmatpush.bf16.msrb.mxu0 %v7080_v58 }
 0x945   :  { %v2764_v53 = vmul.f32 %v2754_v16, %v2754_v16 }
 0x947   :  { %v2772_v42 = vmul.f32 %v2764_v53, %v2754_v16 }
 0x948   :  { %v2734_v10 = vpop.f32.mrf.mxu2 }
 0x949   :  { %v2780_v43 = vmul.f32 0.044715, %v2772_v42  ;;  %v2735_v63 = vadd.f32 %v2734_v10, %v8967_v39  ;;  %v7078_v42 = vld [vmem:[%s8976_s16 + $0x60] sm:$0xff] }
 0x94a   :  { %v2755_v23 = vpop.f32.mrf.mxu1 }
 0x94b   :  { %v2788_v21 = vadd.f32 %v2780_v43, %v2754_v16  ;;  %v2763_v37 = vmul.f32 %v2735_v63, %v2735_v63  ;;  %v2756_v51 = vadd.f32 %v2755_v23, %v8961_v50 }
 0x94d   :  { %v2796_v49 = vmul.f32 0.7978846, %v2788_v21  ;;  %v2771_v33 = vmul.f32 %v2763_v37, %v2735_v63  ;;  %v2766_v59 = vmul.f32 %v2756_v51, %v2756_v51  ;;  %v7070_v37 = vld [vmem:[%s8976_s16 + $0x20] sm:$0xff] }
 0x94e   :  { %3374 = vmatpush.bf16.msrb.mxu3 %v7070_v37 }
 0x94f   :  { %v2779_v34 = vmul.f32 0.044715, %v2771_v33  ;;  %v2774_v8 = vmul.f32 %v2766_v59, %v2756_v51  ;;  %7578 = vtanh.f32 %v2796_v49  ;;  %v7076_v59 = vld [vmem:[%s8976_s16 + $0x50] sm:$0xff] }
 0x950   :  { %v2736_v45 = vpop.f32.mrf.mxu2 }
 0x951   :  { %v2787_v3 = vadd.f32 %v2779_v34, %v2735_v63  ;;  %v2782_v48 = vmul.f32 0.044715, %v2774_v8  ;;  %v2737_v46 = vadd.f32 %v2736_v45, %v8967_v39 }
 0x953   :  { %v2795_v57 = vmul.f32 0.7978846, %v2787_v3  ;;  %v2790_v61 = vadd.f32 %v2782_v48, %v2756_v51  ;;  %v2765_v9 = vmul.f32 %v2737_v46, %v2737_v46  ;;  %v9012_v3 = vld [vmem:[%s6027_s9] sm:$0x3]  ;;  %v7069_v48 = vld [vmem:[%s8976_s16 + $0x18] sm:$0xff] }
 0x954   :  { %3375 = vmatpush.bf16.msrb.mxu3 %v7069_v48 }
 0x955   :  { %v2798_v17 = vmul.f32 0.7978846, %v2790_v61  ;;  %v2773_v29 = vmul.f32 %v2765_v9, %v2737_v46  ;;  %7580 = vtanh.f32 %v2795_v57  ;;  %v7579_v24 = vpop.eup %7578  ;;  %v7075_v9 = vld [vmem:[%s8976_s16 + $0x48] sm:$0xff] }
 0x956   :  { %v2812_v4 = vadd.f32 1.0, %v7579_v24  ;;  %v3127_v24 = vperm.slane %v9012_v3, 1 }
 0x957   :  { %7582 = vtanh.f32 %v2798_v17  ;;  %v2781_v22 = vmul.f32 0.044715, %v2773_v29 }
 0x958   :  { %v2820_v0 = vmul.f32 0.5, %v2812_v4 }
 0x959   :  { %v2789_v32 = vadd.f32 %v2781_v22, %v2737_v46  ;;  %v7068_v22 = vld [vmem:[%s8976_s16 + $0x10] sm:$0xff] }
 0x95a   :  { %v2828_v14 = vmul.f32 %v2820_v0, %v2754_v16  ;;  %v7079_v16 = vld [vmem:[%s8976_s16 + $0x68] sm:$0xff]  ;;  %3376 = vmatpush.bf16.msrb.mxu3 %v7068_v22 }
 0x95b   :  { %v2797_v11 = vmul.f32 0.7978846, %v2789_v32  ;;  %v7581_v41 = vpop.eup %7580  ;;  %3387 = vmatpush.bf16.msrb.mxu0 %v7079_v16 }
 0x95c   :  { %v2811_v52 = vadd.f32 1.0, %v7581_v41 }
 0x95d   :  { %v7583_v55 = vpop.eup %7582  ;;  %7584 = vtanh.f32 %v2797_v11 }
 0x95e   :  { %v2814_v30 = vadd.f32 1.0, %v7583_v55  ;;  %v2819_v27 = vmul.f32 0.5, %v2811_v52  ;;  %v7074_v55 = vld [vmem:[%s8976_s16 + $0x40] sm:$0xff] }
 0x95f   :  { %3388 = vmatpush.bf16.msrb.mxu0 %v7078_v42 }
 0x960   :  { %v2822_v1 = vmul.f32 0.5, %v2814_v30  ;;  %v2827_v13 = vmul.f32 %v2819_v27, %v2735_v63  ;;  %v7077_v63 = vld [vmem:[%s8976_s16 + $0x58] sm:$0xff]  ;;  %v3126_v27 = vperm.slane %v9012_v3, 0 }
 0x962   :  { %v2830_v5 = vmul.f32 %v2822_v1, %v2756_v51 }
 0x963   :  { %v7585_v18 = vpop.eup %7584  ;;  %3389 = vmatpush.bf16.msrb.mxu0 %v7077_v63  ;;  %v9046_v63 = vld [vmem:[%s8002_s17 + $0x6] sm:$0x3f]  ;;  %s7781_s17 = smov 34  }
 0x964   :  { %v2869_v7 = vpack.c.bf16 %v2830_v5, %v2828_v14  ;;  %v2813_v44 = vadd.f32 1.0, %v7585_v18  ;;  %v7067_v14 = vld [vmem:[%s8976_s16 + $0x8] sm:$0xff]  ;;  %v3444_v3 = vperm.slane %v9046_v63, 1  ;;  %s6029_s4 = sld [smem:[%s9974_s0 + %s7781_s17]]  }
 0x965   :  { %3377 = vmatpush.bf16.msrb.mxu3 %v7067_v14 }
 0x966   :  { %v2821_v6 = vmul.f32 0.5, %v2813_v44  ;;  %2998 = vmatmul.bf16.vlgmr.msra.gmra.mxu0 %v2869_v7 }
 0x967   :  { %3390 = vmatpush.bf16.msrb.mxu0 %v7076_v59 }
 0x968   :  { %v2829_v12 = vmul.f32 %v2821_v6, %v2737_v46 }
 0x96a   :  { %v2868_v28 = vpack.c.bf16 %v2829_v12, %v2827_v13  ;;  %v7066_v12 = vld [vmem:[%s8976_s16] sm:$0xff] }
 0x96b   :  { %3391 = vmatpush.bf16.msrb.mxu0 %v7075_v9  ;;  %3378 = vmatpush.bf16.msrb.mxu3 %v7066_v12 }
 0x96c   :  { %2979 = vmatmul.bf16.vlgmr.msra.gmra.mxu3 %v2868_v28 }
 0x96f   :  { %3392 = vmatpush.bf16.msrb.mxu0 %v7074_v55 }
 0x97e   :  { %v2758_v53 = vpop.f32.mrf.mxu1 }
 0x97f   :  { %v8990_v10 = vadd.f32 %v2758_v53, %v8961_v50 }
 0x981   :  { %v2768_v43 = vmul.f32 %v8990_v10, %v8990_v10 }
 0x983   :  { %v2776_v23 = vmul.f32 %v2768_v43, %v8990_v10 }
 0x984   :  { %v2739_v21 = vpop.f32.mrf.mxu2 }
 0x985   :  { %v2784_v51 = vmul.f32 0.044715, %v2776_v23  ;;  %v9003_v49 = vadd.f32 %v2739_v21, %v8967_v39 }
 0x986   :  { %v2760_v33 = vpop.f32.mrf.mxu1 }
 0x987   :  { %v2792_v34 = vadd.f32 %v2784_v51, %v8990_v10  ;;  %v2767_v8 = vmul.f32 %v9003_v49, %v9003_v49  ;;  %v9010_v45 = vadd.f32 %v2760_v33, %v8961_v50 }
 0x989   :  { %v2800_v46 = vmul.f32 0.7978846, %v2792_v34  ;;  %v2775_v57 = vmul.f32 %v2767_v8, %v9003_v49  ;;  %v2770_v61 = vmul.f32 %v9010_v45, %v9010_v45 }
 0x98b   :  { %v2783_v17 = vmul.f32 0.044715, %v2775_v57  ;;  %v2778_v29 = vmul.f32 %v2770_v61, %v9010_v45  ;;  %7586 = vtanh.f32 %v2800_v46 }
 0x98c   :  { %v2741_v50 = vpop.f32.mrf.mxu2 }
 0x98d   :  { %v2791_v32 = vadd.f32 %v2783_v17, %v9003_v49  ;;  %v2786_v4 = vmul.f32 0.044715, %v2778_v29  ;;  %v9024_v11 = vadd.f32 %v2741_v50, %v8967_v39 }
 0x98e   :  { %v3196_v41 = vpop.f32.mrf.mxu1 }
 0x98f   :  { %v2799_v0 = vmul.f32 0.7978846, %v2791_v32  ;;  %v2794_v30 = vadd.f32 %v2786_v4, %v9010_v45  ;;  %v2769_v52 = vmul.f32 %v9024_v11, %v9024_v11  ;;  %v9030_v1 = vadd.f32 %v3196_v41, %v3127_v24 }
 0x991   :  { %v2802_v5 = vmul.f32 0.7978846, %v2794_v30  ;;  %v2777_v18 = vmul.f32 %v2769_v52, %v9024_v11  ;;  %v3202_v39 = vmul.f32 %v9030_v1, %v9030_v1  ;;  %7588 = vtanh.f32 %v2799_v0  ;;  %v7587_v7 = vpop.eup %7586 }
 0x992   :  { %v2816_v16 = vadd.f32 1.0, %v7587_v7 }
 0x993   :  { %v2785_v44 = vmul.f32 0.044715, %v2777_v18  ;;  %v3206_v6 = vmul.f32 %v3202_v39, %v9030_v1  ;;  %7590 = vtanh.f32 %v2802_v5 }
 0x994   :  { %v3182_v13 = vpop.f32.mrf.mxu2  ;;  %v2824_v59 = vmul.f32 0.5, %v2816_v16 }
 0x995   :  { %v2793_v28 = vadd.f32 %v2785_v44, %v9024_v11  ;;  %v3210_v31 = vmul.f32 0.044715, %v3206_v6  ;;  %v9040_v58 = vadd.f32 %v3182_v13, %v3126_v27 }
 0x996   :  { %v3198_v26 = vpop.f32.mrf.mxu1 }
 0x997   :  { %v2801_v35 = vmul.f32 0.7978846, %v2793_v28  ;;  %v3214_v53 = vadd.f32 %v3210_v31, %v9030_v1  ;;  %v3201_v42 = vmul.f32 %v9040_v58, %v9040_v58  ;;  %v3199_v38 = vadd.f32 %v3198_v26, %v3127_v24  ;;  %v7589_v43 = vpop.eup %7588 }
 0x998   :  { %v2815_v57 = vadd.f32 1.0, %v7589_v43  ;;  %v2832_v24 = vmul.f32 %v2824_v59, %v8990_v10  ;;  %v3445_v59 = vperm.slane %v9046_v63, 2 }
 0x999   :  { %v7591_v23 = vpop.eup %7590  ;;  %v3218_v21 = vmul.f32 0.7978846, %v3214_v53  ;;  %v3205_v37 = vmul.f32 %v3201_v42, %v9040_v58  ;;  %v3204_v51 = vmul.f32 %v3199_v38, %v3199_v38  ;;  %7592 = vtanh.f32 %v2801_v35 }
 0x99a   :  { %v2818_v33 = vadd.f32 1.0, %v7591_v23  ;;  %v2823_v52 = vmul.f32 0.5, %v2815_v57 }
 0x99b   :  { %v3209_v34 = vmul.f32 0.044715, %v3205_v37  ;;  %v3208_v8 = vmul.f32 %v3204_v51, %v3199_v38  ;;  %7594 = vtanh.f32 %v3218_v21 }
 0x99c   :  { %v3184_v48 = vpop.f32.mrf.mxu2  ;;  %v2826_v46 = vmul.f32 0.5, %v2818_v33 }
 0x99d   :  { %v3213_v61 = vadd.f32 %v3209_v34, %v9040_v58  ;;  %v3212_v9 = vmul.f32 0.044715, %v3208_v8  ;;  %v3185_v17 = vadd.f32 %v3184_v48, %v3126_v27 }
 0x99e   :  { %v3553_v29 = vpop.f32.mrf.mxu1  ;;  %v2834_v50 = vmul.f32 %v2826_v46, %v9010_v45  ;;  %v2831_v45 = vmul.f32 %v2823_v52, %v9003_v49 }
 0x99f   :  { %v7593_v22 = vpop.eup %7592  ;;  %v3217_v32 = vmul.f32 0.7978846, %v3213_v61  ;;  %v3216_v4 = vadd.f32 %v3212_v9, %v3199_v38  ;;  %v3203_v41 = vmul.f32 %v3185_v17, %v3185_v17  ;;  %v9053_v55 = vadd.f32 %v3553_v29, %v3444_v3  ;;  %v7438_v61 = vld [vmem:[%s8981_s24] ss:$0 sm:$0xff] }
 0x9a0   :  { %v2871_v0 = vpack.c.bf16 %v2834_v50, %v2832_v24  ;;  %v2817_v30 = vadd.f32 1.0, %v7593_v22 }
 0x9a1   :  { %v3220_v14 = vmul.f32 0.7978846, %v3216_v4  ;;  %v3207_v5 = vmul.f32 %v3203_v41, %v3185_v17  ;;  %7596 = vtanh.f32 %v3217_v32  ;;  %v7595_v39 = vpop.eup %7594 }
 0x9a2   :  { %3003 = vmatmul.bf16.gmra.mxu0 %v2871_v0  ;;  %v2825_v18 = vmul.f32 0.5, %v2817_v30  ;;  %v3226_v6 = vadd.f32 1.0, %v7595_v39 }
 0x9a3   :  { %7598 = vtanh.f32 %v3220_v14  ;;  %v3211_v27 = vmul.f32 0.044715, %v3207_v5  ;;  %v7439_v5 = vld [vmem:[%s6029_s4] ss:$0 sm:$0xff] }
 0x9a4   :  { %v9055_v10 = vpop.f32.mrf.mxu2  ;;  %v2833_v7 = vmul.f32 %v2825_v18, %v9024_v11  ;;  %v3230_v16 = vmul.f32 0.5, %v3226_v6 }
 0x9a5   :  { %v3215_v44 = vadd.f32 %v3211_v27, %v3185_v17 }
 0x9a6   :  { %v3555_v13 = vpop.f32.mrf.mxu1  ;;  %v2870_v12 = vpack.c.bf16 %v2833_v7, %v2831_v45  ;;  %v3234_v23 = vmul.f32 %v3230_v16, %v9030_v1 }
 0x9a7   :  { %v3219_v28 = vmul.f32 0.7978846, %v3215_v44  ;;  %v7597_v31 = vpop.eup %7596 }
 0x9a8   :  { %2984 = vmatmul.bf16.gmra.mxu3 %v2870_v12  ;;  %v3225_v53 = vadd.f32 1.0, %v7597_v31  ;;  %v3009_v31 = vperm.slane %v8014_v47, 0 }
 0x9a9   :  { %v7599_v26 = vpop.eup %7598  ;;  %7600 = vtanh.f32 %v3219_v28 }
 0x9aa   :  { %v3228_v35 = vadd.f32 1.0, %v7599_v26  ;;  %v3229_v37 = vmul.f32 0.5, %v3225_v53 }
 0x9ac   :  { %v3232_v42 = vmul.f32 0.5, %v3228_v35  ;;  %v3542_v43 = vpop.f32.mrf.mxu2  ;;  %v3233_v8 = vmul.f32 %v3229_v37, %v9040_v58 }
 0x9ad   :  { %v3400_v43 = vperm.slane %v784_v54, 0 }
 0x9ae   :  { %v3236_v21 = vmul.f32 %v3232_v42, %v3199_v38  ;;  %v9060_v49 = vpop.f32.mrf.mxu1  ;;  %v3010_v42 = vperm.slane %v776_v20, 0 }
 0x9af   :  { %v7601_v11 = vpop.eup %7600 }
 0x9b0   :  { %v3271_v51 = vpack.c.bf16 %v3236_v21, %v3234_v23  ;;  %v3227_v33 = vadd.f32 1.0, %v7601_v11 }
 0x9b2   :  { %v3231_v34 = vmul.f32 0.5, %v3227_v33  ;;  %3393 = vmatmul.bf16.vlgmr.msrb.gmra.mxu0 %v3271_v51  ;;  %v3399_v51 = vperm.slane %v8008_v40, 0 }
 0x9b4   :  { %v3235_v3 = vmul.f32 %v3231_v34, %v3185_v17  ;;  %v3566_v48 = vpop.f32.mrf.mxu2 }
 0x9b5   :  { %v9064_v46 = vadd.f32 %v3566_v48, %v3445_v59 }
 0x9b6   :  { %v3270_v1 = vpack.c.bf16 %v3235_v3, %v3233_v8  ;;  %v3581_v38 = vpop.f32.mrf.mxu1 }
 0x9b8   :  { %3379 = vmatmul.bf16.vlgmr.msrb.gmra.mxu3 %v3270_v1 }
 0x9bc   :  { %v3568_v57 = vpop.f32.mrf.mxu2 }
 0x9e3   :  { %v2999_v9 = vpop.f32.mrf.mxu0 }
 0x9eb   :  { %v3001_v22 = vpop.f32.mrf.mxu0 }
 0x9ef   :  { %v2980_v29 = vpop.f32.mrf.mxu3 }
 0x9f0   :  { %v2981_v24 = vadd.f32 %v7438_v61, %v2980_v29 }
 0x9f2   :  { %v3000_v50 = vadd.f32 %v2999_v9, %v2981_v24 }
 0x9f4   :  { %3017 = vrot.lane.b32.xlu2 %v3000_v50, %s7761_s18 }
 0x9f7   :  { %v2982_v58 = vpop.f32.mrf.mxu3 }
 0x9f8   :  { %v2983_v17 = vadd.f32 %v7438_v61, %v2982_v58 }
 0x9fa   :  { %v3002_v32 = vadd.f32 %v3001_v22, %v2983_v17 }
 0x9fc   :  { %3019 = vrot.lane.b32.xlu0 %v3002_v32, %s7761_s18 }
 0xa1f   :  { %v3004_v4 = vpop.f32.mrf.mxu0 }
 0xa27   :  { %v3006_v52 = vpop.f32.mrf.mxu0 }
 0xa2b   :  { %v2985_v41 = vpop.f32.mrf.mxu3 }
 0xa2c   :  { %v2986_v0 = vadd.f32 %v7438_v61, %v2985_v41 }
 0xa2e   :  { %v3005_v30 = vadd.f32 %v3004_v4, %v2986_v0 }
 0xa2f   :  { %v3394_v18 = vpop.f32.mrf.mxu0 }
 0xa30   :  { %3021 = vrot.lane.b32.xlu0 %v3005_v30, %s7761_s18 }
 0xa33   :  { %v2987_v14 = vpop.f32.mrf.mxu3 }
 0xa34   :  { %v2988_v7 = vadd.f32 %v7438_v61, %v2987_v14 }
 0xa36   :  { %v3007_v12 = vadd.f32 %v3006_v52, %v2988_v7  ;;  %v3443_v52 = vperm.slane %v9046_v63, 0 }
 0xa37   :  { %v3396_v13 = vpop.f32.mrf.mxu0 }
 0xa38   :  { %v9128_v14 = vadd.f32 %v9055_v10, %v3443_v52 }
 0xa3b   :  { %v3380_v39 = vpop.f32.mrf.mxu3 }
 0xa3c   :  { %v3381_v27 = vadd.f32 %v7439_v5, %v3380_v39 }
 0xa3e   :  { %v3395_v45 = vadd.f32 %v3394_v18, %v3381_v27 }
 0xa40   :  { %3405 = vrot.lane.b32.xlu1 %v3395_v45, %s7761_s18 }
 0xa43   :  { %v3382_v44 = vpop.f32.mrf.mxu3 }
 0xa44   :  { %v3383_v6 = vadd.f32 %v7439_v5, %v3382_v44  ;;  %v3682_v5 = vadd.f32 1.0, %v9128_v14 }
 0xa46   :  { %v3397_v28 = vadd.f32 %v3396_v13, %v3383_v6  ;;  %v3686_v18 = vperm.slane %v3682_v5, 0  ;;  %v3446_v6 = vperm.slane %v9046_v63, 3  ;;  %v6665_v5 = vld [vmem:[%s8049_s22 + $0x48] sm:$0xf0] }
 0xa48   :  { %3023 = vrot.lane.b32.xlu1 %v3007_v12, %s7761_s18  ;;  %3407 = vrot.lane.b32.xlu2 %v3397_v28, %s7761_s18  ;;  %v9140_v10 = vadd.f32 %v9060_v49, %v3446_v6 }
 0xa4a   :  { %v3592_v13 = vrot.slane %v9140_v10, 1 }
 0xa4c   :  { %v3751_v28 = vadd.f32 1.0, %v3592_v13 }
 0xa4e   :  { %v3018_v26 = vpop.permute.xlu2 %3017 }
 0xa4f   :  { %v3029_v16 = vmul.f32 %v3018_v26, %v3009_v31  ;;  %v3584_v26 = vrot.slane %v9128_v14, 1 }
 0xa51   :  { %3037 = vrot.lane.b32.xlu2 %v3029_v16, %s7761_s18  ;;  %v3755_v16 = vperm.slane %v3751_v28, 0  ;;  %v3683_v63 = vadd.f32 1.0, %v3584_v26 }
 0xa6e   :  { %v3020_v35 = vpop.permute.xlu0 %3019 }
 0xa6f   :  { %v3030_v53 = vmul.f32 %v3020_v35, %v3009_v31 }
 0xa71   :  { %3039 = vrot.lane.b32.xlu0 %v3030_v53, %s7761_s18  ;;  %v3687_v53 = vperm.slane %v3683_v63, 0 }
 0xaa2   :  { %v3022_v23 = vpop.permute.xlu0 %3021  ;;  %v3408_v21 = vpop.permute.xlu2 %3407 }
 0xaa3   :  { %v3031_v11 = vmul.f32 %v3022_v23, %v3010_v42  ;;  %v3412_v37 = vmul.f32 %v3408_v21, %v3400_v43 }
 0xaa5   :  { %3041 = vrot.lane.b32.xlu0 %v3031_v11, %s7761_s18  ;;  %3417 = vrot.lane.b32.xlu2 %v3412_v37, %s7761_s18 }
 0xaab   :  { %v3038_v20 = vpop.permute.xlu2 %3037 }
 0xaac   :  { %v9089_v54 = vadd.f32 %v3038_v20, %v8697_v62  ;;  %v7105_v20 = vld [vmem:[%s8049_s22 + $0x74] sm:$0xf0] }
 0xaae   :  { %v3594_v8 = vsel %vm259_vm4, %v9089_v54, 0.0 }
 0xab2   :  { %v3406_v33 = vpop.permute.xlu1 %3405 }
 0xab3   :  { %v3411_v59 = vmul.f32 %v3406_v33, %v3399_v51  ;;  %v3750_v51 = vadd.f32 1.0, %v9140_v10 }
 0xab5   :  { %3415 = vrot.lane.b32.xlu1 %v3411_v59, %s7761_s18  ;;  %v3754_v33 = vperm.slane %v3750_v51, 0 }
 0xaba   :  { %v3024_v34 = vpop.permute.xlu1 %3023 }
 0xabb   :  { %v3032_v47 = vmul.f32 %v3024_v34, %v3010_v42 }
 0xabd   :  { %3043 = vrot.lane.b32.xlu1 %v3032_v47, %s7761_s18  ;;  %v6687_v47 = vld [vmem:[%s8049_s22 + $0x70] sm:$0xf] }
 0xace   :  { %3595 = vadd.xlane.f32.xlu2 %v3594_v8  ;;  %v7104_v8 = vld [vmem:[%s8049_s22 + $0x74] sm:$0xf] }
 0xae3   :  { %v3040_v3 = vpop.permute.xlu0 %3039 }
 0xae4   :  { %v9094_v48 = vadd.f32 %v3040_v3, %v8703_v56  ;;  %v6688_v3 = vor.u32 %v7105_v20, %v6687_v47 }
 0xae6   :  { %v3597_v40 = vsel %vm259_vm4, %v9094_v48, 0.0  ;;  %3849 = vmatpush.bf16.msra.mxu3 %v6688_v3 }
 0xae7   :  { %3598 = vadd.xlane.f32.xlu0 %v3597_v40  ;;  %v6689_v40 = vld [vmem:[%s8049_s22 + $0x78] sm:$0xf0] }
 0xaff   :  { %v3418_v1 = vpop.permute.xlu2 %3417 }
 0xb00   :  { %v3422_v38 = vadd.f32 %v3418_v1, %v8730_v60 }
 0xb02   :  { %v3709_v57 = vsel %vm259_vm4, %v3422_v38, 0.0 }
 0xb03   :  { %3710 = vadd.xlane.f32.xlu2 %v3709_v57  ;;  %v6679_v57 = vld [vmem:[%s8049_s22 + $0x60] sm:$0xf] }
 0xb17   :  { %v3042_v62 = vpop.permute.xlu0 %3041 }
 0xb18   :  { %v9101_v61 = vadd.f32 %v3042_v62, %v8711_v25  ;;  %v7103_v62 = vld [vmem:[%s8049_s22 + $0x64] sm:$0xf0] }
 0xb1a   :  { %v3600_v9 = vsel %vm259_vm4, %v9101_v61, 0.0 }
 0xb1b   :  { %3601 = vadd.xlane.f32.xlu0 %v3600_v9  ;;  %v7102_v9 = vld [vmem:[%s8049_s22 + $0x64] sm:$0xf] }
 0xb27   :  { %v3416_v56 = vpop.permute.xlu1 %3415 }
 0xb28   :  { %v3421_v29 = vadd.f32 %v3416_v56, %v8725_v36  ;;  %v6680_v56 = vor.u32 %v7103_v62, %v6679_v57 }
 0xb2a   :  { %v3706_v24 = vsel %vm259_vm4, %v3421_v29, 0.0  ;;  %3850 = vmatpush.bf16.msra.mxu3 %v6680_v56  ;;  %v7113_v56 = vld [vmem:[%s8058_s27 + $0x74] sm:$0xf0] }
 0xb2b   :  { %3707 = vadd.xlane.f32.xlu1 %v3706_v24 }
 0xb2f   :  { %v3044_v50 = vpop.permute.xlu1 %3043 }
 0xb30   :  { %v9108_v60 = vadd.f32 %v3044_v50, %v8717_v2  ;;  %v6671_v50 = vld [vmem:[%s8049_s22 + $0x50] sm:$0xf] }
 0xb32   :  { %v3603_v58 = vsel %vm259_vm4, %v9108_v60, 0.0 }
 0xb33   :  { %3604 = vadd.xlane.f32.xlu1 %v3603_v58  ;;  %v7101_v58 = vld [vmem:[%s8049_s22 + $0x54] sm:$0xf0] }
 0xb41   :  { %v3596_v25 = vpop.xlane.xlu2 %3595 }
 0xb42   :  { %v3606_v17 = vmul.f32 %v3596_v25, %v7875_v19  ;;  %v6672_v25 = vor.u32 %v7101_v58, %v6671_v50  ;;  %v6725_v58 = vld [vmem:[%s8058_s27 + $0x78] sm:$0xf0] }
 0xb44   :  { %v9114_v22 = vsub.f32 %v9089_v54, %v3606_v17  ;;  %v7100_v17 = vld [vmem:[%s8049_s22 + $0x54] sm:$0xf]  ;;  %3851 = vmatpush.bf16.msra.mxu3 %v6672_v25 }
 0xb46   :  { %v3614_v36 = vmul.f32 %v9114_v22, %v9114_v22 }
 0xb48   :  { %v3618_v32 = vsel %vm259_vm4, %v3614_v36, 0.0  ;;  %v6673_v36 = vld [vmem:[%s8049_s22 + $0x58] sm:$0xf0] }
 0xb49   :  { %3619 = vadd.xlane.f32.xlu2 %v3618_v32  ;;  %v6676_v32 = vor.u32 %v7100_v17, %v6673_v36  ;;  %v6715_v17 = vld [vmem:[%s8058_s27 + $0x60] sm:$0xf]  ;;  %v7111_v36 = vld [vmem:[%s8058_s27 + $0x64] sm:$0xf0] }
 0xb5a   :  { %v3599_v4 = vpop.xlane.xlu0 %3598 }
 0xb5b   :  { %v3607_v2 = vmul.f32 %v3599_v4, %v7875_v19 }
 0xb5d   :  { %v9121_v41 = vsub.f32 %v9094_v48, %v3607_v2  ;;  %v6663_v2 = vld [vmem:[%s8049_s22 + $0x40] sm:$0xf] }
 0xb5f   :  { %v3615_v0 = vmul.f32 %v9121_v41, %v9121_v41 }
 0xb61   :  { %v3621_v30 = vsel %vm259_vm4, %v3615_v0, 0.0  ;;  %v7099_v0 = vld [vmem:[%s8049_s22 + $0x44] sm:$0xf0] }
 0xb62   :  { %3622 = vadd.xlane.f32.xlu0 %v3621_v30  ;;  %v7098_v30 = vld [vmem:[%s8049_s22 + $0x44] sm:$0xf]  ;;  %v6664_v52 = vor.u32 %v7099_v0, %v6663_v2  ;;  %v6717_v2 = vld [vmem:[%s8058_s27 + $0x68] sm:$0xf0]  ;;  %v6707_v0 = vld [vmem:[%s8058_s27 + $0x50] sm:$0xf] }
 0xb64   :  { %3852 = vmatpush.bf16.msra.mxu3 %v6664_v52 }
 0xb76   :  { %v3711_v39 = vpop.xlane.xlu2 %3710  ;;  %3688 = vrot.lane.b32.xlu0 %v3686_v18, %s7761_s18  ;;  %v6668_v18 = vor.u32 %v7098_v30, %v6665_v5  ;;  %v7109_v30 = vld [vmem:[%s8058_s27 + $0x54] sm:$0xf0]  ;;  %v7108_v5 = vld [vmem:[%s8058_s27 + $0x54] sm:$0xf] }
 0xb77   :  { %v3713_v27 = vmul.f32 %v3711_v39, %v7875_v19 }
 0xb79   :  { %v9133_v45 = vsub.f32 %v3422_v38, %v3713_v27  ;;  %v6692_v38 = vor.u32 %v7104_v8, %v6689_v40  ;;  %v3698_v40 = vperm.slane %v9128_v14, 0 }
 0xb7b   :  { %v3717_v7 = vmul.f32 %v9133_v45, %v9133_v45  ;;  %3868 = vmatpush.bf16.msra.mxu0 %v6692_v38 }
 0xb7d   :  { %v3721_v44 = vsel %vm259_vm4, %v3717_v7, 0.0 }
 0xb7e   :  { %3722 = vadd.xlane.f32.xlu2 %v3721_v44 }
 0xb8e   :  { %v3602_v12 = vpop.xlane.xlu0 %3601 }
 0xb8f   :  { %v3608_v31 = vmul.f32 %v3602_v12, %v7875_v19 }
 0xb91   :  { %v9149_v35 = vsub.f32 %v9101_v61, %v3608_v31 }
 0xb93   :  { %v3616_v49 = vmul.f32 %v9149_v35, %v9149_v35 }
 0xb95   :  { %v3624_v23 = vsel %vm259_vm4, %v3616_v49, 0.0 }
 0xb96   :  { %3758 = vrot.lane.b32.xlu2 %v3755_v16, %s7761_s18 }
 0xb9e   :  { %v3708_v42 = vpop.xlane.xlu1 %3707  ;;  %3690 = vrot.lane.b32.xlu2 %v3687_v53, %s7761_s18 }
 0xb9f   :  { %v3712_v43 = vmul.f32 %v3708_v42, %v7875_v19 }
 0xba0   :  { %3625 = vadd.xlane.f32.xlu0 %v3624_v23 }
 0xba1   :  { %v9158_v21 = vsub.f32 %v3421_v29, %v3712_v43  ;;  %v6681_v29 = vld [vmem:[%s8049_s22 + $0x68] sm:$0xf0] }
 0xba2   :  { %v6684_v24 = vor.u32 %v7102_v9, %v6681_v29  ;;  %v7112_v29 = vld [vmem:[%s8058_s27 + $0x74] sm:$0xf] }
 0xba3   :  { %v3716_v11 = vmul.f32 %v9158_v21, %v9158_v21  ;;  %v6728_v25 = vor.u32 %v7112_v29, %v6725_v58 }
 0xba4   :  { %3869 = vmatpush.bf16.msra.mxu0 %v6684_v24 }
 0xba5   :  { %v3718_v37 = vsel %vm259_vm4, %v3716_v11, 0.0  ;;  %3950 = vmatpush.bf16.msra.mxu1 %v6728_v25 }
 0xba6   :  { %3719 = vadd.xlane.f32.xlu1 %v3718_v37  ;;  %v3605_v12 = vpop.xlane.xlu1 %3604 }
 0xba7   :  { %v3609_v31 = vmul.f32 %v3605_v12, %v7875_v19  ;;  %v7106_v12 = vld [vmem:[%s8058_s27 + $0x44] sm:$0xf] }
 0xba8   :  { %3870 = vmatpush.bf16.msra.mxu0 %v6676_v32  ;;  %v7110_v32 = vld [vmem:[%s8058_s27 + $0x64] sm:$0xf] }
 0xba9   :  { %v9185_v49 = vsub.f32 %v9108_v60, %v3609_v31  ;;  %v6720_v52 = vor.u32 %v7110_v32, %v6717_v2  ;;  %v6701_v31 = vld [vmem:[%s8058_s27 + $0x48] sm:$0xf0] }
 0xbab   :  { %v3617_v23 = vmul.f32 %v9185_v49, %v9185_v49  ;;  %3951 = vmatpush.bf16.msra.mxu1 %v6720_v52 }
 0xbac   :  { %3871 = vmatpush.bf16.msra.mxu0 %v6668_v18  ;;  %v6709_v18 = vld [vmem:[%s8058_s27 + $0x58] sm:$0xf0] }
 0xbbc   :  { %v3620_v59 = vpop.xlane.xlu2 %3619 }
 0xbbd   :  { %v3630_v34 = vmul.f32 %v3620_v59, %v7875_v19 }
 0xbbf   :  { %3756 = vrot.lane.b32.xlu1 %v3754_v33, %s7761_s18  ;;  %v3634_v1 = vadd.f32 1e-06, %v3630_v34  ;;  %v3627_v33 = vsel %vm259_vm4, %v3617_v23, 0.0 }
 0xbc1   :  { %7602 = vrsqrt.f32 %v3634_v1  ;;  %vm3644_vm7 = vweird.f32 %v3634_v1 }
 0xbc7   :  { %v7603_v4 = vpop.eup %7602 }
 0xbc8   :  { %v3639_v39 = vmul.f32 %v7603_v4, %v3634_v1  ;;  %vm3645_vm6 = vweird.f32 %v7603_v4 }
 0xbc9   :  { %vm3646_vm11 = vmor %vm3644_vm7, %vm3645_vm6 }
 0xbca   :  { %v3640_v44 = vmul.f32 %v7603_v4, %v3639_v39  ;;  %v6708_v39 = vor.u32 %v7109_v30, %v6707_v0 }
 0xbcc   :  { %v3641_v28 = vmul.f32 0.5, %v3640_v44  ;;  %v6699_v44 = vld [vmem:[%s8058_s27 + $0x40] sm:$0xf] }
 0xbce   :  { %v3642_v16 = vsub.f32 1.5, %v3641_v28 }
 0xbd0   :  { %v3643_v43 = vmul.f32 %v7603_v4, %v3642_v16 }
 0xbd2   :  { %v3647_v51 = vsel %vm3646_vm11, %v7603_v4, %v3643_v43  ;;  %v6716_v4 = vor.u32 %v7111_v36, %v6715_v17 }
 0xbd3   :  { %v3678_v47 = vmul.f32 %v3647_v51, %v9114_v22 }
 0xbd5   :  { %v3623_v27 = vpop.xlane.xlu0 %3622 }
 0xbd6   :  { %v3631_v7 = vmul.f32 %v3623_v27, %v7875_v19  ;;  %v6712_v27 = vor.u32 %v7108_v5, %v6709_v18 }
 0xbd8   :  { %v3635_v6 = vadd.f32 1e-06, %v3631_v7  ;;  %3952 = vmatpush.bf16.msra.mxu1 %v6712_v27 }
 0xbda   :  { %7604 = vrsqrt.f32 %v3635_v6  ;;  %vm3654_vm13 = vweird.f32 %v3635_v6 }
 0xbe0   :  { %v7605_v63 = vpop.eup %7604 }
 0xbe1   :  { %v3649_v53 = vmul.f32 %v7605_v63, %v3635_v6  ;;  %vm3655_vm12 = vweird.f32 %v7605_v63  ;;  %v7107_v6 = vld [vmem:[%s8058_s27 + $0x44] sm:$0xf0] }
 0xbe2   :  { %vm3656_vm14 = vmor %vm3654_vm13, %vm3655_vm12  ;;  %v6700_v28 = vor.u32 %v7107_v6, %v6699_v44 }
 0xbe3   :  { %v3650_v42 = vmul.f32 %v7605_v63, %v3649_v53 }
 0xbe5   :  { %v3651_v11 = vmul.f32 0.5, %v3650_v42 }
 0xbe7   :  { %v3652_v37 = vsub.f32 1.5, %v3651_v11 }
 0xbe8   :  { %v3689_v34 = vpop.permute.xlu0 %3688 }
 0xbe9   :  { %3628 = vadd.xlane.f32.xlu1 %v3627_v33  ;;  %v3653_v59 = vmul.f32 %v7605_v63, %v3652_v37  ;;  %v3694_v3 = vmul.f32 %v3689_v34, %v3678_v47 }
 0xbeb   :  { %v3657_v20 = vsel %vm3656_vm14, %v7605_v63, %v3653_v59  ;;  %v3702_v38 = vadd.f32 %v3698_v40, %v3694_v3  ;;  %v6704_v63 = vor.u32 %v7106_v12, %v6701_v31 }
 0xbec   :  { %v3679_v8 = vmul.f32 %v3657_v20, %v9121_v41  ;;  %v6723_v41 = vld [vmem:[%s8058_s27 + $0x70] sm:$0xf] }
 0xbed   :  { %v6724_v50 = vor.u32 %v7113_v56, %v6723_v41  ;;  %3953 = vmatpush.bf16.msra.mxu1 %v6704_v63  ;;  %v3764_v41 = vperm.slane %v9140_v10, 0 }
 0xbee   :  { %v3695_v1 = vmul.f32 %v3689_v34, %v3679_v8 }
 0xbef   :  { %3936 = vmatpush.bf16.msra.mxu2 %v6724_v50 }
 0xbf0   :  { %v3703_v57 = vadd.f32 %v3698_v40, %v3695_v1 }
 0xbf1   :  { %v3723_v9 = vpop.xlane.xlu2 %3722 }
 0xbf2   :  { %v3792_v62 = vpack.c.bf16 %v3703_v57, %v3702_v38  ;;  %v3725_v22 = vmul.f32 %v3723_v9, %v7875_v19 }
 0xbf3   :  { %3937 = vmatpush.bf16.msra.mxu2 %v6716_v4 }
 0xbf4   :  { %6693 = vmatmul.msk.bf16.vlgmr.msra.gmra.mxu3 %vm259_vm4, %v3792_v62  ;;  %6695 = vmatmul.msk.bf16.vlgmr.msra.gmra.mxu0 %vm259_vm4, %v3792_v62  ;;  %v3727_v24 = vadd.f32 1e-06, %v3725_v22  ;;  %v3765_v22 = vperm.slane %v3592_v13, 0 }
 0xbf6   :  { %7606 = vrsqrt.f32 %v3727_v24  ;;  %vm3744_vm2 = vweird.f32 %v3727_v24 }
 0xbf7   :  { %3938 = vmatpush.bf16.msra.mxu2 %v6708_v39 }
 0xbf9   :  { %v3759_v1 = vpop.permute.xlu2 %3758 }
 0xbfb   :  { %3939 = vmatpush.bf16.msra.mxu2 %v6700_v28 }
 0xbfc   :  { %v7607_v7 = vpop.eup %7606 }
 0xbfd   :  { %v3739_v16 = vmul.f32 %v7607_v7, %v3727_v24  ;;  %vm3745_vm15 = vweird.f32 %v7607_v7 }
 0xbfe   :  { %vm3746_vm3 = vmor %vm3744_vm2, %vm3745_vm15 }
 0xbff   :  { %v3740_v53 = vmul.f32 %v7607_v7, %v3739_v16  ;;  %v3699_v16 = vperm.slane %v3584_v26, 0 }
 0xc01   :  { %v3741_v11 = vmul.f32 0.5, %v3740_v53  ;;  %v3691_v6 = vpop.permute.xlu2 %3690 }
 0xc03   :  { %v3742_v37 = vsub.f32 1.5, %v3741_v11  ;;  %v9230_v11 = vld [vmem:[%s8130_s5 + $0x2] sm:$0x3]  ;;  %s7783_s5 = smov 36  }
 0xc05   :  { %v3743_v33 = vmul.f32 %v7607_v7, %v3742_v37 }
 0xc07   :  { %v3747_v47 = vsel %vm3746_vm3, %v7607_v7, %v3743_v33 }
 0xc08   :  { %v3749_v3 = vmul.f32 %v3747_v47, %v9133_v45 }
 0xc0a   :  { %v3763_v57 = vmul.f32 %v3759_v1, %v3749_v3 }
 0xc0c   :  { %v3769_v29 = vadd.f32 %v3765_v22, %v3763_v57 }
 0xc13   :  { %v3626_v45 = vpop.xlane.xlu0 %3625 }
 0xc14   :  { %v3632_v58 = vmul.f32 %v3626_v45, %v7875_v19  ;;  %v3886_v45 = vperm.slane %v9230_v11, 1 }
 0xc16   :  { %v3636_v25 = vadd.f32 1e-06, %v3632_v58 }
 0xc18   :  { %vm3664_vm12 = vweird.f32 %v3636_v25 }
 0xc19   :  { %v3720_v42 = vpop.xlane.xlu1 %3719 }
 0xc1a   :  { %v3724_v43 = vmul.f32 %v3720_v42, %v7875_v19 }
 0xc1c   :  { %v3726_v23 = vadd.f32 1e-06, %v3724_v43 }
 0xc1e   :  { %7608 = vrsqrt.f32 %v3726_v23  ;;  %vm3734_vm6 = vweird.f32 %v3726_v23 }
 0xc1f   :  { %7610 = vrsqrt.f32 %v3636_v25 }
 0xc24   :  { %v7609_v51 = vpop.eup %7608 }
 0xc25   :  { %v3729_v59 = vmul.f32 %v7609_v51, %v3726_v23  ;;  %vm3735_vm5 = vweird.f32 %v7609_v51 }
 0xc26   :  { %vm3736_vm7 = vmor %vm3734_vm6, %vm3735_vm5 }
 0xc27   :  { %v3730_v34 = vmul.f32 %v7609_v51, %v3729_v59 }
 0xc29   :  { %v3731_v20 = vmul.f32 0.5, %v3730_v34 }
 0xc2b   :  { %v3732_v8 = vsub.f32 1.5, %v3731_v20 }
 0xc2d   :  { %v3733_v40 = vmul.f32 %v7609_v51, %v3732_v8 }
 0xc2f   :  { %v3737_v38 = vsel %vm3736_vm7, %v7609_v51, %v3733_v40  ;;  %v3885_v51 = vperm.slane %v9230_v11, 0 }
 0xc30   :  { %v3748_v62 = vmul.f32 %v3737_v38, %v9158_v21  ;;  %v7611_v21 = vpop.eup %7610 }
 0xc31   :  { %v3757_v9 = vpop.permute.xlu1 %3756  ;;  %v3659_v17 = vmul.f32 %v7611_v21, %v3636_v25  ;;  %vm3665_vm11 = vweird.f32 %v7611_v21 }
 0xc32   :  { %v3762_v56 = vmul.f32 %v3757_v9, %v3748_v62  ;;  %vm3666_vm13 = vmor %vm3664_vm12, %vm3665_vm11 }
 0xc33   :  { %v3660_v36 = vmul.f32 %v7611_v21, %v3659_v17 }
 0xc34   :  { %v3768_v24 = vadd.f32 %v3764_v41, %v3762_v56 }
 0xc35   :  { %v3661_v4 = vmul.f32 0.5, %v3660_v36 }
 0xc36   :  { %v3883_v50 = vpack.c.bf16 %v3769_v29, %v3768_v24 }
 0xc37   :  { %v3662_v2 = vsub.f32 1.5, %v3661_v4 }
 0xc38   :  { %6729 = vmatmul.msk.bf16.vlgmr.msra.gmra.mxu2 %vm259_vm4, %v3883_v50  ;;  %6730 = vmatmul.msk.bf16.vlgmr.msra.gmra.mxu1 %vm259_vm4, %v3883_v50 }
 0xc39   :  { %v3663_v30 = vmul.f32 %v7611_v21, %v3662_v2 }
 0xc3b   :  { %v3667_v18 = vsel %vm3666_vm13, %v7611_v21, %v3663_v30 }
 0xc3c   :  { %v3680_v7 = vmul.f32 %v3667_v18, %v9149_v35  ;;  %v6651_v35 = vld [vmem:[%s8125_s1 + $0x2] sm:$0x3] }
 0xc3d   :  { %v3795_v37 = vperm.slane %v6651_v35, 0  ;;  %v9253_v50 = vperm.slane %v6651_v35, 1 }
 0xc3e   :  { %v3696_v31 = vmul.f32 %v3691_v6, %v3680_v7 }
 0xc40   :  { %v3704_v53 = vadd.f32 %v3699_v16, %v3696_v31 }
 0xc5c   :  { %v3629_v32 = vpop.xlane.xlu1 %3628 }
 0xc5d   :  { %v3633_v13 = vmul.f32 %v3629_v32, %v7875_v19 }
 0xc5f   :  { %v3637_v10 = vadd.f32 1e-06, %v3633_v13 }
 0xc61   :  { %7612 = vrsqrt.f32 %v3637_v10  ;;  %vm3674_vm15 = vweird.f32 %v3637_v10 }
 0xc67   :  { %v7613_v0 = vpop.eup %7612 }
 0xc68   :  { %v3669_v52 = vmul.f32 %v7613_v0, %v3637_v10  ;;  %vm3675_vm14 = vweird.f32 %v7613_v0 }
 0xc69   :  { %vm3676_vm2 = vmor %vm3674_vm15, %vm3675_vm14 }
 0xc6a   :  { %v3670_v5 = vmul.f32 %v7613_v0, %v3669_v52 }
 0xc6c   :  { %v3671_v39 = vmul.f32 0.5, %v3670_v5 }
 0xc6e   :  { %v3672_v27 = vsub.f32 1.5, %v3671_v39 }
 0xc70   :  { %v3673_v44 = vmul.f32 %v7613_v0, %v3672_v27 }
 0xc71   :  { %v9239_v1 = vpop.f32.mrf.mxu0 }
 0xc72   :  { %v3677_v12 = vsel %vm3676_vm2, %v7613_v0, %v3673_v44 }
 0xc73   :  { %v3681_v28 = vmul.f32 %v3677_v12, %v9185_v49 }
 0xc75   :  { %v3697_v63 = vmul.f32 %v3691_v6, %v3681_v28 }
 0xc77   :  { %v3705_v42 = vadd.f32 %v3699_v16, %v3697_v63  ;;  %v3854_v23 = vpop.f32.mrf.mxu3 }
 0xc78   :  { %v3855_v33 = vadd.f32 %v3854_v23, %v3795_v37 }
 0xc79   :  { %v3793_v43 = vpack.c.bf16 %v3705_v42, %v3704_v53  ;;  %v9249_v29 = vpop.f32.mrf.mxu0 }
 0xc7a   :  { %v4080_v62 = vpack.c.bf16 %v3855_v33, %v3855_v33 }
 0xc7b   :  { %6694 = vmatmul.msk.bf16.gmra.mxu3 %vm259_vm4, %v3793_v43  ;;  %6696 = vmatmul.msk.bf16.gmra.mxu0 %vm259_vm4, %v3793_v43 }
 0xc7c   :  { %v4107_v22 = vunpack.c.l.b16 %v4080_v62 }
 0xc7f   :  { %v3856_v26 = vpop.f32.mrf.mxu3 }
 0xc80   :  { %v3857_v47 = vadd.f32 %v3856_v26, %v3795_v37 }
 0xc82   :  { %v4081_v38 = vpack.c.bf16 %v3857_v47, %v3857_v47 }
 0xc84   :  { %v4108_v9 = vunpack.c.l.b16 %v4081_v38 }
 0xc86   :  { %v9247_v56 = vpack.c.b16 %v4108_v9, %v4107_v22 }
 0xcb5   :  { %v9245_v41 = vpop.f32.mrf.mxu1 }
 0xcbb   :  { %v3941_v49 = vpop.f32.mrf.mxu2 }
 0xcbc   :  { %v3942_v59 = vadd.f32 %v3941_v49, %v3885_v51 }
 0xcbd   :  { %v3957_v24 = vpop.f32.mrf.mxu1 }
 0xcbe   :  { %v7320_v14 = vpack.i.bf16 %v3855_v33, %v3942_v59  ;;  %v4082_v3 = vpack.c.bf16 %v3942_v59, %v3942_v59  ;;  %v9258_v25 = vadd.f32 %v3957_v24, %v3886_v45 }
 0xcc0   :  { %7321 = vrot.lane.b32.xlu2 %v7320_v14, %s7766_s6  ;;  %v4109_v40 = vunpack.c.l.b16 %v4082_v3 }
 0xcc2   :  { %v9241_v57 = vpack.c.b16 %v4109_v40, %v4109_v40 }
 0xcc3   :  { %v3943_v34 = vpop.f32.mrf.mxu2 }
 0xcc4   :  { %v3944_v20 = vadd.f32 %v3943_v34, %v3885_v51 }
 0xcc6   :  { %v7350_v8 = vpack.i.bf16 %v3944_v20, %v3857_v47  ;;  %v4085_v35 = vpack.c.bf16 %v3944_v20, %v3944_v20 }
 0xcc8   :  { %7351 = vrot.lane.b32.xlu1 %v7350_v8, %s7768_s8  ;;  %7326 = vrot.lane.b32.xlu2 %v7350_v8, %s7766_s6  ;;  %v4151_v33 = vunpack.c.l.b16 %v4085_v35 }
 0xcd0   :  { %7331 = vrot.lane.b32.xlu2 %v7320_v14, %s7767_s7 }
 0xcd8   :  { %7336 = vrot.lane.b32.xlu2 %v7320_v14, %s7768_s8 }
 0xce0   :  { %7346 = vrot.lane.b32.xlu2 %v7350_v8, %s7767_s7  ;;  %v9286_v8 = vpack.c.b16 %v4151_v33, %v4151_v33 }
 0xce8   :  { %4114 = vrot.lane.b32.xlu2 %v9241_v57, %s7761_s18 }
 0xcf0   :  { %4112 = vrot.lane.b32.xlu2 %v9247_v56, %s7761_s18 }
 0xcf8   :  { %v3878_v58 = vpop.f32.mrf.mxu0 }
 0xcf9   :  { %v9261_v21 = vadd.f32 %v3878_v58, %v9253_v50 }
 0xcfb   :  { %v9265_v17 = vpack.i.bf16 %v9261_v21, %v9258_v25 }
 0xcfe   :  { %v3859_v36 = vpop.f32.mrf.mxu3 }
 0xcff   :  { %v3860_v13 = vadd.f32 %v3859_v36, %v3795_v37 }
 0xd01   :  { %v4083_v23 = vpack.c.bf16 %v3860_v13, %v3860_v13 }
 0xd03   :  { %v4149_v59 = vunpack.c.l.b16 %v4083_v23  ;;  %v9322_v23 = vadd.f32 %v9249_v29, %v9253_v50  ;;  %v3956_v29 = vadd.f32 %v9245_v41, %v3886_v45 }
 0xd06   :  { %v3861_v32 = vpop.f32.mrf.mxu3 }
 0xd07   :  { %v3862_v10 = vadd.f32 %v3861_v32, %v3795_v37 }
 0xd09   :  { %v7360_v4 = vpack.i.bf16 %v3862_v10, %v3860_v13  ;;  %v4084_v63 = vpack.c.bf16 %v3862_v10, %v3862_v10 }
 0xd0b   :  { %7361 = vrot.lane.b32.xlu1 %v7360_v4, %s7768_s8  ;;  %7356 = vrot.lane.b32.xlu2 %v7360_v4, %s7767_s7  ;;  %v4150_v49 = vunpack.c.l.b16 %v4084_v63 }
 0xd0c   :  { %7341 = vrot.lane.b32.xlu0 %v7360_v4, %s7766_s6 }
 0xd0d   :  { %v9284_v34 = vpack.c.b16 %v4150_v49, %v4149_v59 }
 0xd1a   :  { %v7322_v2 = vpop.permute.xlu2 %7321 }
 0xd1b   :  { %v7323_v0 = vunpack.i.l.bf16 %v7322_v2  ;;  %v7324_v52 = vunpack.i.h.bf16 %v7322_v2 }
 0xd1d   :  { %v4088_v30 = vpack.c.bf16 %v7323_v0, %v7323_v0  ;;  %v4086_v27 = vpack.c.bf16 %v7324_v52, %v7324_v52 }
 0xd1f   :  { %v4193_v5 = vunpack.c.l.b16 %v4088_v30  ;;  %v4191_v28 = vunpack.c.l.b16 %v4086_v27 }
 0xd21   :  { %v9270_v18 = vpack.c.b16 %v4193_v5, %v4193_v5 }
 0xd22   :  { %v7327_v39 = vpop.permute.xlu2 %7326 }
 0xd23   :  { %v7329_v7 = vunpack.i.h.bf16 %v7327_v39  ;;  %v7328_v44 = vunpack.i.l.bf16 %v7327_v39  ;;  %4198 = vrot.lane.b32.xlu0 %v9270_v18, %s7761_s18 }
 0xd25   :  { %v4091_v6 = vpack.c.bf16 %v7329_v7, %v7329_v7  ;;  %v4087_v12 = vpack.c.bf16 %v7328_v44, %v7328_v44 }
 0xd27   :  { %v4235_v31 = vunpack.c.l.b16 %v4091_v6  ;;  %v4192_v16 = vunpack.c.l.b16 %v4087_v12 }
 0xd29   :  { %v9274_v53 = vpack.c.b16 %v4235_v31, %v4235_v31  ;;  %v9276_v42 = vpack.c.b16 %v4192_v16, %v4191_v28  ;;  %v3880_v16 = vpop.f32.mrf.mxu0 }
 0xd2a   :  { %v7332_v43 = vpop.permute.xlu2 %7331 }
 0xd2b   :  { %v7333_v37 = vunpack.i.l.bf16 %v7332_v43  ;;  %4240 = vrot.lane.b32.xlu2 %v9274_v53, %s7761_s18  ;;  %4196 = vrot.lane.b32.xlu0 %v9276_v42, %s7761_s18  ;;  %v7334_v40 = vunpack.i.h.bf16 %v7332_v43  ;;  %v9313_v43 = vadd.f32 %v3880_v16, %v9253_v50 }
 0xd2d   :  { %v4094_v51 = vpack.c.bf16 %v7333_v37, %v7333_v37  ;;  %v4092_v58 = vpack.c.bf16 %v7334_v40, %v7334_v40  ;;  %v7375_v35 = vpack.i.bf16 %v9313_v43, %v9261_v21 }
 0xd2f   :  { %v4277_v14 = vunpack.c.l.b16 %v4094_v51  ;;  %v4275_v0 = vunpack.c.l.b16 %v4092_v58 }
 0xd31   :  { %v9282_v26 = vpack.c.b16 %v4277_v14, %v4277_v14 }
 0xd32   :  { %v7337_v47 = vpop.permute.xlu2 %7336 }
 0xd33   :  { %v7338_v20 = vunpack.i.l.bf16 %v7337_v47  ;;  %4282 = vrot.lane.b32.xlu1 %v9282_v26, %s7761_s18  ;;  %4154 = vrot.lane.b32.xlu2 %v9284_v34, %s7761_s18  ;;  %v7339_v38 = vunpack.i.h.bf16 %v7337_v47 }
 0xd34   :  { %4156 = vrot.lane.b32.xlu0 %v9286_v8, %s7761_s18 }
 0xd35   :  { %v4100_v3 = vpack.c.bf16 %v7338_v20, %v7338_v20  ;;  %v4098_v36 = vpack.c.bf16 %v7339_v38, %v7339_v38 }
 0xd37   :  { %v4361_v62 = vunpack.c.l.b16 %v4100_v3  ;;  %v4359_v30 = vunpack.c.l.b16 %v4098_v36 }
 0xd39   :  { %v9294_v9 = vpack.c.b16 %v4361_v62, %v4361_v62 }
 0xd3a   :  { %v7352_v22 = vpop.permute.xlu1 %7351  ;;  %v7347_v24 = vpop.permute.xlu2 %7346 }
 0xd3b   :  { %v7353_v32 = vunpack.i.l.bf16 %v7352_v22  ;;  %v7348_v13 = vunpack.i.l.bf16 %v7347_v24  ;;  %v7354_v2 = vunpack.i.h.bf16 %v7352_v22  ;;  %v7349_v62 = vunpack.i.h.bf16 %v7347_v24 }
 0xd3c   :  { %4366 = vrot.lane.b32.xlu0 %v9294_v9, %s7761_s18 }
 0xd3d   :  { %v4099_v10 = vpack.c.bf16 %v7353_v32, %v7353_v32  ;;  %v4093_v4 = vpack.c.bf16 %v7348_v13, %v7348_v13  ;;  %v4103_v7 = vpack.c.bf16 %v7354_v2, %v7354_v2  ;;  %v4097_v32 = vpack.c.bf16 %v7349_v62, %v7349_v62 }
 0xd3f   :  { %v4360_v52 = vunpack.c.l.b16 %v4099_v10  ;;  %v4276_v5 = vunpack.c.l.b16 %v4093_v4  ;;  %v4403_v12 = vunpack.c.l.b16 %v4103_v7  ;;  %v4319_v13 = vunpack.c.l.b16 %v4097_v32 }
 0xd41   :  { %v9298_v39 = vpack.c.b16 %v4360_v52, %v4359_v30  ;;  %v9300_v27 = vpack.c.b16 %v4276_v5, %v4275_v0  ;;  %v9307_v28 = vpack.c.b16 %v4403_v12, %v4403_v12  ;;  %v9349_v2 = vpack.c.b16 %v4319_v13, %v4319_v13 }
 0xd42   :  { %v4115_v44 = vpop.permute.xlu2 %4114  ;;  %v7370_v12 = vpack.i.bf16 %v9258_v25, %v9322_v23 }
 0xd43   :  { %v4126_v6 = vsel %vm1311_vm8, %v4115_v44, 0  ;;  %4364 = vrot.lane.b32.xlu2 %v9298_v39, %s7761_s18 }
 0xd44   :  { %4280 = vrot.lane.b32.xlu0 %v9300_v27, %s7761_s18  ;;  %4134 = vmatpush.bf16.xpose.msrb.mxu2 %v4126_v6 }
 0xd4a   :  { %v4113_v31 = vpop.permute.xlu2 %4112 }
 0xd4b   :  { %v4123_v63 = vsel %vm1311_vm8, %v4113_v31, 0 }
 0xd4c   :  { %4408 = vrot.lane.b32.xlu0 %v9307_v28, %s7761_s18  ;;  %4135 = vmatpush.bf16.xpose.msrb.mxu2 %v4123_v63 }
 0xd53   :  { %6731 = vmatmul.msk.bf16.vlgmr.msrb.gmra.mxu2 %vm1311_vm8, %v9247_v56 }
 0xd54   :  { %7376 = vrot.lane.b32.xlu0 %v7375_v35, %s7766_s6 }
 0xd5c   :  { %4046 = vrot.lane.b32.xlu0 %v9322_v23, %s7767_s7 }
 0xd63   :  { %6732 = vmatmul.msk.bf16.gmra.mxu2 %vm1311_vm8, %v9241_v57  ;;  %v9339_v57 = vadd.f32 %v9239_v1, %v9253_v50 }
 0xd64   :  { %4064 = vrot.lane.b32.xlu0 %v9322_v23, %s7768_s8 }
 0xd65   :  { %v7357_v37 = vpop.permute.xlu2 %7356  ;;  %v7365_v20 = vpack.i.bf16 %v9339_v57, %v3956_v29 }
 0xd66   :  { %v7359_v51 = vunpack.i.h.bf16 %v7357_v37  ;;  %v7358_v49 = vunpack.i.l.bf16 %v7357_v37 }
 0xd68   :  { %v4096_v33 = vpack.c.bf16 %v7359_v51, %v7359_v51  ;;  %v4095_v56 = vpack.c.bf16 %v7358_v49, %v7358_v49  ;;  %v4754_v49 = vpack.c.bf16 %v3956_v29, %v3956_v29 }
 0xd6a   :  { %v4318_v59 = vunpack.c.l.b16 %v4096_v33  ;;  %v4317_v14 = vunpack.c.l.b16 %v4095_v56 }
 0xd6c   :  { %v9330_v47 = vpack.c.b16 %v4318_v59, %v4317_v14  ;;  %v4789_v14 = vunpack.c.l.b16 %v4754_v49 }
 0xd6e   :  { %4322 = vrot.lane.b32.xlu2 %v9330_v47, %s7761_s18 }
 0xd76   :  { %7366 = vrot.lane.b32.xlu2 %v7365_v20, %s7766_s6 }
 0xd7d   :  { %v7362_v1 = vpop.permute.xlu1 %7361 }
 0xd7e   :  { %v7342_v3 = vpop.permute.xlu0 %7341  ;;  %7381 = vrot.lane.b32.xlu2 %v7365_v20, %s7767_s7  ;;  %v7364_v10 = vunpack.i.h.bf16 %v7362_v1  ;;  %v7363_v4 = vunpack.i.l.bf16 %v7362_v1 }
 0xd7f   :  { %v7344_v40 = vunpack.i.h.bf16 %v7342_v3  ;;  %v7343_v38 = vunpack.i.l.bf16 %v7342_v3  ;;  %v4753_v3 = vpack.c.bf16 %v9322_v23, %v9322_v23 }
 0xd80   :  { %v4102_v24 = vpack.c.bf16 %v7364_v10, %v7364_v10  ;;  %v4101_v0 = vpack.c.bf16 %v7363_v4, %v7363_v4 }
 0xd81   :  { %v4090_v22 = vpack.c.bf16 %v7344_v40, %v7344_v40  ;;  %v4089_v58 = vpack.c.bf16 %v7343_v38, %v7343_v38  ;;  %v4791_v40 = vpack.c.b16 %v4789_v14, %v4789_v14 }
 0xd82   :  { %v4402_v30 = vunpack.c.l.b16 %v4102_v24  ;;  %v4401_v52 = vunpack.c.l.b16 %v4101_v0 }
 0xd83   :  { %v4234_v36 = vunpack.c.l.b16 %v4090_v22  ;;  %v4233_v11 = vunpack.c.l.b16 %v4089_v58  ;;  %v4788_v22 = vunpack.c.l.b16 %v4753_v3  ;;  %v4800_v23 = vsel %vm1996_vm9, %v4791_v40, 0 }
 0xd84   :  { %v9353_v5 = vpack.c.b16 %v4402_v30, %v4401_v52  ;;  %v4756_v40 = vpack.c.bf16 %v9313_v43, %v9313_v43 }
 0xd85   :  { %v9344_v41 = vpack.c.b16 %v4234_v36, %v4233_v11  ;;  %v4241_v45 = vpop.permute.xlu2 %4240 }
 0xd86   :  { %v4252_v50 = vsel %vm1311_vm8, %v4241_v45, 0 }
 0xd87   :  { %4238 = vrot.lane.b32.xlu1 %v9344_v41, %s7761_s18  ;;  %4260 = vmatpush.bf16.xpose.msrb.mxu0 %v4252_v50 }
 0xd8d   :  { %v4155_v51 = vpop.permute.xlu2 %4154 }
 0xd8e   :  { %v4165_v56 = vsel %vm1311_vm8, %v4155_v51, 0 }
 0xd8f   :  { %4324 = vrot.lane.b32.xlu1 %v9349_v2, %s7761_s18 }
 0xd95   :  { %v4199_v7 = vpop.permute.xlu0 %4198 }
 0xd96   :  { %v4210_v44 = vsel %vm1311_vm8, %v4199_v7, 0 }
 0xd97   :  { %4406 = vrot.lane.b32.xlu1 %v9353_v5, %s7761_s18  ;;  %4218 = vmatpush.bf16.xpose.msrb.mxu3 %v4210_v44 }
 0xd9d   :  { %v4197_v6 = vpop.permute.xlu0 %4196 }
 0xd9e   :  { %v4207_v31 = vsel %vm1311_vm8, %v4197_v6, 0 }
 0xd9f   :  { %7371 = vrot.lane.b32.xlu1 %v7370_v12, %s7766_s6  ;;  %4219 = vmatpush.bf16.xpose.msrb.mxu3 %v4207_v31 }
 0xda5   :  { %v4283_v16 = vpop.permute.xlu1 %4282 }
 0xda6   :  { %v4294_v63 = vsel %vm1311_vm8, %v4283_v16, 0  ;;  %v4157_v35 = vpop.permute.xlu0 %4156  ;;  %6735 = vmatmul.msk.bf16.vlgmr.msrb.gmra.mxu3 %vm1311_vm8, %v9276_v42  ;;  %v4365_v42 = vpop.permute.xlu2 %4364 }
 0xda7   :  { %v4168_v37 = vsel %vm1311_vm8, %v4157_v35, 0  ;;  %7386 = vrot.lane.b32.xlu1 %v7365_v20, %s7768_s8  ;;  %4302 = vmatpush.bf16.xpose.msra.mxu2 %v4294_v63  ;;  %v4752_v20 = vpack.c.bf16 %v9339_v57, %v9339_v57  ;;  %v4375_v29 = vsel %vm1311_vm8, %v4365_v42, 0 }
 0xda8   :  { %4176 = vmatpush.bf16.xpose.msrb.mxu1 %v4168_v37 }
 0xda9   :  { %v4787_v58 = vunpack.c.l.b16 %v4752_v20 }
 0xdab   :  { %v4790_v36 = vpack.c.b16 %v4788_v22, %v4787_v58  ;;  %v4831_v22 = vunpack.c.l.b16 %v4756_v40 }
 0xdae   :  { %v4367_v33 = vpop.permute.xlu0 %4366 }
 0xdaf   :  { %v4378_v59 = vsel %vm1311_vm8, %v4367_v33, 0 }
 0xdb0   :  { %4177 = vmatpush.bf16.xpose.msrb.mxu1 %v4165_v56  ;;  %4386 = vmatpush.bf16.xpose.msra.mxu3 %v4378_v59  ;;  %v4757_v59 = vpack.c.bf16 %v9258_v25, %v9258_v25 }
 0xdb2   :  { %v4832_v42 = vunpack.c.l.b16 %v4757_v59 }
 0xdb4   :  { %v4834_v20 = vpack.c.b16 %v4832_v42, %v4832_v42 }
 0xdb6   :  { %v4281_v38 = vpop.permute.xlu0 %4280  ;;  %6736 = vmatmul.msk.bf16.gmra.mxu3 %vm1311_vm8, %v9270_v18 }
 0xdb7   :  { %v4291_v62 = vsel %vm1311_vm8, %v4281_v38, 0  ;;  %6733 = vmatmul.msk.bf16.vlgmr.msrb.gmra.mxu1 %vm1311_vm8, %v9284_v34  ;;  %v4755_v38 = vpack.c.bf16 %v9261_v21, %v9261_v21 }
 0xdb8   :  { %4303 = vmatpush.bf16.xpose.msra.mxu2 %v4291_v62  ;;  %4387 = vmatpush.bf16.xpose.msra.mxu3 %v4375_v29 }
 0xdbe   :  { %v4409_v18 = vpop.permute.xlu0 %4408 }
 0xdbf   :  { %6739 = vmatmul.msk.bf16.vlgmr.msra.gmra.mxu2 %vm1311_vm8, %v9300_v27  ;;  %v4420_v56 = vsel %vm1311_vm8, %v4409_v18, 0 }
 0xdc0   :  { %4808 = vmatpush.bf16.msrb.mxu2 %v4800_v23  ;;  %v4843_v23 = vsel %vm1996_vm9, %v4834_v20, 0 }
 0xdc4   :  { %4809 = vmatpush.bf16.msrb.mxu2 %v4790_v36 }
 0xdc6   :  { %6743 = vmatmul.msk.bf16.vlgmr.msra.gmra.mxu3 %vm1311_vm8, %v9298_v39  ;;  %v9390_v11 = vpop.permute.xlu0 %7376 }
 0xdc7   :  { %6734 = vmatmul.msk.bf16.gmra.mxu1 %vm1311_vm8, %v9286_v8  ;;  %v7379_v18 = vunpack.i.h.bf16 %v9390_v11  ;;  %v7378_v21 = vunpack.i.l.bf16 %v9390_v11 }
 0xdc8   :  { %v4323_v34 = vpop.permute.xlu2 %4322 }
 0xdc9   :  { %v4333_v62 = vsel %vm1311_vm8, %v4323_v34, 0 }
 0xdce   :  { %v4047_v24 = vpop.permute.xlu0 %4046 }
 0xdcf   :  { %6740 = vmatmul.msk.bf16.gmra.mxu2 %vm1311_vm8, %v9282_v26  ;;  %v4765_v7 = vpack.c.bf16 %v4047_v24, %v4047_v24 }
 0xdd0   :  { %v9388_v57 = vpop.permute.xlu2 %7366 }
 0xdd1   :  { %v7368_v32 = vunpack.i.l.bf16 %v9388_v57  ;;  %v4960_v63 = vunpack.c.l.b16 %v4765_v7  ;;  %v7369_v58 = vunpack.i.h.bf16 %v9388_v57  ;;  %v4761_v57 = vpack.c.bf16 %v7378_v21, %v7378_v21 }
 0xdd3   :  { %v4760_v45 = vpack.c.bf16 %v7368_v32, %v7368_v32 }
 0xdd5   :  { %v4875_v1 = vunpack.c.l.b16 %v4760_v45  ;;  %v4758_v45 = vpack.c.bf16 %v7369_v58, %v7369_v58 }
 0xdd6   :  { %v4137_v27 = vpop.f32.mrf.mxu2  ;;  %6744 = vmatmul.msk.bf16.gmra.mxu3 %vm1311_vm8, %v9294_v9 }
 0xdd7   :  { %v4877_v39 = vpack.c.b16 %v4875_v1, %v4875_v1  ;;  %v9395_v50 = vmul.f32 0.25, %v4137_v27 }
 0xdd8   :  { %v7382_v8 = vpop.permute.xlu2 %7381 }
 0xdd9   :  { %v7384_v13 = vunpack.i.h.bf16 %v7382_v8  ;;  %v7383_v10 = vunpack.i.l.bf16 %v7382_v8  ;;  %v4464_v26 = vsel %vm1660_vm10, %v9395_v50, -inf  ;;  %v4886_v4 = vsel %vm1996_vm9, %v4877_v39, 0 }
 0xdda   :  { %4465 = vmax.xlane.f32.xlu0 %v4464_v26  ;;  %4894 = vmatpush.bf16.msrb.mxu3 %v4886_v4  ;;  %v4762_v8 = vpack.c.bf16 %v7379_v18, %v7379_v18 }
 0xddb   :  { %v4766_v0 = vpack.c.bf16 %v7383_v10, %v7383_v10  ;;  %v4764_v30 = vpack.c.bf16 %v7384_v13, %v7384_v13  ;;  %v4873_v13 = vunpack.c.l.b16 %v4758_v45 }
 0xddc   :  { %v4917_v11 = vunpack.c.l.b16 %v4762_v8 }
 0xddd   :  { %v4961_v52 = vunpack.c.l.b16 %v4766_v0  ;;  %v4959_v12 = vunpack.c.l.b16 %v4764_v30  ;;  %v4916_v0 = vunpack.c.l.b16 %v4761_v57 }
 0xdde   :  { %v4139_v44 = vpop.f32.mrf.mxu2 }
 0xddf   :  { %v4963_v9 = vpack.c.b16 %v4961_v52, %v4961_v52  ;;  %v9400_v6 = vmul.f32 0.25, %v4139_v44  ;;  %v4962_v35 = vpack.c.b16 %v4960_v63, %v4959_v12  ;;  %v4065_v44 = vpop.permute.xlu0 %4064  ;;  %v4919_v12 = vpack.c.b16 %v4917_v11, %v4916_v0 }
 0xde1   :  { %v4467_v31 = vsel %vm1660_vm10, %v9400_v6, -inf  ;;  %v4972_v16 = vsel %vm1996_vm9, %v4963_v9, 0 }
 0xde2   :  { %4468 = vmax.xlane.f32.xlu2 %v4467_v31  ;;  %4980 = vmatpush.bf16.msra.mxu2 %v4972_v16  ;;  %v4771_v16 = vpack.c.bf16 %v4065_v44, %v4065_v44 }
 0xde6   :  { %v9405_v37 = vpop.f32.mrf.mxu2  ;;  %4981 = vmatpush.bf16.msra.mxu2 %v4962_v35 }
 0xdee   :  { %v4144_v51 = vpop.f32.mrf.mxu2 }
 0xdf9   :  { %v4239_v49 = vpop.permute.xlu1 %4238 }
 0xdfa   :  { %v4249_v33 = vsel %vm1311_vm8, %v4239_v49, 0  ;;  %v5046_v49 = vunpack.c.l.b16 %v4771_v16 }
 0xdfb   :  { %4261 = vmatpush.bf16.xpose.msrb.mxu0 %v4249_v33 }
 0xe01   :  { %v4325_v14 = vpop.permute.xlu1 %4324 }
 0xe02   :  { %v4336_v3 = vsel %vm1311_vm8, %v4325_v14, 0  ;;  %6737 = vmatmul.msk.bf16.vlgmr.msrb.gmra.mxu0 %vm1311_vm8, %v9344_v41  ;;  %v4830_v41 = vunpack.c.l.b16 %v4755_v38 }
 0xe03   :  { %4428 = vmatpush.bf16.xpose.msra.mxu0 %v4420_v56  ;;  %4344 = vmatpush.bf16.xpose.msra.mxu1 %v4336_v3 }
 0xe04   :  { %v4833_v36 = vpack.c.b16 %v4831_v22, %v4830_v41 }
 0xe09   :  { %v4407_v29 = vpop.permute.xlu1 %4406 }
 0xe0a   :  { %v4417_v25 = vsel %vm1311_vm8, %v4407_v29, 0 }
 0xe0b   :  { %4345 = vmatpush.bf16.xpose.msra.mxu1 %v4333_v62  ;;  %4429 = vmatpush.bf16.xpose.msra.mxu0 %v4417_v25  ;;  %v9449_v25 = vmul.f32 0.25, %v9405_v37 }
 0xe0d   :  { %v4470_v41 = vsel %vm1660_vm10, %v9449_v25, -inf }
 0xe11   :  { %v7372_v32 = vpop.permute.xlu1 %7371 }
 0xe12   :  { %v7374_v34 = vunpack.i.h.bf16 %v7372_v32  ;;  %v7373_v1 = vunpack.i.l.bf16 %v7372_v32  ;;  %6738 = vmatmul.msk.bf16.gmra.mxu0 %vm1311_vm8, %v9274_v53  ;;  %6741 = vmatmul.msk.bf16.vlgmr.msra.gmra.mxu1 %vm1311_vm8, %v9330_v47 }
 0xe13   :  { %4851 = vmatpush.bf16.msrb.mxu1 %v4843_v23 }
 0xe14   :  { %v4763_v27 = vpack.c.bf16 %v7374_v34, %v7374_v34  ;;  %v4759_v39 = vpack.c.bf16 %v7373_v1, %v7373_v1 }
 0xe16   :  { %v4918_v10 = vunpack.c.l.b16 %v4763_v27  ;;  %v4874_v26 = vunpack.c.l.b16 %v4759_v39 }
 0xe17   :  { %4852 = vmatpush.bf16.msrb.mxu1 %v4833_v36 }
 0xe18   :  { %v4920_v4 = vpack.c.b16 %v4918_v10, %v4918_v10  ;;  %v4876_v24 = vpack.c.b16 %v4874_v26, %v4873_v13 }
 0xe19   :  { %v7387_v30 = vpop.permute.xlu1 %7386 }
 0xe1a   :  { %v7389_v52 = vunpack.i.h.bf16 %v7387_v30  ;;  %v7388_v7 = vunpack.i.l.bf16 %v7387_v30  ;;  %4895 = vmatpush.bf16.msrb.mxu3 %v4876_v24  ;;  %v4929_v53 = vsel %vm1996_vm9, %v4920_v4, 0 }
 0xe1b   :  { %4937 = vmatpush.bf16.msrb.mxu0 %v4929_v53 }
 0xe1c   :  { %v4772_v47 = vpack.c.bf16 %v7388_v7, %v7388_v7  ;;  %v4770_v9 = vpack.c.bf16 %v7389_v52, %v7389_v52 }
 0xe1e   :  { %v5047_v31 = vunpack.c.l.b16 %v4772_v47  ;;  %v5045_v35 = vunpack.c.l.b16 %v4770_v9 }
 0xe1f   :  { %4938 = vmatpush.bf16.msrb.mxu0 %v4919_v12 }
 0xe20   :  { %v5049_v63 = vpack.c.b16 %v5047_v31, %v5047_v31  ;;  %v5048_v33 = vpack.c.b16 %v5046_v49, %v5045_v35 }
 0xe22   :  { %6742 = vmatmul.msk.bf16.gmra.mxu1 %vm1311_vm8, %v9349_v2  ;;  %6745 = vmatmul.msk.bf16.vlgmr.msra.gmra.mxu0 %vm1311_vm8, %v9353_v5  ;;  %v5058_v51 = vsel %vm1996_vm9, %v5049_v63, 0 }
 0xe23   :  { %5066 = vmatpush.bf16.msra.mxu3 %v5058_v51 }
 0xe27   :  { %5067 = vmatpush.bf16.msra.mxu3 %v5048_v33 }
 0xe29   :  { %v4221_v56 = vpop.f32.mrf.mxu3 }
 0xe2a   :  { %v9459_v21 = vmul.f32 0.25, %v4221_v56 }
 0xe2c   :  { %v4482_v1 = vsel %vm1660_vm10, %v9459_v21, -inf }
 0xe31   :  { %v4223_v59 = vpop.f32.mrf.mxu3 }
 0xe32   :  { %6746 = vmatmul.msk.bf16.gmra.mxu0 %vm1311_vm8, %v9307_v28  ;;  %v9440_v5 = vmul.f32 0.25, %v4223_v59 }
 0xe34   :  { %v4179_v14 = vpop.f32.mrf.mxu1  ;;  %v4485_v38 = vsel %vm1660_vm10, %v9440_v5, -inf }
 0xe35   :  { %v9436_v3 = vmul.f32 0.25, %v4179_v14 }
 0xe37   :  { %v4473_v2 = vsel %vm1660_vm10, %v9436_v3, -inf }
 0xe38   :  { %4474 = vmax.xlane.f32.xlu0 %v4473_v2 }
 0xe39   :  { %v4226_v42 = vpop.f32.mrf.mxu3 }
 0xe3a   :  { %v9499_v59 = vmul.f32 0.25, %v4226_v42 }
 0xe3c   :  { %v4181_v40 = vpop.f32.mrf.mxu1 }
 0xe3d   :  { %v9442_v20 = vmul.f32 0.25, %v4181_v40 }
 0xe3f   :  { %v4476_v29 = vsel %vm1660_vm10, %v9442_v20, -inf }
 0xe40   :  { %4486 = vmax.xlane.f32.xlu0 %v4485_v38  ;;  %4477 = vmax.xlane.f32.xlu2 %v4476_v29  ;;  %v4488_v38 = vsel %vm1660_vm10, %v9499_v59, -inf }
 0xe41   :  { %v4228_v28 = vpop.f32.mrf.mxu3 }
 0xe42   :  { %v4305_v62 = vpop.f32.mrf.mxu2 }
 0xe43   :  { %v9461_v32 = vmul.f32 0.25, %v4305_v62 }
 0xe44   :  { %v4184_v22 = vpop.f32.mrf.mxu1 }
 0xe45   :  { %v9451_v23 = vmul.f32 0.25, %v4184_v22  ;;  %v4500_v27 = vsel %vm1660_vm10, %v9461_v32, -inf }
 0xe47   :  { %v4479_v58 = vsel %vm1660_vm10, %v9451_v23, -inf }
 0xe48   :  { %4471 = vmax.xlane.f32.xlu2 %v4470_v41  ;;  %4480 = vmax.xlane.f32.xlu1 %v4479_v58 }
 0xe49   :  { %v9457_v36 = vpop.f32.mrf.mxu3 }
 0xe4a   :  { %v4307_v18 = vpop.f32.mrf.mxu2 }
 0xe4b   :  { %v9490_v12 = vmul.f32 0.25, %v4307_v18 }
 0xe4c   :  { %v4186_v37 = vpop.f32.mrf.mxu1 }
 0xe4d   :  { %v4466_v45 = vpop.xlane.xlu0 %4465  ;;  %v4503_v33 = vsel %vm1660_vm10, %v9490_v12, -inf }
 0xe4e   :  { %v4536_v34 = vsub.f32 %v9395_v50, %v4466_v45 }
 0xe50   :  { %v4560_v39 = vmul.f32 1.442695, %v4536_v34  ;;  %4483 = vmax.xlane.f32.xlu1 %v4482_v1  ;;  %4501 = vmax.xlane.f32.xlu2 %v4500_v27 }
 0xe51   :  { %v9468_v8 = vpop.f32.mrf.mxu3 }
 0xe52   :  { %7614 = vpow2.f32 %v4560_v39  ;;  %v9470_v57 = vpop.f32.mrf.mxu2 }
 0xe55   :  { %v4469_v31 = vpop.xlane.xlu2 %4468 }
 0xe56   :  { %v4537_v51 = vsub.f32 %v9400_v6, %v4469_v31 }
 0xe58   :  { %v9472_v13 = vpop.eup %7614  ;;  %v4562_v56 = vmul.f32 1.442695, %v4537_v51 }
 0xe59   :  { %v9474_v10 = vpop.f32.mrf.mxu3  ;;  %v4608_v50 = vsel %vm1660_vm10, %v9472_v13, 0.0 }
 0xe5a   :  { %v4312_v26 = vpop.f32.mrf.mxu2  ;;  %4609 = vadd.xlane.f32.xlu2 %v4608_v50  ;;  %7616 = vpow2.f32 %v4562_v56 }
 0xe60   :  { %v9509_v29 = vpop.eup %7616 }
 0xe61   :  { %v4396_v4 = vpop.f32.mrf.mxu3  ;;  %v4611_v42 = vsel %vm1660_vm10, %v9509_v29, 0.0 }
 0xe7f   :  { %v4263_v24 = vpop.f32.mrf.mxu0 }
 0xe80   :  { %v9478_v11 = vmul.f32 0.25, %v4263_v24 }
 0xe82   :  { %v4491_v0 = vsel %vm1660_vm10, %v9478_v11, -inf }
 0xe83   :  { %4492 = vmax.xlane.f32.xlu1 %v4491_v0 }
 0xe87   :  { %v4265_v30 = vpop.f32.mrf.mxu0 }
 0xe88   :  { %v9482_v52 = vmul.f32 0.25, %v4265_v30 }
 0xe8a   :  { %v4494_v7 = vsel %vm1660_vm10, %v9482_v52, -inf }
 0xe8b   :  { %4495 = vmax.xlane.f32.xlu0 %v4494_v7 }
 0xe8f   :  { %v4268_v53 = vpop.f32.mrf.mxu0  ;;  %v4347_v44 = vpop.f32.mrf.mxu1 }
 0xe90   :  { %v9486_v47 = vmul.f32 0.25, %v4347_v44  ;;  %v9501_v14 = vmul.f32 0.25, %v4268_v53 }
 0xe92   :  { %v4509_v9 = vsel %vm1660_vm10, %v9486_v47, -inf  ;;  %v4497_v6 = vsel %vm1660_vm10, %v9501_v14, -inf }
 0xe93   :  { %4510 = vmax.xlane.f32.xlu1 %v4509_v9 }
 0xe97   :  { %v4270_v16 = vpop.f32.mrf.mxu0  ;;  %v4349_v63 = vpop.f32.mrf.mxu1 }
 0xe98   :  { %v9492_v35 = vmul.f32 0.25, %v4349_v63  ;;  %v9541_v63 = vmul.f32 0.25, %v9457_v36 }
 0xe9a   :  { %v4512_v49 = vsel %vm1660_vm10, %v9492_v35, -inf }
 0xe9b   :  { %4513 = vmax.xlane.f32.xlu0 %v4512_v49  ;;  %4504 = vmax.xlane.f32.xlu1 %v4503_v33  ;;  %v9544_v33 = vmul.f32 0.25, %v9468_v8 }
 0xe9f   :  { %v9503_v2 = vpop.f32.mrf.mxu1  ;;  %v4431_v40 = vpop.f32.mrf.mxu0 }
 0xea0   :  { %v9514_v58 = vmul.f32 0.25, %v4431_v40 }
 0xea2   :  { %v4527_v45 = vsel %vm1660_vm10, %v9514_v58, -inf }
 0xea3   :  { %4498 = vmax.xlane.f32.xlu0 %v4497_v6  ;;  %4489 = vmax.xlane.f32.xlu1 %v4488_v38  ;;  %v4518_v6 = vsel %vm1660_vm10, %v9541_v63, -inf  ;;  %v4521_v38 = vsel %vm1660_vm10, %v9544_v33, -inf }
 0xea7   :  { %v4354_v28 = vpop.f32.mrf.mxu1  ;;  %v4433_v62 = vpop.f32.mrf.mxu0 }
 0xea8   :  { %v9552_v28 = vmul.f32 0.25, %v4433_v62 }
 0xeab   :  { %4612 = vadd.xlane.f32.xlu1 %v4611_v42  ;;  %v4475_v22 = vpop.xlane.xlu0 %4474 }
 0xeac   :  { %v4539_v41 = vsub.f32 %v9436_v3, %v4475_v22 }
 0xeae   :  { %v4566_v18 = vmul.f32 1.442695, %v4539_v41 }
 0xeaf   :  { %v9516_v37 = vpop.f32.mrf.mxu0 }
 0xeb0   :  { %7618 = vpow2.f32 %v4566_v18 }
 0xeb3   :  { %v4478_v34 = vpop.xlane.xlu2 %4477  ;;  %4528 = vmax.xlane.f32.xlu1 %v4527_v45  ;;  %v4487_v56 = vpop.xlane.xlu0 %4486 }
 0xeb4   :  { %v4540_v1 = vsub.f32 %v9442_v20, %v4478_v34 }
 0xeb6   :  { %v9521_v27 = vpop.eup %7618  ;;  %v4568_v39 = vmul.f32 1.442695, %v4540_v1 }
 0xeb7   :  { %v4438_v50 = vpop.f32.mrf.mxu0  ;;  %v4617_v3 = vsel %vm1660_vm10, %v9521_v27, 0.0 }
 0xeb8   :  { %7620 = vpow2.f32 %v4568_v39  ;;  %4618 = vadd.xlane.f32.xlu2 %v4617_v3 }
 0xebb   :  { %v4472_v26 = vpop.xlane.xlu2 %4471  ;;  %v4481_v4 = vpop.xlane.xlu1 %4480 }
 0xebc   :  { %v4538_v24 = vsub.f32 %v9449_v25, %v4472_v26  ;;  %v4541_v0 = vsub.f32 %v9451_v23, %v4481_v4 }
 0xebe   :  { %v9527_v30 = vpop.eup %7620  ;;  %v4564_v7 = vmul.f32 1.442695, %v4538_v24  ;;  %v4570_v53 = vmul.f32 1.442695, %v4541_v0 }
 0xebf   :  { %v4620_v20 = vsel %vm1660_vm10, %v9527_v30, 0.0 }
 0xec0   :  { %7622 = vpow2.f32 %v4564_v7  ;;  %4621 = vadd.xlane.f32.xlu0 %v4620_v20 }
 0xec1   :  { %7624 = vpow2.f32 %v4570_v53 }
 0xec3   :  { %v4502_v44 = vpop.xlane.xlu2 %4501  ;;  %v4484_v51 = vpop.xlane.xlu1 %4483 }
 0xec4   :  { %v4548_v16 = vsub.f32 %v9461_v32, %v4502_v44  ;;  %v4542_v40 = vsub.f32 %v9459_v21, %v4484_v51  ;;  %v4543_v32 = vsub.f32 %v9440_v5, %v4487_v56  ;;  %v4530_v5 = vsel %vm1660_vm10, %v9552_v28, -inf }
 0xec6   :  { %v9531_v9 = vpop.eup %7622  ;;  %v4584_v49 = vmul.f32 1.442695, %v4548_v16  ;;  %v4572_v36 = vmul.f32 1.442695, %v4542_v40  ;;  %v4574_v42 = vmul.f32 1.442695, %v4543_v32 }
 0xec7   :  { %v9533_v31 = vpop.eup %7624  ;;  %v4614_v25 = vsel %vm1660_vm10, %v9531_v9, 0.0 }
 0xec8   :  { %4615 = vadd.xlane.f32.xlu0 %v4614_v25  ;;  %v4623_v23 = vsel %vm1660_vm10, %v9533_v31, 0.0  ;;  %7626 = vpow2.f32 %v4584_v49 }
 0xec9   :  { %4624 = vadd.xlane.f32.xlu2 %v4623_v23  ;;  %7628 = vpow2.f32 %v4572_v36 }
 0xeca   :  { %7630 = vpow2.f32 %v4574_v42 }
 0xecd   :  { %v4610_v44 = vpop.xlane.xlu2 %4609 }
 0xece   :  { %v9554_v8 = vpop.eup %7626 }
 0xecf   :  { %v4644_v21 = vsel %vm1660_vm10, %v9554_v8, 0.0  ;;  %v9560_v22 = vpop.eup %7628 }
 0xed0   :  { %4519 = vmax.xlane.f32.xlu0 %v4518_v6  ;;  %v9562_v41 = vpop.eup %7630  ;;  %v4626_v62 = vsel %vm1660_vm10, %v9560_v22, 0.0 }
 0xed1   :  { %4522 = vmax.xlane.f32.xlu2 %v4521_v38  ;;  %v4629_v18 = vsel %vm1660_vm10, %v9562_v41, 0.0 }
 0xed8   :  { %4531 = vmax.xlane.f32.xlu0 %v4530_v5 }
 0xed9   :  { %4645 = vadd.xlane.f32.xlu2 %v4644_v21 }
 0xee0   :  { %4627 = vadd.xlane.f32.xlu0 %v4626_v62 }
 0xee1   :  { %4630 = vadd.xlane.f32.xlu2 %v4629_v18 }
 0xef6   :  { %v4493_v45 = vpop.xlane.xlu1 %4492 }
 0xef7   :  { %v4545_v34 = vsub.f32 %v9478_v11, %v4493_v45 }
 0xef9   :  { %v4578_v1 = vmul.f32 1.442695, %v4545_v34 }
 0xefb   :  { %7632 = vpow2.f32 %v4578_v1 }
 0xefe   :  { %v4496_v3 = vpop.xlane.xlu0 %4495 }
 0xeff   :  { %v4546_v53 = vsub.f32 %v9482_v52, %v4496_v3 }
 0xf01   :  { %v9569_v39 = vpop.eup %7632  ;;  %v4580_v16 = vmul.f32 1.442695, %v4546_v53 }
 0xf02   :  { %v4635_v50 = vsel %vm1660_vm10, %v9569_v39, 0.0 }
 0xf03   :  { %4636 = vadd.xlane.f32.xlu1 %v4635_v50 }
 0xf06   :  { %v4511_v26 = vpop.xlane.xlu1 %4510 }
 0xf0e   :  { %v4505_v4 = vpop.xlane.xlu1 %4504  ;;  %v4514_v24 = vpop.xlane.xlu0 %4513 }
 0xf0f   :  { %v4549_v0 = vsub.f32 %v9490_v12, %v4505_v4  ;;  %v4552_v7 = vsub.f32 %v9492_v35, %v4514_v24 }
 0xf11   :  { %v4586_v20 = vmul.f32 1.442695, %v4549_v0  ;;  %v4592_v11 = vmul.f32 1.442695, %v4552_v7 }
 0xf13   :  { %7634 = vpow2.f32 %v4586_v20 }
 0xf14   :  { %7636 = vpow2.f32 %v4592_v11 }
 0xf15   :  { %7638 = vrcp.f32 %v4610_v44 }
 0xf16   :  { %v4490_v25 = vpop.xlane.xlu1 %4489  ;;  %7640 = vpow2.f32 %v4580_v16  ;;  %v4499_v1 = vpop.xlane.xlu0 %4498 }
 0xf17   :  { %v4544_v51 = vsub.f32 %v9499_v59, %v4490_v25  ;;  %v4551_v59 = vsub.f32 %v9486_v47, %v4511_v26  ;;  %v4547_v26 = vsub.f32 %v9501_v14, %v4499_v1 }
 0xf19   :  { %v9576_v23 = vpop.eup %7634  ;;  %v4576_v35 = vmul.f32 1.442695, %v4544_v51  ;;  %v4590_v42 = vmul.f32 1.442695, %v4551_v59  ;;  %v4582_v0 = vmul.f32 1.442695, %v4547_v26 }
 0xf1a   :  { %v9579_v49 = vpop.eup %7636  ;;  %v4647_v12 = vsel %vm1660_vm10, %v9576_v23, 0.0 }
 0xf1b   :  { %4648 = vadd.xlane.f32.xlu0 %v4647_v12  ;;  %v4656_v52 = vsel %vm1660_vm10, %v9579_v49, 0.0  ;;  %v7639_v56 = vpop.eup %7638 }
 0xf1c   :  { %4657 = vadd.xlane.f32.xlu2 %v4656_v52  ;;  %7391 = vrot.lane.b32.xlu1 %v9265_v17, %s7767_s7  ;;  %v9587_v32 = vpop.eup %7640  ;;  %v4704_v6 = vmul.f32 %v7639_v56, %v9472_v13 }
 0xf1d   :  { %v4638_v38 = vsel %vm1660_vm10, %v9587_v32, 0.0 }
 0xf1e   :  { %v4613_v40 = vpop.xlane.xlu1 %4612  ;;  %v4728_v5 = vpack.c.bf16 %v4704_v6, %v4704_v6 }
 0xf1f   :  { %7642 = vrcp.f32 %v4613_v40 }
 0xf20   :  { %7644 = vpow2.f32 %v4576_v35  ;;  %v4779_v45 = vunpack.c.l.b16 %v4728_v5 }
 0xf21   :  { %7646 = vpow2.f32 %v4590_v42 }
 0xf23   :  { %4639 = vadd.xlane.f32.xlu0 %v4638_v38 }
 0xf25   :  { %v7643_v36 = vpop.eup %7642 }
 0xf26   :  { %v4705_v21 = vmul.f32 %v7643_v36, %v9509_v29  ;;  %v9594_v62 = vpop.eup %7644  ;;  %v4529_v53 = vpop.xlane.xlu1 %4528 }
 0xf27   :  { %v4632_v47 = vsel %vm1660_vm10, %v9594_v62, 0.0  ;;  %v9599_v3 = vpop.eup %7646  ;;  %v4557_v25 = vsub.f32 %v9514_v58, %v4529_v53 }
 0xf28   :  { %v4729_v18 = vpack.c.bf16 %v4705_v21, %v4705_v21  ;;  %v4653_v29 = vsel %vm1660_vm10, %v9599_v3, 0.0 }
 0xf29   :  { %v4602_v35 = vmul.f32 1.442695, %v4557_v25 }
 0xf2a   :  { %v4780_v34 = vunpack.c.l.b16 %v4729_v18 }
 0xf2b   :  { %v4619_v13 = vpop.xlane.xlu2 %4618  ;;  %4633 = vadd.xlane.f32.xlu0 %v4632_v47 }
 0xf2c   :  { %v4782_v50 = vpack.c.b16 %v4780_v34, %v4779_v45  ;;  %7648 = vrcp.f32 %v4619_v13 }
 0xf2e   :  { %6747 = vmatmul.msk.bf16.vlgmr.msrb.gmra.mxu2 %vm1660_vm10, %v4782_v50 }
 0xf32   :  { %v7649_v24 = vpop.eup %7648 }
 0xf33   :  { %4654 = vadd.xlane.f32.xlu0 %v4653_v29  ;;  %v4622_v4 = vpop.xlane.xlu0 %4621  ;;  %v4707_v7 = vmul.f32 %v7649_v24, %v9521_v27 }
 0xf34   :  { %7650 = vrcp.f32 %v4622_v4 }
 0xf35   :  { %7652 = vpow2.f32 %v4582_v0  ;;  %v4731_v11 = vpack.c.bf16 %v4707_v7, %v4707_v7 }
 0xf37   :  { %v4822_v14 = vunpack.c.l.b16 %v4731_v11 }
 0xf3a   :  { %v7651_v20 = vpop.eup %7650 }
 0xf3b   :  { %v4708_v44 = vmul.f32 %v7651_v20, %v9527_v30  ;;  %v4616_v16 = vpop.xlane.xlu0 %4615  ;;  %v9607_v56 = vpop.eup %7652 }
 0xf3c   :  { %v4625_v51 = vpop.xlane.xlu2 %4624  ;;  %7654 = vrcp.f32 %v4616_v16  ;;  %v4641_v21 = vsel %vm1660_vm10, %v9607_v56, 0.0 }
 0xf3d   :  { %v4732_v12 = vpack.c.bf16 %v4708_v44, %v4708_v44  ;;  %7656 = vrcp.f32 %v4625_v51 }
 0xf3e   :  { %7658 = vpow2.f32 %v4602_v35 }
 0xf3f   :  { %v4823_v52 = vunpack.c.l.b16 %v4732_v12 }
 0xf41   :  { %v4825_v40 = vpack.c.b16 %v4823_v52, %v4822_v14 }
 0xf42   :  { %v7655_v27 = vpop.eup %7654 }
 0xf43   :  { %v7657_v59 = vpop.eup %7656  ;;  %v4706_v6 = vmul.f32 %v7655_v27, %v9531_v9  ;;  %6749 = vmatmul.msk.bf16.vlgmr.msrb.gmra.mxu1 %vm1660_vm10, %v4825_v40  ;;  %v4520_v30 = vpop.xlane.xlu0 %4519 }
 0xf44   :  { %v4523_v38 = vpop.xlane.xlu2 %4522  ;;  %v4554_v58 = vsub.f32 %v9541_v63, %v4520_v30  ;;  %v4709_v36 = vmul.f32 %v7657_v59, %v9533_v31  ;;  %v9618_v1 = vpop.eup %7658 }
 0xf45   :  { %v4730_v42 = vpack.c.bf16 %v4706_v6, %v4706_v6  ;;  %v4555_v5 = vsub.f32 %v9544_v33, %v4523_v38  ;;  %v4671_v13 = vsel %vm1660_vm10, %v9618_v1, 0.0 }
 0xf46   :  { %v4596_v18 = vmul.f32 1.442695, %v4554_v58  ;;  %4642 = vadd.xlane.f32.xlu1 %v4641_v21  ;;  %v4733_v34 = vpack.c.bf16 %v4709_v36, %v4709_v36  ;;  %v9646_v36 = vmul.f32 0.25, %v9470_v57 }
 0xf47   :  { %4052 = vrot.lane.b32.xlu0 %v9313_v43, %s7767_s7  ;;  %v4781_v9 = vunpack.c.l.b16 %v4730_v42  ;;  %v4598_v45 = vmul.f32 1.442695, %v4555_v5 }
 0xf48   :  { %7660 = vpow2.f32 %v4596_v18  ;;  %v4824_v50 = vunpack.c.l.b16 %v4733_v34  ;;  %v4506_v34 = vsel %vm1660_vm10, %v9646_v36, -inf }
 0xf49   :  { %v4783_v47 = vpack.c.b16 %v4781_v9, %v4781_v9  ;;  %7662 = vpow2.f32 %v4598_v45 }
 0xf4a   :  { %v4826_v24 = vpack.c.b16 %v4824_v50, %v4824_v50 }
 0xf4b   :  { %6748 = vmatmul.msk.bf16.gmra.mxu2 %vm1660_vm10, %v4783_v47  ;;  %v4532_v31 = vpop.xlane.xlu0 %4531 }
 0xf4c   :  { %v4646_v63 = vpop.xlane.xlu2 %4645  ;;  %v4558_v33 = vsub.f32 %v9552_v28, %v4532_v31 }
 0xf4e   :  { %v9624_v29 = vpop.eup %7660  ;;  %v4604_v26 = vmul.f32 1.442695, %v4558_v33  ;;  %4672 = vadd.xlane.f32.xlu1 %v4671_v13 }
 0xf4f   :  { %v4662_v4 = vsel %vm1660_vm10, %v9624_v29, 0.0  ;;  %v9628_v0 = vpop.eup %7662 }
 0xf50   :  { %7664 = vpow2.f32 %v4604_v26  ;;  %4663 = vadd.xlane.f32.xlu2 %v4662_v4  ;;  %v4665_v53 = vsel %vm1660_vm10, %v9628_v0, 0.0 }
 0xf53   :  { %6750 = vmatmul.msk.bf16.gmra.mxu1 %vm1660_vm10, %v4826_v24  ;;  %v4628_v7 = vpop.xlane.xlu0 %4627 }
 0xf54   :  { %v4631_v28 = vpop.xlane.xlu2 %4630  ;;  %7666 = vrcp.f32 %v4628_v7 }
 0xf55   :  { %7668 = vrcp.f32 %v4631_v28 }
 0xf56   :  { %v9633_v20 = vpop.eup %7664  ;;  %4666 = vadd.xlane.f32.xlu1 %v4665_v53  ;;  %7670 = vrcp.f32 %v4646_v63 }
 0xf57   :  { %v4674_v11 = vsel %vm1660_vm10, %v9633_v20, 0.0 }
 0xf58   :  { %4675 = vadd.xlane.f32.xlu2 %v4674_v11 }
 0xf5a   :  { %v7667_v44 = vpop.eup %7666 }
 0xf5b   :  { %v7669_v16 = vpop.eup %7668  ;;  %v4710_v25 = vmul.f32 %v7667_v44, %v9560_v22 }
 0xf5c   :  { %v4711_v51 = vmul.f32 %v7669_v16, %v9562_v41  ;;  %v7671_v22 = vpop.eup %7670 }
 0xf5d   :  { %v4734_v12 = vpack.c.bf16 %v4710_v25, %v4710_v25  ;;  %v4716_v38 = vmul.f32 %v7671_v22, %v9554_v8 }
 0xf5e   :  { %v4735_v14 = vpack.c.bf16 %v4711_v51, %v4711_v51 }
 0xf5f   :  { %v4865_v52 = vunpack.c.l.b16 %v4734_v12  ;;  %v4740_v5 = vpack.c.bf16 %v4716_v38, %v4716_v38 }
 0xf60   :  { %v4866_v35 = vunpack.c.l.b16 %v4735_v14 }
 0xf61   :  { %v4951_v8 = vunpack.c.l.b16 %v4740_v5 }
 0xf62   :  { %v4868_v40 = vpack.c.b16 %v4866_v35, %v4865_v52 }
 0xf64   :  { %6751 = vmatmul.msk.bf16.vlgmr.msrb.gmra.mxu3 %vm1660_vm10, %v4868_v40 }
 0xf6f   :  { %4070 = vrot.lane.b32.xlu1 %v9313_v43, %s7768_s8 }
 0xf70   :  { %7396 = vrot.lane.b32.xlu2 %v9265_v17, %s7768_s8  ;;  %s9833_s8 = sld [smem:[%s9974_s0 + %s7783_s5]]  }
 0xf76   :  { %v4637_v27 = vpop.xlane.xlu1 %4636 }
 0xf8e   :  { %v7392_v59 = vpop.permute.xlu1 %7391  ;;  %v4649_v6 = vpop.xlane.xlu0 %4648 }
 0xf8f   :  { %v7393_v30 = vunpack.i.l.bf16 %v7392_v59  ;;  %7672 = vrcp.f32 %v4649_v6  ;;  %v4658_v44 = vpop.xlane.xlu2 %4657  ;;  %v7394_v51 = vunpack.i.h.bf16 %v7392_v59 }
 0xf90   :  { %7674 = vrcp.f32 %v4637_v27 }
 0xf91   :  { %v4769_v41 = vpack.c.bf16 %v7393_v30, %v7393_v30  ;;  %v4767_v52 = vpack.c.bf16 %v7394_v51, %v7394_v51 }
 0xf93   :  { %v5004_v58 = vunpack.c.l.b16 %v4769_v41  ;;  %v5002_v30 = vunpack.c.l.b16 %v4767_v52 }
 0xf95   :  { %v7673_v42 = vpop.eup %7672  ;;  %v5006_v43 = vpack.c.b16 %v5004_v58, %v5004_v58 }
 0xf96   :  { %v4717_v17 = vmul.f32 %v7673_v42, %v9576_v23  ;;  %v4640_v21 = vpop.xlane.xlu0 %4639  ;;  %v7675_v18 = vpop.eup %7674 }
 0xf97   :  { %7676 = vrcp.f32 %v4640_v21  ;;  %v5015_v9 = vsel %vm1996_vm9, %v5006_v43, 0  ;;  %v4713_v57 = vmul.f32 %v7675_v18, %v9569_v39 }
 0xf98   :  { %v4741_v45 = vpack.c.bf16 %v4717_v17, %v4717_v17  ;;  %5023 = vmatpush.bf16.msra.mxu1 %v5015_v9 }
 0xf99   :  { %4507 = vmax.xlane.f32.xlu2 %v4506_v34  ;;  %v4737_v33 = vpack.c.bf16 %v4713_v57, %v4713_v57 }
 0xf9a   :  { %v4952_v47 = vunpack.c.l.b16 %v4741_v45 }
 0xf9b   :  { %v4908_v26 = vunpack.c.l.b16 %v4737_v33 }
 0xf9c   :  { %v4954_v31 = vpack.c.b16 %v4952_v47, %v4951_v8 }
 0xf9d   :  { %v7677_v63 = vpop.eup %7676 }
 0xf9e   :  { %v4714_v23 = vmul.f32 %v7677_v63, %v9587_v32  ;;  %6755 = vmatmul.msk.bf16.vlgmr.msra.gmra.mxu2 %vm1660_vm10, %v4954_v31  ;;  %v4634_v13 = vpop.xlane.xlu0 %4633 }
 0xf9f   :  { %7678 = vrcp.f32 %v4634_v13 }
 0xfa0   :  { %v4738_v50 = vpack.c.bf16 %v4714_v23, %v4714_v23 }
 0xfa2   :  { %v4909_v4 = vunpack.c.l.b16 %v4738_v50 }
 0xfa4   :  { %v4911_v24 = vpack.c.b16 %v4909_v4, %v4908_v26 }
 0xfa5   :  { %v7679_v7 = vpop.eup %7678 }
 0xfa6   :  { %v4712_v28 = vmul.f32 %v7679_v7, %v9594_v62  ;;  %6753 = vmatmul.msk.bf16.vlgmr.msrb.gmra.mxu0 %vm1660_vm10, %v4911_v24  ;;  %v4655_v53 = vpop.xlane.xlu0 %4654 }
 0xfa7   :  { %7680 = vrcp.f32 %v4655_v53 }
 0xfa8   :  { %v4736_v39 = vpack.c.bf16 %v4712_v28, %v4712_v28  ;;  %7682 = vrcp.f32 %v4658_v44 }
 0xfaa   :  { %v4867_v11 = vunpack.c.l.b16 %v4736_v39 }
 0xfac   :  { %v4869_v16 = vpack.c.b16 %v4867_v11, %v4867_v11 }
 0xfad   :  { %v7681_v32 = vpop.eup %7680 }
 0xfae   :  { %6752 = vmatmul.msk.bf16.gmra.mxu3 %vm1660_vm10, %v4869_v16  ;;  %v7683_v25 = vpop.eup %7682  ;;  %v4719_v12 = vmul.f32 %v7681_v32, %v9599_v3 }
 0xfaf   :  { %v4720_v14 = vmul.f32 %v7683_v25, %v9579_v49 }
 0xfb0   :  { %v4743_v35 = vpack.c.bf16 %v4719_v12, %v4719_v12 }
 0xfb1   :  { %v4744_v6 = vpack.c.bf16 %v4720_v14, %v4720_v14  ;;  %v9660_v22 = vpop.f32.mrf.mxu2 }
 0xfb2   :  { %v4994_v38 = vunpack.c.l.b16 %v4743_v35 }
 0xfb3   :  { %v4995_v43 = vunpack.c.l.b16 %v4744_v6 }
 0xfb5   :  { %v4997_v5 = vpack.c.b16 %v4995_v43, %v4994_v38 }
 0xfb9   :  { %v4643_v62 = vpop.xlane.xlu1 %4642  ;;  %v4053_v40 = vpop.permute.xlu0 %4052 }
 0xfba   :  { %7684 = vrcp.f32 %v4643_v62  ;;  %v4768_v27 = vpack.c.bf16 %v4053_v40, %v4053_v40  ;;  %v9666_v9 = vpop.f32.mrf.mxu2 }
 0xfbc   :  { %v5003_v41 = vunpack.c.l.b16 %v4768_v27 }
 0xfbe   :  { %v5005_v58 = vpack.c.b16 %v5003_v41, %v5002_v30 }
 0xfc0   :  { %v7685_v42 = vpop.eup %7684  ;;  %v9662_v59 = vpop.f32.mrf.mxu1  ;;  %5024 = vmatpush.bf16.msra.mxu1 %v5005_v58 }
 0xfc1   :  { %v4715_v3 = vmul.f32 %v7685_v42, %v9607_v56  ;;  %v4673_v49 = vpop.xlane.xlu1 %4672 }
 0xfc3   :  { %v4739_v17 = vpack.c.bf16 %v4715_v3, %v4715_v3  ;;  %v4664_v21 = vpop.xlane.xlu2 %4663  ;;  %6757 = vmatmul.msk.bf16.vlgmr.msra.gmra.mxu1 %vm1660_vm10, %v4997_v5 }
 0xfc4   :  { %7686 = vrcp.f32 %v4664_v21  ;;  %v9682_v21 = vmul.f32 0.25, %v9474_v10 }
 0xfc5   :  { %v4910_v18 = vunpack.c.l.b16 %v4739_v17 }
 0xfc7   :  { %v4912_v45 = vpack.c.b16 %v4910_v18, %v4910_v18  ;;  %v4524_v18 = vsel %vm1660_vm10, %v9682_v21, -inf }
 0xfc8   :  { %v9668_v34 = vpop.f32.mrf.mxu1 }
 0xfc9   :  { %v4667_v8 = vpop.xlane.xlu1 %4666  ;;  %6754 = vmatmul.msk.bf16.gmra.mxu0 %vm1660_vm10, %v4912_v45 }
 0xfca   :  { %v7687_v57 = vpop.eup %7686  ;;  %7688 = vrcp.f32 %v4667_v8 }
 0xfcb   :  { %v4676_v56 = vpop.xlane.xlu2 %4675  ;;  %v4722_v47 = vmul.f32 %v7687_v57, %v9624_v29 }
 0xfcc   :  { %7690 = vrcp.f32 %v4676_v56 }
 0xfcd   :  { %v4746_v23 = vpack.c.bf16 %v4722_v47, %v4722_v47  ;;  %7692 = vrcp.f32 %v4673_v49 }
 0xfce   :  { %v4816_v31 = vpop.f32.mrf.mxu2 }
 0xfcf   :  { %v5037_v24 = vunpack.c.l.b16 %v4746_v23 }
 0xfd0   :  { %v7689_v63 = vpop.eup %7688  ;;  %v4859_v33 = vpop.f32.mrf.mxu1 }
 0xfd1   :  { %v4723_v13 = vmul.f32 %v7689_v63, %v9628_v0 }
 0xfd2   :  { %v7691_v29 = vpop.eup %7690 }
 0xfd3   :  { %v4747_v50 = vpack.c.bf16 %v4723_v13, %v4723_v13  ;;  %v7397_v26 = vpop.permute.xlu2 %7396  ;;  %v7693_v32 = vpop.eup %7692  ;;  %v4726_v51 = vmul.f32 %v7691_v29, %v9633_v20  ;;  %v7116_v29 = vld [vmem:[%s8641_s15 + $0x30] sm:$0xff] }
 0xfd4   :  { %v7398_v4 = vunpack.i.l.bf16 %v7397_v26  ;;  %v7399_v25 = vunpack.i.h.bf16 %v7397_v26  ;;  %v4725_v12 = vmul.f32 %v7693_v32, %v9618_v1 }
 0xfd5   :  { %v5038_v7 = vunpack.c.l.b16 %v4747_v50  ;;  %v4750_v52 = vpack.c.bf16 %v4726_v51, %v4726_v51 }
 0xfd6   :  { %v4775_v28 = vpack.c.bf16 %v7398_v4, %v7398_v4  ;;  %v4817_v39 = vpop.f32.mrf.mxu2  ;;  %v4773_v14 = vpack.c.bf16 %v7399_v25, %v7399_v25  ;;  %v4749_v40 = vpack.c.bf16 %v4725_v12, %v4725_v12 }
 0xfd7   :  { %v5040_v53 = vpack.c.b16 %v5038_v7, %v5037_v24  ;;  %v5081_v30 = vunpack.c.l.b16 %v4750_v52  ;;  %v7114_v52 = vld [vmem:[%s8641_s15 + $0x20] sm:$0xff] }
 0xfd8   :  { %v5090_v11 = vunpack.c.l.b16 %v4775_v28  ;;  %v4860_v44 = vpop.f32.mrf.mxu1  ;;  %v5088_v27 = vunpack.c.l.b16 %v4773_v14  ;;  %v5080_v38 = vunpack.c.l.b16 %v4749_v40  ;;  %v9691_v28 = vmul.f32 0.25, %v9503_v2  ;;  %v7115_v2 = vld [vmem:[%s8641_s15 + $0x28] sm:$0xff] }
 0xfd9   :  { %6759 = vmatmul.msk.bf16.vlgmr.msra.gmra.mxu3 %vm1660_vm10, %v5040_v53  ;;  %v7117_v44 = vld [vmem:[%s8641_s15 + $0x38] sm:$0xff] }
 0xfda   :  { %v5092_v16 = vpack.c.b16 %v5090_v11, %v5090_v11  ;;  %v5083_v42 = vpack.c.b16 %v5081_v30, %v5080_v38  ;;  %v4515_v53 = vsel %vm1660_vm10, %v9691_v28, -inf  ;;  %5230 = vmatpush.bf16.msrb.mxu2 %v7117_v44 }
 0xfdc   :  { %v5101_v0 = vsel %vm1996_vm9, %v5092_v16, 0  ;;  %v5245_v16 = vperm.slane %v9053_v55, 0 }
 0xfdd   :  { %5109 = vmatpush.bf16.msra.mxu0 %v5101_v0 }
 0xfde   :  { %5231 = vmatpush.bf16.msrb.mxu2 %v7116_v29  ;;  %v3587_v29 = vrot.slane %v9053_v55, 1 }
 0xfe1   :  { %v4071_v62 = vpop.permute.xlu1 %4070 }
 0xfe2   :  { %v4774_v35 = vpack.c.bf16 %v4071_v62, %v4071_v62  ;;  %5232 = vmatpush.bf16.msrb.mxu2 %v7115_v2 }
 0xfe4   :  { %v5089_v6 = vunpack.c.l.b16 %v4774_v35 }
 0xfe6   :  { %v5091_v41 = vpack.c.b16 %v5089_v6, %v5088_v27  ;;  %5233 = vmatpush.bf16.msrb.mxu2 %v7114_v52 }
 0xfe7   :  { %v4897_v58 = vpop.f32.mrf.mxu3 }
 0xfe8   :  { %5110 = vmatpush.bf16.msra.mxu0 %v5091_v41 }
 0xfeb   :  { %6761 = vmatmul.msk.bf16.vlgmr.msra.gmra.mxu0 %vm1660_vm10, %v5083_v42 }
 0xfef   :  { %v4899_v43 = vpop.f32.mrf.mxu3 }
 0xff0   :  { %v7400_v20 = vpack.i.bf16 %v4899_v43, %v4897_v58 }
 0xff2   :  { %7401 = vrot.lane.b32.xlu0 %v7400_v20, %s7755_s25 }
0x100c   :  { %v4508_v1 = vpop.xlane.xlu2 %4507 }
0x100d   :  { %v4550_v3 = vsub.f32 %v9646_v36, %v4508_v1 }
0x100f   :  { %v4588_v49 = vmul.f32 1.442695, %v4550_v3 }
0x1011   :  { %7694 = vpow2.f32 %v4588_v49 }
0x1017   :  { %v7695_v5 = vpop.eup %7694 }
0x1018   :  { %v4650_v17 = vsel %vm1660_vm10, %v7695_v5, 0.0 }
0x1019   :  { %4651 = vadd.xlane.f32.xlu1 %v4650_v17 }
0x1021   :  { %4525 = vmax.xlane.f32.xlu1 %v4524_v18  ;;  %v4983_v45 = vpop.f32.mrf.mxu2 }
0x1023   :  { %v4940_v36 = vpop.f32.mrf.mxu0 }
0x1029   :  { %v4985_v8 = vpop.f32.mrf.mxu2 }
0x102a   :  { %v7405_v57 = vpack.i.bf16 %v4985_v8, %v4983_v45 }
0x102b   :  { %v4942_v31 = vpop.f32.mrf.mxu0 }
0x102c   :  { %7406 = vrot.lane.b32.xlu0 %v7405_v57, %s7769_s10  ;;  %v7415_v7 = vpack.i.bf16 %v4942_v31, %v4940_v36 }
0x1031   :  { %v4902_v56 = vpop.f32.mrf.mxu3 }
0x1039   :  { %v4903_v47 = vpop.f32.mrf.mxu3 }
0x1040   :  { %v5026_v63 = vpop.f32.mrf.mxu1 }
0x1046   :  { %v4945_v33 = vpop.f32.mrf.mxu0 }
0x1048   :  { %v5028_v23 = vpop.f32.mrf.mxu1 }
0x1049   :  { %v7420_v13 = vpack.i.bf16 %v5028_v23, %v5026_v63 }
0x104b   :  { %7421 = vrot.lane.b32.xlu2 %v7420_v13, %s7769_s10  ;;  %s7784_s10 = smov 38  }
0x104e   :  { %v4946_v10 = vpop.f32.mrf.mxu0 }
0x105c   :  { %v5069_v50 = vpop.f32.mrf.mxu3 }
0x1064   :  { %v5071_v26 = vpop.f32.mrf.mxu3  ;;  %v7402_v62 = vpop.permute.xlu0 %7401 }
0x1065   :  { %v7410_v4 = vpack.i.bf16 %v5071_v26, %v5069_v50  ;;  %v7404_v40 = vunpack.i.h.bf16 %v7402_v62  ;;  %v7403_v27 = vunpack.i.l.bf16 %v7402_v62  ;;  %v7440_v26 = vld [vmem:[%s8646_s21 + $0x1] ss:$0 sm:$0xff]  ;;  %s9945_s21 = sld [smem:[%s9974_s0 + %s7784_s10]]  }
0x1067   :  { %7411 = vrot.lane.b32.xlu0 %v7410_v4, %s7770_s11  ;;  %v5169_v38 = vsel %vm1311_vm8, %v9666_v9, %v7404_v40  ;;  %v5168_v58 = vsel %vm1311_vm8, %v9660_v22, %v7403_v27 }
0x1068   :  { %v5112_v24 = vpop.f32.mrf.mxu0 }
0x106f   :  { %7416 = vrot.lane.b32.xlu0 %v7415_v7, %s7755_s25  ;;  %s7782_s25 = smov 35  }
0x1070   :  { %v5114_v39 = vpop.f32.mrf.mxu0  ;;  %s9807_s1 = sld [smem:[%s9974_s0 + %s7782_s25]]  }
0x1071   :  { %v7425_v11 = vpack.i.bf16 %v5114_v39, %v5112_v24 }
0x1074   :  { %4516 = vmax.xlane.f32.xlu2 %v4515_v53 }
0x1077   :  { %7426 = vrot.lane.b32.xlu0 %v7425_v11, %s7770_s11 }
0x108c   :  { %v4652_v32 = vpop.xlane.xlu1 %4651  ;;  %5357 = vrot.lane.b32.xlu2 %v5245_v16, %s7761_s18 }
0x108d   :  { %7696 = vrcp.f32 %v4652_v32 }
0x1093   :  { %v7697_v25 = vpop.eup %7696 }
0x1094   :  { %v4718_v0 = vmul.f32 %v7697_v25, %v7695_v5 }
0x1096   :  { %v4742_v51 = vpack.c.bf16 %v4718_v0, %v4718_v0  ;;  %v5246_v0 = vperm.slane %v3587_v29, 0 }
0x1098   :  { %v4953_v12 = vunpack.c.l.b16 %v4742_v51  ;;  %v4526_v51 = vpop.xlane.xlu1 %4525 }
0x1099   :  { %v4556_v52 = vsub.f32 %v9682_v21, %v4526_v51  ;;  %v6811_v51 = vld [vmem:[%s8784_s14 + $0x58] sm:$0xf0] }
0x109a   :  { %v4955_v14 = vpack.c.b16 %v4953_v12, %v4953_v12 }
0x109b   :  { %v4600_v62 = vmul.f32 1.442695, %v4556_v52  ;;  %v6809_v52 = vld [vmem:[%s8784_s14 + $0x50] sm:$0xf] }
0x109c   :  { %6756 = vmatmul.msk.bf16.gmra.mxu2 %vm1660_vm10, %v4955_v14 }
0x109d   :  { %7698 = vpow2.f32 %v4600_v62 }
0x109e   :  { %v7407_v35 = vpop.permute.xlu0 %7406 }
0x109f   :  { %v7409_v6 = vunpack.i.h.bf16 %v7407_v35  ;;  %v7408_v30 = vunpack.i.l.bf16 %v7407_v35 }
0x10a1   :  { %v5172_v20 = vsel %vm185_vm0, %v5168_v58, %v7408_v30  ;;  %v5173_v1 = vsel %vm185_vm0, %v5169_v38, %v7409_v6 }
0x10a5   :  { %v7422_v9 = vpop.permute.xlu2 %7421 }
0x10a6   :  { %v7424_v57 = vunpack.i.h.bf16 %v7422_v9  ;;  %v7423_v56 = vunpack.i.l.bf16 %v7422_v9 }
0x10d9   :  { %v7412_v41 = vpop.permute.xlu0 %7411 }
0x10da   :  { %v7414_v42 = vunpack.i.h.bf16 %v7412_v41  ;;  %v7413_v43 = vunpack.i.l.bf16 %v7412_v41 }
0x10dc   :  { %v5176_v3 = vsel %vm306_vm1, %v5172_v20, %v7413_v43  ;;  %v5177_v49 = vsel %vm306_vm1, %v5173_v1, %v7414_v42 }
0x10dd   :  { %v5191_v5 = vpack.c.bf16 %v5177_v49, %v5176_v3 }
0x10df   :  { %6788 = vmatmul.msk.bf16.vlgmr.msrb.gmra.mxu2 %vm259_vm4, %v5191_v5 }
0x10e1   :  { %v7417_v17 = vpop.permute.xlu0 %7416 }
0x10e2   :  { %v7419_v18 = vunpack.i.h.bf16 %v7417_v17  ;;  %v7418_v45 = vunpack.i.l.bf16 %v7417_v17 }
0x10e4   :  { %v5171_v22 = vsel %vm1311_vm8, %v9668_v34, %v7419_v18  ;;  %v5170_v8 = vsel %vm1311_vm8, %v9662_v59, %v7418_v45 }
0x10e5   :  { %v5174_v63 = vsel %vm185_vm0, %v5170_v8, %v7423_v56  ;;  %v5175_v33 = vsel %vm185_vm0, %v5171_v22, %v7424_v57 }
0x10e7   :  { %v4517_v21 = vpop.xlane.xlu2 %4516 }
0x10e8   :  { %v4553_v30 = vsub.f32 %v9691_v28, %v4517_v21  ;;  %v6801_v21 = vld [vmem:[%s8784_s14 + $0x40] sm:$0xf] }
0x10e9   :  { %v7427_v36 = vpop.permute.xlu0 %7426 }
0x10ea   :  { %v7429_v47 = vunpack.i.h.bf16 %v7427_v36  ;;  %v7428_v31 = vunpack.i.l.bf16 %v7427_v36  ;;  %v4594_v58 = vmul.f32 1.442695, %v4553_v30  ;;  %v7119_v30 = vld [vmem:[%s8784_s14 + $0x44] sm:$0xf0] }
0x10ec   :  { %v5179_v23 = vsel %vm306_vm1, %v5175_v33, %v7429_v47  ;;  %v5178_v13 = vsel %vm306_vm1, %v5174_v63, %v7428_v31  ;;  %7700 = vpow2.f32 %v4594_v58  ;;  %v9779_v33 = vmul.f32 0.25, %v9516_v37  ;;  %v6827_v37 = vld [vmem:[%s8784_s14 + $0x78] sm:$0xf0] }
0x10ed   :  { %v5192_v10 = vpack.c.bf16 %v5179_v23, %v5178_v13 }
0x10ee   :  { %v4533_v13 = vsel %vm1660_vm10, %v9779_v33, -inf }
0x10ef   :  { %6789 = vmatmul.msk.bf16.gmra.mxu2 %vm259_vm4, %v5192_v10 }
0x111f   :  { %v4988_v34 = vpop.f32.mrf.mxu2 }
0x1127   :  { %v4989_v50 = vpop.f32.mrf.mxu2 }
0x1162   :  { %v5235_v59 = vpop.f32.mrf.mxu2 }
0x1163   :  { %v5236_v4 = vadd.f32 %v7440_v26, %v5235_v59  ;;  %v7124_v59 = vld [vmem:[%s8784_s14 + $0x74] sm:$0xf] }
0x1165   :  { %v5249_v24 = vmul.f32 %v5245_v16, %v5236_v4  ;;  %v6830_v4 = vor.u32 %v7124_v59, %v6827_v37  ;;  %v5345_v59 = vadd.f32 1.0, %v9064_v46 }
0x1167   :  { %v9723_v7 = vadd.f32 %v5249_v24, %v9089_v54  ;;  %v6825_v24 = vld [vmem:[%s8784_s14 + $0x70] sm:$0xf]  ;;  %5454 = vmatpush.bf16.msrb.mxu3 %v6830_v4 }
0x1169   :  { %v5257_v39 = vsel %vm259_vm4, %v9723_v7, 0.0 }
0x116a   :  { %v5237_v53 = vpop.f32.mrf.mxu2  ;;  %5258 = vadd.xlane.f32.xlu0 %v5257_v39  ;;  %v7125_v39 = vld [vmem:[%s8784_s14 + $0x74] sm:$0xf0] }
0x116b   :  { %v5238_v11 = vadd.f32 %v7440_v26, %v5237_v53  ;;  %v6826_v53 = vor.u32 %v7125_v39, %v6825_v24  ;;  %v7144_v24 = vld [vmem:[%s9807_s1 + $0x10] sm:$0xff] }
0x116d   :  { %v5250_v44 = vmul.f32 %v5245_v16, %v5238_v11  ;;  %5435 = vmatpush.bf16.msrb.mxu1 %v6826_v53  ;;  %v7122_v11 = vld [vmem:[%s8784_s14 + $0x64] sm:$0xf] }
0x116f   :  { %v9729_v32 = vadd.f32 %v5250_v44, %v9094_v48  ;;  %v6819_v44 = vld [vmem:[%s8784_s14 + $0x68] sm:$0xf0] }
0x1170   :  { %v6822_v29 = vor.u32 %v7122_v11, %v6819_v44 }
0x1171   :  { %v5260_v2 = vsel %vm259_vm4, %v9729_v32, 0.0 }
0x1172   :  { %5261 = vadd.xlane.f32.xlu1 %v5260_v2  ;;  %v5240_v25 = vpop.f32.mrf.mxu2  ;;  %v6817_v2 = vld [vmem:[%s8784_s14 + $0x60] sm:$0xf]  ;;  %5455 = vmatpush.bf16.msrb.mxu3 %v6822_v29 }
0x1173   :  { %v5241_v54 = vadd.f32 %v7440_v26, %v5240_v25  ;;  %v7123_v25 = vld [vmem:[%s8784_s14 + $0x64] sm:$0xf0] }
0x1175   :  { %v5251_v12 = vmul.f32 %v5246_v0, %v5241_v54  ;;  %v7120_v54 = vld [vmem:[%s8784_s14 + $0x54] sm:$0xf] }
0x1177   :  { %v9734_v14 = vadd.f32 %v5251_v12, %v9101_v61  ;;  %v7699_v61 = vpop.eup %7698  ;;  %v6814_v12 = vor.u32 %v7120_v54, %v6811_v51 }
0x1178   :  { %v4668_v6 = vsel %vm1660_vm10, %v7699_v61, 0.0  ;;  %v9757_v28 = vpop.eup %7700 }
0x1179   :  { %v5263_v55 = vsel %vm259_vm4, %v9734_v14, 0.0  ;;  %v4659_v17 = vsel %vm1660_vm10, %v9757_v28, 0.0  ;;  %5456 = vmatpush.bf16.msrb.mxu3 %v6814_v12 }
0x117a   :  { %v5242_v16 = vpop.f32.mrf.mxu2  ;;  %5264 = vadd.xlane.f32.xlu1 %v5263_v55  ;;  %v7121_v55 = vld [vmem:[%s8784_s14 + $0x54] sm:$0xf0] }
0x117b   :  { %v5243_v48 = vadd.f32 %v7440_v26, %v5242_v16 }
0x117d   :  { %v5252_v35 = vmul.f32 %v5246_v0, %v5243_v48  ;;  %v6810_v48 = vor.u32 %v7121_v55, %v6809_v52  ;;  %v7143_v55 = vld [vmem:[%s9807_s1 + $0x8] sm:$0xff] }
0x117f   :  { %v9740_v40 = vadd.f32 %v5252_v35, %v9108_v60  ;;  %v7118_v35 = vld [vmem:[%s8784_s14 + $0x44] sm:$0xf] }
0x1181   :  { %v5266_v27 = vsel %vm259_vm4, %v9740_v40, 0.0 }
0x1182   :  { %5267 = vadd.xlane.f32.xlu1 %v5266_v27  ;;  %v6803_v27 = vld [vmem:[%s8784_s14 + $0x48] sm:$0xf0]  ;;  %s7785_s14 = smov 37  }
0x1183   :  { %s6032_s12 = sld [smem:[%s9974_s0 + %s7785_s14]]  }
0x118a   :  { %4669 = vadd.xlane.f32.xlu1 %v4668_v6  ;;  %v6806_v6 = vor.u32 %v7118_v35, %v6803_v27  ;;  %v7142_v35 = vld [vmem:[%s9807_s1] sm:$0xff] }
0x118c   :  { %5457 = vmatpush.bf16.msrb.mxu3 %v6806_v6 }
0x11dd   :  { %v5259_v41 = vpop.xlane.xlu0 %5258 }
0x11de   :  { %v5269_v38 = vmul.f32 %v5259_v41, %v7875_v19  ;;  %v6802_v41 = vor.u32 %v7119_v30, %v6801_v21 }
0x11e0   :  { %v9748_v42 = vsub.f32 %v9723_v7, %v5269_v38 }
0x11e2   :  { %v5277_v60 = vmul.f32 %v9748_v42, %v9748_v42 }
0x11e4   :  { %v5281_v43 = vsel %vm259_vm4, %v5277_v60, 0.0 }
0x11e5   :  { %v5262_v20 = vpop.xlane.xlu1 %5261  ;;  %5282 = vadd.xlane.f32.xlu1 %v5281_v43 }
0x11e6   :  { %v5270_v1 = vmul.f32 %v5262_v20, %v7875_v19 }
0x11e8   :  { %v9755_v3 = vsub.f32 %v9729_v32, %v5270_v1 }
0x11ea   :  { %v5278_v49 = vmul.f32 %v9755_v3, %v9755_v3 }
0x11ec   :  { %v5284_v5 = vsel %vm259_vm4, %v5278_v49, 0.0 }
0x11ed   :  { %5285 = vadd.xlane.f32.xlu0 %v5284_v5  ;;  %4660 = vadd.xlane.f32.xlu1 %v4659_v17  ;;  %v5265_v18 = vpop.xlane.xlu1 %5264 }
0x11ee   :  { %v5271_v45 = vmul.f32 %v5265_v18, %v7875_v19 }
0x11f0   :  { %v9766_v9 = vsub.f32 %v9734_v14, %v5271_v45 }
0x11f2   :  { %v5279_v22 = vmul.f32 %v9766_v9, %v9766_v9 }
0x11f4   :  { %v5287_v8 = vsel %vm259_vm4, %v5279_v22, 0.0 }
0x11f5   :  { %5288 = vadd.xlane.f32.xlu0 %v5287_v8  ;;  %v5268_v57 = vpop.xlane.xlu1 %5267 }
0x11f6   :  { %v5272_v56 = vmul.f32 %v5268_v57, %v7875_v19 }
0x11f8   :  { %v9773_v36 = vsub.f32 %v9740_v40, %v5272_v56 }
0x11fa   :  { %v5280_v47 = vmul.f32 %v9773_v36, %v9773_v36 }
0x11fc   :  { %v5290_v31 = vsel %vm259_vm4, %v5280_v47, 0.0 }
0x11fd   :  { %5291 = vadd.xlane.f32.xlu1 %v5290_v31  ;;  %v4670_v63 = vpop.xlane.xlu1 %4669 }
0x11fe   :  { %7702 = vrcp.f32 %v4670_v63 }
0x1204   :  { %v7703_v23 = vpop.eup %7702 }
0x1205   :  { %v4724_v10 = vmul.f32 %v7703_v23, %v7699_v61  ;;  %4534 = vmax.xlane.f32.xlu1 %v4533_v13 }
0x1207   :  { %v4748_v34 = vpack.c.bf16 %v4724_v10, %v4724_v10 }
0x1209   :  { %5359 = vrot.lane.b32.xlu0 %v5246_v0, %s7761_s18  ;;  %v5039_v50 = vunpack.c.l.b16 %v4748_v34  ;;  %v6818_v0 = vor.u32 %v7123_v25, %v6817_v2  ;;  %v5349_v2 = vperm.slane %v5345_v59, 0  ;;  %v7139_v59 = vld [vmem:[%s8933_s29 + $0xe8] sm:$0xff] }
0x120b   :  { %v5041_v26 = vpack.c.b16 %v5039_v50, %v5039_v50  ;;  %5436 = vmatpush.bf16.msrb.mxu1 %v6818_v0 }
0x120d   :  { %6760 = vmatmul.msk.bf16.gmra.mxu3 %vm1660_vm10, %v5041_v26  ;;  %v7145_v26 = vld [vmem:[%s9807_s1 + $0x18] sm:$0xff] }
0x120f   :  { %5437 = vmatpush.bf16.msrb.mxu1 %v6810_v48  ;;  %v5358_v48 = vpop.permute.xlu2 %5357 }
0x1213   :  { %5438 = vmatpush.bf16.msrb.mxu1 %v6802_v41 }
0x1217   :  { %5801 = vmatpush.bf16.msra.mxu1 %v7145_v26  ;;  %v7130_v26 = vld [vmem:[%s8933_s29 + $0xa0] sm:$0xff] }
0x121b   :  { %5802 = vmatpush.bf16.msra.mxu1 %v7144_v24  ;;  %v7128_v24 = vld [vmem:[%s8933_s29 + $0x90] sm:$0xff] }
0x121f   :  { %5803 = vmatpush.bf16.msra.mxu1 %v7143_v55 }
0x1223   :  { %5804 = vmatpush.bf16.msra.mxu1 %v7142_v35  ;;  %v7134_v35 = vld [vmem:[%s8933_s29 + $0xc0] sm:$0xff] }
0x1258   :  { %v5283_v16 = vpop.xlane.xlu1 %5282 }
0x1259   :  { %v5293_v62 = vmul.f32 %v5283_v16, %v7875_v19 }
0x125b   :  { %v5297_v61 = vadd.f32 1e-06, %v5293_v62 }
0x125d   :  { %7704 = vrsqrt.f32 %v5297_v61  ;;  %vm5307_vm1 = vweird.f32 %v5297_v61 }
0x1260   :  { %v5286_v38 = vpop.xlane.xlu0 %5285  ;;  %v4661_v58 = vpop.xlane.xlu1 %4660 }
0x1261   :  { %v5294_v60 = vmul.f32 %v5286_v38, %v7875_v19  ;;  %7706 = vrcp.f32 %v4661_v58  ;;  %v3589_v38 = vrot.slane %v9064_v46, 1 }
0x1263   :  { %v7705_v43 = vpop.eup %7704  ;;  %v5298_v20 = vadd.f32 1e-06, %v5294_v60 }
0x1264   :  { %v5302_v1 = vmul.f32 %v7705_v43, %v5297_v61  ;;  %vm5308_vm0 = vweird.f32 %v7705_v43 }
0x1265   :  { %7708 = vrsqrt.f32 %v5298_v20  ;;  %vm5309_vm9 = vmor %vm5307_vm1, %vm5308_vm0  ;;  %vm5317_vm5 = vweird.f32 %v5298_v20 }
0x1266   :  { %v5303_v49 = vmul.f32 %v7705_v43, %v5302_v1 }
0x1267   :  { %v7707_v5 = vpop.eup %7706 }
0x1268   :  { %v5304_v17 = vmul.f32 0.5, %v5303_v49  ;;  %v4721_v18 = vmul.f32 %v7707_v5, %v9757_v28  ;;  %v5289_v45 = vpop.xlane.xlu0 %5288 }
0x1269   :  { %v5295_v22 = vmul.f32 %v5289_v45, %v7875_v19 }
0x126a   :  { %v5305_v8 = vsub.f32 1.5, %v5304_v17  ;;  %v4745_v57 = vpack.c.bf16 %v4721_v18, %v4721_v18 }
0x126b   :  { %v7709_v56 = vpop.eup %7708  ;;  %v5299_v47 = vadd.f32 1e-06, %v5295_v22 }
0x126c   :  { %v5306_v31 = vmul.f32 %v7705_v43, %v5305_v8  ;;  %v5312_v63 = vmul.f32 %v7709_v56, %v5298_v20  ;;  %v4996_v23 = vunpack.c.l.b16 %v4745_v57  ;;  %vm5318_vm3 = vweird.f32 %v7709_v56 }
0x126d   :  { %7710 = vrsqrt.f32 %v5299_v47  ;;  %vm5319_vm6 = vmor %vm5317_vm5, %vm5318_vm3  ;;  %vm5327_vm11 = vweird.f32 %v5299_v47 }
0x126e   :  { %v5313_v28 = vmul.f32 %v7709_v56, %v5312_v63  ;;  %v4998_v13 = vpack.c.b16 %v4996_v23, %v4996_v23  ;;  %v5310_v10 = vsel %vm5309_vm9, %v7705_v43, %v5306_v31  ;;  %v5346_v43 = vadd.f32 1.0, %v3589_v38  ;;  %v7133_v23 = vld [vmem:[%s8933_s29 + $0xb8] sm:$0xff] }
0x126f   :  { %v5341_v53 = vmul.f32 %v5310_v10, %v9748_v42  ;;  %5679 = vmatpush.bf16.msrb.mxu0 %v7133_v23  ;;  %v7131_v10 = vld [vmem:[%s8933_s29 + $0xa8] sm:$0xff] }
0x1270   :  { %v5314_v34 = vmul.f32 0.5, %v5313_v28  ;;  %6758 = vmatmul.msk.bf16.gmra.mxu1 %vm1660_vm10, %v4998_v13  ;;  %v5292_v50 = vpop.xlane.xlu1 %5291  ;;  %v5350_v18 = vperm.slane %v5346_v43, 0  ;;  %v7132_v28 = vld [vmem:[%s8933_s29 + $0xb0] sm:$0xff]  ;;  %v7141_v13 = vld [vmem:[%s8933_s29 + $0xf8] sm:$0xff] }
0x1271   :  { %v5296_v37 = vmul.f32 %v5292_v50, %v7875_v19  ;;  %v5353_v54 = vmul.f32 %v5349_v2, %v5341_v53  ;;  %5698 = vmatpush.bf16.msra.mxu2 %v7141_v13  ;;  %v6798_v53 = vld [vmem:[%s8952_s3 + $0x2] sm:$0x3] }
0x1272   :  { %v5315_v4 = vsub.f32 1.5, %v5314_v34  ;;  %v7140_v34 = vld [vmem:[%s8933_s29 + $0xf0] sm:$0xff] }
0x1273   :  { %v7711_v39 = vpop.eup %7710  ;;  %v5300_v11 = vadd.f32 1e-06, %v5296_v37  ;;  %v5363_v61 = vadd.f32 %v5358_v48, %v5353_v54  ;;  %5680 = vmatpush.bf16.msrb.mxu0 %v7132_v28  ;;  %v7138_v37 = vld [vmem:[%s8933_s29 + $0xe0] sm:$0xff] }
0x1274   :  { %v5316_v44 = vmul.f32 %v7709_v56, %v5315_v4  ;;  %v5322_v29 = vmul.f32 %v7711_v39, %v5299_v47  ;;  %vm5328_vm7 = vweird.f32 %v7711_v39 }
0x1275   :  { %7712 = vrsqrt.f32 %v5300_v11  ;;  %vm5329_vm12 = vmor %vm5327_vm11, %vm5328_vm7  ;;  %vm5337_vm14 = vweird.f32 %v5300_v11  ;;  %5699 = vmatpush.bf16.msra.mxu2 %v7140_v34 }
0x1276   :  { %v5320_v25 = vsel %vm5319_vm6, %v7709_v56, %v5316_v44  ;;  %v5323_v0 = vmul.f32 %v7711_v39, %v5322_v29  ;;  %v7127_v44 = vld [vmem:[%s8933_s29 + $0x88] sm:$0xff]  ;;  %v5381_v29 = vperm.slane %v6798_v53, 0 }
0x1277   :  { %v5342_v51 = vmul.f32 %v5320_v25, %v9755_v3  ;;  %5681 = vmatpush.bf16.msrb.mxu0 %v7131_v10 }
0x1278   :  { %v5324_v12 = vmul.f32 0.5, %v5323_v0  ;;  %v4535_v52 = vpop.xlane.xlu1 %4534  ;;  %v7126_v0 = vld [vmem:[%s8933_s29 + $0x80] sm:$0xff] }
0x1279   :  { %v5354_v16 = vmul.f32 %v5349_v2, %v5342_v51  ;;  %v4559_v42 = vsub.f32 %v9779_v33, %v4535_v52  ;;  %5700 = vmatpush.bf16.msra.mxu2 %v7139_v59  ;;  %v7136_v2 = vld [vmem:[%s8933_s29 + $0xd0] sm:$0xff]  ;;  %v7135_v51 = vld [vmem:[%s8933_s29 + $0xc8] sm:$0xff]  ;;  %v9855_v52 = vperm.slane %v6798_v53, 1 }
0x127a   :  { %v5325_v62 = vsub.f32 1.5, %v5324_v12 }
0x127b   :  { %v7713_v27 = vpop.eup %7712  ;;  %v5364_v6 = vadd.f32 %v5358_v48, %v5354_v16  ;;  %v4606_v21 = vmul.f32 1.442695, %v4559_v42  ;;  %v5360_v56 = vpop.permute.xlu0 %5359  ;;  %5682 = vmatpush.bf16.msrb.mxu0 %v7130_v26 }
0x127c   :  { %v5326_v30 = vmul.f32 %v7711_v39, %v5325_v62  ;;  %v5332_v41 = vmul.f32 %v7713_v27, %v5300_v11  ;;  %vm5338_vm13 = vweird.f32 %v7713_v27 }
0x127d   :  { %v5378_v3 = vpack.c.bf16 %v5364_v6, %v5363_v61  ;;  %7714 = vpow2.f32 %v4606_v21  ;;  %vm5339_vm15 = vmor %vm5337_vm14, %vm5338_vm13  ;;  %5701 = vmatpush.bf16.msra.mxu2 %v7138_v37 }
0x127e   :  { %v5333_v58 = vmul.f32 %v7713_v27, %v5332_v41  ;;  %v5330_v60 = vsel %vm5329_vm12, %v7711_v39, %v5326_v30  ;;  %v7137_v39 = vld [vmem:[%s8933_s29 + $0xd8] sm:$0xff] }
0x127f   :  { %6833 = vmatmul.msk.bf16.vlgmr.msrb.gmra.mxu3 %vm259_vm4, %v5378_v3  ;;  %v5343_v49 = vmul.f32 %v5330_v60, %v9766_v9 }
0x1280   :  { %v5334_v33 = vmul.f32 0.5, %v5333_v58  ;;  %6831 = vmatmul.msk.bf16.vlgmr.msrb.gmra.mxu1 %vm259_vm4, %v5378_v3 }
0x1281   :  { %v5355_v22 = vmul.f32 %v5350_v18, %v5343_v49  ;;  %5702 = vmatpush.bf16.msra.mxu2 %v7137_v39 }
0x1282   :  { %v5335_v20 = vsub.f32 1.5, %v5334_v33 }
0x1283   :  { %v7715_v1 = vpop.eup %7714  ;;  %v5365_v47 = vadd.f32 %v5360_v56, %v5355_v22 }
0x1284   :  { %v5336_v5 = vmul.f32 %v7713_v27, %v5335_v20  ;;  %v4677_v17 = vsel %vm1660_vm10, %v7715_v1, 0.0 }
0x1285   :  { %4678 = vadd.xlane.f32.xlu1 %v4677_v17  ;;  %5703 = vmatpush.bf16.msra.mxu2 %v7136_v2 }
0x1286   :  { %v5340_v45 = vsel %vm5339_vm15, %v7713_v27, %v5336_v5 }
0x1287   :  { %v5344_v8 = vmul.f32 %v5340_v45, %v9773_v36 }
0x1289   :  { %v5356_v57 = vmul.f32 %v5350_v18, %v5344_v8  ;;  %5704 = vmatpush.bf16.msra.mxu2 %v7135_v51 }
0x128b   :  { %v5366_v31 = vadd.f32 %v5360_v56, %v5356_v57 }
0x128d   :  { %v5379_v9 = vpack.c.bf16 %v5366_v31, %v5365_v47  ;;  %5705 = vmatpush.bf16.msra.mxu2 %v7134_v35 }
0x128f   :  { %6834 = vmatmul.msk.bf16.gmra.mxu3 %vm259_vm4, %v5379_v9 }
0x1290   :  { %v5074_v63 = vpop.f32.mrf.mxu3  ;;  %6832 = vmatmul.msk.bf16.gmra.mxu1 %vm259_vm4, %v5379_v9 }
0x1298   :  { %v5075_v36 = vpop.f32.mrf.mxu3 }
0x12a0   :  { %6948 = vmatmul.msk.bf16.vlgmr.msra.gmra.mxu1 %vm259_vm4, %v7965_v15  ;;  %v7129_v15 = vld [vmem:[%s8933_s29 + $0x98] sm:$0xff] }
0x12a1   :  { %5683 = vmatpush.bf16.msrb.mxu0 %v7129_v15 }
0x12a5   :  { %5684 = vmatpush.bf16.msrb.mxu0 %v7128_v24 }
0x12a9   :  { %5685 = vmatpush.bf16.msrb.mxu0 %v7127_v44 }
0x12ad   :  { %5686 = vmatpush.bf16.msrb.mxu0 %v7126_v0 }
0x12ed   :  { %v5031_v50 = vpop.f32.mrf.mxu1 }
0x12f5   :  { %v5032_v4 = vpop.f32.mrf.mxu1 }
0x12f8   :  { %v4679_v11 = vpop.xlane.xlu1 %4678 }
0x12f9   :  { %7716 = vrcp.f32 %v4679_v11 }
0x12fd   :  { %v5440_v25 = vpop.f32.mrf.mxu1 }
0x12fe   :  { %v9852_v54 = vadd.f32 %v5440_v25, %v5381_v29 }
0x12ff   :  { %v7717_v12 = vpop.eup %7716 }
0x1300   :  { %v4727_v55 = vmul.f32 %v7717_v12, %v7715_v1  ;;  %v5469_v16 = vmul.f32 %v9852_v54, %v9852_v54 }
0x1302   :  { %v4751_v42 = vpack.c.bf16 %v4727_v55, %v4727_v55  ;;  %v5477_v48 = vmul.f32 %v5469_v16, %v9852_v54  ;;  %v5459_v62 = vpop.f32.mrf.mxu3 }
0x1303   :  { %v9862_v27 = vadd.f32 %v5459_v62, %v9855_v52 }
0x1304   :  { %v5485_v61 = vmul.f32 0.044715, %v5477_v48  ;;  %v5082_v6 = vunpack.c.l.b16 %v4751_v42 }
0x1305   :  { %v5470_v21 = vmul.f32 %v9862_v27, %v9862_v27  ;;  %v5442_v30 = vpop.f32.mrf.mxu1 }
0x1306   :  { %v5493_v41 = vadd.f32 %v5485_v61, %v9852_v54  ;;  %v5443_v3 = vadd.f32 %v5442_v30, %v5381_v29  ;;  %v5084_v58 = vpack.c.b16 %v5082_v6, %v5082_v6 }
0x1307   :  { %v5478_v33 = vmul.f32 %v5470_v21, %v9862_v27 }
0x1308   :  { %v5501_v60 = vmul.f32 0.7978846, %v5493_v41  ;;  %v5471_v43 = vmul.f32 %v5443_v3, %v5443_v3  ;;  %6762 = vmatmul.msk.bf16.gmra.mxu0 %vm1660_vm10, %v5084_v58 }
0x1309   :  { %v5486_v20 = vmul.f32 0.044715, %v5478_v33 }
0x130a   :  { %v5479_v1 = vmul.f32 %v5471_v43, %v5443_v3  ;;  %v5461_v49 = vpop.f32.mrf.mxu3  ;;  %7718 = vtanh.f32 %v5501_v60 }
0x130b   :  { %v5494_v5 = vadd.f32 %v5486_v20, %v9862_v27  ;;  %v5462_v17 = vadd.f32 %v5461_v49, %v9855_v52 }
0x130c   :  { %v5487_v18 = vmul.f32 0.044715, %v5479_v1 }
0x130d   :  { %v5502_v45 = vmul.f32 0.7978846, %v5494_v5  ;;  %v5472_v22 = vmul.f32 %v5462_v17, %v5462_v17  ;;  %v5445_v8 = vpop.f32.mrf.mxu1 }
0x130e   :  { %v5495_v57 = vadd.f32 %v5487_v18, %v5443_v3  ;;  %v9871_v56 = vadd.f32 %v5445_v8, %v5381_v29 }
0x130f   :  { %v5480_v47 = vmul.f32 %v5472_v22, %v5462_v17  ;;  %7720 = vtanh.f32 %v5502_v45 }
0x1310   :  { %v5503_v31 = vmul.f32 0.7978846, %v5495_v57  ;;  %v5473_v9 = vmul.f32 %v9871_v56, %v9871_v56  ;;  %v7719_v36 = vpop.eup %7718 }
0x1311   :  { %v5488_v63 = vmul.f32 0.044715, %v5480_v47  ;;  %v5517_v50 = vadd.f32 1.0, %v7719_v36 }
0x1312   :  { %7722 = vtanh.f32 %v5503_v31  ;;  %v5481_v23 = vmul.f32 %v5473_v9, %v9871_v56  ;;  %v5464_v28 = vpop.f32.mrf.mxu3 }
0x1313   :  { %v5496_v13 = vadd.f32 %v5488_v63, %v5462_v17  ;;  %v9877_v10 = vadd.f32 %v5464_v28, %v9855_v52  ;;  %v5525_v2 = vmul.f32 0.5, %v5517_v50 }
0x1314   :  { %v5489_v34 = vmul.f32 0.044715, %v5481_v23 }
0x1315   :  { %v5504_v26 = vmul.f32 0.7978846, %v5496_v13  ;;  %v5474_v59 = vmul.f32 %v9877_v10, %v9877_v10  ;;  %v5447_v15 = vpop.f32.mrf.mxu1  ;;  %v7721_v24 = vpop.eup %7720  ;;  %v5533_v35 = vmul.f32 %v5525_v2, %v9852_v54 }
0x1316   :  { %v5497_v37 = vadd.f32 %v5489_v34, %v9871_v56  ;;  %v5448_v4 = vadd.f32 %v5447_v15, %v5381_v29  ;;  %v5518_v51 = vadd.f32 1.0, %v7721_v24 }
0x1317   :  { %7724 = vtanh.f32 %v5504_v26  ;;  %v5482_v39 = vmul.f32 %v5474_v59, %v9877_v10 }
0x1318   :  { %v7723_v53 = vpop.eup %7722  ;;  %v5505_v11 = vmul.f32 0.7978846, %v5497_v37  ;;  %v5475_v44 = vmul.f32 %v5448_v4, %v5448_v4  ;;  %v5526_v41 = vmul.f32 0.5, %v5518_v51 }
0x1319   :  { %v5519_v25 = vadd.f32 1.0, %v7723_v53  ;;  %v5490_v0 = vmul.f32 0.044715, %v5482_v39  ;;  %v7442_v53 = vld [vmem:[%s8981_s24 + $0x1] ss:$0 sm:$0xff] }
0x131a   :  { %v5483_v12 = vmul.f32 %v5475_v44, %v5448_v4  ;;  %v5466_v55 = vpop.f32.mrf.mxu3  ;;  %7726 = vtanh.f32 %v5505_v11  ;;  %v5534_v5 = vmul.f32 %v5526_v41, %v9862_v27 }
0x131b   :  { %v5527_v16 = vmul.f32 0.5, %v5519_v25  ;;  %v5498_v42 = vadd.f32 %v5490_v0, %v9877_v10  ;;  %v5467_v48 = vadd.f32 %v5466_v55, %v9855_v52 }
0x131c   :  { %v5491_v29 = vmul.f32 0.044715, %v5483_v12 }
0x131d   :  { %v7725_v62 = vpop.eup %7724  ;;  %v5535_v61 = vmul.f32 %v5527_v16, %v5443_v3  ;;  %v5506_v6 = vmul.f32 0.7978846, %v5498_v42  ;;  %v5476_v21 = vmul.f32 %v5467_v48, %v5467_v48  ;;  %v9886_v30 = vpop.f32.mrf.mxu1 }
0x131e   :  { %v5520_v58 = vadd.f32 1.0, %v7725_v62  ;;  %v5499_v33 = vadd.f32 %v5491_v29, %v5448_v4  ;;  %v5717_v62 = vperm.slane %v9064_v46, 0 }
0x131f   :  { %v5576_v60 = vpack.c.bf16 %v5535_v61, %v5533_v35  ;;  %v5484_v43 = vmul.f32 %v5476_v21, %v5467_v48  ;;  %7728 = vtanh.f32 %v5506_v6  ;;  %v5718_v6 = vperm.slane %v3589_v38, 0 }
0x1320   :  { %v5528_v20 = vmul.f32 0.5, %v5520_v58  ;;  %v5507_v1 = vmul.f32 0.7978846, %v5499_v33  ;;  %v7727_v52 = vpop.eup %7726 }
0x1321   :  { %v5492_v49 = vmul.f32 0.044715, %v5484_v43  ;;  %5687 = vmatmul.bf16.vlgmr.msrb.gmra.mxu0 %v5576_v60  ;;  %v5521_v8 = vadd.f32 1.0, %v7727_v52 }
0x1322   :  { %v5536_v18 = vmul.f32 %v5528_v20, %v5462_v17  ;;  %7730 = vtanh.f32 %v5507_v1 }
0x1323   :  { %v5500_v54 = vadd.f32 %v5492_v49, %v5467_v48  ;;  %v5529_v9 = vmul.f32 0.5, %v5521_v8 }
0x1324   :  { %v5577_v3 = vpack.c.bf16 %v5536_v18, %v5534_v5 }
0x1325   :  { %v5508_v45 = vmul.f32 0.7978846, %v5500_v54  ;;  %v5808_v22 = vpop.f32.mrf.mxu1  ;;  %v7729_v57 = vpop.eup %7728  ;;  %v5537_v28 = vmul.f32 %v5529_v9, %v9871_v56 }
0x1326   :  { %5706 = vmatmul.bf16.vlgmr.msra.gmra.mxu2 %v5577_v3  ;;  %v5522_v63 = vadd.f32 1.0, %v7729_v57 }
0x1327   :  { %7732 = vtanh.f32 %v5508_v45 }
0x1328   :  { %v7731_v47 = vpop.eup %7730  ;;  %v5530_v13 = vmul.f32 0.5, %v5522_v63 }
0x1329   :  { %v5523_v31 = vadd.f32 1.0, %v7731_v47 }
0x132a   :  { %v5538_v26 = vmul.f32 %v5530_v13, %v9877_v10 }
0x132b   :  { %v5531_v36 = vmul.f32 0.5, %v5523_v31 }
0x132d   :  { %v7733_v23 = vpop.eup %7732  ;;  %v5539_v27 = vmul.f32 %v5531_v36, %v5448_v4 }
0x132e   :  { %v5524_v17 = vadd.f32 1.0, %v7733_v23 }
0x132f   :  { %v5578_v34 = vpack.c.bf16 %v5539_v27, %v5537_v28 }
0x1330   :  { %v5532_v50 = vmul.f32 0.5, %v5524_v17 }
0x1331   :  { %5692 = vmatmul.bf16.gmra.mxu0 %v5578_v34 }
0x1332   :  { %v5540_v59 = vmul.f32 %v5532_v50, %v5467_v48 }
0x1334   :  { %v5579_v15 = vpack.c.bf16 %v5540_v59, %v5538_v26 }
0x1336   :  { %5711 = vmatmul.bf16.gmra.mxu2 %v5579_v15 }
0x1385   :  { %v5117_v37 = vpop.f32.mrf.mxu0 }
0x138d   :  { %v5118_v24 = vpop.f32.mrf.mxu0 }
0x139e   :  { %v5688_v39 = vpop.f32.mrf.mxu0 }
0x139f   :  { %v5689_v11 = vadd.f32 %v7442_v53, %v5688_v39 }
0x13a6   :  { %v5690_v44 = vpop.f32.mrf.mxu0 }
0x13a7   :  { %v5691_v56 = vadd.f32 %v7442_v53, %v5690_v44 }
0x13a9   :  { %v5707_v2 = vpop.f32.mrf.mxu2 }
0x13aa   :  { %v5708_v25 = vadd.f32 %v5707_v2, %v5689_v11  ;;  %v7149_v2 = vld [vmem:[%s6032_s12 + $0x18] sm:$0xff] }
0x13ab   :  { %5973 = vmatpush.bf16.msra.mxu3 %v7149_v2 }
0x13ac   :  { %5725 = vrot.lane.b32.xlu1 %v5708_v25, %s7761_s18  ;;  %v7148_v25 = vld [vmem:[%s6032_s12 + $0x10] sm:$0xff] }
0x13ae   :  { %v5693_v51 = vpop.f32.mrf.mxu0 }
0x13af   :  { %v5694_v10 = vadd.f32 %v7442_v53, %v5693_v51  ;;  %5974 = vmatpush.bf16.msra.mxu3 %v7148_v25 }
0x13b1   :  { %v5709_v4 = vpop.f32.mrf.mxu2 }
0x13b2   :  { %v5710_v0 = vadd.f32 %v5709_v4, %v5691_v56  ;;  %v7147_v56 = vld [vmem:[%s6032_s12 + $0x8] sm:$0xff] }
0x13b3   :  { %5975 = vmatpush.bf16.msra.mxu3 %v7147_v56 }
0x13b4   :  { %5727 = vrot.lane.b32.xlu2 %v5710_v0, %s7761_s18  ;;  %v7146_v0 = vld [vmem:[%s6032_s12] sm:$0xff] }
0x13b6   :  { %v5695_v16 = vpop.f32.mrf.mxu0 }
0x13b7   :  { %v5696_v42 = vadd.f32 %v7442_v53, %v5695_v16  ;;  %5976 = vmatpush.bf16.msra.mxu3 %v7146_v0 }
0x13b9   :  { %v5712_v12 = vpop.f32.mrf.mxu2 }
0x13ba   :  { %v5713_v55 = vadd.f32 %v5712_v12, %v5694_v10 }
0x13bc   :  { %5729 = vrot.lane.b32.xlu0 %v5713_v55, %s7761_s18 }
0x13c1   :  { %v5714_v48 = vpop.f32.mrf.mxu2 }
0x13c2   :  { %v5715_v29 = vadd.f32 %v5714_v48, %v5696_v42 }
0x13c4   :  { %5731 = vrot.lane.b32.xlu2 %v5715_v29, %s7761_s18 }
0x140e   :  { %v5728_v35 = vpop.permute.xlu2 %5727 }
0x140f   :  { %v5738_v61 = vmul.f32 %v5728_v35, %v5717_v62 }
0x1411   :  { %5747 = vrot.lane.b32.xlu2 %v5738_v61, %s7761_s18 }
0x141e   :  { %v5732_v21 = vpop.permute.xlu2 %5731  ;;  %v5726_v41 = vpop.permute.xlu1 %5725 }
0x141f   :  { %v5740_v58 = vmul.f32 %v5732_v21, %v5718_v6  ;;  %v5737_v33 = vmul.f32 %v5726_v41, %v5717_v62 }
0x1421   :  { %5751 = vrot.lane.b32.xlu2 %v5740_v58, %s7761_s18  ;;  %5745 = vrot.lane.b32.xlu0 %v5737_v33, %s7761_s18 }
0x142e   :  { %v5730_v60 = vpop.permute.xlu0 %5729 }
0x142f   :  { %v5739_v43 = vmul.f32 %v5730_v60, %v5718_v6 }
0x1431   :  { %5749 = vrot.lane.b32.xlu0 %v5739_v43, %s7761_s18 }
0x146b   :  { %v5748_v20 = vpop.permute.xlu2 %5747 }
0x146c   :  { %v5758_v1 = vadd.f32 %v5748_v20, %v9729_v32 }
0x146e   :  { %v5816_v49 = vsel %vm259_vm4, %v5758_v1, 0.0 }
0x146f   :  { %5817 = vadd.xlane.f32.xlu0 %v5816_v49 }
0x147b   :  { %v5752_v5 = vpop.permute.xlu2 %5751 }
0x147c   :  { %v5760_v18 = vadd.f32 %v5752_v5, %v9740_v40  ;;  %v7441_v40 = vld [vmem:[%s9833_s8] ss:$0 sm:$0xff] }
0x147d   :  { %v9919_v31 = vadd.f32 %v7441_v40, %v9886_v30 }
0x147e   :  { %v5822_v54 = vsel %vm259_vm4, %v5760_v18, 0.0 }
0x147f   :  { %v5811_v24 = vrot.slane %v9919_v31, 1  ;;  %v5901_v43 = vadd.f32 1.0, %v9919_v31 }
0x1481   :  { %v5914_v39 = vperm.slane %v5811_v24, 0 }
0x1493   :  { %v5746_v46 = vpop.permute.xlu0 %5745 }
0x1494   :  { %v5757_v38 = vadd.f32 %v5746_v46, %v9723_v7 }
0x1496   :  { %v5813_v52 = vsel %vm259_vm4, %v5757_v38, 0.0 }
0x1497   :  { %5814 = vadd.xlane.f32.xlu1 %v5813_v52 }
0x149f   :  { %5823 = vadd.xlane.f32.xlu1 %v5822_v54 }
0x14a3   :  { %v5750_v3 = vpop.permute.xlu0 %5749 }
0x14a4   :  { %v5759_v45 = vadd.f32 %v5750_v3, %v9734_v14  ;;  %v5913_v14 = vperm.slane %v9919_v31, 0  ;;  %v7443_v31 = vld [vmem:[%s9945_s21] ss:$0 sm:$0xff] }
0x14a6   :  { %v5819_v32 = vsel %vm259_vm4, %v5759_v45, 0.0 }
0x14a7   :  { %5820 = vadd.xlane.f32.xlu2 %v5819_v32 }
0x14e2   :  { %v5818_v22 = vpop.xlane.xlu0 %5817 }
0x14e3   :  { %v5826_v8 = vmul.f32 %v5818_v22, %v7875_v19 }
0x14e5   :  { %v9912_v7 = vsub.f32 %v5758_v1, %v5826_v8 }
0x14e7   :  { %v5834_v57 = vmul.f32 %v9912_v7, %v9912_v7 }
0x14e9   :  { %v5840_v47 = vsel %vm259_vm4, %v5834_v57, 0.0 }
0x14ea   :  { %5841 = vadd.xlane.f32.xlu2 %v5840_v47 }
0x1502   :  { %5915 = vrot.lane.b32.xlu2 %v5913_v14, %s7761_s18 }
0x150a   :  { %v5815_v9 = vpop.xlane.xlu1 %5814 }
0x150b   :  { %v5825_v63 = vmul.f32 %v5815_v9, %v7875_v19 }
0x150d   :  { %v9924_v36 = vsub.f32 %v5757_v38, %v5825_v63 }
0x150f   :  { %v5833_v23 = vmul.f32 %v9924_v36, %v9924_v36 }
0x1511   :  { %v5837_v28 = vsel %vm259_vm4, %v5833_v23, 0.0 }
0x1512   :  { %5838 = vadd.xlane.f32.xlu0 %v5837_v28  ;;  %v5824_v27 = vpop.xlane.xlu1 %5823 }
0x1513   :  { %v5828_v17 = vmul.f32 %v5824_v27, %v7875_v19 }
0x1515   :  { %v9930_v30 = vsub.f32 %v5760_v18, %v5828_v17  ;;  %v5905_v18 = vperm.slane %v5901_v43, 0  ;;  %v5902_v17 = vadd.f32 1.0, %v5811_v24 }
0x1517   :  { %v5836_v13 = vmul.f32 %v9930_v30, %v9930_v30 }
0x1519   :  { %v5846_v34 = vsel %vm259_vm4, %v5836_v13, 0.0 }
0x151a   :  { %5847 = vadd.xlane.f32.xlu0 %v5846_v34  ;;  %v5821_v50 = vpop.xlane.xlu2 %5820 }
0x151b   :  { %v5827_v26 = vmul.f32 %v5821_v50, %v7875_v19 }
0x151d   :  { %v9936_v59 = vsub.f32 %v5759_v45, %v5827_v26 }
0x151f   :  { %v5835_v15 = vmul.f32 %v9936_v59, %v9936_v59 }
0x1521   :  { %v5843_v37 = vsel %vm259_vm4, %v5835_v15, 0.0  ;;  %v5906_v15 = vperm.slane %v5902_v17, 0 }
0x1522   :  { %5844 = vadd.xlane.f32.xlu1 %v5843_v37 }
0x153b   :  { %5917 = vrot.lane.b32.xlu1 %v5914_v39, %s7761_s18  ;;  %s7786_s18 = smov 39  }
0x153c   :  { %s6034_s19 = sld [smem:[%s9974_s0 + %s7786_s18]]  }
0x155d   :  { %v5842_v53 = vpop.xlane.xlu2 %5841 }
0x155e   :  { %v5850_v11 = vmul.f32 %v5842_v53, %v7875_v19 }
0x1560   :  { %v5854_v44 = vadd.f32 1e-06, %v5850_v11 }
0x1562   :  { %7734 = vrsqrt.f32 %v5854_v44  ;;  %vm5873_vm2 = vweird.f32 %v5854_v44 }
0x1568   :  { %v7735_v4 = vpop.eup %7734 }
0x1569   :  { %v5868_v51 = vmul.f32 %v7735_v4, %v5854_v44  ;;  %vm5874_vm10 = vweird.f32 %v7735_v4 }
0x156a   :  { %vm5875_vm0 = vmor %vm5873_vm2, %vm5874_vm10 }
0x156b   :  { %v5869_v10 = vmul.f32 %v7735_v4, %v5868_v51 }
0x156d   :  { %v5870_v42 = vmul.f32 0.5, %v5869_v10 }
0x156f   :  { %v5871_v48 = vsub.f32 1.5, %v5870_v42 }
0x1571   :  { %v5872_v6 = vmul.f32 %v7735_v4, %v5871_v48 }
0x1573   :  { %v5876_v58 = vsel %vm5875_vm0, %v7735_v4, %v5872_v6 }
0x1574   :  { %v5898_v46 = vmul.f32 %v5876_v58, %v9912_v7 }
0x1576   :  { %v5910_v45 = vmul.f32 %v5905_v18, %v5898_v46 }
0x1585   :  { %v5839_v12 = vpop.xlane.xlu0 %5838 }
0x1586   :  { %v5849_v55 = vmul.f32 %v5839_v12, %v7875_v19 }
0x1588   :  { %v5853_v16 = vadd.f32 1e-06, %v5849_v55 }
0x158a   :  { %7736 = vrsqrt.f32 %v5853_v16  ;;  %vm5863_vm9 = vweird.f32 %v5853_v16 }
0x158d   :  { %v5848_v29 = vpop.xlane.xlu0 %5847 }
0x158e   :  { %v5852_v62 = vmul.f32 %v5848_v29, %v7875_v19 }
0x1590   :  { %v7737_v35 = vpop.eup %7736  ;;  %v5856_v61 = vadd.f32 1e-06, %v5852_v62 }
0x1591   :  { %v5858_v21 = vmul.f32 %v7737_v35, %v5853_v16  ;;  %vm5864_vm1 = vweird.f32 %v7737_v35 }
0x1592   :  { %7738 = vrsqrt.f32 %v5856_v61  ;;  %vm5865_vm3 = vmor %vm5863_vm9, %vm5864_vm1  ;;  %vm5893_vm6 = vweird.f32 %v5856_v61 }
0x1593   :  { %v5859_v41 = vmul.f32 %v7737_v35, %v5858_v21 }
0x1595   :  { %v5860_v33 = vmul.f32 0.5, %v5859_v41  ;;  %v5845_v60 = vpop.xlane.xlu1 %5844 }
0x1596   :  { %v5851_v20 = vmul.f32 %v5845_v60, %v7875_v19  ;;  %v5916_v19 = vpop.permute.xlu2 %5915 }
0x1597   :  { %v5861_v1 = vsub.f32 1.5, %v5860_v33  ;;  %v5922_v40 = vadd.f32 %v5916_v19, %v5910_v45 }
0x1598   :  { %v7739_v49 = vpop.eup %7738  ;;  %v5855_v38 = vadd.f32 1e-06, %v5851_v20 }
0x1599   :  { %v5862_v52 = vmul.f32 %v7737_v35, %v5861_v1  ;;  %v5888_v5 = vmul.f32 %v7739_v49, %v5856_v61  ;;  %vm5894_vm5 = vweird.f32 %v7739_v49 }
0x159a   :  { %7740 = vrsqrt.f32 %v5855_v38  ;;  %vm5895_vm7 = vmor %vm5893_vm6, %vm5894_vm5  ;;  %vm5883_vm12 = vweird.f32 %v5855_v38 }
0x159b   :  { %v5866_v54 = vsel %vm5865_vm3, %v7737_v35, %v5862_v52  ;;  %v5889_v3 = vmul.f32 %v7739_v49, %v5888_v5 }
0x159c   :  { %v5897_v32 = vmul.f32 %v5866_v54, %v9924_v36 }
0x159d   :  { %v5890_v22 = vmul.f32 0.5, %v5889_v3 }
0x159e   :  { %v5909_v8 = vmul.f32 %v5905_v18, %v5897_v32 }
0x159f   :  { %v5891_v57 = vsub.f32 1.5, %v5890_v22 }
0x15a0   :  { %v7741_v47 = vpop.eup %7740  ;;  %v5921_v14 = vadd.f32 %v5916_v19, %v5909_v8 }
0x15a1   :  { %v5878_v7 = vmul.f32 %v7741_v47, %v5855_v38  ;;  %v5892_v23 = vmul.f32 %v7739_v49, %v5891_v57  ;;  %vm5884_vm11 = vweird.f32 %v7741_v47 }
0x15a2   :  { %v5934_v9 = vpack.c.bf16 %v5922_v40, %v5921_v14  ;;  %vm5885_vm13 = vmor %vm5883_vm12, %vm5884_vm11 }
0x15a3   :  { %v5879_v63 = vmul.f32 %v7741_v47, %v5878_v7  ;;  %v5896_v36 = vsel %vm5895_vm7, %v7739_v49, %v5892_v23 }
0x15a4   :  { %6965 = vmatmul.msk.bf16.vlgmr.msra.gmra.mxu3 %vm259_vm4, %v5934_v9  ;;  %v5900_v34 = vmul.f32 %v5896_v36, %v9930_v30 }
0x15a5   :  { %v5880_v28 = vmul.f32 0.5, %v5879_v63 }
0x15a6   :  { %v5912_v53 = vmul.f32 %v5906_v15, %v5900_v34 }
0x15a7   :  { %v5881_v27 = vsub.f32 1.5, %v5880_v28 }
0x15a9   :  { %v5882_v13 = vmul.f32 %v7741_v47, %v5881_v27 }
0x15ab   :  { %v5886_v50 = vsel %vm5885_vm13, %v7741_v47, %v5882_v13 }
0x15ac   :  { %v5899_v26 = vmul.f32 %v5886_v50, %v9936_v59 }
0x15ad   :  { %v5918_v37 = vpop.permute.xlu1 %5917 }
0x15ae   :  { %v5911_v39 = vmul.f32 %v5906_v15, %v5899_v26  ;;  %v5924_v44 = vadd.f32 %v5918_v37, %v5912_v53 }
0x15b0   :  { %v5923_v11 = vadd.f32 %v5918_v37, %v5911_v39 }
0x15b2   :  { %v5935_v2 = vpack.c.bf16 %v5924_v44, %v5923_v11 }
0x15b4   :  { %6966 = vmatmul.msk.bf16.gmra.mxu3 %vm259_vm4, %v5935_v2 }
0x1627   :  { %v5978_v24 = vpop.f32.mrf.mxu3 }
0x1628   :  { %v5979_v30 = vadd.f32 %v7443_v31, %v5978_v24 }
0x162a   :  { %5988 = vst.msk [vmem:[%s6034_s19] sm:$0xff] %vm1311_vm8, %v5979_v30 }
0x162f   :  { %v5980_v59 = vpop.f32.mrf.mxu3 }
0x1630   :  { %v5981_v25 = vadd.f32 %v7443_v31, %v5980_v59 }
0x1632   :  { %5989 = vst.msk [vmem:[%s6034_s19 + $0x8] sm:$0xff] %vm1311_vm8, %v5981_v25 }
0x1637   :  { %v5983_v56 = vpop.f32.mrf.mxu3 }
0x1638   :  { %v5984_v4 = vadd.f32 %v7443_v31, %v5983_v56 }
0x163a   :  { %5990 = vst.msk [vmem:[%s6034_s19 + $0x10] sm:$0xff] %vm1311_vm8, %v5984_v4 }
0x163f   :  { %v5985_v0 = vpop.f32.mrf.mxu3 }
0x1640   :  { %v5986_v51 = vadd.f32 %v7443_v31, %v5985_v0 }
0x1642   :  { %5991 = vst.msk [vmem:[%s6034_s19 + $0x18] sm:$0xff] %vm1311_vm8, %v5986_v51 }

</bundles_post_ra>
